<compile_context>
chip_gen: v5e
topology: v5e:2x2
jax: 0.10.0
libtpu: 0.0.40
codegen_flags: <defaults>
</compile_context>

<pallas_src>
import math

import jax
import jax.numpy as jnp
import numpy as np
from jax import lax
from jax.experimental import pallas as pl
from jax.experimental.pallas import tpu as pltpu


def get_relative_position_index(win_h, win_w):
    coords = np.stack(
        np.meshgrid(np.arange(win_h), np.arange(win_w), indexing="ij")
    )  # (2, wh, ww)
    coords_flatten = coords.reshape(2, -1)  # (2, N)
    relative_coords = coords_flatten[:, :, None] - coords_flatten[:, None, :]  # (2,N,N)
    relative_coords = relative_coords.transpose(1, 2, 0).copy()  # (N,N,2)
    relative_coords[:, :, 0] += win_h - 1
    relative_coords[:, :, 1] += win_w - 1
    relative_coords[:, :, 0] *= 2 * win_w - 1
    return relative_coords.sum(-1)  # (N, N)


def _pick_window_block(n_windows, seq, channels, num_heads, head_dim,
                       budget_bytes=6 * 1024 * 1024, max_block=256):
    """Largest divisor of n_windows whose per-step activation footprint fits
    a conservative VMEM budget; prefers >= 2 grid steps (megacore)."""
    attn_dim = num_heads * head_dim
    # Per-window f32 bytes: x/out blocks (double-buffered), q/k/v/qn/kn/o,
    # scores + exp(scores) + softmax temporaries.
    per_window = 4 * (4 * seq * channels
                      + 8 * seq * attn_dim
                      + 3 * num_heads * seq * seq)
    cap = max(1, budget_bytes // max(per_window, 1))
    cap = min(int(cap), max_block, n_windows)
    fallback = 1
    for wb in range(cap, 0, -1):
        if n_windows % wb == 0:
            if fallback == 1:
                fallback = wb
            if n_windows // wb >= 2:
                return wb
    return fallback


def _window_attn_kernel(wb, seq, channels, num_heads, head_dim):
    attn_dim = num_heads * head_dim
    m = wb * seq
    eps2 = 1e-24  # (F.normalize default eps = 1e-12) ** 2

    def kernel(x_ref, wq_ref, wk_ref, wv_ref, bq_ref, bk_ref, bv_ref,
               wp_ref, bp_ref, scale_ref, bias_ref, o_ref):
        # (WB, N, C) -> (WB*N, C): one big MXU matmul for all windows in block
        # (leading-dim merge -> free reshape).
        x2 = x_ref[...].reshape(m, channels)

        # Three lane-aligned projections (avoids sub-lane slicing of fused qkv).
        q = jnp.dot(x2, wq_ref[...], preferred_element_type=jnp.float32) + bq_ref[...]
        k = jnp.dot(x2, wk_ref[...], preferred_element_type=jnp.float32) + bk_ref[...]
        v = jnp.dot(x2, wv_ref[...], preferred_element_type=jnp.float32) + bv_ref[...]

        def to_heads(t):  # (WB*N, AD) -> (WB, nh, N, hd)
            return t.reshape(wb, seq, num_heads, head_dim).transpose(0, 2, 1, 3)

        q4, k4, v4 = to_heads(q), to_heads(k), to_heads(v)

        # Cosine attention: L2-normalize along head_dim (rsqrt -> EUP slot).
        qn = q4 * lax.rsqrt(jnp.sum(q4 * q4, axis=-1, keepdims=True) + eps2)
        kn = k4 * lax.rsqrt(jnp.sum(k4 * k4, axis=-1, keepdims=True) + eps2)

        # Fold per-head logit scale into the (small) normalized q tensor.
        qn = qn * scale_ref[...].reshape(1, num_heads, 1, 1)

        bh = wb * num_heads
        qf = qn.reshape(bh, seq, head_dim)
        kf = kn.reshape(bh, seq, head_dim)
        vf = v4.reshape(bh, seq, head_dim)

        # Batched scores over the fused (window, head) batch dim.
        s = jnp.einsum("bqd,bkd->bqk", qf, kf,
                       preferred_element_type=jnp.float32)      # (WB*nh, N, N)

        # Relative position bias (per head, shared across windows).
        s = (s.reshape(wb, num_heads, seq, seq) + bias_ref[...][None]
             ).reshape(bh, seq, seq)

        # Numerically stable softmax; probabilities kept UNnormalized here and
        # the 1/l scale applied to the smaller (N, hd) PV output below.
        s = s - jnp.max(s, axis=-1, keepdims=True)
        p = jnp.exp(s)
        l = jnp.sum(p, axis=-1, keepdims=True)                  # (WB*nh, N, 1)
        r = pl.reciprocal(l, approx=True)
        r = r * (2.0 - l * r)            # Newton step -> near-f32 accuracy

        o = jnp.einsum("bqk,bkd->bqd", p, vf,
                       preferred_element_type=jnp.float32) * r  # (WB*nh, N, hd)
        o = o.reshape(wb, num_heads, seq, head_dim).transpose(0, 2, 1, 3)
        o = o.reshape(m, attn_dim)

        y = jnp.dot(o, wp_ref[...], preferred_element_type=jnp.float32) + bp_ref[...]
        o_ref[...] = y.reshape(wb, seq, channels)

    return kernel


def window_attention_pallas(x, params, num_heads, head_dim, max_window_block=256):
    """x: (B_, N, C) float32.  mask=None path only."""
    B_, N, C = x.shape
    attn_dim = num_heads * head_dim

    # Split fused qkv weight/bias into three lane-aligned operands.
    wqkv = params["wqkv"]                                  # (3*AD, C) torch layout
    wq = wqkv[0 * attn_dim:1 * attn_dim].T                 # (C, AD)
    wk = wqkv[1 * attn_dim:2 * attn_dim].T
    wv = wqkv[2 * attn_dim:3 * attn_dim].T
    bqkv = params["bqkv"]
    bq = bqkv[0 * attn_dim:1 * attn_dim].reshape(1, attn_dim)
    bk = bqkv[1 * attn_dim:2 * attn_dim].reshape(1, attn_dim)
    bv = bqkv[2 * attn_dim:3 * attn_dim].reshape(1, attn_dim)
    wproj_t = params["wproj"].T                            # (AD, C)
    bproj = params["bproj"].reshape(1, C)                  # (1, C)

    # logit scale: exp(clamp(logit_scale, max=log(1/0.01)))  -> (num_heads, 1)
    scale = jnp.exp(jnp.minimum(params["logit_scale"].reshape(num_heads, 1),
                                math.log(1.0 / 0.01))).astype(jnp.float32)

    # relative position bias: gather from table -> (num_heads, N, N)
    rel_idx = params["rel_pos_index"].reshape(-1)          # (N*N,) int32
    bias = params["rel_pos_table"][rel_idx].reshape(N, N, num_heads)
    bias = jnp.transpose(bias, (2, 0, 1)).astype(jnp.float32)

    # Batch many windows per grid step; block size chosen from a VMEM budget,
    # keeping >= 2 grid steps where possible (megacore).
    wb = _pick_window_block(B_, N, C, num_heads, head_dim,
                            max_block=max_window_block)
    grid = (B_ // wb,)

    kernel = _window_attn_kernel(wb, N, C, num_heads, head_dim)

    out = pl.pallas_call(
        kernel,
        out_shape=jax.ShapeDtypeStruct((B_, N, C), jnp.float32),
        grid_spec=pltpu.PrefetchScalarGridSpec(
            num_scalar_prefetch=0,
            grid=grid,
            in_specs=[
                pl.BlockSpec((wb, N, C), lambda b: (b, 0, 0)),            # x block
                pl.BlockSpec((C, attn_dim), lambda b: (0, 0)),            # Wq^T
                pl.BlockSpec((C, attn_dim), lambda b: (0, 0)),            # Wk^T
                pl.BlockSpec((C, attn_dim), lambda b: (0, 0)),            # Wv^T
                pl.BlockSpec((1, attn_dim), lambda b: (0, 0)),            # bq
                pl.BlockSpec((1, attn_dim), lambda b: (0, 0)),            # bk
                pl.BlockSpec((1, attn_dim), lambda b: (0, 0)),            # bv
                pl.BlockSpec((attn_dim, C), lambda b: (0, 0)),            # Wproj^T
                pl.BlockSpec((1, C), lambda b: (0, 0)),                   # bproj
                pl.BlockSpec((num_heads, 1), lambda b: (0, 0)),           # logit scale
                pl.BlockSpec((num_heads, N, N), lambda b: (0, 0, 0)),     # rel bias
            ],
            out_specs=pl.BlockSpec((wb, N, C), lambda b: (b, 0, 0)),
        ),
        compiler_params=pltpu.CompilerParams(
            dimension_semantics=("parallel",),
            vmem_limit_bytes=32 * 1024 * 1024,
        ),
    )(x, wq, wk, wv, bq, bk, bv, wproj_t, bproj, scale, bias)
    return out


def window_attention_ref(x, params, num_heads, head_dim):
    """Pure-JAX reference mirroring the PyTorch forward (mask=None)."""
    B_, N, C = x.shape
    attn_dim = num_heads * head_dim
    qkv = x @ params["wqkv"].T + params["bqkv"]               # (B_, N, 3AD)
    qkv = qkv.reshape(B_, N, 3, num_heads, head_dim).transpose(2, 0, 3, 1, 4)
    q, k, v = qkv[0], qkv[1], qkv[2]                          # (B_, nh, N, hd)

    def l2n(t):
        return t / jnp.maximum(jnp.linalg.norm(t, axis=-1, keepdims=True), 1e-12)

    attn = jnp.einsum("bhnd,bhmd->bhnm", l2n(q), l2n(k))
    logit_scale = jnp.exp(
        jnp.minimum(params["logit_scale"], math.log(1.0 / 0.01)))  # (nh,1,1)
    attn = attn * logit_scale[None]
    rel_idx = params["rel_pos_index"].reshape(-1)
    bias = params["rel_pos_table"][rel_idx].reshape(N, N, num_heads)
    bias = jnp.transpose(bias, (2, 0, 1))[None]
    attn = attn + bias
    attn = jax.nn.softmax(attn, axis=-1)
    out = jnp.einsum("bhnm,bhmd->bhnd", attn, v)
    out = out.transpose(0, 2, 1, 3).reshape(B_, N, attn_dim)
    return out @ params["wproj"].T + params["bproj"]


if __name__ == "__main__":
    # Small config consistent with the module: dim=C=32, window 4x4 -> N=16.
    dim = 32
    num_heads = 4
    head_dim = dim // num_heads
    attn_dim = num_heads * head_dim
    win_h = win_w = 4
    N = win_h * win_w
    B_ = 8  # number of windows (batched 4 per grid step -> grid of 2)

    key = jax.random.PRNGKey(0)
    k_x, k_w1, k_b1, k_w2, k_b2, k_tab = jax.random.split(key, 6)

    x = jax.random.normal(k_x, (B_, N, dim), dtype=jnp.float32)

    params = {
        "wqkv": 0.05 * jax.random.normal(k_w1, (3 * attn_dim, dim), jnp.float32),
        "bqkv": 0.05 * jax.random.normal(k_b1, (3 * attn_dim,), jnp.float32),
        "wproj": 0.05 * jax.random.normal(k_w2, (dim, attn_dim), jnp.float32),
        "bproj": 0.05 * jax.random.normal(k_b2, (dim,), jnp.float32),
        "logit_scale": jnp.log(10.0 * jnp.ones((num_heads, 1, 1), jnp.float32)),
        "rel_pos_table": 0.02 * jax.random.normal(
            k_tab, ((2 * win_h - 1) * (2 * win_w - 1), num_heads), jnp.float32),
        "rel_pos_index": jnp.asarray(
            get_relative_position_index(win_h, win_w), dtype=jnp.int32),
    }

    out = window_attention_pallas(x, params, num_heads, head_dim)
    out = jax.block_until_ready(out)

    ref = window_attention_ref(x, params, num_heads, head_dim)
    np.testing.assert_allclose(np.asarray(out), np.asarray(ref),
                               rtol=1e-3, atol=1e-4)
    print("KERNEL_OK")
</pallas_src>

<mosaic_0001>
module attributes {stable_mosaic.version = 11 : i64} {
  func.func @kernel(%arg0: i32, %arg1: memref<4x16x32xf32, #tpu.memory_space<vmem>>, %arg2: memref<32x32xf32, #tpu.memory_space<vmem>>, %arg3: memref<32x32xf32, #tpu.memory_space<vmem>>, %arg4: memref<32x32xf32, #tpu.memory_space<vmem>>, %arg5: memref<1x32xf32, #tpu.memory_space<vmem>>, %arg6: memref<1x32xf32, #tpu.memory_space<vmem>>, %arg7: memref<1x32xf32, #tpu.memory_space<vmem>>, %arg8: memref<32x32xf32, #tpu.memory_space<vmem>>, %arg9: memref<1x32xf32, #tpu.memory_space<vmem>>, %arg10: memref<4x1xf32, #tpu.memory_space<vmem>>, %arg11: memref<4x16x16xf32, #tpu.memory_space<vmem>>, %arg12: memref<4x16x32xf32, #tpu.memory_space<vmem>>) attributes {dimension_semantics = [#tpu.dimension_semantics<parallel>], iteration_bounds = array<i64: 2>, scalar_prefetch = 0 : i64, scratch_operands = 0 : i64, tpu.core_type = #tpu.core_type<tc>, window_params = [{transform_indices = @transform_0, window_bounds = array<i64: 4, 16, 32>}, {pipeline_mode = #tpu.pipeline_mode<synchronous>, transform_indices = @transform_1, window_bounds = array<i64: 32, 32>}, {pipeline_mode = #tpu.pipeline_mode<synchronous>, transform_indices = @transform_2, window_bounds = array<i64: 32, 32>}, {pipeline_mode = #tpu.pipeline_mode<synchronous>, transform_indices = @transform_3, window_bounds = array<i64: 32, 32>}, {pipeline_mode = #tpu.pipeline_mode<synchronous>, transform_indices = @transform_4, window_bounds = array<i64: 1, 32>}, {pipeline_mode = #tpu.pipeline_mode<synchronous>, transform_indices = @transform_5, window_bounds = array<i64: 1, 32>}, {pipeline_mode = #tpu.pipeline_mode<synchronous>, transform_indices = @transform_6, window_bounds = array<i64: 1, 32>}, {pipeline_mode = #tpu.pipeline_mode<synchronous>, transform_indices = @transform_7, window_bounds = array<i64: 32, 32>}, {pipeline_mode = #tpu.pipeline_mode<synchronous>, transform_indices = @transform_8, window_bounds = array<i64: 1, 32>}, {pipeline_mode = #tpu.pipeline_mode<synchronous>, transform_indices = @transform_9, window_bounds = array<i64: 4, 1>}, {pipeline_mode = #tpu.pipeline_mode<synchronous>, transform_indices = @transform_10, window_bounds = array<i64: 4, 16, 16>}, {transform_indices = @transform_11, window_bounds = array<i64: 4, 16, 32>}]} {
    %c0 = arith.constant 0 : index
    %c0_0 = arith.constant 0 : index
    %c0_1 = arith.constant 0 : index
    %0 = vector.load %arg1[%c0, %c0_0, %c0_1] : memref<4x16x32xf32, #tpu.memory_space<vmem>>, vector<4x16x32xf32>
    %1 = vector.shape_cast %0 : vector<4x16x32xf32> to vector<64x32xf32>
    %c0_2 = arith.constant 0 : index
    %c0_3 = arith.constant 0 : index
    %2 = vector.load %arg2[%c0_2, %c0_3] : memref<32x32xf32, #tpu.memory_space<vmem>>, vector<32x32xf32>
    %cst = arith.constant dense<0.000000e+00> : vector<64x32xf32>
    %3 = tpu.matmul %1, %2, %cst {dimension_numbers = #tpu.dot_dimension_numbers<[1], [0], [0], [1], [0, 0, 1, 1], [], []>} : vector<64x32xf32>, vector<32x32xf32>, vector<64x32xf32> -> vector<64x32xf32>
    %c0_4 = arith.constant 0 : index
    %c0_5 = arith.constant 0 : index
    %4 = vector.load %arg5[%c0_4, %c0_5] : memref<1x32xf32, #tpu.memory_space<vmem>>, vector<1x32xf32>
    %5 = vector.broadcast %4 : vector<1x32xf32> to vector<64x32xf32>
    %6 = arith.addf %3, %5 : vector<64x32xf32>
    %c0_6 = arith.constant 0 : index
    %c0_7 = arith.constant 0 : index
    %7 = vector.load %arg3[%c0_6, %c0_7] : memref<32x32xf32, #tpu.memory_space<vmem>>, vector<32x32xf32>
    %cst_8 = arith.constant dense<0.000000e+00> : vector<64x32xf32>
    %8 = tpu.matmul %1, %7, %cst_8 {dimension_numbers = #tpu.dot_dimension_numbers<[1], [0], [0], [1], [0, 0, 1, 1], [], []>} : vector<64x32xf32>, vector<32x32xf32>, vector<64x32xf32> -> vector<64x32xf32>
    %c0_9 = arith.constant 0 : index
    %c0_10 = arith.constant 0 : index
    %9 = vector.load %arg6[%c0_9, %c0_10] : memref<1x32xf32, #tpu.memory_space<vmem>>, vector<1x32xf32>
    %10 = vector.broadcast %9 : vector<1x32xf32> to vector<64x32xf32>
    %11 = arith.addf %8, %10 : vector<64x32xf32>
    %c0_11 = arith.constant 0 : index
    %c0_12 = arith.constant 0 : index
    %12 = vector.load %arg4[%c0_11, %c0_12] : memref<32x32xf32, #tpu.memory_space<vmem>>, vector<32x32xf32>
    %cst_13 = arith.constant dense<0.000000e+00> : vector<64x32xf32>
    %13 = tpu.matmul %1, %12, %cst_13 {dimension_numbers = #tpu.dot_dimension_numbers<[1], [0], [0], [1], [0, 0, 1, 1], [], []>} : vector<64x32xf32>, vector<32x32xf32>, vector<64x32xf32> -> vector<64x32xf32>
    %c0_14 = arith.constant 0 : index
    %c0_15 = arith.constant 0 : index
    %14 = vector.load %arg7[%c0_14, %c0_15] : memref<1x32xf32, #tpu.memory_space<vmem>>, vector<1x32xf32>
    %15 = vector.broadcast %14 : vector<1x32xf32> to vector<64x32xf32>
    %16 = arith.addf %13, %15 : vector<64x32xf32>
    %17 = vector.shape_cast %6 : vector<64x32xf32> to vector<4x16x4x8xf32>
    %18 = tpu.transpose %17, [0, 2, 1, 3] : vector<4x16x4x8xf32> -> vector<4x4x16x8xf32>
    %19 = vector.shape_cast %11 : vector<64x32xf32> to vector<4x16x4x8xf32>
    %20 = tpu.transpose %19, [0, 2, 1, 3] : vector<4x16x4x8xf32> -> vector<4x4x16x8xf32>
    %21 = vector.shape_cast %16 : vector<64x32xf32> to vector<4x16x4x8xf32>
    %22 = tpu.transpose %21, [0, 2, 1, 3] : vector<4x16x4x8xf32> -> vector<4x4x16x8xf32>
    %23 = arith.mulf %18, %18 : vector<4x4x16x8xf32>
    %cst_16 = arith.constant dense<0.000000e+00> : vector<4x4x16xf32>
    %24 = vector.multi_reduction <add>, %23, %cst_16 [3] : vector<4x4x16x8xf32> to vector<4x4x16xf32>
    %25 = vector.shape_cast %24 : vector<4x4x16xf32> to vector<4x4x16x1xf32>
    %cst_17 = arith.constant 1.000000e-24 : f32
    %26 = vector.broadcast %cst_17 : f32 to vector<4x4x16x1xf32>
    %27 = arith.addf %25, %26 : vector<4x4x16x1xf32>
    %28 = math.rsqrt %27 : vector<4x4x16x1xf32>
    %29 = vector.broadcast %28 : vector<4x4x16x1xf32> to vector<4x4x16x8xf32>
    %30 = arith.mulf %18, %29 : vector<4x4x16x8xf32>
    %31 = arith.mulf %20, %20 : vector<4x4x16x8xf32>
    %cst_18 = arith.constant dense<0.000000e+00> : vector<4x4x16xf32>
    %32 = vector.multi_reduction <add>, %31, %cst_18 [3] : vector<4x4x16x8xf32> to vector<4x4x16xf32>
    %33 = vector.shape_cast %32 : vector<4x4x16xf32> to vector<4x4x16x1xf32>
    %cst_19 = arith.constant 1.000000e-24 : f32
    %34 = vector.broadcast %cst_19 : f32 to vector<4x4x16x1xf32>
    %35 = arith.addf %33, %34 : vector<4x4x16x1xf32>
    %36 = math.rsqrt %35 : vector<4x4x16x1xf32>
    %37 = vector.broadcast %36 : vector<4x4x16x1xf32> to vector<4x4x16x8xf32>
    %38 = arith.mulf %20, %37 : vector<4x4x16x8xf32>
    %c0_20 = arith.constant 0 : index
    %c0_21 = arith.constant 0 : index
    %39 = vector.load %arg10[%c0_20, %c0_21] : memref<4x1xf32, #tpu.memory_space<vmem>>, vector<4x1xf32>
    %40 = vector.shape_cast %39 : vector<4x1xf32> to vector<1x4x1x1xf32>
    %41 = vector.broadcast %40 : vector<1x4x1x1xf32> to vector<4x4x16x8xf32>
    %42 = arith.mulf %30, %41 : vector<4x4x16x8xf32>
    %43 = vector.shape_cast %42 : vector<4x4x16x8xf32> to vector<16x16x8xf32>
    %44 = vector.shape_cast %38 : vector<4x4x16x8xf32> to vector<16x16x8xf32>
    %45 = vector.shape_cast %22 : vector<4x4x16x8xf32> to vector<16x16x8xf32>
    "tpu.trace_start"() <{level = 10 : i32, message = "bqd,bkd->bqk"}> : () -> ()
    %cst_22 = arith.constant dense<0.000000e+00> : vector<16x16x16xf32>
    %46 = tpu.matmul %43, %44, %cst_22 {dimension_numbers = #tpu.dot_dimension_numbers<[2], [2], [1], [1], [0, 0, 0, 1, 1, 1], [0], [0]>} : vector<16x16x8xf32>, vector<16x16x8xf32>, vector<16x16x16xf32> -> vector<16x16x16xf32>
    "tpu.trace_stop"() : () -> ()
    %47 = vector.shape_cast %46 : vector<16x16x16xf32> to vector<4x4x16x16xf32>
    %c0_23 = arith.constant 0 : index
    %c0_24 = arith.constant 0 : index
    %c0_25 = arith.constant 0 : index
    %48 = vector.load %arg11[%c0_23, %c0_24, %c0_25] : memref<4x16x16xf32, #tpu.memory_space<vmem>>, vector<4x16x16xf32>
    %49 = vector.shape_cast %48 : vector<4x16x16xf32> to vector<1x4x16x16xf32>
    %50 = vector.broadcast %49 : vector<1x4x16x16xf32> to vector<4x4x16x16xf32>
    %51 = arith.addf %47, %50 : vector<4x4x16x16xf32>
    %52 = vector.shape_cast %51 : vector<4x4x16x16xf32> to vector<16x16x16xf32>
    %cst_26 = arith.constant dense<0xFF800000> : vector<16x16xf32>
    %53 = vector.multi_reduction <maximumf>, %52, %cst_26 [2] : vector<16x16x16xf32> to vector<16x16xf32>
    %54 = vector.shape_cast %53 : vector<16x16xf32> to vector<16x16x1xf32>
    %55 = vector.broadcast %54 : vector<16x16x1xf32> to vector<16x16x16xf32>
    %56 = arith.subf %52, %55 : vector<16x16x16xf32>
    %57 = math.exp %56 : vector<16x16x16xf32>
    %cst_27 = arith.constant dense<0.000000e+00> : vector<16x16xf32>
    %58 = vector.multi_reduction <add>, %57, %cst_27 [2] : vector<16x16x16xf32> to vector<16x16xf32>
    %59 = vector.shape_cast %58 : vector<16x16xf32> to vector<16x16x1xf32>
    %60 = tpu.reciprocal %59 {approx = true} : vector<16x16x1xf32> -> vector<16x16x1xf32>
    %61 = arith.mulf %59, %60 : vector<16x16x1xf32>
    %cst_28 = arith.constant 2.000000e+00 : f32
    %62 = vector.broadcast %cst_28 : f32 to vector<16x16x1xf32>
    %63 = arith.subf %62, %61 : vector<16x16x1xf32>
    %64 = arith.mulf %60, %63 : vector<16x16x1xf32>
    "tpu.trace_start"() <{level = 10 : i32, message = "bqk,bkd->bqd"}> : () -> ()
    %cst_29 = arith.constant dense<0.000000e+00> : vector<16x16x8xf32>
    %65 = tpu.matmul %57, %45, %cst_29 {dimension_numbers = #tpu.dot_dimension_numbers<[2], [1], [1], [2], [0, 0, 0, 1, 1, 2], [0], [0]>} : vector<16x16x16xf32>, vector<16x16x8xf32>, vector<16x16x8xf32> -> vector<16x16x8xf32>
    "tpu.trace_stop"() : () -> ()
    %66 = vector.broadcast %64 : vector<16x16x1xf32> to vector<16x16x8xf32>
    %67 = arith.mulf %65, %66 : vector<16x16x8xf32>
    %68 = vector.shape_cast %67 : vector<16x16x8xf32> to vector<4x4x16x8xf32>
    %69 = tpu.transpose %68, [0, 2, 1, 3] : vector<4x4x16x8xf32> -> vector<4x16x4x8xf32>
    %70 = vector.shape_cast %69 : vector<4x16x4x8xf32> to vector<64x32xf32>
    %c0_30 = arith.constant 0 : index
    %c0_31 = arith.constant 0 : index
    %71 = vector.load %arg8[%c0_30, %c0_31] : memref<32x32xf32, #tpu.memory_space<vmem>>, vector<32x32xf32>
    %cst_32 = arith.constant dense<0.000000e+00> : vector<64x32xf32>
    %72 = tpu.matmul %70, %71, %cst_32 {dimension_numbers = #tpu.dot_dimension_numbers<[1], [0], [0], [1], [0, 0, 1, 1], [], []>} : vector<64x32xf32>, vector<32x32xf32>, vector<64x32xf32> -> vector<64x32xf32>
    %c0_33 = arith.constant 0 : index
    %c0_34 = arith.constant 0 : index
    %73 = vector.load %arg9[%c0_33, %c0_34] : memref<1x32xf32, #tpu.memory_space<vmem>>, vector<1x32xf32>
    %74 = vector.broadcast %73 : vector<1x32xf32> to vector<64x32xf32>
    %75 = arith.addf %72, %74 : vector<64x32xf32>
    %76 = vector.shape_cast %75 : vector<64x32xf32> to vector<4x16x32xf32>
    %c0_35 = arith.constant 0 : index
    %c0_36 = arith.constant 0 : index
    %c0_37 = arith.constant 0 : index
    %77 = vector.load %arg12[%c0_35, %c0_36, %c0_37] : memref<4x16x32xf32, #tpu.memory_space<vmem>>, vector<4x16x32xf32>
    tpu.vector_store %arg12[%c0_35, %c0_36, %c0_37], %76 {strides = array<i32>} : memref<4x16x32xf32, #tpu.memory_space<vmem>>, vector<4x16x32xf32>,
    return
  }
  func.func @transform_0(%arg0: i32) -> (i32, i32, i32) {
    %c0_i32 = arith.constant 0 : i32
    %c0_i32_0 = arith.constant 0 : i32
    %c0_i32_1 = arith.constant 0 : i32
    return %arg0, %c0_i32, %c0_i32_0 : i32, i32, i32
  }
  func.func @transform_1(%arg0: i32) -> (i32, i32) {
    %c0_i32 = arith.constant 0 : i32
    %c0_i32_0 = arith.constant 0 : i32
    %c0_i32_1 = arith.constant 0 : i32
    return %c0_i32, %c0_i32_0 : i32, i32
  }
  func.func @transform_2(%arg0: i32) -> (i32, i32) {
    %c0_i32 = arith.constant 0 : i32
    %c0_i32_0 = arith.constant 0 : i32
    %c0_i32_1 = arith.constant 0 : i32
    return %c0_i32, %c0_i32_0 : i32, i32
  }
  func.func @transform_3(%arg0: i32) -> (i32, i32) {
    %c0_i32 = arith.constant 0 : i32
    %c0_i32_0 = arith.constant 0 : i32
    %c0_i32_1 = arith.constant 0 : i32
    return %c0_i32, %c0_i32_0 : i32, i32
  }
  func.func @transform_4(%arg0: i32) -> (i32, i32) {
    %c0_i32 = arith.constant 0 : i32
    %c0_i32_0 = arith.constant 0 : i32
    %c0_i32_1 = arith.constant 0 : i32
    return %c0_i32, %c0_i32_0 : i32, i32
  }
  func.func @transform_5(%arg0: i32) -> (i32, i32) {
    %c0_i32 = arith.constant 0 : i32
    %c0_i32_0 = arith.constant 0 : i32
    %c0_i32_1 = arith.constant 0 : i32
    return %c0_i32, %c0_i32_0 : i32, i32
  }
  func.func @transform_6(%arg0: i32) -> (i32, i32) {
    %c0_i32 = arith.constant 0 : i32
    %c0_i32_0 = arith.constant 0 : i32
    %c0_i32_1 = arith.constant 0 : i32
    return %c0_i32, %c0_i32_0 : i32, i32
  }
  func.func @transform_7(%arg0: i32) -> (i32, i32) {
    %c0_i32 = arith.constant 0 : i32
    %c0_i32_0 = arith.constant 0 : i32
    %c0_i32_1 = arith.constant 0 : i32
    return %c0_i32, %c0_i32_0 : i32, i32
  }
  func.func @transform_8(%arg0: i32) -> (i32, i32) {
    %c0_i32 = arith.constant 0 : i32
    %c0_i32_0 = arith.constant 0 : i32
    %c0_i32_1 = arith.constant 0 : i32
    return %c0_i32, %c0_i32_0 : i32, i32
  }
  func.func @transform_9(%arg0: i32) -> (i32, i32) {
    %c0_i32 = arith.constant 0 : i32
    %c0_i32_0 = arith.constant 0 : i32
    %c0_i32_1 = arith.constant 0 : i32
    return %c0_i32, %c0_i32_0 : i32, i32
  }
  func.func @transform_10(%arg0: i32) -> (i32, i32, i32) {
    %c0_i32 = arith.constant 0 : i32
    %c0_i32_0 = arith.constant 0 : i32
    %c0_i32_1 = arith.constant 0 : i32
    %c0_i32_2 = arith.constant 0 : i32
    return %c0_i32, %c0_i32_0, %c0_i32_1 : i32, i32, i32
  }
  func.func @transform_11(%arg0: i32) -> (i32, i32, i32) {
    %c0_i32 = arith.constant 0 : i32
    %c0_i32_0 = arith.constant 0 : i32
    %c0_i32_1 = arith.constant 0 : i32
    return %arg0, %c0_i32, %c0_i32_0 : i32, i32, i32
  }
}

</mosaic_0001>

<bundles_post_ra>
// kernel: tpu_custom_call.1
= control target key start
LH: loop header
LB: loop body
LE: loop exit
PB: predicated region body
PF: predicated region fallthrough
CT: control target
= control target key end

     0   :  { %s13487_s0 = inlined_call_operand.hbm [shape: f32[8,16,32], index: 0, kind: input, shape index: {}]   ;;  %s13488_s1 = inlined_call_operand.hbm [shape: f32[32,32], index: 1, kind: input, shape index: {}]   ;;  %s13489_s2 = inlined_call_operand.hbm [shape: f32[32,32], index: 2, kind: input, shape index: {}]   ;;  %s13490_s3 = inlined_call_operand.hbm [shape: f32[32,32], index: 3, kind: input, shape index: {}]   ;;  %s13491_s4 = inlined_call_operand.vmem [shape: f32[1,32], index: 4, kind: input, shape index: {}]   ;;  %s13492_s5 = inlined_call_operand.vmem [shape: f32[1,32], index: 5, kind: input, shape index: {}]   ;;  %s13493_s6 = inlined_call_operand.vmem [shape: f32[1,32], index: 6, kind: input, shape index: {}]   ;;  %s13494_s7 = inlined_call_operand.hbm [shape: f32[32,32], index: 7, kind: input, shape index: {}]   ;;  %s13495_s8 = inlined_call_operand.vmem [shape: f32[1,32], index: 8, kind: input, shape index: {}]   ;;  %s13496_s9 = inlined_call_operand.vmem [shape: f32[4,1], index: 9, kind: input, shape index: {}]   ;;  %s13497_s10 = inlined_call_operand.hbm [shape: f32[4,16,16], index: 10, kind: input, shape index: {}]   ;;  %s13498_s11 = inlined_call_operand.hbm [shape: f32[8,16,32], index: 11, kind: output, shape index: {}]  }
   0x1   :  { %13596 = sst [smem:[#allocation83_spill]] %s13488_s1 }
   0x2   :  { %13597 = sst [smem:[#allocation84_spill]] %s13489_s2 }
   0x3   :  { %13598 = sst [smem:[#allocation85_spill]] %s13490_s3 }
   0x4   :  { %13599 = sst [smem:[#allocation86_spill]] %s13494_s7 }
   0x5   :  { %13600 = sst [smem:[#allocation87_spill]] %s13497_s10 }
   0x6   :  { %16 = vsyncpa [#allocation3], 0 }
   0x7   :  { %18 = vsyncpa [#allocation3 + $0x1], 0 }
   0x8   :  { %19 = vsyncpa [#allocation6], 0 }
   0x9   :  { %20 = vsyncpa [#allocation9], 0 }
   0xa   :  { %21 = vsyncpa [#allocation12], 0 }
   0xb   :  { %22 = vsyncpa [#allocation4], 0 }
   0xc   :  { %24 = vsyncpa [#allocation4 + $0x1], 0  ;;  %s8326_s17 = smov 0   ;;  %s8328_s18 = smov 0  }
   0xd   :  { %s8330_s19 = smov 0   ;;  %s8332_s20 = smov 0  }
   0xe LB: > { %s13601_s1 = sld [smem:[#allocation83_spill]]  ;;  %s8350_s24 = sadd.s32 4294967295, %s8247_s20   ;;  %s8247_s20 = sphi %s8332_s20, %s13935_s20   ;;  %s8243_s19 = sphi %s8330_s19, %s13934_s19   ;;  %s8239_s18 = sphi %s8328_s18, %s13933_s18   ;;  %s8235_s17 = sphi %s8326_s17, %s13932_s17  }
   0xf   : > { %p7370_p0 = scmp.ge.s32.totalorder %s8247_s20, 1  ;;  %p51_p1 = scmp.eq.s32.totalorder %s8350_s24, 0 }
  0x10   : > { %p297_p2 = scmp.lt.s32.totalorder %s8247_s20, 3  ;;  %s8249_s26 = smov [#allocation5]  }
  0x11   : > { %s310_s27 = sshll.u32 %s8249_s26, 4  ;;  %s13603_s3 = sld [smem:[#allocation85_spill]]  ;;  %s311_s27 = int_to_ptr.vmem [resolvable:$true] %s310_s27 }
  0x12   : > { %p8355_p3 = pnand %p7370_p0, %p297_p2  ;;  %s13605_s2 = sld [smem:[#allocation84_spill]] }
  0x13   : > { %s8250_s16 = smov [#allocation8]   ;;  %s13499_s22 = smov 128  }
  0x14   : > { %s308_s23 = sshll.u32 %s13601_s1, 4  ;;  %p7563_p4 = pneg %p8355_p3  ;;  %s309_s23 = int_to_ptr.hbm [resolvable:$true] %s308_s23 }
  0x15   : > { %s338_s21 = sshll.u32 %s8250_s16, 4  ;;  %s13500_s26 = smov 8   ;;  %s339_s21 = int_to_ptr.vmem [resolvable:$true] %s338_s21 }
  0x16   : > { %p8367_p6 = pnand %p7563_p4, %p51_p1  ;;  %s13606_s7 = sld [smem:[#allocation86_spill]] }
  0x17   : > { %s336_s30 = sshll.u32 %s13603_s3, 4  ;;  %s8253_s14 = smov [#allocation7]   ;;  %s337_s30 = int_to_ptr.hbm [resolvable:$true] %s336_s30 }
  0x18   : > { %s322_s15 = sshll.u32 %s13605_s2, 4  ;;  %s324_s16 = sshll.u32 %s8253_s14, 4  ;;  %s323_s15 = int_to_ptr.hbm [resolvable:$true] %s322_s15  ;;  %s325_s16 = int_to_ptr.vmem [resolvable:$true] %s324_s16 }
  0x19   : > { %7566 = dma.hbm_to_vmem [thread:$0]  (!%p8367_p6), %s309_s23, 512, %s311_s27, [#allocation6], %s13499_s22, %s13499_s22, %s13500_s26  }
  0x1a   : > { %7572 = dma.hbm_to_vmem [thread:$0]  (!%p8367_p6), %s337_s30, 512, %s339_s21, [#allocation9], %s13499_s22, %s13499_s22, %s13500_s26  }
  0x1b   : > { %7569 = dma.hbm_to_vmem [thread:$0]  (!%p8367_p6), %s323_s15, 512, %s325_s16, [#allocation6], %s13499_s22, %s13499_s22, %s13500_s26  }
  0x1c   : > { %s359_s13 = sshll.u32 %s13606_s7, 4  ;;  %s8254_s23 = smov [#allocation10]   ;;  %s360_s13 = int_to_ptr.hbm [resolvable:$true] %s359_s13 }
  0x1d   : > { %s361_s27 = sshll.u32 %s8254_s23, 4  ;;  %s13607_s10 = sld [smem:[#allocation87_spill]]  ;;  %s362_s27 = int_to_ptr.vmem [resolvable:$true] %s361_s27 }
  0x1e   : > { %7575 = dma.hbm_to_vmem [thread:$0]  (!%p8367_p6), %s360_s13, 512, %s362_s27, [#allocation9], %s13499_s22, %s13499_s22, %s13500_s26  }
  0x1f   : > { %s8255_s15 = smov [#allocation11]   ;;  %s7369_s14 = sadd.s32 4294967294, %s8247_s20  }
  0x20   : > { %s381_s29 = sshll.u32 %s8255_s15, 4  ;;  %s8407_s16 = sadd.s32 1, %s8247_s20   ;;  %s382_s29 = int_to_ptr.vmem [resolvable:$true] %s381_s29 }
  0x21   : > { %s37_s23 = sadd.s32 1, %s8243_s19  ;;  %s34_s30 = ssub.s32 %s8247_s20, %s8407_s16 }
  0x22   : > { %p44_p7 = scmp.ne.s32.totalorder %s8243_s19, %s8239_s18  ;;  %p35_p8 = scmp.eq.s32.totalorder %s34_s30, 0 }
  0x23   : > { %s379_s28 = sshll.u32 %s13607_s10, 4  ;;  %p45_p9 = scmp.eq.s32.totalorder %s8247_s20, 0  ;;  %s380_s28 = int_to_ptr.hbm [resolvable:$true] %s379_s28 }
  0x24   : > { %7578 = dma.hbm_to_vmem [thread:$0]  (!%p8367_p6), %s380_s28, 1024, %s382_s29, [#allocation12], %s13499_s22, %s13499_s22, %s13500_s26  }
  0x25   : > { %p50_p10 = scmp.ne.s32.totalorder %s8239_s18, %s8235_s17  ;;  %p284_p11 = scmp.eq.s32.totalorder %s8350_s24, 1 }
  0x26   : > { %s8419_s13 = scalar_select %p35_p8, %s8243_s19, %s37_s23  }
  0x27   : > { %p8423_p12 = por %p51_p1, %p50_p10  ;;  %p8427_p13 = por %p284_p11, %p44_p7 }
  0x28   : > { %p290_p0 = scmp.eq.s32.totalorder %s7369_s14, 1  ;;  %p46_p2 = por %p45_p9, %p44_p7 }
  0x29   : > { %s395_s21 = sand.u32 1, %s8243_s19   ;;  %p7592_p6 = scmp.lt.s32.totalorder %s8247_s20, 2 }
  0x2a   : > { %p8432_p4 = por %p290_p0, %p50_p10  ;;  %s7377_s15 = sshll.u32 %s395_s21, 6 }
  0x2b   : > { %s7524_s29 = sshll.u32 %s8247_s20, 6  ;;  %s399_s1 = scalar_lea.vmem [#allocation2], %s7377_s15 }
  0x2c   : > { %s405_s22 = scalar_lea.hbm %s13487_s0, %s7524_s29  ;;  %s408_s2 = sshll.u32 %s399_s1, 4  ;;  %s409_s2 = int_to_ptr.vmem [resolvable:$true] %s408_s2 }
  0x2d   : > { %s406_s26 = sshll.u32 %s405_s22, 4  ;;  %p8441_p8 = pnand %p7592_p6, %p46_p2  ;;  %s407_s26 = int_to_ptr.hbm [resolvable:$true] %s406_s26 }
  0x2e   : > { %s396_s3 = scalar_lea.sflag [#allocation3], %s395_s21  ;;  %s8139_s7 = sshra.s32 %s407_s26, 4  ;;  %s8140_s7 = int_to_ptr.hbm [resolvable:$true] %s8139_s7 }
  0x2f   : > { %s8141_s10 = scalar_lea.hbm %s8140_s7, 64  ;;  %p8143_p9 = pneg %p8441_p8 }
  0x30   : > { %p8142_p7 = scmp.ne.s32.totalorder %s8140_s7, %s8141_s10  ;;  %s8146_s1 = scalar_lea.hbm %s13487_s0, 128 }
  0x31   : > { %p8147_p0 = scmp.lt.s32.totalorder %s8140_s7, %s13487_s0  ;;  %p8148_p2 = scmp.lt.s32.totalorder %s8146_s1, %s8141_s10 }
  0x32   : > { %p8144_p10 = pnand %p8143_p9, %p8142_p7 }
  0x33   : > { %p8149_p6 = por %p8148_p2, %p8147_p0 }
  0x34   : > { %p8145_p11 = pneg %p8144_p10 }
  0x36   : > { %p8150_p5 = pnand %p8149_p6, %p8145_p11 }
  0x38   : > { %8153 = shalt.err (!%p8150_p5)
}
  0x39   : > { %s13612_s21 = smov 8   ;;  %s13613_s30 = smov 128  }
  0x3a   : > { %7582 = dma.hbm_to_vmem [thread:$0]  (!%p8441_p8), %s407_s26, 1024, %s409_s2, %s396_s3, %s13613_s30, %s13613_s30, %s13612_s21  }
  0x3b   : > { %420 = sbr.rel (%p8355_p3) target bundleno = 1572 (0x624), region = 64 }
  0x40   : > { %s8461_s29 = sand.u32 1, %s8239_s18  }
  0x41   : > { %s7382_s7 = sshll.u32 %s8461_s29, 6  ;;  %s423_s10 = scalar_lea.sflag [#allocation3], %s8461_s29 }
  0x42   : > { %s8467_s22 = scalar_lea.vmem [#allocation2], %s7382_s7 }
  0x43   : > { %8214 = dma.done.wait (%p8423_p12), %s423_s10, 1024  }
  0x44   : > { %8216 = vsyncadd (%p8423_p12), %s423_s10, 4294966272 }
  0x45   : > { %8218 = dma.done.wait (%p51_p1), [#allocation6], 1024  }
  0x46   : > { %8220 = vsyncadd (%p51_p1), [#allocation6], 4294966272 }
  0x47   : > { %8222 = dma.done.wait (%p51_p1), [#allocation9], 1024  }
  0x48   : > { %8224 = vsyncadd (%p51_p1), [#allocation9], 4294966272 }
  0x49   : > { %8226 = dma.done.wait (%p51_p1), [#allocation12], 1024  }
  0x4a   : > { %8228 = vsyncadd (%p51_p1), [#allocation12], 4294966272  ;;  %v504_v0 = vld [vmem:[#allocation5 + $0x18] sm:$0xff]  ;;  %v503_v1 = vld [vmem:[#allocation5 + $0x10] sm:$0xff]  ;;  %vm509_vm0 = vcmask 261120   ;;  %v8256_v17 = vmov 0  }
  0x4b   : > { %546 = vmatpush.msra.mxu0 %v504_v0  ;;  %7527 = vmatpush.msra.mxu1 %v504_v0  ;;  %v502_v2 = vld [vmem:[#allocation5 + $0x8] sm:$0xff]  ;;  %v501_v3 = vld [vmem:[#allocation5] sm:$0xff]  ;;  %v495_v5 = vld [vmem:[%s8467_s22 + $0x10] sm:$0xff]  ;;  %s8257_s12 = smov 104   ;;  %s8258_s14 = smov 112   ;;  %vm754_vm1 = vcmask 1047556  }
  0x4c   : > { %7528 = vmatpush.msra.mxu2 %v504_v0  ;;  %7529 = vmatpush.msra.mxu3 %v504_v0  ;;  %v493_v4 = vld [vmem:[%s8467_s22] sm:$0xff]  ;;  %v499_v7 = vld [vmem:[%s8467_s22 + $0x30] sm:$0xff]  ;;  %v578_v8 = vld [vmem:[#allocation7 + $0x18] sm:$0xff]  ;;  %s8259_s1 = smov 120   ;;  %v8260_v58 = vmov 1983009808  }
  0x4d   : > { %547 = vmatpush.msra.mxu0 %v503_v1  ;;  %7530 = vmatpush.msra.mxu1 %v503_v1  ;;  %v497_v6 = vld [vmem:[%s8467_s22 + $0x20] sm:$0xff]  ;;  %v577_v9 = vld [vmem:[#allocation7 + $0x10] sm:$0xff]  ;;  %v576_v10 = vld [vmem:[#allocation7 + $0x8] sm:$0xff]  ;;  %v759_v59 = vunpack.c.l.s4 %v8260_v58  ;;  %vm3586_vm2 = vcmask 64512   ;;  %s490_s21 = scalar_lea.vmem [#allocation13], %s7382_s7  ;;  %s7526_s7 = sshll.u32 %s8350_s24, 6 }
  0x4e   : > { %7531 = vmatpush.msra.mxu2 %v503_v1  ;;  %7532 = vmatpush.msra.mxu3 %v503_v1  ;;  %v494_v11 = vld [vmem:[%s8467_s22 + $0x8] sm:$0xff]  ;;  %v496_v12 = vld [vmem:[%s8467_s22 + $0x18] sm:$0xff]  ;;  %v575_v13 = vld [vmem:[#allocation7] sm:$0xff]  ;;  %s7244_s2 = scalar_lea.hbm %s13498_s11, %s7526_s7  ;;  %s7232_s25 = scalar_lea.sflag [#allocation4], %s8461_s29 }
  0x4f   : > { %548 = vmatpush.msra.mxu0 %v502_v2  ;;  %7533 = vmatpush.msra.mxu1 %v502_v2  ;;  %v498_v14 = vld [vmem:[%s8467_s22 + $0x28] sm:$0xff]  ;;  %v500_v15 = vld [vmem:[%s8467_s22 + $0x38] sm:$0xff]  ;;  %v4579_v16 = vld [vmem:[%s13496_s9] sm:$0xf]  ;;  %v8644_v63 = vunpack.c.0.s8 %v759_v59  ;;  %s7247_s3 = sshll.u32 %s7244_s2, 4  ;;  %s8189_s15 = scalar_lea.hbm %s13498_s11, 128  ;;  %s7248_s3 = int_to_ptr.hbm [resolvable:$true] %s7247_s3 }
  0x50   : > { %7534 = vmatpush.msra.mxu2 %v502_v2  ;;  %7535 = vmatpush.msra.mxu3 %v502_v2  ;;  %v4584_v18 = vperm.slane %v4579_v16, 0  ;;  %v4581_v19 = vrot.slane %v4579_v16, 1  ;;  %v7711_v21 = vld [vmem:[%s13491_s4] ss:$0 sm:$0xff]  ;;  %s8183_s26 = sshra.s32 %s7248_s3, 4  ;;  %s8184_s26 = int_to_ptr.hbm [resolvable:$true] %s8183_s26 }
  0x51   : > { %549 = vmatpush.msra.mxu0 %v501_v3  ;;  %7536 = vmatpush.msra.mxu1 %v501_v3  ;;  %v8558_v36 = vld [vmem:[%s13492_s5] ss:$0 sm:$0xff]  ;;  %13616 = vst [vmem:[#allocation21_spill] sm:$0xff] %v8644_v63  ;;  %s8185_s24 = scalar_lea.hbm %s8184_s26, 64  ;;  %p8190_p12 = scmp.lt.s32.totalorder %s8184_s26, %s13498_s11 }
  0x52   : > { %7389 = vmatmul.msk.f32.vlgmr.msra.gmra.mxu0 %vm509_vm0, %v493_v4  ;;  %7391 = vmatmul.msk.f32.vlgmr.msra.gmra.mxu1 %vm509_vm0, %v495_v5  ;;  %v4585_v20 = vperm.slane %v4581_v19, 0  ;;  %p8186_p1 = scmp.ne.s32.totalorder %s8184_s26, %s8185_s24  ;;  %p8191_p8 = scmp.lt.s32.totalorder %s8189_s15, %s8185_s24 }
  0x53   : > { %7537 = vmatpush.msra.mxu2 %v501_v3  ;;  %7538 = vmatpush.msra.mxu3 %v501_v3 }
  0x54   : > { %7393 = vmatmul.msk.f32.vlgmr.msra.gmra.mxu2 %vm509_vm0, %v497_v6  ;;  %7395 = vmatmul.msk.f32.vlgmr.msra.gmra.mxu3 %vm509_vm0, %v499_v7  ;;  %p8187_p3 = pnand %p8186_p1, %p8427_p13  ;;  %p8192_p7 = por %p8191_p8, %p8190_p12 }
  0x55   : > { %595 = vmatpush.msrb.mxu1 %v578_v8  ;;  %7648 = vset.pattern.permute.xlu0 %v8256_v17  ;;  %v8261_v8 = vmov 1934713408  }
  0x56   : > { %7649 = vset.pattern.permute.xlu1 %v8256_v17  ;;  %7650 = vset.pattern.permute.xlu2 %v8256_v17  ;;  %p8188_p5 = pneg %p8187_p3 }
  0x57   : > { %596 = vmatpush.msrb.mxu1 %v577_v9  ;;  %4589 = vperm.xlu0 %7648, %v4584_v18   ;;  %v783_v9 = vunpack.c.l.s4 %v8261_v8 }
  0x58   : > { %p8193_p9 = pnand %p8192_p7, %p8188_p5 }
  0x59   : > { %597 = vmatpush.msrb.mxu1 %v576_v10  ;;  %v8664_v17 = vunpack.c.0.s8 %v783_v9 }
  0x5a   : > { %7390 = vmatmul.msk.f32.gmra.mxu0 %vm509_vm0, %v494_v11  ;;  %7392 = vmatmul.msk.f32.gmra.mxu1 %vm509_vm0, %v496_v12 }
  0x5b   : > { %598 = vmatpush.msrb.mxu1 %v575_v13  ;;  %13617 = vst [vmem:[#allocation22_spill] sm:$0xff] %v8664_v17 }
  0x5c   : > { %7394 = vmatmul.msk.f32.gmra.mxu2 %vm509_vm0, %v498_v14  ;;  %7396 = vmatmul.msk.f32.gmra.mxu3 %vm509_vm0, %v500_v15 }
  0x5f   : > { %4593 = vperm.xlu0 %7648, %v4585_v20  }
  0x62   : > { %7397 = vmatmul.msk.f32.vlgmr.msrb.gmra.mxu1 %vm509_vm0, %v493_v4 }
  0x6a   : > { %7398 = vmatmul.msk.f32.gmra.mxu1 %vm509_vm0, %v494_v11 }
  0x72   : > { %7399 = vmatmul.msk.f32.gmra.mxu1 %vm509_vm0, %v495_v5 }
  0x7a   : > { %7400 = vmatmul.msk.f32.gmra.mxu1 %vm509_vm0, %v496_v12 }
  0x82   : > { %7401 = vmatmul.msk.f32.gmra.mxu1 %vm509_vm0, %v497_v6 }
  0x8a   : > { %7402 = vmatmul.msk.f32.gmra.mxu1 %vm509_vm0, %v498_v14 }
  0x92   : > { %7403 = vmatmul.msk.f32.gmra.mxu1 %vm509_vm0, %v499_v7 }
  0x9a   : > { %7404 = vmatmul.msk.f32.gmra.mxu1 %vm509_vm0, %v500_v15 }
  0xc9   : > { %v8622_v52 = vpop.permute.xlu0 %4589 }
  0xca   : > { %13614 = vst [vmem:[#allocation19_spill] sm:$0xff] %v8622_v52 }
  0xcf   : > { %v551_v22 = vpop.f32.mrf.mxu0  ;;  %v557_v23 = vpop.f32.mrf.mxu1 }
  0xd0   : > { %v8515_v24 = vadd.f32 %v7711_v21, %v551_v22  ;;  %v8517_v25 = vadd.f32 %v7711_v21, %v557_v23 }
  0xd1   : > { %v8635_v56 = vpop.permute.xlu0 %4593 }
  0xd2   : > { %733 = vrot.lane.b32.xlu1 %v8517_v25, %s8257_s12  ;;  %705 = vrot.lane.b32.xlu0 %v8515_v24, %s8258_s14  ;;  %13615 = vst [vmem:[#allocation20_spill] sm:$0xff] %v8635_v56  ;;  %v756_v62 = vrot.slane %v8515_v24, 4 }
  0xd3   : > { %681 = vrot.lane.b32.xlu2 %v8515_v24, %s8259_s1 }
  0xd7   : > { %v563_v26 = vpop.f32.mrf.mxu2  ;;  %v569_v28 = vpop.f32.mrf.mxu3 }
  0xd8   : > { %v8525_v27 = vadd.f32 %v7711_v21, %v563_v26  ;;  %v8533_v29 = vadd.f32 %v7711_v21, %v569_v28  ;;  %v560_v30 = vpop.f32.mrf.mxu1  ;;  %v554_v31 = vpop.f32.mrf.mxu0 }
  0xd9   : > { %v8541_v32 = vadd.f32 %v7711_v21, %v554_v31  ;;  %v8549_v34 = vadd.f32 %v7711_v21, %v560_v30 }
  0xda   : > { %713 = vrot.lane.b32.xlu1 %v8525_v27, %s8258_s14  ;;  %685 = vrot.lane.b32.xlu0 %v8517_v25, %s8259_s1 }
  0xdb   : > { %729 = vrot.lane.b32.xlu2 %v8515_v24, %s8257_s12 }
  0xdf   : > { %v566_v39 = vpop.f32.mrf.mxu2  ;;  %v572_v46 = vpop.f32.mrf.mxu3 }
  0xe0   : > { %v600_v33 = vpop.f32.mrf.mxu1  ;;  %v8571_v40 = vadd.f32 %v7711_v21, %v566_v39  ;;  %v8600_v47 = vadd.f32 %v7711_v21, %v572_v46 }
  0xe1   : > { %v8563_v37 = vadd.f32 %v8558_v36, %v600_v33 }
  0xe2   : > { %717 = vrot.lane.b32.xlu1 %v8533_v29, %s8258_s14  ;;  %709 = vrot.lane.b32.xlu0 %v8517_v25, %s8258_s14 }
  0xe3   : > { %693 = vrot.lane.b32.xlu2 %v8533_v29, %s8259_s1 }
  0xe8   : > { %v603_v35 = vpop.f32.mrf.mxu1 }
  0xe9   : > { %v8580_v42 = vadd.f32 %v8558_v36, %v603_v35 }
  0xea   : > { %707 = vrot.lane.b32.xlu1 %v8541_v32, %s8258_s14  ;;  %689 = vrot.lane.b32.xlu0 %v8525_v27, %s8259_s1 }
  0xeb   : > { %731 = vrot.lane.b32.xlu2 %v8541_v32, %s8257_s12 }
  0xf0   : > { %v606_v38 = vpop.f32.mrf.mxu1 }
  0xf1   : > { %v8589_v44 = vadd.f32 %v8558_v36, %v606_v38 }
  0xf2   : > { %687 = vrot.lane.b32.xlu1 %v8549_v34, %s8259_s1  ;;  %737 = vrot.lane.b32.xlu0 %v8525_v27, %s8257_s12 }
  0xf3   : > { %711 = vrot.lane.b32.xlu2 %v8549_v34, %s8258_s14 }
  0xf8   : > { %v609_v41 = vpop.f32.mrf.mxu1 }
  0xf9   : > { %v8592_v45 = vadd.f32 %v8558_v36, %v609_v41 }
  0xfa   : > { %1642 = vrot.lane.b32.xlu1 %v8563_v37, %s8259_s1  ;;  %741 = vrot.lane.b32.xlu0 %v8533_v29, %s8257_s12 }
  0xfb   : > { %735 = vrot.lane.b32.xlu2 %v8549_v34, %s8257_s12 }
 0x100   : > { %v612_v43 = vpop.f32.mrf.mxu1 }
 0x101   : > { %v8616_v50 = vadd.f32 %v8558_v36, %v612_v43 }
 0x102   : > { %1690 = vrot.lane.b32.xlu1 %v8563_v37, %s8257_s12  ;;  %683 = vrot.lane.b32.xlu0 %v8541_v32, %s8259_s1 }
 0x103   : > { %715 = vrot.lane.b32.xlu2 %v8571_v40, %s8258_s14 }
 0x108   : > { %v615_v48 = vpop.f32.mrf.mxu1 }
 0x109   : > { %v8603_v49 = vadd.f32 %v8558_v36, %v615_v48 }
 0x10a   : > { %1692 = vrot.lane.b32.xlu1 %v8580_v42, %s8257_s12  ;;  %691 = vrot.lane.b32.xlu0 %v8571_v40, %s8259_s1 }
 0x10b   : > { %1666 = vrot.lane.b32.xlu2 %v8563_v37, %s8258_s14 }
 0x110   : > { %v618_v53 = vpop.f32.mrf.mxu1 }
 0x111   : > { %v8629_v55 = vadd.f32 %v8558_v36, %v618_v53  ;;  %v868_v53 = vrot.slane %v8517_v25, 4 }
 0x112   : > { %1670 = vrot.lane.b32.xlu1 %v8589_v44, %s8258_s14  ;;  %739 = vrot.lane.b32.xlu0 %v8571_v40, %s8257_s12 }
 0x113   : > { %1648 = vrot.lane.b32.xlu2 %v8592_v45, %s8259_s1 }
 0x118   : > { %v621_v18 = vpop.f32.mrf.mxu1 }
 0x119   : > { %v8673_v30 = vadd.f32 %v8558_v36, %v621_v18 }
 0x11a   : > { %1694 = vrot.lane.b32.xlu1 %v8589_v44, %s8257_s12  ;;  %695 = vrot.lane.b32.xlu0 %v8600_v47, %s8259_s1 }
 0x11b   : > { %1652 = vrot.lane.b32.xlu2 %v8603_v49, %s8259_s1 }
 0x122   : > { %1696 = vrot.lane.b32.xlu1 %v8592_v45, %s8257_s12  ;;  %719 = vrot.lane.b32.xlu0 %v8600_v47, %s8258_s14 }
 0x12a   : > { %1674 = vrot.lane.b32.xlu1 %v8616_v50, %s8258_s14  ;;  %1644 = vrot.lane.b32.xlu0 %v8580_v42, %s8259_s1 }
 0x12d   : > { %v682_v51 = vpop.permute.xlu2 %681 }
 0x12e   : > { %v768_v61 = vrot.slane %v682_v51, 4 }
 0x132   : > { %1700 = vrot.lane.b32.xlu1 %v8603_v49, %s8257_s12  ;;  %1668 = vrot.lane.b32.xlu0 %v8580_v42, %s8258_s14 }
 0x135   : > { %v730_v54 = vpop.permute.xlu2 %729 }
 0x136   : > { %v766_v60 = vrot.slane %v730_v54, 4  ;;  %v769_v3 = vsel %vm754_vm1, %v730_v54, %v768_v61 }
 0x137   : > { %v777_v12 = vperm.slane %v769_v3, %v8644_v63 }
 0x138   : > { %v767_v2 = vsel %vm754_vm1, %v766_v60, %v682_v51 }
 0x139   : > { %v773_v11 = vperm.slane %v767_v2, %v8644_v63  ;;  %v790_v26 = vrot.slane %v777_v12, 4 }
 0x13a   : > { %1654 = vrot.lane.b32.xlu1 %v8629_v55, %s8259_s1  ;;  %1646 = vrot.lane.b32.xlu0 %v8589_v44, %s8259_s1 }
 0x13b   : > { %v778_v19 = vrot.slane %v773_v11, 4 }
 0x13d   : > { %v8637_v57 = vpop.permute.xlu2 %693 }
 0x142   : > { %1678 = vrot.lane.b32.xlu1 %v8629_v55, %s8258_s14  ;;  %1672 = vrot.lane.b32.xlu0 %v8592_v45, %s8258_s14 }
 0x144   : > { %v8646_v0 = vpop.permute.xlu1 %733  ;;  %v706_v1 = vpop.permute.xlu0 %705 }
 0x145   : > { %v753_v4 = vrot.slane %v706_v1, 4  ;;  %v757_v5 = vsel %vm754_vm1, %v706_v1, %v756_v62  ;;  %v8651_v6 = vpop.permute.xlu2 %731 }
 0x146   : > { %v765_v7 = vperm.slane %v757_v5, %v8644_v63  ;;  %v878_v5 = vrot.slane %v8646_v0, 4 }
 0x147   : > { %v755_v10 = vsel %vm754_vm1, %v753_v4, %v8515_v24 }
 0x148   : > { %v761_v13 = vperm.slane %v755_v10, %v8644_v63  ;;  %v792_v14 = vrot.slane %v765_v7, 4  ;;  %v791_v35 = vsel %vm754_vm1, %v790_v26, %v765_v7 }
 0x149   : > { %v797_v41 = vperm.slane %v791_v35, %v8664_v17 }
 0x14a   : > { %v780_v15 = vrot.slane %v761_v13, 4  ;;  %v793_v16 = vsel %vm754_vm1, %v777_v12, %v792_v14  ;;  %1702 = vrot.lane.b32.xlu1 %v8629_v55, %s8257_s12  ;;  %1650 = vrot.lane.b32.xlu0 %v8616_v50, %s8259_s1  ;;  %v779_v28 = vsel %vm754_vm1, %v778_v19, %v761_v13  ;;  %v980_v13 = vrot.slane %v8525_v27, 4 }
 0x14b   : > { %v801_v24 = vperm.slane %v793_v16, %v8664_v17  ;;  %v785_v38 = vperm.slane %v779_v28, %v8664_v17  ;;  %v806_v59 = vrot.slane %v797_v41, 4  ;;  %v812_v19 = vrot.slane %v8541_v32, 4 }
 0x14c   : > { %v781_v20 = vsel %vm754_vm1, %v773_v11, %v780_v15  ;;  %v8667_v21 = vpop.permute.xlu1 %713  ;;  %v686_v22 = vpop.permute.xlu0 %685  ;;  %v1092_v15 = vrot.slane %v8533_v29, 4 }
 0x14d   : > { %v789_v23 = vperm.slane %v781_v20, %v8664_v17  ;;  %v8675_v33 = vpop.permute.xlu2 %711  ;;  %v808_v39 = vrot.slane %v801_v24, 4  ;;  %v802_v48 = vrot.slane %v785_v38, 4  ;;  %v880_v62 = vrot.slane %v686_v22, 4 }
 0x14e   : > { %v807_v9 = vsel %vm754_vm1, 0.0, %v806_v59  ;;  %v1036_v20 = vrot.slane %v8571_v40, 4  ;;  %v978_v26 = vrot.slane %v8667_v21, 4  ;;  %v879_v28 = vsel %vm754_vm1, %v878_v5, %v686_v22 }
 0x14f   : > { %v804_v31 = vrot.slane %v789_v23, 4  ;;  %v809_v51 = vsel %vm754_vm1, 0.0, %v808_v39  ;;  %v1213_v60 = vsel %vm754_vm1, %v808_v39, %v797_v41  ;;  %v803_v3 = vsel %vm754_vm1, 0.0, %v802_v48 }
 0x150   : > { %v1218_v61 = vrot.slane %v809_v51, 4  ;;  %v8704_v10 = vperm.slane %v1213_v60, %v8644_v63  ;;  %v881_v14 = vsel %vm754_vm1, %v8646_v0, %v880_v62  ;;  %v924_v0 = vrot.slane %v8549_v34, 4 }
 0x151   : > { %v805_v43 = vsel %vm754_vm1, 0.0, %v804_v31  ;;  %v1202_v54 = vsel %vm754_vm1, %v804_v31, %v785_v38  ;;  %v889_v35 = vperm.slane %v881_v14, %v8644_v63  ;;  %v1716_v48 = vrot.slane %v8563_v37, 4 }
 0x152   : > { %1656 = vrot.lane.b32.xlu1 %v8673_v30, %s8259_s1  ;;  %1698 = vrot.lane.b32.xlu0 %v8616_v50, %s8257_s12  ;;  %v1207_v58 = vrot.slane %v805_v43, 4  ;;  %v8696_v4 = vperm.slane %v1202_v54, %v8644_v63  ;;  %v1219_v12 = vsel %vm754_vm1, %v1218_v61, %v807_v9  ;;  %v1238_v41 = vrot.slane %v8704_v10, 4 }
 0x153   : > { %v8729_v39 = vperm.slane %v1219_v12, %v8644_v63  ;;  %v822_v51 = vrot.slane %v8651_v6, 4  ;;  %v979_v61 = vsel %vm754_vm1, %v978_v26, %v8525_v27  ;;  %v902_v62 = vrot.slane %v889_v35, 4 }
 0x154   : > { %v8685_v36 = vpop.permute.xlu1 %717  ;;  %v710_v46 = vpop.permute.xlu0 %709  ;;  %v1208_v8 = vsel %vm754_vm1, %v1207_v58, %v803_v3  ;;  %v1226_v24 = vrot.slane %v8696_v4, 4  ;;  %v981_v58 = vsel %vm754_vm1, %v8667_v21, %v980_v13 }
 0x155   : > { %v869_v1 = vsel %vm754_vm1, %v710_v46, %v868_v53  ;;  %v8692_v2 = vpop.permute.xlu2 %735  ;;  %v866_v7 = vrot.slane %v710_v46, 4  ;;  %v8719_v23 = vperm.slane %v1208_v8, %v8644_v63  ;;  %v922_v46 = vrot.slane %v8675_v33, 4 }
 0x156   : > { %v877_v11 = vperm.slane %v869_v1, %v8644_v63  ;;  %v1090_v59 = vrot.slane %v8685_v36, 4  ;;  %v1239_v5 = vsel %vm754_vm1, %v8729_v39, %v1238_v41  ;;  %v1093_v14 = vsel %vm754_vm1, %v8685_v36, %v1092_v15 }
 0x157   : > { %v867_v31 = vsel %vm754_vm1, %v866_v7, %v8517_v25  ;;  %v885_v25 = vperm.slane %v879_v28, %v8644_v63  ;;  %v1227_v54 = vsel %vm754_vm1, %v8719_v23, %v1226_v24  ;;  %v923_v21 = vsel %vm754_vm1, %v922_v46, %v8549_v34 }
 0x158   : > { %v904_v38 = vrot.slane %v877_v11, 4  ;;  %v873_v53 = vperm.slane %v867_v31, %v8644_v63  ;;  %v925_v7 = vsel %vm754_vm1, %v8675_v33, %v924_v0  ;;  %v8759_v8 = vperm.slane %v1227_v54, %v8664_v17 }
 0x159   : > { %v8762_v9 = vperm.slane %v1239_v5, %v8664_v17  ;;  %v890_v13 = vrot.slane %v885_v25, 4  ;;  %v903_v26 = vsel %vm754_vm1, %v902_v62, %v877_v11  ;;  %v8770_v34 = vperm.slane %v981_v58, %v8644_v63 }
 0x15a   : > { %1676 = vrot.lane.b32.xlu0 %v8603_v49, %s8258_s14  ;;  %v905_v1 = vsel %vm754_vm1, %v889_v35, %v904_v38  ;;  %v892_v24 = vrot.slane %v873_v53, 4  ;;  %v1091_v33 = vsel %vm754_vm1, %v1090_v59, %v8533_v29  ;;  %v8777_v31 = vperm.slane %v979_v61, %v8644_v63 }
 0x15b   : > { %v913_v28 = vperm.slane %v905_v1, %v8664_v17  ;;  %v1252_v0 = vrot.slane %v8762_v9, 4  ;;  %v8780_v35 = vperm.slane %v923_v21, %v8644_v63  ;;  %v8783_v36 = vperm.slane %v925_v7, %v8644_v63 }
 0x15c   : > { %v8712_v16 = vpop.permute.xlu1 %707  ;;  %v8714_v18 = vpop.permute.xlu0 %689  ;;  %v891_v11 = vsel %vm754_vm1, %v890_v13, %v873_v53  ;;  %v8787_v15 = vperm.slane %v1093_v14, %v8644_v63  ;;  %v909_v29 = vperm.slane %v903_v26, %v8664_v17  ;;  %v934_v38 = vrot.slane %v8692_v2, 4 }
 0x15d   : > { %v8750_v3 = vpop.permute.xlu2 %715  ;;  %v8793_v41 = vsel %vm754_vm1, %v1252_v0, %v8759_v8  ;;  %v8796_v46 = vperm.slane %v1091_v33, %v8644_v63  ;;  %v893_v54 = vsel %vm754_vm1, %v885_v25, %v892_v24  ;;  %v810_v58 = vrot.slane %v8712_v16, 4 }
 0x15e   : > { %13618 = vst [vmem:[#allocation23_spill] sm:$0xff] %v8793_v41  ;;  %v3558_v53 = vmul.f32 %v8793_v41, %v8793_v41  ;;  %v1016_v59 = vrot.slane %v8770_v34, 4  ;;  %v8804_v61 = vperm.slane %v891_v11, %v8664_v17  ;;  %v920_v62 = vrot.slane %v913_v28, 4 }
 0x15f   : > { %v1224_v1 = vrot.slane %v8719_v23, 4  ;;  %v1004_v5 = vrot.slane %v8777_v31, 4  ;;  %v948_v25 = vrot.slane %v8780_v35, 4  ;;  %v960_v21 = vrot.slane %v8783_v36, 4 }
 0x160   : > { %v3599_v7 = vsel %vm3586_vm2, %v3558_v53, 0.0  ;;  %v901_v13 = vperm.slane %v893_v54, %v8664_v17  ;;  %v918_v14 = vrot.slane %v909_v29, 4  ;;  %v813_v24 = vsel %vm754_vm1, %v8712_v16, %v812_v19 }
 0x161   : > { %3600 = vadd.xlane.f32.xlu2 %v3599_v7  ;;  %v811_v11 = vsel %vm754_vm1, %v810_v58, %v8541_v32  ;;  %v992_v54 = vrot.slane %v8714_v18, 4  ;;  %v1321_v22 = vsel %vm754_vm1, %v920_v62, %v909_v29  ;;  %v921_v7 = vsel %vm754_vm1, 0.0, %v920_v62 }
 0x162   : > { %1680 = vrot.lane.b32.xlu0 %v8673_v30, %s8258_s14  ;;  %v8832_v60 = vperm.slane %v813_v24, %v8644_v63  ;;  %v1236_v32 = vrot.slane %v8729_v39, 4  ;;  %v8836_v58 = vrot.slane %v901_v13, 4  ;;  %v919_v53 = vsel %vm754_vm1, 0.0, %v918_v14 }
 0x163   : > { %v8840_v29 = vperm.slane %v811_v11, %v8644_v63  ;;  %v1037_v62 = vsel %vm754_vm1, %v8750_v3, %v1036_v20  ;;  %v1326_v13 = vrot.slane %v921_v7, 4 }
 0x164   : > { %v688_v27 = vpop.permute.xlu1 %687  ;;  %v8764_v12 = vpop.permute.xlu0 %737  ;;  %v1237_v20 = vsel %vm754_vm1, %v1236_v32, %v8704_v10 }
 0x165   : > { %v935_v23 = vsel %vm754_vm1, %v934_v38, %v688_v27  ;;  %v936_v16 = vrot.slane %v688_v27, 4  ;;  %v1667_v19 = vpop.permute.xlu2 %1666  ;;  %v1225_v38 = vsel %vm754_vm1, %v1224_v1, %v8696_v4  ;;  %v1034_v27 = vrot.slane %v8750_v3, 4 }
 0x166   : > { %v941_v28 = vperm.slane %v935_v23, %v8644_v63  ;;  %v8844_v4 = vperm.slane %v1321_v22, %v8644_v63  ;;  %v1714_v1 = vrot.slane %v1667_v19, 4  ;;  %v8851_v39 = vperm.slane %v1225_v38, %v8664_v17 }
 0x167   : > { %v937_v14 = vsel %vm754_vm1, %v8692_v2, %v936_v16  ;;  %v990_v24 = vrot.slane %v8764_v12, 4  ;;  %v993_v23 = vsel %vm754_vm1, %v8764_v12, %v992_v54  ;;  %v8865_v38 = vsel %vm754_vm1, 0.0, %v8836_v58 }
 0x168   : > { %v949_v11 = vsel %vm754_vm1, %v941_v28, %v948_v25  ;;  %v1250_v3 = vrot.slane %v8851_v39, 4  ;;  %v1035_v16 = vsel %vm754_vm1, %v1034_v27, %v8571_v40  ;;  %v946_v7 = vrot.slane %v941_v28, 4 }
 0x169   : > { %v945_v0 = vperm.slane %v937_v14, %v8644_v63  ;;  %v1001_v25 = vperm.slane %v993_v23, %v8644_v63  ;;  %v1715_v10 = vsel %vm754_vm1, %v1714_v1, %v8563_v37  ;;  %v8875_v32 = vperm.slane %v1237_v20, %v8664_v17 }
 0x16a   : > { %1704 = vrot.lane.b32.xlu0 %v8673_v30, %s8257_s12  ;;  %v957_v43 = vperm.slane %v949_v11, %v8664_v17  ;;  %v991_v22 = vsel %vm754_vm1, %v990_v24, %v8714_v18  ;;  %v8881_v28 = vperm.slane %v1035_v16, %v8644_v63  ;;  %v8884_v27 = vperm.slane %v1037_v62, %v8644_v63 }
 0x16b   : > { %v1717_v1 = vsel %vm754_vm1, %v1667_v19, %v1716_v48  ;;  %v8891_v14 = vsel %vm754_vm1, %v8875_v32, %v1250_v3  ;;  %v947_v23 = vsel %vm754_vm1, %v946_v7, %v8780_v35  ;;  %v1721_v18 = vperm.slane %v1715_v10, %v8644_v63 }
 0x16c   : > { %v1643_v26 = vpop.permute.xlu1 %1642  ;;  %v8819_v33 = vpop.permute.xlu0 %741  ;;  %13619 = vst [vmem:[#allocation24_spill] sm:$0xff] %v8891_v14  ;;  %v3556_v24 = vmul.f32 %v8891_v14, %v8891_v14  ;;  %v958_v62 = vrot.slane %v945_v0, 4  ;;  %v961_v20 = vsel %vm754_vm1, %v945_v0, %v960_v21  ;;  %v997_v37 = vperm.slane %v991_v22, %v8644_v63 }
 0x16d   : > { %v1728_v2 = vrot.slane %v1643_v26, 4  ;;  %v972_v19 = vrot.slane %v957_v43, 4  ;;  %v1014_v3 = vrot.slane %v1001_v25, 4  ;;  %v8905_v7 = vsel %vm754_vm1, %v1326_v13, %v919_v53 }
 0x16e   : > { %v3593_v16 = vsel %vm3586_vm2, %v3556_v24, 0.0  ;;  %v969_v21 = vperm.slane %v961_v20, %v8664_v17  ;;  %v1740_v0 = vrot.slane %v1721_v18, 4  ;;  %v959_v13 = vsel %vm754_vm1, %v958_v62, %v8783_v36 }
 0x16f   : > { %3594 = vadd.xlane.f32.xlu2 %v3593_v16  ;;  %v1002_v24 = vrot.slane %v997_v37, 4  ;;  %v1015_v20 = vsel %vm754_vm1, %v1014_v3, %v8770_v34 }
 0x174   : > { %v1691_v12 = vpop.permute.xlu1 %1690  ;;  %v684_v54 = vpop.permute.xlu0 %683 }
 0x175   : > { %v1726_v40 = vrot.slane %v1691_v12, 4  ;;  %v1729_v48 = vsel %vm754_vm1, %v1691_v12, %v1728_v2  ;;  %v824_v22 = vrot.slane %v684_v54, 4  ;;  %v823_v62 = vsel %vm754_vm1, %v822_v51, %v684_v54 }
 0x176   : > { %v1737_v43 = vperm.slane %v1729_v48, %v8644_v63  ;;  %v1003_v51 = vsel %vm754_vm1, %v1002_v24, %v8777_v31  ;;  %v13620_v31 = vrot.slane %v8840_v29, 4  ;;  %v1248_v24 = vrot.slane %v8875_v32, 4 }
 0x177   : > { %v1727_v11 = vsel %vm754_vm1, %v1726_v40, %v1643_v26  ;;  %v953_v26 = vperm.slane %v947_v23, %v8664_v17  ;;  %v1725_v40 = vperm.slane %v1717_v1, %v8644_v63  ;;  %v1017_v1 = vsel %vm754_vm1, %v1001_v25, %v1016_v59 }
 0x178   : > { %v1733_v35 = vperm.slane %v1727_v11, %v8644_v63  ;;  %v8923_v23 = vsel %vm754_vm1, 0.0, %v972_v19  ;;  %v1005_v11 = vsel %vm754_vm1, %v997_v37, %v1004_v5  ;;  %v8935_v59 = vperm.slane %v959_v13, %v8664_v17 }
 0x179   : > { %v970_v16 = vrot.slane %v953_v26, 4  ;;  %v1752_v10 = vrot.slane %v1725_v40, 4  ;;  %v8937_v25 = vrot.slane %v969_v21, 4  ;;  %v1750_v53 = vrot.slane %v1737_v43, 4 }
 0x17a   : > { %v1741_v48 = vsel %vm754_vm1, %v1733_v35, %v1740_v0  ;;  %v1738_v36 = vrot.slane %v1733_v35, 4  ;;  %v825_v5 = vsel %vm754_vm1, %v8651_v6, %v824_v22  ;;  %v1364_v34 = vsel %vm754_vm1, %v972_v19, %v953_v26 }
 0x17b   : > { %v1749_v3 = vperm.slane %v1741_v48, %v8664_v17  ;;  %v1753_v35 = vsel %vm754_vm1, %v1737_v43, %v1752_v10  ;;  %v1013_v54 = vperm.slane %v1005_v11, %v8664_v17  ;;  %v829_v0 = vperm.slane %v823_v62, %v8644_v63 }
 0x17c   : > { %v8912_v2 = vpop.permute.xlu1 %1692  ;;  %v8914_v12 = vpop.permute.xlu0 %691  ;;  %v1761_v21 = vperm.slane %v1753_v35, %v8664_v17  ;;  %v8951_v13 = vsel %vm754_vm1, 0.0, %v970_v16  ;;  %v8954_v6 = vperm.slane %v1015_v20, %v8664_v17  ;;  %v1739_v19 = vsel %vm754_vm1, %v1738_v36, %v1721_v18 }
 0x17d   : > { %v833_v26 = vperm.slane %v825_v5, %v8644_v63  ;;  %v1751_v10 = vsel %vm754_vm1, %v1750_v53, %v1725_v40  ;;  %v834_v43 = vrot.slane %v829_v0, 4  ;;  %v837_v22 = vsel %vm754_vm1, %v829_v0, %v13620_v31 }
 0x17e   : > { %v8970_v18 = vsel %vm754_vm1, 0.0, %v8937_v25  ;;  %v8973_v16 = vperm.slane %v1364_v34, %v8644_v63  ;;  %v1764_v40 = vrot.slane %v1749_v3, 4  ;;  %v8976_v53 = vperm.slane %v1003_v51, %v8664_v17 }
 0x17f   : > { %v1745_v36 = vperm.slane %v1739_v19, %v8664_v17  ;;  %v1768_v32 = vrot.slane %v1761_v21, 4  ;;  %v845_v62 = vperm.slane %v837_v22, %v8664_v17  ;;  %v1757_v5 = vperm.slane %v1751_v10, %v8664_v17 }
 0x180   : > { %13621 = vst [vmem:[#allocation25_spill] sm:$0xff] %v8973_v16  ;;  %v835_v35 = vsel %vm754_vm1, %v834_v43, %v8840_v29  ;;  %v846_v0 = vrot.slane %v833_v26, 4  ;;  %v13623_v31 = vrot.slane %v8832_v60, 4  ;;  %v1025_v3 = vperm.slane %v1017_v1, %v8664_v17 }
 0x181   : > { %13622 = vst [vmem:[#allocation26_spill] sm:$0xff] %v8976_v53  ;;  %v8987_v37 = vrot.slane %v1013_v54, 4  ;;  %v1030_v51 = vrot.slane %v8954_v6, 4  ;;  %v8992_v21 = vsel %vm754_vm1, %v1248_v24, %v8851_v39  ;;  %v1102_v19 = vrot.slane %v8819_v33, 4 }
 0x182   : > { %v849_v34 = vsel %vm754_vm1, %v833_v26, %v13623_v31  ;;  %13625 = vst [vmem:[#allocation28_spill] sm:$0xff] %v8992_v21  ;;  %v13626_v10 = vrot.slane %v8637_v57, 4  ;;  %v1765_v43 = vsel %vm754_vm1, 0.0, %v1764_v40  ;;  %v3554_v1 = vmul.f32 %v8992_v21, %v8992_v21 }
 0x183   : > { %13624 = vst [vmem:[#allocation27_spill] sm:$0xff] %v8987_v37  ;;  %v1769_v54 = vsel %vm754_vm1, 0.0, %v1768_v32  ;;  %v841_v26 = vperm.slane %v835_v35, %v8664_v17  ;;  %v857_v22 = vperm.slane %v849_v34, %v8664_v17  ;;  %v860_v39 = vrot.slane %v845_v62, 4 }
 0x184   : > { %v8963_v11 = vpop.permute.xlu1 %1670  ;;  %v8965_v48 = vpop.permute.xlu0 %739  ;;  %v1105_v29 = vsel %vm754_vm1, %v8819_v33, %v13626_v10  ;;  %v1762_v24 = vrot.slane %v1745_v36, 4  ;;  %v1766_v31 = vrot.slane %v1757_v5, 4  ;;  %v847_v20 = vsel %vm754_vm1, %v846_v0, %v8832_v60 }
 0x185   : > { %v3587_v56 = vsel %vm3586_vm2, %v3554_v1, 0.0  ;;  %v1032_v52 = vrot.slane %v1025_v3, 4  ;;  %v2167_v21 = vrot.slane %v1765_v43, 4  ;;  %v1103_v62 = vsel %vm754_vm1, %v1102_v19, %v8637_v57 }
 0x186   : > { %3588 = vadd.xlane.f32.xlu1 %v3587_v56  ;;  %v1113_v34 = vperm.slane %v1105_v29, %v8644_v63  ;;  %v2173_v60 = vsel %vm754_vm1, %v1768_v32, %v1757_v5  ;;  %v2178_v0 = vrot.slane %v1769_v54, 4  ;;  %v853_v1 = vperm.slane %v847_v20, %v8664_v17 }
 0x187   : > { %v858_v33 = vrot.slane %v841_v26, 4  ;;  %v861_v10 = vsel %vm754_vm1, 0.0, %v860_v39  ;;  %v864_v3 = vrot.slane %v857_v22, 4  ;;  %v9022_v56 = vsel %vm754_vm1, 0.0, %v8987_v37 }
 0x188   : > { %v9025_v43 = vsel %vm754_vm1, 0.0, %v1030_v51  ;;  %v1767_v57 = vsel %vm754_vm1, 0.0, %v1766_v31  ;;  %v1763_v19 = vsel %vm754_vm1, 0.0, %v1762_v24  ;;  %v1109_v32 = vperm.slane %v1103_v62, %v8644_v63 }
 0x189   : > { %13628 = vst [vmem:[#allocation30_spill] sm:$0xff] %v9025_v43  ;;  %v2177_v5 = vperm.slane %v2173_v60, %v8644_v63  ;;  %v2162_v20 = vsel %vm754_vm1, %v1764_v40, %v1745_v36  ;;  %v2168_v29 = vsel %vm754_vm1, %v2167_v21, %v1763_v19  ;;  %v1126_v54 = vrot.slane %v1113_v34, 4 }
 0x18a   : > { %v13629_v22 = vrot.slane %v8787_v15, 4  ;;  %v1261_v37 = vrot.slane %v861_v10, 4  ;;  %v2166_v51 = vperm.slane %v2162_v20, %v8644_v63  ;;  %v859_v31 = vsel %vm754_vm1, 0.0, %v858_v33 }
 0x18b   : > { %v862_v43 = vrot.slane %v853_v1, 4  ;;  %v865_v24 = vsel %vm754_vm1, 0.0, %v864_v3  ;;  %v2179_v62 = vsel %vm754_vm1, %v2178_v0, %v1767_v57  ;;  %v9041_v60 = vsel %vm754_vm1, 0.0, %v1032_v52 }
 0x18c   : > { %v9010_v14 = vpop.permute.xlu1 %1694  ;;  %v9012_v35 = vpop.permute.xlu0 %695  ;;  %v1129_v41 = vsel %vm754_vm1, %v1113_v34, %v13629_v22  ;;  %13630 = vst [vmem:[#allocation31_spill] sm:$0xff] %v9041_v60  ;;  %v1429_v40 = vsel %vm754_vm1, %v1032_v52, %v8954_v6  ;;  %v2172_v36 = vperm.slane %v2168_v29, %v8644_v63  ;;  %v2183_v21 = vperm.slane %v2179_v62, %v8644_v63 }
 0x18d   : > { %13627 = vst [vmem:[#allocation29_spill] sm:$0xff] %v9012_v35  ;;  %v13631_v10 = vrot.slane %v8796_v46, 4  ;;  %v1137_v33 = vperm.slane %v1129_v41, %v8664_v17  ;;  %v2186_v19 = vrot.slane %v2166_v51, 4  ;;  %v2198_v20 = vrot.slane %v2177_v5, 4 }
 0x18e   : > { %v1114_v0 = vrot.slane %v1109_v32, 4  ;;  %v1127_v57 = vsel %vm754_vm1, %v1126_v54, %v8787_v15  ;;  %v1262_v52 = vsel %vm754_vm1, %v1261_v37, %v859_v31  ;;  %v1272_v6 = vrot.slane %v865_v24, 4 }
 0x18f   : > { %v1117_v34 = vsel %vm754_vm1, %v1109_v32, %v13631_v10  ;;  %v9060_v53 = vperm.slane %v1429_v40, %v8644_v63  ;;  %v863_v10 = vsel %vm754_vm1, 0.0, %v862_v43  ;;  %v1256_v32 = vsel %vm754_vm1, %v860_v39, %v841_v26 }
 0x190   : > { %v1125_v16 = vperm.slane %v1117_v34, %v8664_v17  ;;  %v2187_v15 = vsel %vm754_vm1, %v2172_v36, %v2186_v19  ;;  %v2199_v37 = vsel %vm754_vm1, %v2183_v21, %v2198_v20  ;;  %v9069_v54 = vperm.slane %v1127_v57, %v8664_v17 }
 0x191   : > { %13632 = vst [vmem:[#allocation32_spill] sm:$0xff] %v9060_v53  ;;  %v2195_v31 = vperm.slane %v2187_v15, %v8664_v17  ;;  %v2207_v24 = vperm.slane %v2199_v37, %v8664_v17  ;;  %v9074_v40 = vperm.slane %v1262_v52, %v8644_v63  ;;  %v1115_v43 = vsel %vm754_vm1, %v1114_v0, %v8796_v46 }
 0x192   : > { %v1144_v34 = vrot.slane %v1137_v33, 4  ;;  %v1267_v26 = vsel %vm754_vm1, %v864_v3, %v853_v1  ;;  %v1273_v39 = vsel %vm754_vm1, %v1272_v6, %v863_v10  ;;  %v9081_v20 = vperm.slane %v1256_v32, %v8644_v63 }
 0x193   : > { %v2212_v19 = vrot.slane %v2207_v24, 4  ;;  %v9084_v57 = vperm.slane %v1273_v39, %v8644_v63  ;;  %v1278_v15 = vrot.slane %v9074_v40, 4  ;;  %v1048_v52 = vrot.slane %v8914_v12, 4 }
 0x194   : > { %v9051_v22 = vpop.permute.xlu0 %719  ;;  %v9056_v29 = vpop.permute.xlu1 %1696  ;;  %v1046_v37 = vrot.slane %v8965_v48, 4  ;;  %v2184_v41 = vrot.slane %v2172_v36, 4  ;;  %v2196_v46 = vrot.slane %v2183_v21, 4  ;;  %v9093_v1 = vperm.slane %v1267_v26, %v8644_v63 }
 0x195   : > { %v9090_v33 = vsel %vm754_vm1, %v2212_v19, %v2195_v31  ;;  %v1279_v3 = vsel %vm754_vm1, %v1278_v15, %v9081_v20  ;;  %v1290_v0 = vrot.slane %v9084_v57, 4  ;;  %v1049_v10 = vsel %vm754_vm1, %v8965_v48, %v1048_v52 }
 0x196   : > { %13633 = vst [vmem:[#allocation33_spill] sm:$0xff] %v9090_v33  ;;  %v4071_v36 = vmul.f32 %v9090_v33, %v9090_v33  ;;  %v1285_v21 = vperm.slane %v1279_v3, %v8664_v17  ;;  %v2185_v32 = vsel %vm754_vm1, %v2184_v41, %v2166_v51  ;;  %v9107_v26 = vperm.slane %v1115_v43, %v8664_v17 }
 0x197   : > { %v1291_v39 = vsel %vm754_vm1, %v1290_v0, %v9093_v1  ;;  %v2191_v19 = vperm.slane %v2185_v32, %v8664_v17  ;;  %v2197_v15 = vsel %vm754_vm1, %v2196_v46, %v2177_v5  ;;  %v1047_v48 = vsel %vm754_vm1, %v1046_v37, %v8914_v12 }
 0x198   : > { %13634 = vst [vmem:[#allocation34_spill] sm:$0xff] %v9107_v26  ;;  %v4111_v52 = vsel %vm3586_vm2, %v4071_v36, 0.0  ;;  %v1297_v62 = vperm.slane %v1291_v39, %v8664_v17  ;;  %v1304_v3 = vrot.slane %v1285_v21, 4  ;;  %v9119_v51 = vrot.slane %v1125_v16, 4 }
 0x199   : > { %v1057_v41 = vperm.slane %v1049_v10, %v8644_v63  ;;  %4112 = vadd.xlane.f32.xlu1 %v4111_v52  ;;  %v2203_v43 = vperm.slane %v2197_v15, %v8664_v17  ;;  %v2210_v0 = vrot.slane %v2191_v19, 4  ;;  %v1142_v5 = vrot.slane %v9069_v54, 4 }
 0x19a   : > { %13635 = vst [vmem:[#allocation35_spill] sm:$0xff] %v9119_v51  ;;  %v9125_v46 = vsel %vm754_vm1, %v1297_v62, %v1304_v3  ;;  %v1302_v12 = vrot.slane %v1297_v62, 4  ;;  %v2214_v37 = vrot.slane %v2195_v31, 4  ;;  %v9128_v36 = vsel %vm754_vm1, 0.0, %v1144_v34 }
 0x19b   : > { %13636 = vst [vmem:[#allocation36_spill] sm:$0xff] %v9125_v46  ;;  %v1053_v32 = vperm.slane %v1047_v48, %v8644_v63  ;;  %v3557_v16 = vmul.f32 %v9125_v46, %v9125_v46  ;;  %v9134_v10 = vsel %vm754_vm1, %v2203_v43, %v2210_v0  ;;  %v1537_v39 = vsel %vm754_vm1, %v1144_v34, %v9069_v54 }
 0x19c   : > { %v9098_v6 = vpop.permute.xlu0 %1644  ;;  %v9117_v33 = vpop.permute.xlu1 %1674  ;;  %13637 = vst [vmem:[#allocation37_spill] sm:$0xff] %v9128_v36  ;;  %v1826_v15 = vrot.slane %v8963_v11, 4  ;;  %v9140_v52 = vsel %vm754_vm1, %v1302_v12, %v1285_v21  ;;  %v4069_v62 = vmul.f32 %v9134_v10, %v9134_v10  ;;  %v1070_v31 = vrot.slane %v1057_v41, 4 }
 0x19d   : > { %13638 = vst [vmem:[#allocation38_spill] sm:$0xff] %v9134_v10  ;;  %v13640_v48 = vrot.slane %v8884_v27, 4  ;;  %v3596_v46 = vsel %vm3586_vm2, %v3557_v16, 0.0  ;;  %v3555_v0 = vmul.f32 %v9140_v52, %v9140_v52  ;;  %v1828_v21 = vrot.slane %v8589_v44, 4 }
 0x19e   : > { %13639 = vst [vmem:[#allocation39_spill] sm:$0xff] %v9140_v52  ;;  %3597 = vadd.xlane.f32.xlu2 %v3596_v46  ;;  %v9154_v12 = vsel %vm754_vm1, %v2207_v24, %v2214_v37  ;;  %v1058_v60 = vrot.slane %v1053_v32, 4  ;;  %v13642_v53 = vrot.slane %v8881_v28, 4  ;;  %v1827_v54 = vsel %vm754_vm1, %v1826_v15, %v8589_v44 }
 0x19f   : > { %v1073_v3 = vsel %vm754_vm1, %v1057_v41, %v13640_v48  ;;  %13641 = vst [vmem:[#allocation40_spill] sm:$0xff] %v9154_v12  ;;  %v3590_v16 = vsel %vm3586_vm2, %v3555_v0, 0.0  ;;  %v2208_v48 = vrot.slane %v2203_v43, 4  ;;  %v1829_v34 = vsel %vm754_vm1, %v8963_v11, %v1828_v21 }
 0x1a0   : > { %v1061_v41 = vsel %vm754_vm1, %v1053_v32, %v13642_v53  ;;  %v1081_v46 = vperm.slane %v1073_v3, %v8664_v17  ;;  %3591 = vadd.xlane.f32.xlu0 %v3590_v16  ;;  %v4105_v24 = vsel %vm3586_vm2, %v4069_v62, 0.0  ;;  %v9168_v37 = vsel %vm754_vm1, 0.0, %v9119_v51 }
 0x1a1   : > { %13643 = vst [vmem:[#allocation41_spill] sm:$0xff] %v9168_v37  ;;  %v1071_v53 = vsel %vm754_vm1, %v1070_v31, %v8884_v27  ;;  %4106 = vadd.xlane.f32.xlu1 %v4105_v24  ;;  %v4073_v43 = vmul.f32 %v9154_v12, %v9154_v12  ;;  %v9175_v44 = vsel %vm754_vm1, %v2208_v48, %v2191_v19  ;;  %v1784_v32 = vrot.slane %v9098_v6, 4 }
 0x1a2   : > { %13644 = vst [vmem:[#allocation42_spill] sm:$0xff] %v9175_v44  ;;  %v1069_v11 = vperm.slane %v1061_v41, %v8664_v17  ;;  %v13645_v3 = vrot.slane %v8580_v42, 4  ;;  %v9185_v27 = vperm.slane %v1827_v54, %v8644_v63  ;;  %v9188_v31 = vperm.slane %v1829_v34, %v8644_v63 }
 0x1a3   : > { %v1059_v19 = vsel %vm754_vm1, %v1058_v60, %v8881_v28  ;;  %v4067_v21 = vmul.f32 %v9175_v44, %v9175_v44  ;;  %v9195_v41 = vsel %vm754_vm1, 0.0, %v1142_v5  ;;  %v9198_v16 = vperm.slane %v1537_v39, %v8644_v63 }
 0x1a4   : > { %v1669_v10 = vpop.permute.xlu0 %1668  ;;  %v9179_v15 = vpop.permute.xlu1 %1700  ;;  %13646 = vst [vmem:[#allocation43_spill] sm:$0xff] %v9195_v41  ;;  %v1088_v48 = vrot.slane %v1081_v46, 4  ;;  %v1782_v34 = vrot.slane %v8912_v2, 4  ;;  %v4117_v24 = vsel %vm3586_vm2, %v4073_v43, 0.0  ;;  %v9206_v60 = vperm.slane %v1059_v19, %v8664_v17 }
 0x1a5   : > { %v1770_v62 = vrot.slane %v1669_v10, 4  ;;  %v1773_v0 = vsel %vm754_vm1, %v1669_v10, %v13645_v3  ;;  %13647 = vst [vmem:[#allocation44_spill] sm:$0xff] %v9198_v16  ;;  %v1077_v10 = vperm.slane %v1071_v53, %v8664_v17  ;;  %v9208_v3 = vrot.slane %v1069_v11, 4  ;;  %v1649_v11 = vpop.permute.xlu2 %1648 }
 0x1a6   : > { %v1781_v28 = vperm.slane %v1773_v0, %v8644_v63  ;;  %4118 = vadd.xlane.f32.xlu2 %v4117_v24  ;;  %v1785_v5 = vsel %vm754_vm1, %v8912_v2, %v1784_v32  ;;  %v1852_v46 = vrot.slane %v9185_v27, 4  ;;  %v1838_v43 = vrot.slane %v9010_v14, 4 }
 0x1a7   : > { %13648 = vst [vmem:[#allocation45_spill] sm:$0xff] %v9208_v3  ;;  %v1771_v39 = vsel %vm754_vm1, %v1770_v62, %v8580_v42  ;;  %v4099_v0 = vsel %vm3586_vm2, %v4067_v21, 0.0  ;;  %v1086_v54 = vrot.slane %v1077_v10, 4  ;;  %v1483_v19 = vsel %vm754_vm1, %v1088_v48, %v1077_v10 }
 0x1a8   : > { %v1146_v24 = vrot.slane %v9051_v22, 4  ;;  %4100 = vadd.xlane.f32.xlu0 %v4099_v0  ;;  %v1783_v42 = vsel %vm754_vm1, %v1782_v34, %v9098_v6  ;;  %v1793_v32 = vperm.slane %v1785_v5, %v8644_v63  ;;  %v1777_v62 = vperm.slane %v1771_v39, %v8644_v63 }
 0x1a9   : > { %v1808_v53 = vrot.slane %v1781_v28, 4  ;;  %v9228_v21 = vsel %vm754_vm1, 0.0, %v9208_v3  ;;  %v9231_v10 = vsel %vm754_vm1, 0.0, %v1088_v48  ;;  %v1938_v0 = vrot.slane %v9117_v33, 4 }
 0x1aa   : > { %13649 = vst [vmem:[#allocation46_spill] sm:$0xff] %v9228_v21  ;;  %v9235_v52 = vperm.slane %v1483_v19, %v8644_v63  ;;  %v1894_v6 = vrot.slane %v9056_v29, 4  ;;  %v1147_v39 = vsel %vm754_vm1, %v1146_v24, %v8600_v47  ;;  %v13652_v12 = vrot.slane %v8600_v47, 4 }
 0x1ab   : > { %13650 = vst [vmem:[#allocation47_spill] sm:$0xff] %v9231_v10  ;;  %v1940_v44 = vrot.slane %v8616_v50, 4  ;;  %v1789_v16 = vperm.slane %v1783_v42, %v8644_v63  ;;  %v1806_v19 = vrot.slane %v1793_v32, 4  ;;  %v1796_v41 = vrot.slane %v1777_v62, 4 }
 0x1ac   : > { %v1647_v2 = vpop.permute.xlu0 %1646  ;;  %13651 = vst [vmem:[#allocation48_spill] sm:$0xff] %v9235_v52  ;;  %v1149_v48 = vsel %vm754_vm1, %v9051_v22, %v13652_v12  ;;  %v9247_v36 = vpop.permute.xlu1 %1654  ;;  %v1809_v37 = vsel %vm754_vm1, %v1793_v32, %v1808_v53  ;;  %v1939_v24 = vsel %vm754_vm1, %v1938_v0, %v8616_v50  ;;  %v9257_v12 = vperm.slane %v1147_v39, %v8644_v63 }
 0x1ad   : > { %v1839_v34 = vsel %vm754_vm1, %v1838_v43, %v1647_v2  ;;  %v1840_v5 = vrot.slane %v1647_v2, 4  ;;  %v1896_v43 = vrot.slane %v1649_v11, 4  ;;  %v1941_v51 = vsel %vm754_vm1, %v9117_v33, %v1940_v44  ;;  %v1653_v2 = vpop.permute.xlu2 %1652 }
 0x1ae   : > { %v1845_v22 = vperm.slane %v1839_v34, %v8644_v63  ;;  %13653 = vst [vmem:[#allocation49_spill] sm:$0xff] %v9257_v12  ;;  %v9260_v42 = vperm.slane %v1149_v48, %v8644_v63  ;;  %v1807_v26 = vsel %vm754_vm1, %v1806_v19, %v1781_v28  ;;  %v9266_v32 = vsel %vm754_vm1, 0.0, %v1086_v54 }
 0x1af   : > { %v1841_v53 = vsel %vm754_vm1, %v9010_v14, %v1840_v5  ;;  %13655 = vst [vmem:[#allocation51_spill] sm:$0xff] %v9266_v32  ;;  %v1794_v50 = vrot.slane %v1789_v16, 4  ;;  %v1817_v0 = vperm.slane %v1809_v37, %v8664_v17  ;;  %v1895_v33 = vsel %vm754_vm1, %v1894_v6, %v1649_v11 }
 0x1b0   : > { %13654 = vst [vmem:[#allocation50_spill] sm:$0xff] %v9260_v42  ;;  %v9271_v44 = vperm.slane %v1939_v24, %v8644_v63  ;;  %v9274_v34 = vperm.slane %v1941_v51, %v8644_v63  ;;  %v1797_v39 = vsel %vm754_vm1, %v1789_v16, %v1796_v41  ;;  %v1897_v28 = vsel %vm754_vm1, %v9056_v29, %v1896_v43  ;;  %v7971_v43 = vld [vmem:[%s13496_s9] sm:$0xf] }
 0x1b1   : > { %v1795_v14 = vsel %vm754_vm1, %v1794_v50, %v1777_v62  ;;  %v1813_v54 = vperm.slane %v1807_v26, %v8664_v17  ;;  %v1849_v5 = vperm.slane %v1841_v53, %v8644_v63  ;;  %v1850_v37 = vrot.slane %v1845_v22, 4 }
 0x1b2   : > { %v9286_v51 = vperm.slane %v1895_v33, %v8644_v63  ;;  %v1805_v41 = vperm.slane %v1797_v39, %v8664_v17  ;;  %v1824_v16 = vrot.slane %v1817_v0, 4  ;;  %v9290_v29 = vperm.slane %v1897_v28, %v8644_v63 }
 0x1b3   : > { %v1853_v26 = vsel %vm754_vm1, %v1845_v22, %v1852_v46  ;;  %v2006_v24 = vrot.slane %v9179_v15, 4  ;;  %v1801_v53 = vperm.slane %v1795_v14, %v8664_v17  ;;  %v1822_v50 = vrot.slane %v1813_v54, 4 }
 0x1b4   : > { %v1673_v62 = vpop.permute.xlu0 %1672  ;;  %v1851_v33 = vsel %vm754_vm1, %v1850_v37, %v9185_v27  ;;  %v1862_v39 = vrot.slane %v1849_v5, 4  ;;  %v2052_v0 = vrot.slane %v8629_v55, 4  ;;  %v1679_v28 = vpop.permute.xlu1 %1678  ;;  %v1906_v6 = vrot.slane %v9286_v51, 4 }
 0x1b5   : > { %v1861_v46 = vperm.slane %v1853_v26, %v8664_v17  ;;  %v1884_v22 = vrot.slane %v8592_v45, 4  ;;  %v1882_v48 = vrot.slane %v1673_v62, 4  ;;  %v1820_v11 = vrot.slane %v1805_v41, 4 }
 0x1b6   : > { %v1825_v19 = vsel %vm754_vm1, 0.0, %v1824_v16  ;;  %v1918_v14 = vrot.slane %v9290_v29, 4  ;;  %v1818_v27 = vrot.slane %v1801_v53, 4  ;;  %v9307_v37 = vperm.slane %v1851_v33, %v8664_v17 }
 0x1b7   : > { %v13656_v12 = vrot.slane %v9188_v31, 4  ;;  %v2050_v26 = vrot.slane %v1679_v28, 4  ;;  %v1823_v35 = vsel %vm754_vm1, 0.0, %v1822_v50  ;;  %v1863_v41 = vsel %vm754_vm1, %v1862_v39, %v9188_v31 }
 0x1b8   : > { %v4582_v52 = vrot.slane %v7971_v43, 2  ;;  %v2008_v33 = vrot.slane %v1653_v2, 4  ;;  %v2232_v10 = vrot.slane %v1825_v19, 4  ;;  %v9320_v32 = vrot.slane %v1861_v46, 4 }
 0x1b9   : > { %v1865_v42 = vsel %vm754_vm1, %v1849_v5, %v13656_v12  ;;  %v1883_v12 = vsel %vm754_vm1, %v1882_v48, %v8592_v45  ;;  %v1885_v5 = vsel %vm754_vm1, %v1673_v62, %v1884_v22  ;;  %v1821_v50 = vsel %vm754_vm1, 0.0, %v1820_v11 }
 0x1ba   : > { %743 = vrot.lane.b32.xlu1 %v8600_v47, %s8257_s12  ;;  %v2227_v31 = vsel %vm754_vm1, %v1824_v16, %v1813_v54  ;;  %v1873_v47 = vperm.slane %v1865_v42, %v8664_v17  ;;  %v2053_v39 = vsel %vm754_vm1, %v1679_v28, %v2052_v0  ;;  %v9330_v21 = vperm.slane %v1863_v41, %v8664_v17 }
 0x1bb   : > { %v1874_v19 = vrot.slane %v9307_v37, 4  ;;  %v2051_v43 = vsel %vm754_vm1, %v2050_v26, %v8629_v55  ;;  %v2216_v45 = vsel %vm754_vm1, %v1820_v11, %v1801_v53  ;;  %v1889_v48 = vperm.slane %v1883_v12, %v8644_v63 }
 0x1bc   : > { %v1893_v62 = vperm.slane %v1885_v5, %v8644_v63  ;;  %v4586_v46 = vperm.slane %v4582_v52, 0  ;;  %v2007_v54 = vsel %vm754_vm1, %v2006_v24, %v1653_v2  ;;  %v9339_v42 = vpop.permute.xlu0 %1650  ;;  %v2231_v16 = vperm.slane %v2227_v31, %v8644_v63 }
 0x1bd   : > { %v2233_v0 = vsel %vm754_vm1, %v2232_v10, %v1823_v35  ;;  %v9345_v28 = vsel %vm754_vm1, 0.0, %v9320_v32  ;;  %v9348_v55 = vperm.slane %v2053_v39, %v8644_v63  ;;  %v9350_v11 = vrot.slane %v1873_v47, 4 }
 0x1be   : > { %v9353_v53 = vperm.slane %v2051_v43, %v8644_v63  ;;  %v2220_v52 = vperm.slane %v2216_v45, %v8644_v63  ;;  %v2221_v2 = vrot.slane %v1821_v50, 4  ;;  %v9357_v24 = vsel %vm754_vm1, 0.0, %v1874_v19 }
 0x1bf   : > { %v1878_v35 = vrot.slane %v9330_v21, 4  ;;  %v2009_v10 = vsel %vm754_vm1, %v9179_v15, %v2008_v33  ;;  %v1819_v22 = vsel %vm754_vm1, 0.0, %v1818_v27  ;;  %v1907_v26 = vsel %vm754_vm1, %v1906_v6, %v1889_v48 }
 0x1c0   : > { %v1908_v41 = vrot.slane %v1889_v48, 4  ;;  %v1920_v12 = vrot.slane %v1893_v62, 4  ;;  %v2222_v5 = vsel %vm754_vm1, %v2221_v2, %v1819_v22  ;;  %v2088_v50 = vrot.slane %v9348_v55, 4  ;;  %v1703_v2 = vpop.permute.xlu1 %1702 }
 0x1c1   : > { %v2226_v47 = vperm.slane %v2222_v5, %v8644_v63  ;;  %v2237_v39 = vperm.slane %v2233_v0, %v8644_v63  ;;  %v9371_v15 = vsel %vm754_vm1, 0.0, %v9350_v11  ;;  %v2240_v6 = vrot.slane %v2220_v52, 4 }
 0x1c2   : > { %4597 = vperm.xlu1 %7649, %v4586_v46   ;;  %v2252_v33 = vrot.slane %v2231_v16, 4  ;;  %v9375_v19 = vperm.slane %v1907_v26, %v8664_v17  ;;  %v1919_v43 = vsel %vm754_vm1, %v1918_v14, %v1893_v62  ;;  %v1909_v46 = vsel %vm754_vm1, %v9286_v51, %v1908_v41 }
 0x1c3   : > { %v2238_v45 = vrot.slane %v2226_v47, 4  ;;  %v2250_v48 = vrot.slane %v2237_v39, 4  ;;  %v1921_v0 = vsel %vm754_vm1, %v9290_v29, %v1920_v12  ;;  %v2241_v22 = vsel %vm754_vm1, %v2226_v47, %v2240_v6 }
 0x1c4   : > { %v2253_v5 = vsel %vm754_vm1, %v2237_v39, %v2252_v33  ;;  %v2249_v31 = vperm.slane %v2241_v22, %v8664_v17  ;;  %v9389_v62 = vsel %vm754_vm1, 0.0, %v1878_v35  ;;  %v1925_v51 = vperm.slane %v1919_v43, %v8664_v17  ;;  %v1699_v12 = vpop.permute.xlu0 %1698 }
 0x1c5   : > { %v2261_v26 = vperm.slane %v2253_v5, %v8664_v17  ;;  %v2239_v27 = vsel %vm754_vm1, %v2238_v45, %v2220_v52  ;;  %v2251_v14 = vsel %vm754_vm1, %v2250_v48, %v2231_v16  ;;  %v1917_v47 = vperm.slane %v1909_v46, %v8664_v17 }
 0x1c6   : > { %v9393_v29 = vperm.slane %v2239_v27, %v8664_v17  ;;  %v9396_v41 = vperm.slane %v2251_v14, %v8664_v17  ;;  %v2062_v39 = vrot.slane %v1703_v2, 4  ;;  %v13657_v6 = vrot.slane %v9247_v36, 4 }
 0x1c7   : > { %v2266_v16 = vrot.slane %v2261_v26, 4  ;;  %v1929_v35 = vperm.slane %v1921_v0, %v8664_v17  ;;  %v9404_v33 = vperm.slane %v2007_v54, %v8644_v63  ;;  %v1292_v43 = vrot.slane %v9093_v1, 4 }
 0x1c8   : > { %v2065_v52 = vsel %vm754_vm1, %v1703_v2, %v13657_v6  ;;  %v2262_v27 = vrot.slane %v9396_v41, 4  ;;  %v1930_v45 = vrot.slane %v9375_v19, 4  ;;  %v9410_v48 = vperm.slane %v2009_v10, %v8644_v63 }
 0x1c9   : > { %v9413_v46 = vsel %vm754_vm1, %v2266_v16, %v2249_v31  ;;  %v1280_v2 = vrot.slane %v9081_v20, 4  ;;  %v1934_v22 = vrot.slane %v1925_v51, 4  ;;  %v9417_v0 = vperm.slane %v2065_v52, %v8644_v63 }
 0x1ca   : > { %13658 = vst [vmem:[#allocation52_spill] sm:$0xff] %v9413_v46  ;;  %v4072_v54 = vmul.f32 %v9413_v46, %v9413_v46  ;;  %v9423_v1 = vsel %vm754_vm1, %v2262_v27, %v9393_v29  ;;  %v9426_v10 = vrot.slane %v1917_v47, 4  ;;  %v2063_v14 = vsel %vm754_vm1, %v2062_v39, %v9247_v36 }
 0x1cb   : > { %13659 = vst [vmem:[#allocation53_spill] sm:$0xff] %v9423_v1  ;;  %v4068_v20 = vmul.f32 %v9423_v1, %v9423_v1  ;;  %v1936_v6 = vrot.slane %v1929_v35, 4  ;;  %v1293_v46 = vsel %vm754_vm1, %v9084_v57, %v1292_v43  ;;  %v1952_v5 = vrot.slane %v9339_v42, 4 }
 0x1cc   : > { %v4114_v16 = vsel %vm3586_vm2, %v4072_v54, 0.0  ;;  %v1281_v36 = vsel %vm754_vm1, %v9074_v40, %v1280_v2  ;;  %v9442_v39 = vsel %vm754_vm1, 0.0, %v1930_v45  ;;  %v1935_v35 = vsel %vm754_vm1, 0.0, %v1934_v22 }
 0x1cd   : > { %4115 = vadd.xlane.f32.xlu0 %v4114_v16  ;;  %v4102_v47 = vsel %vm3586_vm2, %v4068_v20, 0.0  ;;  %v2069_v54 = vperm.slane %v2063_v14, %v8644_v63  ;;  %v2086_v52 = vrot.slane %v9417_v0, 4  ;;  %v9449_v57 = vsel %vm754_vm1, 0.0, %v9426_v10  ;;  %v1677_v14 = vpop.permute.xlu0 %1676 }
 0x1ce   : > { %4103 = vadd.xlane.f32.xlu2 %v4102_v47  ;;  %v2089_v43 = vsel %vm754_vm1, %v9417_v0, %v2088_v50  ;;  %v9454_v20 = vperm.slane %v1293_v46, %v8664_v17  ;;  %v2268_v40 = vrot.slane %v2249_v31, 4  ;;  %v1937_v45 = vsel %vm754_vm1, 0.0, %v1936_v6 }
 0x1cf   : > { %v1950_v2 = vrot.slane %v1699_v12, 4  ;;  %v9458_v22 = vperm.slane %v1281_v36, %v8664_v17  ;;  %v1310_v16 = vsel %vm754_vm1, %v8836_v58, %v8804_v61  ;;  %v1315_v31 = vrot.slane %v8865_v38, 4 }
 0x1d0   : > { %v1306_v47 = vrot.slane %v9454_v20, 4  ;;  %v9465_v27 = vsel %vm754_vm1, %v2261_v26, %v2268_v40  ;;  %v9468_v50 = vperm.slane %v1310_v16, %v8644_v63  ;;  %v9472_v46 = vsel %vm754_vm1, %v1936_v6, %v1925_v51 }
 0x1d1   : > { %13660 = vst [vmem:[#allocation54_spill] sm:$0xff] %v9465_v27  ;;  %v1953_v0 = vsel %vm754_vm1, %v1699_v12, %v1952_v5  ;;  %v4074_v36 = vmul.f32 %v9465_v27, %v9465_v27  ;;  %v13661_v58 = vrot.slane %v8804_v61, 4  ;;  %v2340_v3 = vrot.slane %v1937_v45, 4  ;;  %v13758_v27 = vld [vmem:[#allocation37_spill] sm:$0xff] }
 0x1d2   : > { %v9482_v26 = vsel %vm754_vm1, %v1306_v47, %v9458_v22  ;;  %v1994_v40 = vrot.slane %v1677_v14, 4  ;;  %v1996_v12 = vrot.slane %v8603_v49, 4  ;;  %v1334_v61 = vrot.slane %v9468_v50, 4 }
 0x1d3   : > { %v915_v1 = vsel %vm754_vm1, 0.0, %v13661_v58  ;;  %13662 = vst [vmem:[#allocation55_spill] sm:$0xff] %v9482_v26  ;;  %v3559_v51 = vmul.f32 %v9482_v26, %v9482_v26  ;;  %v1951_v6 = vsel %vm754_vm1, %v1950_v2, %v9339_v42  ;;  %v1961_v45 = vperm.slane %v1953_v0, %v8644_v63 }
 0x1d4   : > { %v1316_v38 = vsel %vm754_vm1, %v1315_v31, %v915_v1  ;;  %v4120_v16 = vsel %vm3586_vm2, %v4074_v36, 0.0  ;;  %v9498_v1 = vperm.slane %v8905_v7, %v8644_v63  ;;  %v2097_v31 = vperm.slane %v2089_v43, %v8664_v17 }
 0x1d5   : > { %v9489_v5 = vperm.slane %v1316_v38, %v8644_v63  ;;  %v3602_v58 = vsel %vm3586_vm2, %v3559_v51, 0.0  ;;  %v1997_v38 = vsel %vm754_vm1, %v1677_v14, %v1996_v12  ;;  %v2074_v26 = vrot.slane %v2069_v54, 4 }
 0x1d6   : > { %4121 = vadd.xlane.f32.xlu2 %v4120_v16  ;;  %3603 = vadd.xlane.f32.xlu0 %v3602_v58  ;;  %v1995_v42 = vsel %vm754_vm1, %v1994_v40, %v8603_v49  ;;  %v1346_v7 = vrot.slane %v8844_v4, 4  ;;  %v2341_v0 = vsel %vm754_vm1, %v2340_v3, %v1935_v35  ;;  %v13663_v36 = vrot.slane %v9353_v53, 4 }
 0x1d7   : > { %v1335_v2 = vsel %vm754_vm1, %v9489_v5, %v1334_v61  ;;  %v2087_v51 = vsel %vm754_vm1, %v2086_v52, %v9348_v55  ;;  %v1957_v14 = vperm.slane %v1951_v6, %v8644_v63  ;;  %v1974_v12 = vrot.slane %v1961_v45, 4 }
 0x1d8   : > { %v2077_v43 = vsel %vm754_vm1, %v2069_v54, %v13663_v36  ;;  %v2005_v16 = vperm.slane %v1997_v38, %v8644_v63  ;;  %v1347_v49 = vsel %vm754_vm1, %v9498_v1, %v1346_v7  ;;  %v2264_v40 = vrot.slane %v9393_v29, 4 }
 0x1d9   : > { %v13664_v61 = vrot.slane %v9274_v34, 4  ;;  %v2001_v35 = vperm.slane %v1995_v42, %v8644_v63  ;;  %v1343_v54 = vperm.slane %v1335_v2, %v8664_v17  ;;  %v1355_v55 = vperm.slane %v1347_v49, %v8664_v17 }
 0x1da   : > { %v2075_v52 = vsel %vm754_vm1, %v2074_v26, %v9353_v53  ;;  %v2085_v6 = vperm.slane %v2077_v43, %v8664_v17  ;;  %v2104_v58 = vrot.slane %v2097_v31, 4  ;;  %v9531_v38 = vsel %vm754_vm1, %v9396_v41, %v2264_v40 }
 0x1db   : > { %v1977_v3 = vsel %vm754_vm1, %v1961_v45, %v13664_v61  ;;  %v9534_v29 = vperm.slane %v2341_v0, %v8644_v63  ;;  %v2093_v45 = vperm.slane %v2087_v51, %v8664_v17  ;;  %v1962_v42 = vrot.slane %v1957_v14, 4 }
 0x1dc   : > { %v1360_v7 = vrot.slane %v1355_v55, 4  ;;  %v13665_v2 = vrot.slane %v9271_v44, 4  ;;  %v1985_v53 = vperm.slane %v1977_v3, %v8664_v17  ;;  %v2032_v26 = vrot.slane %v2005_v16, 4 }
 0x1dd   : > { %v4070_v31 = vmul.f32 %v9531_v38, %v9531_v38  ;;  %v1975_v41 = vsel %vm754_vm1, %v1974_v12, %v9274_v34  ;;  %v2020_v43 = vrot.slane %v2001_v35, 4  ;;  %v1362_v51 = vrot.slane %v1343_v54, 4 }
 0x1de   : > { %v1965_v36 = vsel %vm754_vm1, %v1957_v14, %v13665_v2  ;;  %v9546_v0 = vsel %vm754_vm1, %v1360_v7, %v1343_v54  ;;  %v9548_v49 = vrot.slane %v2085_v6, 4  ;;  %v9551_v40 = vsel %vm754_vm1, 0.0, %v2104_v58 }
 0x1df   : > { %13666 = vst [vmem:[#allocation56_spill] sm:$0xff] %v9546_v0  ;;  %v3566_v14 = vmul.f32 %v9546_v0, %v9546_v0  ;;  %v4108_v61 = vsel %vm3586_vm2, %v4070_v31, 0.0  ;;  %v2102_v3 = vrot.slane %v2093_v45, 4  ;;  %v1963_v2 = vsel %vm754_vm1, %v1962_v42, %v9271_v44 }
 0x1e0   : > { %v1973_v34 = vperm.slane %v1965_v36, %v8664_v17  ;;  %4109 = vadd.xlane.f32.xlu2 %v4108_v61  ;;  %v1254_v12 = vrot.slane %v8759_v8, 4  ;;  %v1981_v54 = vperm.slane %v1975_v41, %v8664_v17  ;;  %v13667_v6 = vrot.slane %v9410_v48, 4 }
 0x1e1   : > { %v2033_v47 = vsel %vm754_vm1, %v9410_v48, %v2032_v26  ;;  %v3623_v31 = vsel %vm3586_vm2, %v3566_v14, 0.0  ;;  %v1992_v0 = vrot.slane %v1985_v53, 4  ;;  %v2021_v44 = vsel %vm754_vm1, %v9404_v33, %v2020_v43 }
 0x1e2   : > { %v2031_v7 = vsel %vm754_vm1, %v13667_v6, %v2005_v16  ;;  %3624 = vadd.xlane.f32.xlu0 %v3623_v31  ;;  %v9570_v42 = vsel %vm754_vm1, %v1355_v55, %v1362_v51  ;;  %v9574_v8 = vsel %vm754_vm1, %v8762_v9, %v1254_v12  ;;  %v9577_v36 = vperm.slane %v2075_v52, %v8664_v17  ;;  %v627_v6 = vld [vmem:[#allocation8 + $0x18] sm:$0xff] }
 0x1e3   : > { %13668 = vst [vmem:[#allocation57_spill] sm:$0xff] %v9570_v42  ;;  %v9580_v16 = vsel %vm754_vm1, %v2104_v58, %v2093_v45  ;;  %v3560_v53 = vmul.f32 %v9574_v8, %v9574_v8  ;;  %v9585_v26 = vrot.slane %v1973_v34, 4  ;;  %v2037_v55 = vperm.slane %v2031_v7, %v8664_v17  ;;  %644 = vmatpush.msrb.mxu2 %v627_v6 }
 0x1e4   : > { %13669 = vst [vmem:[#allocation58_spill] sm:$0xff] %v9574_v8  ;;  %v2041_v41 = vperm.slane %v2033_v47, %v8664_v17  ;;  %v13670_v9 = vrot.slane %v9449_v57, 4  ;;  %v9594_v43 = vperm.slane %v1963_v2, %v8664_v17  ;;  %v13671_v58 = vrot.slane %v9404_v33, 4  ;;  %v3601_v2 = vpop.xlane.xlu2 %3600 }
 0x1e5   : > { %v2029_v51 = vperm.slane %v2021_v44, %v8664_v17  ;;  %v3568_v14 = vmul.f32 %v9570_v42, %v9570_v42  ;;  %v9604_v47 = vsel %vm754_vm1, 0.0, %v9548_v49  ;;  %v9607_v57 = vsel %vm754_vm1, 0.0, %v2102_v3 }
 0x1e6   : > { %v2330_v52 = vsel %vm754_vm1, %v13670_v9, %v9442_v39  ;;  %v2019_v45 = vsel %vm754_vm1, %v13671_v58, %v2001_v35  ;;  %v1990_v39 = vrot.slane %v1981_v54, 4  ;;  %v9610_v61 = vsel %vm754_vm1, 0.0, %v1992_v0 }
 0x1e7   : > { %v2389_v33 = vsel %vm754_vm1, %v1992_v0, %v1981_v54  ;;  %v3605_v35 = vsel %vm3586_vm2, %v3560_v53, 0.0  ;;  %v2324_v34 = vsel %vm754_vm1, %v9426_v10, %v9375_v19  ;;  %v2334_v12 = vperm.slane %v2330_v52, %v8644_v63  ;;  %v1681_v10 = vpop.permute.xlu0 %1680 }
 0x1e8   : > { %v9620_v3 = vsel %vm754_vm1, 0.0, %v9585_v26  ;;  %v9623_v7 = vperm.slane %v2019_v45, %v8664_v17  ;;  %v2046_v31 = vrot.slane %v2037_v55, 4  ;;  %v2048_v44 = vrot.slane %v2041_v41, 4  ;;  %3606 = vadd.xlane.f32.xlu2 %v3605_v35 }
 0x1e9   : > { %v9626_v54 = vrot.slane %v2029_v51, 4  ;;  %v9628_v53 = vadd.f32 1e-24, %v3601_v2  ;;  %v3629_v19 = vsel %vm3586_vm2, %v3568_v14, 0.0  ;;  %v2328_v9 = vperm.slane %v2324_v34, %v8644_v63 }
 0x1ea   : > { %3630 = vadd.xlane.f32.xlu0 %v3629_v19  ;;  %v2339_v52 = vperm.slane %v9472_v46, %v8644_v63  ;;  %v2346_v58 = vrot.slane %v2334_v12, 4  ;;  %v2358_v41 = vrot.slane %v9534_v29, 4  ;;  %v9636_v45 = vsel %vm754_vm1, 0.0, %v1990_v39 }
 0x1eb   : > { %v9640_v2 = vperm.slane %v2389_v33, %v8644_v63  ;;  %v2047_v34 = vsel %vm754_vm1, 0.0, %v2046_v31  ;;  %v2443_v6 = vsel %vm754_vm1, %v2048_v44, %v2037_v55  ;;  %v2108_v46 = vrot.slane %v8673_v30, 4 }
 0x1ec   : > { %v9649_v19 = vsel %vm754_vm1, 0.0, %v9626_v54  ;;  %7715 = vrsqrt.f32 %v9628_v53  ;;  %v2106_v39 = vrot.slane %v1681_v10, 4  ;;  %v2347_v33 = vsel %vm754_vm1, %v2346_v58, %v2328_v9 }
 0x1ed   : > { %v2049_v48 = vsel %vm754_vm1, 0.0, %v2048_v44  ;;  %v2359_v51 = vsel %vm754_vm1, %v2358_v41, %v2339_v52  ;;  %v2348_v14 = vrot.slane %v2328_v9, 4  ;;  %v2360_v0 = vrot.slane %v2339_v52, 4 }
 0x1ee   : > { %v9656_v31 = vperm.slane %v2443_v6, %v8644_v63  ;;  %v2353_v55 = vperm.slane %v2347_v33, %v8664_v17  ;;  %v2365_v35 = vperm.slane %v2359_v51, %v8664_v17  ;;  %v1308_v42 = vrot.slane %v9458_v22, 4 }
 0x1ef   : > { %v2349_v8 = vsel %vm754_vm1, %v2334_v12, %v2348_v14  ;;  %v2361_v58 = vsel %vm754_vm1, %v9534_v29, %v2360_v0  ;;  %v13672_v44 = vrot.slane %v8935_v59, 4  ;;  %v13673_v9 = vrot.slane %v8923_v23, 4  ;;  %v625_v14 = vld [vmem:[#allocation8 + $0x8] sm:$0xff] }
 0x1f0   : > { %v2448_v6 = vrot.slane %v2049_v48, 4  ;;  %v2370_v33 = vrot.slane %v2365_v35, 4  ;;  %v2357_v51 = vperm.slane %v2349_v8, %v8664_v17  ;;  %v2369_v22 = vperm.slane %v2361_v58, %v8664_v17  ;;  %v626_v48 = vld [vmem:[#allocation8 + $0x10] sm:$0xff] }
 0x1f1   : > { %v975_v41 = vsel %vm754_vm1, 0.0, %v13672_v44  ;;  %v1370_v52 = vsel %vm754_vm1, %v13673_v9, %v8951_v13  ;;  %v9675_v12 = vsel %vm754_vm1, %v9454_v20, %v1308_v42  ;;  %v1375_v0 = vsel %vm754_vm1, %v8937_v25, %v8935_v59  ;;  %645 = vmatpush.msrb.mxu2 %v626_v48  ;;  %v9709_v48 = vpop.permute.xlu1 %1656 }
 0x1f2   : > { %13674 = vst [vmem:[#allocation59_spill] sm:$0xff] %v9675_v12  ;;  %v9678_v29 = vperm.slane %v1370_v52, %v8644_v63  ;;  %v13675_v23 = vrot.slane %v8970_v18, 4  ;;  %v9686_v8 = vpop.eup %7715  ;;  %v2107_v58 = vsel %vm754_vm1, %v2106_v39, %v8673_v30  ;;  %v9691_v20 = vsel %vm754_vm1, %v2370_v33, %v2353_v55  ;;  %v624_v30 = vld [vmem:[#allocation8] sm:$0xff] }
 0x1f3   : > { %13676 = vst [vmem:[#allocation60_spill] sm:$0xff] %v9691_v20  ;;  %v2374_v42 = vrot.slane %v2369_v22, 4  ;;  %v3561_v44 = vmul.f32 %v9675_v12, %v9675_v12  ;;  %v4076_v59 = vmul.f32 %v9691_v20, %v9691_v20  ;;  %v9698_v25 = vperm.slane %v1375_v0, %v8644_v63  ;;  %646 = vmatpush.msrb.mxu2 %v625_v14 }
 0x1f4   : > { %v1381_v13 = vsel %vm754_vm1, %v13675_v23, %v975_v41  ;;  %v13677_v41 = vld [vmem:[#allocation25_spill] sm:$0xff]  ;;  %v2109_v39 = vsel %vm754_vm1, %v1681_v10, %v2108_v46  ;;  %v2372_v23 = vrot.slane %v2353_v55, 4  ;;  %v9718_v46 = vperm.slane %v2107_v58, %v8644_v63 }
 0x1f5   : > { %v9701_v18 = vperm.slane %v1381_v13, %v8644_v63  ;;  %v1388_v9 = vrot.slane %v13677_v41, 4  ;;  %v9706_v52 = vsel %vm754_vm1, %v2374_v42, %v2357_v51  ;;  %v3608_v33 = vsel %vm3586_vm2, %v3561_v44, 0.0  ;;  %647 = vmatpush.msrb.mxu2 %v624_v30 }
 0x1f6   : > { %13678 = vst [vmem:[#allocation25_spill] sm:$0xff] %v9706_v52  ;;  %v4126_v0 = vsel %vm3586_vm2, %v4076_v59, 0.0  ;;  %v4080_v13 = vmul.f32 %v9706_v52, %v9706_v52  ;;  %3609 = vadd.xlane.f32.xlu2 %v3608_v33  ;;  %v1400_v10 = vrot.slane %v9698_v25, 4  ;;  %v9724_v14 = vsel %vm754_vm1, %v2365_v35, %v2372_v23  ;;  %v7972_v33 = vld [vmem:[%s8467_s22] sm:$0xff]  ;;  %v13732_v52 = vld [vmem:[#allocation29_spill] sm:$0xff] }
 0x1f7   : > { %v1389_v12 = vsel %vm754_vm1, %v9678_v29, %v1388_v9  ;;  %4127 = vadd.xlane.f32.xlu0 %v4126_v0  ;;  %13679 = vst [vmem:[#allocation61_spill] sm:$0xff] %v9724_v14  ;;  %v2376_v42 = vrot.slane %v2357_v51, 4  ;;  %v2449_v44 = vsel %vm754_vm1, %v2448_v6, %v2047_v34  ;;  %v9728_v59 = vperm.slane %v2109_v39, %v8644_v63 }
 0x1f8   : > { %v9721_v55 = vperm.slane %v1389_v12, %v8664_v17  ;;  %v4138_v9 = vsel %vm3586_vm2, %v4080_v13, 0.0  ;;  %v1401_v58 = vsel %vm754_vm1, %v9701_v18, %v1400_v10  ;;  %7405 = vmatmul.msk.f32.vlgmr.msrb.gmra.mxu2 %vm509_vm0, %v7972_v33  ;;  %v2120_v12 = vrot.slane %v9709_v48, 4 }
 0x1f9   : > { %4139 = vadd.xlane.f32.xlu1 %v4138_v9  ;;  %v9737_v35 = vperm.slane %v1401_v58, %v8664_v17  ;;  %v9741_v34 = vsel %vm754_vm1, %v2369_v22, %v2376_v42  ;;  %v4078_v6 = vmul.f32 %v9724_v14, %v9724_v14  ;;  %v13681_v39 = vrot.slane %v9623_v7, 4  ;;  %v7980_v14 = vld [vmem:[%s8467_s22 + $0x38] sm:$0xff] }
 0x1fa   : > { %v1416_v51 = vrot.slane %v9721_v55, 4  ;;  %13680 = vst [vmem:[#allocation62_spill] sm:$0xff] %v9741_v34  ;;  %v4082_v30 = vmul.f32 %v9741_v34, %v9741_v34  ;;  %v2432_v0 = vsel %vm754_vm1, %v9626_v54, %v9623_v7  ;;  %v2437_v10 = vrot.slane %v9649_v19, 4  ;;  %v3595_v34 = vpop.xlane.xlu2 %3594 }
 0x1fb   : > { %v2043_v23 = vsel %vm754_vm1, 0.0, %v13681_v39  ;;  %v9758_v22 = vperm.slane %v2432_v0, %v8644_v63  ;;  %v9762_v42 = vperm.slane %v2449_v44, %v8644_v63  ;;  %v2468_v33 = vrot.slane %v9656_v31, 4  ;;  %v1705_v0 = vpop.permute.xlu0 %1704 }
 0x1fc   : > { %v9755_v13 = vsel %vm754_vm1, %v9737_v35, %v1416_v51  ;;  %v4144_v58 = vsel %vm3586_vm2, %v4082_v30, 0.0  ;;  %v2270_v7 = vsel %vm754_vm1, %v9320_v32, %v9307_v37  ;;  %v2438_v54 = vsel %vm754_vm1, %v2437_v10, %v2043_v23 }
 0x1fd   : > { %13682 = vst [vmem:[#allocation63_spill] sm:$0xff] %v9755_v13  ;;  %v3569_v9 = vmul.f32 %v9755_v13, %v9755_v13  ;;  %v2456_v51 = vrot.slane %v9758_v22, 4  ;;  %v2274_v19 = vperm.slane %v2270_v7, %v8644_v63  ;;  %v13683_v44 = vrot.slane %v9345_v28, 4 }
 0x1fe   : > { %4145 = vadd.xlane.f32.xlu2 %v4144_v58  ;;  %v9780_v13 = vperm.slane %v2438_v54, %v8644_v63  ;;  %v2469_v32 = vsel %vm754_vm1, %v9762_v42, %v2468_v33  ;;  %v4132_v23 = vsel %vm3586_vm2, %v4078_v6, 0.0  ;;  %v13684_v10 = vrot.slane %v9371_v15, 4  ;;  %v7973_v6 = vld [vmem:[%s8467_s22 + $0x8] sm:$0xff] }
 0x1ff   : > { %v2276_v39 = vsel %vm754_vm1, %v13683_v44, %v9357_v24  ;;  %v3632_v30 = vsel %vm3586_vm2, %v3569_v9, 0.0  ;;  %v2477_v28 = vperm.slane %v2469_v32, %v8664_v17  ;;  %v2281_v24 = vsel %vm754_vm1, %v9350_v11, %v9330_v21 }
 0x200   : > { %v2280_v37 = vperm.slane %v2276_v39, %v8644_v63  ;;  %3633 = vadd.xlane.f32.xlu0 %v3632_v30  ;;  %v2287_v9 = vsel %vm754_vm1, %v13684_v10, %v9389_v62  ;;  %v2457_v58 = vsel %vm754_vm1, %v9780_v13, %v2456_v51  ;;  %v2285_v33 = vperm.slane %v2281_v24, %v8644_v63 }
 0x201   : > { %v2291_v7 = vperm.slane %v2287_v9, %v8644_v63  ;;  %7406 = vmatmul.msk.f32.gmra.mxu2 %vm509_vm0, %v7973_v6  ;;  %v2118_v39 = vrot.slane %v1705_v0, 4  ;;  %4133 = vadd.xlane.f32.xlu1 %v4132_v23  ;;  %v2465_v21 = vperm.slane %v2457_v58, %v8664_v17  ;;  %v2482_v11 = vrot.slane %v2477_v28, 4 }
 0x202   : > { %v2292_v54 = vrot.slane %v2280_v37, 4  ;;  %v3756_v15 = vmul.f32 %v9686_v8, %v9628_v53  ;;  %v2294_v51 = vrot.slane %v2274_v19, 4  ;;  %v2306_v30 = vrot.slane %v2285_v33, 4 }
 0x203   : > { %v2304_v62 = vrot.slane %v2291_v7, 4  ;;  %v9805_v32 = vsel %vm754_vm1, %v2482_v11, %v2465_v21  ;;  %v2484_v10 = vrot.slane %v2465_v21, 4  ;;  %v1332_v9 = vrot.slane %v9489_v5, 4 }
 0x204   : > { %13685 = vst [vmem:[#allocation64_spill] sm:$0xff] %v9805_v32  ;;  %v2293_v24 = vsel %vm754_vm1, %v2292_v54, %v2274_v19  ;;  %v4088_v23 = vmul.f32 %v9805_v32, %v9805_v32  ;;  %v2295_v6 = vsel %vm754_vm1, %v2280_v37, %v2294_v51  ;;  %v2307_v44 = vsel %vm754_vm1, %v2291_v7, %v2306_v30 }
 0x205   : > { %v2305_v58 = vsel %vm754_vm1, %v2304_v62, %v2285_v33  ;;  %v2121_v20 = vsel %vm754_vm1, %v1705_v0, %v2120_v12  ;;  %v2303_v19 = vperm.slane %v2295_v6, %v8664_v17  ;;  %v2315_v5 = vperm.slane %v2307_v44, %v8664_v17 }
 0x206   : > { %v9816_v11 = vperm.slane %v2305_v58, %v8664_v17  ;;  %v2119_v54 = vsel %vm754_vm1, %v2118_v39, %v9709_v48  ;;  %v4162_v33 = vsel %vm3586_vm2, %v4088_v23, 0.0  ;;  %v1333_v37 = vsel %vm754_vm1, %v1332_v9, %v9468_v50 }
 0x207   : > { %v1344_v7 = vrot.slane %v9498_v1, 4  ;;  %v9827_v12 = vperm.slane %v2293_v24, %v8664_v17  ;;  %v2320_v21 = vrot.slane %v2315_v5, 4  ;;  %v9831_v62 = vsel %vm754_vm1, %v2477_v28, %v2484_v10  ;;  %v7974_v1 = vld [vmem:[%s8467_s22 + $0x10] sm:$0xff] }
 0x208   : > { %4163 = vadd.xlane.f32.xlu0 %v4162_v33  ;;  %v2316_v0 = vrot.slane %v9816_v11, 4  ;;  %13686 = vst [vmem:[#allocation65_spill] sm:$0xff] %v9831_v62  ;;  %v9833_v44 = vadd.f32 1e-24, %v3595_v34  ;;  %v9836_v48 = vperm.slane %v2121_v20, %v8644_v63  ;;  %v2322_v39 = vrot.slane %v2303_v19, 4 }
 0x209   : > { %v1345_v50 = vsel %vm754_vm1, %v1344_v7, %v8844_v4  ;;  %7407 = vmatmul.msk.f32.gmra.mxu2 %vm509_vm0, %v7974_v1  ;;  %v9847_v30 = vsel %vm754_vm1, %v2320_v21, %v2303_v19  ;;  %v1339_v34 = vperm.slane %v1333_v37, %v8664_v17  ;;  %v3757_v20 = vmul.f32 %v9686_v8, %v3756_v15  ;;  %v3589_v37 = vpop.xlane.xlu1 %3588 }
 0x20a   : > { %v9844_v51 = vsel %vm754_vm1, %v2316_v0, %v9827_v12  ;;  %13688 = vst [vmem:[#allocation67_spill] sm:$0xff] %v9847_v30  ;;  %v1351_v28 = vperm.slane %v1345_v50, %v8664_v17  ;;  %v4079_v24 = vmul.f32 %v9847_v30, %v9847_v30  ;;  %v4090_v10 = vmul.f32 %v9831_v62, %v9831_v62 }
 0x20b   : > { %13687 = vst [vmem:[#allocation66_spill] sm:$0xff] %v9844_v51  ;;  %v4075_v4 = vmul.f32 %v9844_v51, %v9844_v51  ;;  %v13689_v23 = vrot.slane %v9594_v43, 4  ;;  %v2378_v6 = vsel %vm754_vm1, %v9585_v26, %v9594_v43  ;;  %v13690_v15 = vrot.slane %v9610_v61, 4  ;;  %v7978_v51 = vld [vmem:[%s8467_s22 + $0x30] sm:$0xff] }
 0x20c   : > { %v1356_v9 = vrot.slane %v1351_v28, 4  ;;  %7717 = vrsqrt.f32 %v9833_v44  ;;  %v4135_v7 = vsel %vm3586_vm2, %v4079_v24, 0.0  ;;  %v9872_v0 = vsel %vm754_vm1, %v2315_v5, %v2322_v39 }
 0x20d   : > { %v1987_v58 = vsel %vm754_vm1, 0.0, %v13689_v23  ;;  %v2395_v19 = vsel %vm754_vm1, %v13690_v15, %v9636_v45  ;;  %v4123_v33 = vsel %vm3586_vm2, %v4075_v4, 0.0  ;;  %13691 = vst [vmem:[#allocation68_spill] sm:$0xff] %v9872_v0  ;;  %4136 = vadd.xlane.f32.xlu2 %v4135_v7  ;;  %v9878_v26 = vperm.slane %v2378_v6, %v8644_v63  ;;  %v7975_v6 = vld [vmem:[%s8467_s22 + $0x18] sm:$0xff] }
 0x20e   : > { %4124 = vadd.xlane.f32.xlu1 %v4123_v33  ;;  %v9875_v21 = vsel %vm754_vm1, %v1356_v9, %v1339_v34  ;;  %v13693_v43 = vrot.slane %v9620_v3, 4  ;;  %v2414_v45 = vrot.slane %v9640_v2, 4  ;;  %v2125_v50 = vperm.slane %v2119_v54, %v8644_v63 }
 0x20f   : > { %13692 = vst [vmem:[#allocation69_spill] sm:$0xff] %v9875_v21  ;;  %v4168_v5 = vsel %vm3586_vm2, %v4090_v10, 0.0  ;;  %v9890_v1 = vperm.slane %v2395_v19, %v8644_v63  ;;  %v9892_v4 = vadd.f32 1e-24, %v3589_v37  ;;  %v3562_v3 = vmul.f32 %v9875_v21, %v9875_v21 }
 0x210   : > { %v2384_v61 = vsel %vm754_vm1, %v13693_v43, %v1987_v58  ;;  %4169 = vadd.xlane.f32.xlu0 %v4168_v5  ;;  %v4081_v24 = vmul.f32 %v9872_v0, %v9872_v0  ;;  %v2402_v9 = vrot.slane %v9878_v26, 4  ;;  %v2132_v54 = vrot.slane %v9718_v46, 4 }
 0x211   : > { %v9887_v39 = vperm.slane %v2384_v61, %v8644_v63  ;;  %v2415_v10 = vsel %vm754_vm1, %v9890_v1, %v2414_v45  ;;  %v1358_v23 = vrot.slane %v1339_v34, 4  ;;  %v1414_v58 = vrot.slane %v9737_v35, 4  ;;  %7408 = vmatmul.msk.f32.gmra.mxu2 %vm509_vm0, %v7975_v6 }
 0x212   : > { %v2142_v15 = vrot.slane %v9836_v48, 4  ;;  %v13694_v19 = vrot.slane %v9728_v59, 4  ;;  %v2423_v7 = vperm.slane %v2415_v10, %v8664_v17  ;;  %v9913_v43 = vpop.eup %7717  ;;  %v9915_v34 = vmul.f32 0.5, %v3757_v20  ;;  %v13697_v20 = vld [vmem:[#allocation26_spill] sm:$0xff] }
 0x213   : > { %v2403_v37 = vsel %vm754_vm1, %v9887_v39, %v2402_v9  ;;  %v2130_v35 = vrot.slane %v2125_v50, 4  ;;  %v2133_v61 = vsel %vm754_vm1, %v2125_v50, %v2132_v54  ;;  %7719 = vrsqrt.f32 %v9892_v4  ;;  %v13699_v54 = vld [vmem:[#allocation27_spill] sm:$0xff] }
 0x214   : > { %v2145_v33 = vsel %vm754_vm1, %v9836_v48, %v13694_v19  ;;  %v2411_v45 = vperm.slane %v2403_v37, %v8664_v17  ;;  %v3611_v5 = vsel %vm3586_vm2, %v3562_v3, 0.0  ;;  %v4141_v48 = vsel %vm3586_vm2, %v4081_v24, 0.0 }
 0x215   : > { %v2428_v6 = vrot.slane %v2423_v7, 4  ;;  %v9923_v9 = vsel %vm754_vm1, %v1351_v28, %v1358_v23  ;;  %v9927_v10 = vsel %vm754_vm1, %v1414_v58, %v9721_v55  ;;  %v13698_v19 = vrot.slane %v13697_v20, 4  ;;  %4142 = vadd.xlane.f32.xlu2 %v4141_v48  ;;  %v13702_v23 = vld [vmem:[#allocation32_spill] sm:$0xff] }
 0x216   : > { %13695 = vst [vmem:[#allocation70_spill] sm:$0xff] %v9923_v9  ;;  %v1418_v37 = vsel %vm754_vm1, %v13699_v54, %v13697_v20  ;;  %3612 = vadd.xlane.f32.xlu1 %v3611_v5  ;;  %v13701_v55 = vrot.slane %v9022_v56, 4  ;;  %v1454_v58 = vrot.slane %v13702_v23, 4  ;;  %v13704_v20 = vld [vmem:[#allocation31_spill] sm:$0xff]  ;;  %v2141_v56 = vperm.slane %v2133_v61, %v8664_v17 }
 0x217   : > { %13696 = vst [vmem:[#allocation71_spill] sm:$0xff] %v9927_v10  ;;  %v1027_v50 = vsel %vm754_vm1, 0.0, %v13698_v19  ;;  %v9936_v3 = vsel %vm754_vm1, %v2428_v6, %v2411_v45  ;;  %v9939_v28 = vperm.slane %v1418_v37, %v8644_v63  ;;  %v3736_v19 = vmul.f32 %v9913_v43, %v9833_v44  ;;  %v13703_v6 = vld [vmem:[#allocation30_spill] sm:$0xff]  ;;  %v7976_v61 = vld [vmem:[%s8467_s22 + $0x20] sm:$0xff] }
 0x218   : > { %13700 = vst [vmem:[#allocation26_spill] sm:$0xff] %v9936_v3  ;;  %v1424_v24 = vsel %vm754_vm1, %v13701_v55, %v1027_v50  ;;  %v4087_v5 = vmul.f32 %v9936_v3, %v9936_v3  ;;  %v13705_v54 = vrot.slane %v13704_v20, 4  ;;  %v2143_v50 = vsel %vm754_vm1, %v2142_v15, %v9728_v59 }
 0x219   : > { %v9950_v48 = vperm.slane %v1424_v24, %v8644_v63  ;;  %v1442_v62 = vrot.slane %v9939_v28, 4  ;;  %v2131_v3 = vsel %vm754_vm1, %v2130_v35, %v9718_v46  ;;  %v3564_v20 = vmul.f32 %v9923_v9, %v9923_v9  ;;  %7409 = vmatmul.msk.f32.gmra.mxu2 %vm509_vm0, %v7976_v61  ;;  %v9972_v59 = vpop.eup %7719 }
 0x21a   : > { %v1435_v37 = vsel %vm754_vm1, %v13705_v54, %v13703_v6  ;;  %v4159_v24 = vsel %vm3586_vm2, %v4087_v5, 0.0  ;;  %v3567_v6 = vmul.f32 %v9927_v10, %v9927_v10  ;;  %v2153_v15 = vperm.slane %v2145_v33, %v8664_v17 }
 0x21b   : > { %v9960_v55 = vperm.slane %v1435_v37, %v8644_v63  ;;  %4160 = vadd.xlane.f32.xlu0 %v4159_v24  ;;  %v1443_v54 = vsel %vm754_vm1, %v9950_v48, %v1442_v62  ;;  %v2430_v35 = vrot.slane %v2411_v45, 4  ;;  %v13706_v9 = vrot.slane %v9551_v40, 4  ;;  %v4113_v24 = vpop.xlane.xlu1 %4112 }
 0x21c   : > { %v3737_v33 = vmul.f32 %v9913_v43, %v3736_v19  ;;  %v3759_v10 = vsub.f32 1.5, %v9915_v34  ;;  %v9990_v62 = vperm.slane %v2131_v3, %v8664_v17  ;;  %v1451_v45 = vperm.slane %v1443_v54, %v8664_v17 }
 0x21d   : > { %v1455_v46 = vsel %vm754_vm1, %v9960_v55, %v1454_v58  ;;  %v9985_v61 = vsel %vm754_vm1, %v13706_v9, %v9607_v57  ;;  %v2149_v37 = vperm.slane %v2143_v50, %v8664_v17  ;;  %v9995_v5 = vrot.slane %v2141_v56, 4  ;;  %v3598_v9 = vpop.xlane.xlu2 %3597 }
 0x21e   : > { %v1463_v58 = vperm.slane %v1455_v46, %v8664_v17  ;;  %v3617_v40 = vsel %vm3586_vm2, %v3564_v20, 0.0  ;;  %v3626_v57 = vsel %vm3586_vm2, %v3567_v6, 0.0  ;;  %v2160_v19 = vrot.slane %v2153_v15, 4 }
 0x21f   : > { %3618 = vadd.xlane.f32.xlu1 %v3617_v40  ;;  %3627 = vadd.xlane.f32.xlu2 %v3626_v57  ;;  %v10000_v3 = vsel %vm754_vm1, %v2423_v7, %v2430_v35  ;;  %v1386_v54 = vrot.slane %v9678_v29, 4  ;;  %vm3761_vm3 = vweird.f32 %v9628_v53  ;;  %v3738_v50 = vmul.f32 0.5, %v3737_v33 }
 0x220   : > { %v1468_v34 = vrot.slane %v1463_v58, 4  ;;  %13707 = vst [vmem:[#allocation27_spill] sm:$0xff] %v10000_v3  ;;  %v3716_v56 = vmul.f32 %v9972_v59, %v9892_v4  ;;  %v10006_v20 = vadd.f32 1e-24, %v4113_v24  ;;  %vm3762_vm4 = vweird.f32 %v9686_v8  ;;  %v7977_v24 = vld [vmem:[%s8467_s22 + $0x28] sm:$0xff]  ;;  %s7245_s22 = sshll.u32 %s490_s21, 4  ;;  %s7246_s22 = int_to_ptr.vmem [resolvable:$true] %s7245_s22 }
 0x221   : > { %v10009_v6 = vadd.f32 1e-24, %v3598_v9  ;;  %v1470_v46 = vrot.slane %v1451_v45, 4  ;;  %v3760_v7 = vmul.f32 %v9686_v8, %v3759_v10  ;;  %vm3741_vm5 = vweird.f32 %v9833_v44  ;;  %7410 = vmatmul.msk.f32.gmra.mxu2 %vm509_vm0, %v7977_v24  ;;  %vm10039_vm6 = vmor %vm3761_vm3, %vm3762_vm4  ;;  %v3592_v24 = vpop.xlane.xlu0 %3591  ;;  %v7979_v44 = vld [vmem:[%s13496_s9] sm:$0xf] }
 0x222   : > { %13708 = vst [vmem:[#allocation32_spill] sm:$0xff] %v10006_v20  ;;  %v10012_v15 = vsel %vm754_vm1, %v1468_v34, %v1451_v45  ;;  %v4089_v33 = vmul.f32 %v10000_v3, %v10000_v3  ;;  %v10025_v40 = vsel %vm754_vm1, 0.0, %v9995_v5  ;;  %v2158_v45 = vrot.slane %v2149_v37, 4 }
 0x223   : > { %13709 = vst [vmem:[#allocation30_spill] sm:$0xff] %v10009_v6  ;;  %v3574_v35 = vmul.f32 %v10012_v15, %v10012_v15  ;;  %v10028_v10 = vsel %vm754_vm1, 0.0, %v2160_v19  ;;  %v1387_v57 = vsel %vm754_vm1, %v1386_v54, %v13677_v41  ;;  %v3739_v9 = vsub.f32 1.5, %v3738_v50 }
 0x224   : > { %13710 = vst [vmem:[#allocation31_spill] sm:$0xff] %v10012_v15  ;;  %v3717_v34 = vmul.f32 %v9972_v59, %v3716_v56  ;;  %7721 = vrsqrt.f32 %v10006_v20  ;;  %v10045_v41 = vsel %vm754_vm1, %v1463_v58, %v1470_v46  ;;  %v1393_v54 = vperm.slane %v1387_v57, %v8664_v17 }
 0x225   : > { %v3647_v29 = vsel %vm3586_vm2, %v3574_v35, 0.0  ;;  %7723 = vrsqrt.f32 %v10009_v6  ;;  %13713 = vst [vmem:[#allocation72_spill] sm:$0xff] %v10045_v41  ;;  %v1398_v50 = vrot.slane %v9701_v18, 4  ;;  %v3764_v56 = vsel %vm10039_vm6, %v9686_v8, %v3760_v7  ;;  %v4107_v35 = vpop.xlane.xlu1 %4106 }
 0x226   : > { %3648 = vadd.xlane.f32.xlu0 %v3647_v29  ;;  %v4165_v53 = vsel %vm3586_vm2, %v4089_v33, 0.0  ;;  %v13714_v3 = vrot.slane %v9206_v60, 4  ;;  %v13715_v29 = vld [vmem:[#allocation45_spill] sm:$0xff]  ;;  %vm3742_vm7 = vweird.f32 %v9913_v43  ;;  %v2551_v46 = vsel %vm754_vm1, %v2160_v19, %v2149_v37  ;;  %v13716_v19 = vld [vmem:[#allocation46_spill] sm:$0xff] }
 0x227   : > { %v1472_v58 = vsel %vm754_vm1, %v13715_v29, %v9206_v60  ;;  %4166 = vadd.xlane.f32.xlu1 %v4165_v53  ;;  %v1399_v18 = vsel %vm754_vm1, %v1398_v50, %v9698_v25  ;;  %v1412_v8 = vrot.slane %v1393_v54, 4  ;;  %v10064_v7 = vmul.f32 %v9913_v43, %v3739_v9  ;;  %v13718_v50 = vld [vmem:[#allocation51_spill] sm:$0xff]  ;;  %vm10097_vm8 = vmor %vm3741_vm5, %vm3742_vm7 }
 0x228   : > { %v1083_v15 = vsel %vm754_vm1, 0.0, %v13714_v3  ;;  %v3718_v33 = vmul.f32 0.5, %v3717_v34  ;;  %v3576_v3 = vmul.f32 %v10045_v41, %v10045_v41  ;;  %v1405_v57 = vperm.slane %v1399_v18, %v8664_v17  ;;  %v13719_v29 = vld [vmem:[#allocation47_spill] sm:$0xff] }
 0x229   : > { %v10071_v37 = vperm.slane %v1472_v58, %v8644_v63  ;;  %v13717_v53 = vrot.slane %v13716_v19, 4  ;;  %v13720_v9 = vrot.slane %v13719_v29, 4  ;;  %v13722_v41 = vld [vmem:[#allocation23_spill] sm:$0xff]  ;;  %v10086_v18 = vsel %vm754_vm1, 0.0, %v2158_v45  ;;  %7411 = vmatmul.msk.f32.gmra.mxu2 %vm509_vm0, %v7978_v51 }
 0x22a   : > { %v10080_v0 = vpop.eup %7721  ;;  %v10083_v21 = vmul.f32 %v3764_v56, %v13722_v41  ;;  %v1410_v60 = vrot.slane %v1405_v57, 4  ;;  %v10102_v41 = vperm.slane %v2551_v46, %v8644_v63  ;;  %v10105_v45 = vsel %vm754_vm1, %v1405_v57, %v1412_v8 }
 0x22b   : > { %v1478_v25 = vsel %vm754_vm1, %v13717_v53, %v1083_v15  ;;  %v1489_v34 = vsel %vm754_vm1, %v13720_v9, %v13718_v50  ;;  %13721 = vst [vmem:[#allocation45_spill] sm:$0xff] %v10080_v0  ;;  %v10091_v15 = vpop.eup %7723  ;;  %v3719_v53 = vsub.f32 1.5, %v3718_v33  ;;  %v3653_v50 = vsel %vm3586_vm2, %v3576_v3, 0.0 }
 0x22c   : > { %13723 = vst [vmem:[#allocation46_spill] sm:$0xff] %v10083_v21  ;;  %v10108_v56 = vperm.slane %v1478_v25, %v8644_v63  ;;  %v10111_v51 = vperm.slane %v1489_v34, %v8644_v63  ;;  %v10119_v46 = vsel %vm754_vm1, %v1410_v60, %v1393_v54  ;;  %v10121_v29 = vadd.f32 1e-24, %v3592_v24  ;;  %v13730_v25 = vld [vmem:[#allocation48_spill] sm:$0xff]  ;;  %v4119_v21 = vpop.xlane.xlu2 %4118 }
 0x22d   : > { %13724 = vst [vmem:[#allocation51_spill] sm:$0xff] %v10091_v15  ;;  %v3563_v8 = vmul.f32 %v10119_v46, %v10119_v46  ;;  %v1496_v57 = vrot.slane %v10071_v37, 4  ;;  %v1508_v9 = vrot.slane %v13730_v25, 4  ;;  %v4268_v34 = vmul.f32 %v10080_v0, %v10006_v20  ;;  %v744_v60 = vpop.permute.xlu1 %743 }
 0x22e   : > { %13727 = vst [vmem:[#allocation47_spill] sm:$0xff] %v10105_v45  ;;  %3654 = vadd.xlane.f32.xlu0 %v3653_v50  ;;  %v3746_v33 = vmul.f32 %v10091_v15, %v10009_v6  ;;  %v3565_v54 = vmul.f32 %v10105_v45, %v10105_v45  ;;  %v2454_v3 = vrot.slane %v9780_v13, 4  ;;  %v10143_v30 = vmul.f32 %v9972_v59, %v3719_v53 }
 0x22f   : > { %13728 = vst [vmem:[#allocation23_spill] sm:$0xff] %v10119_v46  ;;  %v3614_v24 = vsel %vm3586_vm2, %v3563_v8, 0.0  ;;  %v1497_v50 = vsel %vm754_vm1, %v10108_v56, %v1496_v57  ;;  %v1509_v58 = vsel %vm754_vm1, %v10111_v51, %v1508_v9  ;;  %v4583_v46 = vrot.slane %v7979_v44, 3 }
 0x230   : > { %13729 = vst [vmem:[#allocation73_spill] sm:$0xff] %v10121_v29  ;;  %vm3721_vm9 = vweird.f32 %v9892_v4  ;;  %vm3722_vm10 = vweird.f32 %v9972_v59  ;;  %3615 = vadd.xlane.f32.xlu1 %v3614_v24  ;;  %v1505_v13 = vperm.slane %v1497_v50, %v8664_v17  ;;  %v1517_v8 = vperm.slane %v1509_v58, %v8664_v17  ;;  %v4101_v58 = vpop.xlane.xlu0 %4100 }
 0x231   : > { %v10149_v57 = vadd.f32 1e-24, %v4107_v35  ;;  %v2455_v9 = vsel %vm754_vm1, %v2454_v3, %v9758_v22  ;;  %v2466_v44 = vrot.slane %v9762_v42, 4  ;;  %v1158_v45 = vrot.slane %v744_v60, 4  ;;  %7412 = vmatmul.msk.f32.gmra.mxu2 %vm509_vm0, %v7980_v14  ;;  %vm10223_vm11 = vmor %vm3721_vm9, %vm3722_vm10 }
 0x232   : > { %v4269_v53 = vmul.f32 %v10080_v0, %v4268_v34  ;;  %v3747_v32 = vmul.f32 %v10091_v15, %v3746_v33  ;;  %7725 = vrsqrt.f32 %v10121_v29  ;;  %v1522_v24 = vrot.slane %v1517_v8, 4 }
 0x233   : > { %v3620_v35 = vsel %vm3586_vm2, %v3565_v54, 0.0  ;;  %v4587_v50 = vperm.slane %v4583_v46, 0  ;;  %v2467_v22 = vsel %vm754_vm1, %v2466_v44, %v9656_v31  ;;  %v1524_v42 = vrot.slane %v1505_v13, 4 }
 0x234   : > { %v10163_v3 = vsel %vm754_vm1, %v1522_v24, %v1505_v13  ;;  %v10166_v34 = vperm.slane %v2455_v9, %v8664_v17  ;;  %v10169_v33 = vperm.slane %v2467_v22, %v8664_v17  ;;  %v13733_v6 = vrot.slane %v13732_v52, 4 }
 0x235   : > { %13731 = vst [vmem:[#allocation48_spill] sm:$0xff] %v10163_v3  ;;  %v10174_v20 = vadd.f32 1e-24, %v4119_v21  ;;  %v3575_v31 = vmul.f32 %v10163_v3, %v10163_v3  ;;  %v1159_v46 = vsel %vm754_vm1, %v1158_v45, %v13732_v52  ;;  %v13735_v54 = vrot.slane %v9990_v62, 4  ;;  %v13751_v3 = vld [vmem:[#allocation49_spill] sm:$0xff] }
 0x236   : > { %v1161_v14 = vsel %vm754_vm1, %v744_v60, %v13733_v6  ;;  %3621 = vadd.xlane.f32.xlu0 %v3620_v35  ;;  %v10183_v9 = vmul.f32 0.5, %v4269_v53  ;;  %v10185_v44 = vadd.f32 1e-24, %v4101_v58  ;;  %v2478_v24 = vrot.slane %v10169_v33, 4 }
 0x237   : > { %13734 = vst [vmem:[#allocation29_spill] sm:$0xff] %v10174_v20  ;;  %v2155_v13 = vsel %vm754_vm1, 0.0, %v13735_v54  ;;  %v2540_v21 = vsel %vm754_vm1, %v9995_v5, %v9990_v62  ;;  %v10191_v6 = vmul.f32 0.5, %v3747_v32  ;;  %v3650_v60 = vsel %vm3586_vm2, %v3575_v31, 0.0  ;;  %4601 = vperm.xlu2 %7650, %v4587_v50  }
 0x238   : > { %v10195_v52 = vsel %vm754_vm1, %v1517_v8, %v1524_v42  ;;  %v1169_v45 = vperm.slane %v1161_v14, %v8644_v63  ;;  %v10198_v53 = vpop.eup %7725  ;;  %7727 = vrsqrt.f32 %v10149_v57  ;;  %3651 = vadd.xlane.f32.xlu1 %v3650_v60  ;;  %v10203_v58 = vsel %vm754_vm1, %v2478_v24, %v10166_v34  ;;  %v13739_v8 = vld [vmem:[#allocation24_spill] sm:$0xff]  ;;  %v13744_v24 = vld [vmem:[#allocation50_spill] sm:$0xff] }
 0x239   : > { %13736 = vst [vmem:[#allocation74_spill] sm:$0xff] %v10195_v52  ;;  %v10206_v32 = vperm.slane %v1159_v46, %v8644_v63  ;;  %v13738_v5 = vrot.slane %v10025_v40, 4  ;;  %v13740_v35 = vsel %vm10097_vm8, %v9913_v43, %v10064_v7  ;;  %7729 = vrsqrt.f32 %v10174_v20 }
 0x23a   : > { %13737 = vst [vmem:[#allocation75_spill] sm:$0xff] %v10203_v58  ;;  %v10217_v50 = vmul.f32 %v13740_v35, %v13739_v8  ;;  %v4084_v40 = vmul.f32 %v10203_v58, %v10203_v58  ;;  %v10231_v19 = vperm.slane %v2540_v21, %v8644_v63  ;;  %7731 = vrsqrt.f32 %v10185_v44 }
 0x23b   : > { %v2546_v62 = vsel %vm754_vm1, %v13738_v5, %v2155_v13  ;;  %v3577_v4 = vmul.f32 %v10195_v52, %v10195_v52  ;;  %v3726_v14 = vmul.f32 %v10198_v53, %v10121_v29  ;;  %v1182_v31 = vrot.slane %v1169_v45, 4  ;;  %v13748_v52 = vld [vmem:[#allocation35_spill] sm:$0xff] }
 0x23c   : > { %13741 = vst [vmem:[#allocation24_spill] sm:$0xff] %v10217_v50  ;;  %v10245_v46 = vperm.slane %v2546_v62, %v8644_v63  ;;  %v4150_v54 = vsel %vm3586_vm2, %v4084_v40, 0.0  ;;  %v1170_v13 = vrot.slane %v10206_v32, 4  ;;  %v13745_v21 = vrot.slane %v13744_v24, 4  ;;  %v13757_v50 = vld [vmem:[#allocation43_spill] sm:$0xff] }
 0x23d   : > { %v13746_v5 = vrot.slane %v10028_v10, 4  ;;  %v2564_v62 = vrot.slane %v10231_v19, 4  ;;  %v2576_v43 = vrot.slane %v10102_v41, 4  ;;  %v2400_v40 = vrot.slane %v9887_v39, 4 }
 0x23e   : > { %v1185_v60 = vsel %vm754_vm1, %v1169_v45, %v13745_v21  ;;  %4151 = vadd.xlane.f32.xlu0 %v4150_v54  ;;  %v10262_v42 = vpop.eup %7727  ;;  %v3656_v7 = vsel %vm3586_vm2, %v3577_v4, 0.0  ;;  %v2412_v45 = vrot.slane %v9890_v1, 4  ;;  %v1440_v10 = vrot.slane %v9950_v48, 4 }
 0x23f   : > { %v2557_v8 = vsel %vm754_vm1, %v13746_v5, %v10086_v18  ;;  %v1452_v18 = vrot.slane %v9960_v55, 4  ;;  %v10268_v54 = vpop.eup %7729  ;;  %v2565_v21 = vsel %vm754_vm1, %v10245_v46, %v2564_v62  ;;  %v2401_v39 = vsel %vm754_vm1, %v2400_v40, %v9878_v26 }
 0x240   : > { %v10257_v35 = vperm.slane %v2557_v8, %v8644_v63  ;;  %v13747_v8 = vld [vmem:[#allocation34_spill] sm:$0xff]  ;;  %v10279_v1 = vpop.eup %7731  ;;  %3657 = vadd.xlane.f32.xlu1 %v3656_v7  ;;  %v10282_v48 = vperm.slane %v2565_v21, %v8664_v17  ;;  %v2407_v62 = vperm.slane %v2401_v39, %v8664_v17  ;;  %v1441_v40 = vsel %vm754_vm1, %v1440_v10, %v9939_v28 }
 0x241   : > { %v1526_v4 = vsel %vm754_vm1, %v13748_v52, %v13747_v8  ;;  %v1453_v52 = vsel %vm754_vm1, %v1452_v18, %v13702_v23  ;;  %v13750_v7 = vrot.slane %v13747_v8, 4  ;;  %v1193_v58 = vperm.slane %v1185_v60, %v8664_v17  ;;  %v4104_v18 = vpop.xlane.xlu2 %4103 }
 0x242   : > { %v2577_v5 = vsel %vm754_vm1, %v10257_v35, %v2576_v43  ;;  %v2413_v43 = vsel %vm754_vm1, %v2412_v45, %v9640_v2  ;;  %v10305_v45 = vperm.slane %v1453_v52, %v8664_v17  ;;  %v1183_v28 = vsel %vm754_vm1, %v1182_v31, %v13744_v24  ;;  %v4116_v52 = vpop.xlane.xlu0 %4115 }
 0x243   : > { %v10285_v55 = vperm.slane %v2577_v5, %v8664_v17  ;;  %v2419_v26 = vperm.slane %v2413_v43, %v8664_v17  ;;  %v1139_v21 = vsel %vm754_vm1, 0.0, %v13750_v7  ;;  %v13752_v5 = vrot.slane %v13751_v3, 4  ;;  %v13754_v7 = vld [vmem:[#allocation41_spill] sm:$0xff] }
 0x244   : > { %v10310_v10 = vperm.slane %v1441_v40, %v8664_v17  ;;  %v10313_v8 = vperm.slane %v1526_v4, %v8644_v63  ;;  %v1464_v60 = vrot.slane %v10305_v45, 4  ;;  %v2426_v43 = vrot.slane %v2407_v62, 4 }
 0x245   : > { %13749 = vst [vmem:[#allocation50_spill] sm:$0xff] %v10285_v55  ;;  %v1173_v39 = vsel %vm754_vm1, %v10206_v32, %v13752_v5  ;;  %v2590_v2 = vrot.slane %v10285_v55, 4  ;;  %v2424_v23 = vrot.slane %v2419_v26, 4  ;;  %v13755_v5 = vrot.slane %v13754_v7, 4 }
 0x246   : > { %v10328_v4 = vadd.f32 1e-24, %v4104_v18  ;;  %v3727_v55 = vmul.f32 %v10198_v53, %v3726_v14  ;;  %v4248_v7 = vmul.f32 %v10262_v42, %v10149_v57  ;;  %v1200_v18 = vrot.slane %v1193_v58, 4 }
 0x247   : > { %v10317_v32 = vsel %vm754_vm1, %v2590_v2, %v10282_v48  ;;  %v1532_v31 = vsel %vm754_vm1, %v13755_v5, %v1139_v21  ;;  %v10326_v40 = vsel %vm754_vm1, %v2424_v23, %v2407_v62  ;;  %v13759_v2 = vrot.slane %v13758_v27, 4 }
 0x248   : > { %13753 = vst [vmem:[#allocation34_spill] sm:$0xff] %v10317_v32  ;;  %v4096_v24 = vmul.f32 %v10317_v32, %v10317_v32  ;;  %v1181_v21 = vperm.slane %v1173_v39, %v8664_v17  ;;  %v4083_v5 = vmul.f32 %v10326_v40, %v10326_v40  ;;  %v1171_v62 = vsel %vm754_vm1, %v1170_v13, %v13751_v3  ;;  %v13762_v13 = vld [vmem:[#allocation44_spill] sm:$0xff] }
 0x249   : > { %13756 = vst [vmem:[#allocation35_spill] sm:$0xff] %v10326_v40  ;;  %v1543_v29 = vsel %vm754_vm1, %v13759_v2, %v13757_v50  ;;  %v1189_v23 = vperm.slane %v1183_v28, %v8664_v17  ;;  %v10347_v14 = vsel %vm754_vm1, %v1464_v60, %v10310_v10  ;;  %v10350_v39 = vperm.slane %v1532_v31, %v8644_v63 }
 0x24a   : > { %v4186_v27 = vsel %vm3586_vm2, %v4096_v24, 0.0  ;;  %v4147_v50 = vsel %vm3586_vm2, %v4083_v5, 0.0  ;;  %13760 = vst [vmem:[#allocation49_spill] sm:$0xff] %v10347_v14  ;;  %v10353_v2 = vperm.slane %v1543_v29, %v8644_v63  ;;  %v10356_v3 = vsel %vm754_vm1, %v2419_v26, %v2426_v43 }
 0x24b   : > { %4187 = vadd.xlane.f32.xlu0 %v4186_v27  ;;  %4148 = vadd.xlane.f32.xlu1 %v4147_v50  ;;  %13761 = vst [vmem:[#allocation41_spill] sm:$0xff] %v10356_v3  ;;  %7733 = vrsqrt.f32 %v10328_v4  ;;  %v1550_v58 = vrot.slane %v10313_v8, 4  ;;  %v1562_v28 = vrot.slane %v13762_v13, 4  ;;  %v13763_v24 = vsub.f32 1.5, %v10183_v9 }
 0x24c   : > { %v13765_v31 = vsub.f32 1.5, %v10191_v6  ;;  %v10371_v5 = vmul.f32 0.5, %v3727_v55  ;;  %v1196_v26 = vrot.slane %v1181_v21, 4  ;;  %v1177_v43 = vperm.slane %v1171_v62, %v8664_v17 }
 0x24d   : > { %v10364_v60 = vmul.f32 %v10080_v0, %v13763_v24  ;;  %v3570_v27 = vmul.f32 %v10347_v14, %v10347_v14  ;;  %v1551_v50 = vsel %vm754_vm1, %v10350_v39, %v1550_v58  ;;  %v1563_v9 = vsel %vm754_vm1, %v10353_v2, %v1562_v28  ;;  %v4122_v24 = vpop.xlane.xlu2 %4121 }
 0x24e   : > { %v10369_v29 = vmul.f32 %v10091_v15, %v13765_v31  ;;  %v4249_v6 = vmul.f32 %v10262_v42, %v4248_v7  ;;  %v4085_v31 = vmul.f32 %v10356_v3, %v10356_v3  ;;  %v1466_v55 = vrot.slane %v10310_v10, 4  ;;  %v3604_v3 = vpop.xlane.xlu0 %3603 }
 0x24f   : > { %13764 = vst [vmem:[#allocation43_spill] sm:$0xff] %v10364_v60  ;;  %v1571_v21 = vperm.slane %v1563_v9, %v8664_v17  ;;  %v1591_v62 = vsel %vm754_vm1, %v1200_v18, %v1189_v23  ;;  %v10386_v40 = vadd.f32 1e-24, %v4116_v52  ;;  %v1559_v14 = vperm.slane %v1551_v50, %v8664_v17 }
 0x250   : > { %13766 = vst [vmem:[#allocation37_spill] sm:$0xff] %v10369_v29  ;;  %v1506_v58 = vrot.slane %v10111_v51, 4  ;;  %v10392_v28 = vmul.f32 %v10268_v54, %v10174_v20  ;;  %v1197_v7 = vsel %vm754_vm1, 0.0, %v1196_v26  ;;  %v1494_v10 = vrot.slane %v10108_v56, 4 }
 0x251   : > { %v1576_v32 = vrot.slane %v1571_v21, 4  ;;  %v10396_v29 = vpop.eup %7733  ;;  %v1194_v9 = vrot.slane %v1177_v43, 4  ;;  %v1198_v60 = vrot.slane %v1189_v23, 4  ;;  %v1201_v52 = vsel %vm754_vm1, 0.0, %v1200_v18 }
 0x252   : > { %v3635_v50 = vsel %vm3586_vm2, %v3570_v27, 0.0  ;;  %v4228_v51 = vmul.f32 %v10279_v1, %v10185_v44  ;;  %v10403_v20 = vperm.slane %v1591_v62, %v8644_v63  ;;  %v4153_v15 = vsel %vm3586_vm2, %v4085_v31, 0.0 }
 0x253   : > { %3636 = vadd.xlane.f32.xlu0 %v3635_v50  ;;  %v10408_v56 = vsel %vm754_vm1, %v10305_v45, %v1466_v55  ;;  %v1585_v0 = vrot.slane %v1197_v7, 4  ;;  %4154 = vadd.xlane.f32.xlu1 %v4153_v15  ;;  %7735 = vrsqrt.f32 %v10386_v40  ;;  %v10412_v23 = vsel %vm754_vm1, %v1576_v32, %v1559_v14 }
 0x254   : > { %13767 = vst [vmem:[#allocation44_spill] sm:$0xff] %v10408_v56  ;;  %v1507_v18 = vsel %vm754_vm1, %v1506_v58, %v13730_v25  ;;  %v1596_v27 = vrot.slane %v1201_v52, 4  ;;  %v4238_v62 = vmul.f32 %v10396_v29, %v10328_v4  ;;  %v1495_v31 = vsel %vm754_vm1, %v1494_v10, %v10071_v37 }
 0x255   : > { %13768 = vst [vmem:[#allocation76_spill] sm:$0xff] %v10412_v23  ;;  %v10421_v45 = vperm.slane %v1507_v18, %v8664_v17  ;;  %v1199_v15 = vsel %vm754_vm1, 0.0, %v1198_v60  ;;  %v3572_v55 = vmul.f32 %v10408_v56, %v10408_v56  ;;  %v1578_v32 = vrot.slane %v1559_v14, 4  ;;  %v4110_v18 = vpop.xlane.xlu2 %4109 }
 0x256   : > { %v1195_v7 = vsel %vm754_vm1, 0.0, %v1194_v9  ;;  %v3582_v25 = vmul.f32 %v10412_v23, %v10412_v23  ;;  %v10429_v58 = vadd.f32 1e-24, %v4122_v24  ;;  %v2318_v52 = vrot.slane %v9827_v12, 4 }
 0x257   : > { %v1580_v37 = vsel %vm754_vm1, %v1196_v26, %v1177_v43  ;;  %v10434_v50 = vmul.f32 0.5, %v4249_v6  ;;  %v10437_v60 = vperm.slane %v1495_v31, %v8664_v17  ;;  %v1518_v14 = vrot.slane %v10421_v45, 4 }
 0x258   : > { %v4229_v9 = vmul.f32 %v10279_v1, %v4228_v51  ;;  %v4239_v23 = vmul.f32 %v10396_v29, %v4238_v62  ;;  %v1586_v24 = vsel %vm754_vm1, %v1585_v0, %v1195_v7  ;;  %v1597_v12 = vsel %vm754_vm1, %v1596_v27, %v1199_v15  ;;  %v3625_v0 = vpop.xlane.xlu0 %3624 }
 0x259   : > { %v10444_v56 = vpop.eup %7735  ;;  %v3641_v26 = vsel %vm3586_vm2, %v3572_v55, 0.0  ;;  %v10448_v43 = vsel %vm754_vm1, %v1571_v21, %v1578_v32  ;;  %v10451_v6 = vperm.slane %v1580_v37, %v8644_v63  ;;  %v1616_v31 = vrot.slane %v10403_v20, 4 }
 0x25a   : > { %13769 = vst [vmem:[#allocation77_spill] sm:$0xff] %v10448_v43  ;;  %v3671_v51 = vsel %vm3586_vm2, %v3582_v25, 0.0  ;;  %7737 = vrsqrt.f32 %v10429_v58  ;;  %v10458_v27 = vsel %vm754_vm1, %v9816_v11, %v2318_v52  ;;  %v10460_v62 = vadd.f32 1e-24, %v4110_v18 }
 0x25b   : > { %3642 = vadd.xlane.f32.xlu0 %v3641_v26  ;;  %13770 = vst [vmem:[#allocation78_spill] sm:$0xff] %v10458_v27  ;;  %3672 = vadd.xlane.f32.xlu1 %v3671_v51  ;;  %v10462_v21 = vadd.f32 1e-24, %v3604_v3  ;;  %v10466_v15 = vsel %vm754_vm1, %v1518_v14, %v10437_v60  ;;  %v10469_v55 = vperm.slane %v1586_v24, %v8644_v63  ;;  %v4230_v7 = vmul.f32 0.5, %v4229_v9 }
 0x25c   : > { %13771 = vst [vmem:[#allocation79_spill] sm:$0xff] %v10466_v15  ;;  %v10472_v32 = vperm.slane %v1597_v12, %v8644_v63  ;;  %v4278_v11 = vmul.f32 %v10444_v56, %v10386_v40  ;;  %v4240_v25 = vmul.f32 0.5, %v4239_v23  ;;  %v3584_v52 = vmul.f32 %v10448_v43, %v10448_v43 }
 0x25d   : > { %v4077_v3 = vmul.f32 %v10458_v27, %v10458_v27  ;;  %7739 = vrsqrt.f32 %v10460_v62  ;;  %v1604_v37 = vrot.slane %v10451_v6, 4  ;;  %v3571_v18 = vmul.f32 %v10466_v15, %v10466_v15 }
 0x25e   : > { %v1617_v14 = vsel %vm754_vm1, %v10472_v32, %v1616_v31  ;;  %v2562_v23 = vrot.slane %v10245_v46, 4  ;;  %v2574_v24 = vrot.slane %v10257_v35, 4  ;;  %7741 = vrsqrt.f32 %v10462_v21 }
 0x25f   : > { %v10487_v9 = vperm.slane %v1617_v14, %v8664_v17  ;;  %v10492_v12 = vadd.f32 1e-24, %v3625_v0  ;;  %v1605_v26 = vsel %vm754_vm1, %v10469_v55, %v1604_v37  ;;  %v2480_v51 = vrot.slane %v10166_v34, 4 }
 0x260   : > { %v10497_v31 = vpop.eup %7737  ;;  %vm4233_vm12 = vweird.f32 %v10185_v44  ;;  %v4241_v10 = vsub.f32 1.5, %v4240_v25  ;;  %v10501_v14 = vperm.slane %v1605_v26, %v8664_v17  ;;  %v2563_v35 = vsel %vm754_vm1, %v2562_v23, %v10231_v19 }
 0x261   : > { %v1630_v46 = vrot.slane %v10487_v9, 4  ;;  %v3677_v0 = vsel %vm3586_vm2, %v3584_v52, 0.0  ;;  %v4129_v43 = vsel %vm3586_vm2, %v4077_v3, 0.0  ;;  %v2569_v37 = vperm.slane %v2563_v35, %v8664_v17 }
 0x262   : > { %v2575_v34 = vsel %vm754_vm1, %v2574_v24, %v10102_v41  ;;  %v3638_v25 = vsel %vm3586_vm2, %v3571_v18, 0.0  ;;  %4130 = vadd.xlane.f32.xlu2 %v4129_v43  ;;  %v10519_v19 = vsel %vm754_vm1, %v10169_v33, %v2480_v51  ;;  %v4231_v3 = vsub.f32 1.5, %v4230_v7  ;;  %v3631_v33 = vpop.xlane.xlu0 %3630 }
 0x263   : > { %3678 = vadd.xlane.f32.xlu0 %v3677_v0  ;;  %v10514_v26 = vsel %vm754_vm1, %v1630_v46, %v10501_v14  ;;  %v2581_v15 = vperm.slane %v2575_v34, %v8664_v17  ;;  %13773 = vst [vmem:[#allocation81_spill] sm:$0xff] %v10519_v19  ;;  %v10521_v52 = vpop.eup %7739  ;;  %v4279_v23 = vmul.f32 %v10444_v56, %v4278_v11  ;;  %7743 = vrsqrt.f32 %v10492_v12 }
 0x264   : > { %13772 = vst [vmem:[#allocation80_spill] sm:$0xff] %v10514_v26  ;;  %v4298_v41 = vmul.f32 %v10497_v31, %v10429_v58  ;;  %3639 = vadd.xlane.f32.xlu1 %v3638_v25  ;;  %v4289_v43 = vmul.f32 %v10268_v54, %v10392_v28  ;;  %v4258_v18 = vmul.f32 %v10521_v52, %v10460_v62  ;;  %v10532_v46 = vpop.eup %7741  ;;  %v13774_v7 = vsub.f32 1.5, %v10371_v5 }
 0x265   : > { %v2586_v24 = vrot.slane %v2581_v15, 4  ;;  %v4242_v51 = vmul.f32 %v10396_v29, %v4241_v10  ;;  %v3583_v0 = vmul.f32 %v10514_v26, %v10514_v26  ;;  %v4086_v28 = vmul.f32 %v10519_v19, %v10519_v19  ;;  %v10556_v26 = vpop.permute.xlu1 %4597 }
 0x266   : > { %v10537_v11 = vmul.f32 %v10198_v53, %v13774_v7  ;;  %vm4243_vm13 = vweird.f32 %v10328_v4  ;;  %v4259_v34 = vmul.f32 %v10521_v52, %v4258_v18  ;;  %vm4244_vm14 = vweird.f32 %v10396_v29 }
 0x267   : > { %v10547_v10 = vsel %vm754_vm1, %v2586_v24, %v2569_v37  ;;  %v10550_v5 = vmul.f32 0.5, %v4279_v23  ;;  %v4299_v25 = vmul.f32 %v10497_v31, %v4298_v41  ;;  %vm4245_vm15 = vmor %vm4243_vm13, %vm4244_vm14  ;;  %v4232_v35 = vmul.f32 %v10279_v1, %v4231_v3 }
 0x268   : > { %13775 = vst [vmem:[#allocation82_spill] sm:$0xff] %v10547_v10  ;;  %v4092_v7 = vmul.f32 %v10547_v10, %v10547_v10  ;;  %v4260_v4 = vmul.f32 0.5, %v4259_v34  ;;  %v4246_v18 = vsel %vm4245_vm15, %v10396_v29, %v4242_v51  ;;  %vm4234_vm3 = vweird.f32 %v10279_v1  ;;  %v13776_v10 = vld [vmem:[#allocation53_spill] sm:$0xff]  ;;  %v3607_v51 = vpop.xlane.xlu2 %3606 }
 0x269   : > { %v2588_v24 = vrot.slane %v2569_v37, 4  ;;  %v10560_v19 = vpop.eup %7743  ;;  %vm4264_vm4 = vweird.f32 %v10521_v52  ;;  %v3674_v23 = vsel %vm3586_vm2, %v3583_v0, 0.0  ;;  %v4156_v41 = vsel %vm3586_vm2, %v4086_v28, 0.0  ;;  %vm10568_vm5 = vmor %vm4233_vm12, %vm4234_vm3 }
 0x26a   : > { %v4548_v27 = vmul.f32 %v4246_v18, %v13776_v10  ;;  %v4261_v29 = vsub.f32 1.5, %v4260_v4  ;;  %v4174_v37 = vsel %vm3586_vm2, %v4092_v7, 0.0  ;;  %4157 = vadd.xlane.f32.xlu2 %v4156_v41  ;;  %v4236_v0 = vsel %vm10568_vm5, %v10279_v1, %v4232_v35 }
 0x26b   : > { %3675 = vadd.xlane.f32.xlu0 %v3674_v23  ;;  %v10577_v28 = vsel %vm754_vm1, %v2581_v15, %v2588_v24  ;;  %v10579_v34 = vmul.f32 0.5, %v4289_v43  ;;  %v3766_v44 = vmul.f32 %v10532_v46, %v10462_v21  ;;  %v4300_v10 = vmul.f32 0.5, %v4299_v25  ;;  %v13780_v43 = vld [vmem:[#allocation42_spill] sm:$0xff] }
 0x26c   : > { %4175 = vadd.xlane.f32.xlu1 %v4174_v37  ;;  %7413 = vmatpush.xpose.msk.msrb.mxu3 %vm3586_vm2, %v4548_v27  ;;  %v13779_v7 = vrot.slane %v9577_v36, 4  ;;  %v3836_v18 = vmul.f32 %v10560_v19, %v10492_v12  ;;  %v4262_v1 = vmul.f32 %v10521_v52, %v4261_v29  ;;  %vm4263_vm6 = vweird.f32 %v10460_v62  ;;  %v4128_v37 = vpop.xlane.xlu0 %4127 }
 0x26d   : > { %v1548_v15 = vrot.slane %v10350_v39, 4  ;;  %vm4284_vm7 = vweird.f32 %v10444_v56  ;;  %vm4265_vm8 = vmor %vm4263_vm6, %vm4264_vm4  ;;  %v4547_v27 = vmul.f32 %v4236_v0, %v13780_v43  ;;  %v4094_v35 = vmul.f32 %v10577_v28, %v10577_v28 }
 0x26e   : > { %v2099_v4 = vsel %vm754_vm1, 0.0, %v13779_v7  ;;  %v2486_v25 = vsel %vm754_vm1, %v9548_v49, %v9577_v36  ;;  %v13781_v24 = vrot.slane %v9604_v47, 4  ;;  %v4281_v23 = vsub.f32 1.5, %v10550_v5  ;;  %v4140_v5 = vpop.xlane.xlu1 %4139 }
 0x26f   : > { %v4266_v41 = vsel %vm4265_vm8, %v10521_v52, %v4262_v1  ;;  %v10606_v3 = vadd.f32 1e-24, %v3631_v33  ;;  %v3767_v0 = vmul.f32 %v10532_v46, %v3766_v44  ;;  %v4301_v7 = vsub.f32 1.5, %v4300_v10 }
 0x270   : > { %v2492_v62 = vsel %vm754_vm1, %v13781_v24, %v2099_v4  ;;  %v4550_v43 = vmul.f32 %v4266_v41, %v9531_v38  ;;  %7414 = vmatpush.xpose.msk.msrb.mxu3 %vm3586_vm2, %v4547_v27  ;;  %v10616_v49 = vperm.slane %v9985_v61, %v8644_v63  ;;  %v3837_v36 = vmul.f32 %v10560_v19, %v3836_v18  ;;  %v13782_v18 = vld [vmem:[#allocation28_spill] sm:$0xff]  ;;  %v13785_v41 = vld [vmem:[#allocation73_spill] sm:$0xff] }
 0x271   : > { %v10609_v29 = vperm.slane %v2492_v62, %v8644_v63  ;;  %v10619_v47 = vadd.f32 1e-24, %v3607_v51  ;;  %v10622_v52 = vperm.slane %v2486_v25, %v8644_v63  ;;  %v4180_v44 = vsel %vm3586_vm2, %v4094_v35, 0.0  ;;  %v13784_v35 = vld [vmem:[#allocation50_spill] sm:$0xff] }
 0x272   : > { %v10628_v38 = vperm.slane %v9580_v16, %v8644_v63  ;;  %v2520_v10 = vrot.slane %v10616_v49, 4  ;;  %v2592_v61 = vrot.slane %v10282_v48, 4  ;;  %7745 = vrsqrt.f32 %v10606_v3 }
 0x273   : > { %v2508_v33 = vrot.slane %v10609_v29, 4  ;;  %4181 = vadd.xlane.f32.xlu0 %v4180_v44  ;;  %v10636_v4 = vadd.f32 1e-24, %v4128_v37  ;;  %v13783_v16 = vsel %vm10223_vm11, %v9972_v59, %v10143_v30  ;;  %vm3732_vm9 = vweird.f32 %v10198_v53  ;;  %v10658_v59 = vpop.xlane.xlu2 %3609 }
 0x274   : > { %7417 = vmatpush.xpose.msk.msra.mxu3 %vm3586_vm2, %v4550_v43  ;;  %v4035_v1 = vmul.f32 %v13783_v16, %v13782_v18  ;;  %v2521_v27 = vsel %vm754_vm1, %v2520_v10, %v10628_v38  ;;  %v10650_v25 = vsel %vm754_vm1, %v13784_v35, %v2592_v61  ;;  %v10652_v24 = vadd.f32 1e-24, %v4140_v5  ;;  %v13786_v43 = vld [vmem:[#allocation19_spill] sm:$0xff]  ;;  %v10667_v61 = vpop.xlane.xlu0 %3633 }
 0x275   : > { %v2509_v51 = vsel %vm754_vm1, %v2508_v33, %v10622_v52  ;;  %v3768_v62 = vmul.f32 0.5, %v3767_v0  ;;  %7747 = vrsqrt.f32 %v10619_v47  ;;  %v2527_v22 = vperm.slane %v2521_v27, %v8664_v17 }
 0x276   : > { %v2515_v48 = vperm.slane %v2509_v51, %v8664_v17  ;;  %v4098_v30 = vmul.f32 %v10650_v25, %v10650_v25  ;;  %vm3731_vm10 = vweird.f32 %v13785_v41  ;;  %v4282_v37 = vmul.f32 %v10444_v56, %v4281_v23 }
 0x277   : > { %vm4304_vm11 = vweird.f32 %v10497_v31  ;;  %v4604_v33 = vmul.f32 %v13786_v43, %v4035_v1  ;;  %7749 = vrsqrt.f32 %v10652_v24  ;;  %v4302_v0 = vmul.f32 %v10497_v31, %v4301_v7  ;;  %v13792_v7 = vld [vmem:[#allocation52_spill] sm:$0xff]  ;;  %vm10749_vm5 = vmor %vm3731_vm10, %vm3732_vm9 }
 0x278   : > { %v3838_v5 = vmul.f32 0.5, %v3837_v36  ;;  %v2532_v44 = vrot.slane %v2527_v22, 4  ;;  %v4192_v10 = vsel %vm3586_vm2, %v4098_v30, 0.0  ;;  %v4291_v51 = vsub.f32 1.5, %v10579_v34  ;;  %v10673_v18 = vpop.eup %7745 }
 0x279   : > { %vm4283_vm12 = vweird.f32 %v10386_v40  ;;  %7751 = vrsqrt.f32 %v10636_v4  ;;  %4193 = vadd.xlane.f32.xlu2 %v4192_v10  ;;  %7415 = vmatmul.msk.f32.vlgmr.msrb.gmra.mxu3 %vm3586_vm2, %v4604_v33  ;;  %v2534_v23 = vrot.slane %v2515_v48, 4  ;;  %v3769_v36 = vsub.f32 1.5, %v3768_v62 }
 0x27a   : > { %vm10677_vm13 = vmor %vm4283_vm12, %vm4284_vm7  ;;  %vm4303_vm14 = vweird.f32 %v10429_v58  ;;  %v10683_v34 = vsel %vm754_vm1, %v2532_v44, %v2515_v48  ;;  %v1549_v40 = vsel %vm754_vm1, %v1548_v15, %v10313_v8  ;;  %vm4254_vm15 = vweird.f32 %v10262_v42 }
 0x27b   : > { %vm10692_vm3 = vmor %vm4303_vm14, %vm4304_vm11  ;;  %v4091_v1 = vmul.f32 %v10683_v34, %v10683_v34  ;;  %v10699_v58 = vsel %vm754_vm1, %v2527_v22, %v2534_v23  ;;  %v10702_v48 = vperm.slane %v1549_v40, %v8664_v17  ;;  %v1560_v39 = vrot.slane %v10353_v2, 4  ;;  %v10705_v8 = vpop.eup %7747  ;;  %v4134_v22 = vpop.xlane.xlu1 %4133 }
 0x27c   : > { %v4286_v15 = vsel %vm10677_vm13, %v10444_v56, %v4282_v37  ;;  %v4306_v27 = vsel %vm10692_vm3, %v10497_v31, %v4302_v0  ;;  %v3839_v35 = vsub.f32 1.5, %v3838_v5  ;;  %v4093_v62 = vmul.f32 %v10699_v58, %v10699_v58 }
 0x27d   : > { %v10715_v30 = vpop.eup %7749  ;;  %vm4253_vm4 = vweird.f32 %v10149_v57  ;;  %v3856_v2 = vmul.f32 %v10673_v18, %v10606_v3  ;;  %v4171_v33 = vsel %vm3586_vm2, %v4091_v1, 0.0  ;;  %v1561_v56 = vsel %vm754_vm1, %v1560_v39, %v13762_v13  ;;  %v13795_v1 = vld [vmem:[#allocation54_spill] sm:$0xff] }
 0x27e   : > { %v1574_v37 = vrot.slane %v10702_v48, 4  ;;  %v13791_v31 = vsub.f32 1.5, %v10434_v50  ;;  %v10728_v5 = vmul.f32 %v10268_v54, %v4291_v51  ;;  %4172 = vadd.xlane.f32.xlu1 %v4171_v33  ;;  %v4358_v44 = vmul.f32 %v10715_v30, %v10652_v24  ;;  %v4164_v33 = vpop.xlane.xlu0 %4163  ;;  %vm10801_vm8 = vmor %vm4253_vm4, %vm4254_vm15 }
 0x27f   : > { %v4177_v10 = vsel %vm3586_vm2, %v4093_v62, 0.0  ;;  %v10733_v23 = vpop.eup %7751  ;;  %v10736_v40 = vmul.f32 %v4286_v15, %v13792_v7  ;;  %v10739_v13 = vmul.f32 %v10532_v46, %v3769_v36  ;;  %v10742_v50 = vperm.slane %v1561_v56, %v8664_v17  ;;  %v13797_v7 = vld [vmem:[#allocation39_spill] sm:$0xff] }
 0x280   : > { %v4252_v0 = vmul.f32 %v10262_v42, %v13791_v31  ;;  %4178 = vadd.xlane.f32.xlu0 %v4177_v10  ;;  %v2510_v51 = vrot.slane %v10622_v52, 4  ;;  %v10754_v39 = vmul.f32 %v4306_v27, %v13795_v1  ;;  %v10757_v36 = vmul.f32 %v10560_v19, %v3839_v35  ;;  %v4146_v52 = vpop.xlane.xlu2 %4145 }
 0x281   : > { %v3776_v15 = vmul.f32 %v10705_v8, %v10619_v47  ;;  %v4359_v62 = vmul.f32 %v10715_v30, %v4358_v44  ;;  %v3857_v56 = vmul.f32 %v10673_v18, %v3856_v2  ;;  %v10765_v41 = vsel %vm754_vm1, %v10742_v50, %v1574_v37 }
 0x282   : > { %13796 = vst [vmem:[#allocation53_spill] sm:$0xff] %v10765_v41  ;;  %v2522_v31 = vrot.slane %v10628_v38, 4  ;;  %v3734_v27 = vsel %vm10749_vm5, %v10198_v53, %v10537_v11  ;;  %v4318_v35 = vmul.f32 %v10733_v23, %v10636_v4  ;;  %v3580_v44 = vmul.f32 %v10765_v41, %v10765_v41 }
 0x283   : > { %v4360_v10 = vmul.f32 0.5, %v4359_v62  ;;  %v2511_v2 = vsel %vm754_vm1, %v10609_v29, %v2510_v51  ;;  %v4036_v38 = vmul.f32 %v3734_v27, %v13797_v7  ;;  %v10781_v1 = vadd.f32 1e-24, %v4134_v22  ;;  %v13798_v62 = vld [vmem:[#allocation45_spill] sm:$0xff]  ;;  %v4125_v27 = vpop.xlane.xlu1 %4124  ;;  %v13803_v7 = vld [vmem:[#allocation38_spill] sm:$0xff] }
 0x284   : > { %v2523_v37 = vsel %vm754_vm1, %v10616_v49, %v2522_v31  ;;  %v10783_v63 = vadd.f32 1e-24, %v4146_v52  ;;  %v3777_v53 = vmul.f32 %v10705_v8, %v3776_v15  ;;  %vm4364_vm6 = vweird.f32 %v10715_v30 }
 0x285   : > { %v4361_v11 = vsub.f32 1.5, %v4360_v10  ;;  %v10788_v16 = vperm.slane %v2523_v37, %v8664_v17  ;;  %vm4274_vm7 = vweird.f32 %v13798_v62  ;;  %v3665_v29 = vsel %vm3586_vm2, %v3580_v44, 0.0  ;;  %v13801_v10 = vld [vmem:[#allocation32_spill] sm:$0xff]  ;;  %v13802_v44 = vld [vmem:[#allocation51_spill] sm:$0xff] }
 0x286   : > { %v10793_v49 = vperm.slane %v2511_v2, %v8664_v17  ;;  %v4605_v22 = vmul.f32 %v13786_v43, %v4036_v38  ;;  %7753 = vrsqrt.f32 %v10781_v1  ;;  %v4319_v15 = vmul.f32 %v10733_v23, %v4318_v35  ;;  %3666 = vadd.xlane.f32.xlu1 %v3665_v29  ;;  %v13804_v29 = vld [vmem:[#allocation30_spill] sm:$0xff] }
 0x287   : > { %v4362_v52 = vmul.f32 %v10715_v30, %v4361_v11  ;;  %vm4363_vm9 = vweird.f32 %v10652_v24  ;;  %v10809_v31 = vadd.f32 1e-24, %v10658_v59  ;;  %vm4273_vm10 = vweird.f32 %v13801_v10  ;;  %v10827_v11 = vpop.xlane.xlu0 %4169  ;;  %v13813_v10 = vld [vmem:[#allocation43_spill] sm:$0xff] }
 0x288   : > { %vm3752_vm11 = vweird.f32 %v13802_v44  ;;  %vm4365_vm12 = vmor %vm4363_vm9, %vm4364_vm6  ;;  %v2536_v57 = vrot.slane %v10788_v16, 4  ;;  %7416 = vmatmul.msk.f32.gmra.mxu3 %vm3586_vm2, %v4605_v22  ;;  %7755 = vrsqrt.f32 %v10783_v63  ;;  %v4256_v24 = vsel %vm10801_vm8, %v10262_v42, %v4252_v0  ;;  %v13805_v22 = vld [vmem:[#allocation25_spill] sm:$0xff] }
 0x289   : > { %v1602_v59 = vrot.slane %v10469_v55, 4  ;;  %vm4294_vm13 = vweird.f32 %v10268_v54  ;;  %v10823_v35 = vmul.f32 0.5, %v3857_v56  ;;  %v3778_v2 = vmul.f32 0.5, %v3777_v53  ;;  %vm10899_vm9 = vmor %vm4273_vm10, %vm4274_vm7 }
 0x28a   : > { %v4366_v37 = vsel %vm4365_vm12, %v10715_v30, %v4362_v52  ;;  %v4549_v38 = vmul.f32 %v4256_v24, %v13803_v7  ;;  %vm3751_vm14 = vweird.f32 %v13804_v29  ;;  %vm3842_vm15 = vweird.f32 %v10560_v19  ;;  %v13806_v30 = vld [vmem:[#allocation29_spill] sm:$0xff] }
 0x28b   : > { %v4560_v51 = vmul.f32 %v4366_v37, %v13805_v22  ;;  %v10834_v42 = vsel %vm754_vm1, %v2536_v57, %v10793_v49  ;;  %v1603_v55 = vsel %vm754_vm1, %v1602_v59, %v10451_v6  ;;  %v1614_v0 = vrot.slane %v10472_v32, 4  ;;  %v4137_v57 = vpop.xlane.xlu2 %4136  ;;  %v13808_v22 = vld [vmem:[#allocation20_spill] sm:$0xff]  ;;  %vm10922_vm7 = vmor %vm3751_vm14, %vm3752_vm11 }
 0x28c   : > { %vm4293_vm3 = vweird.f32 %v13806_v30  ;;  %7757 = vrsqrt.f32 %v10809_v31  ;;  %v4095_v56 = vmul.f32 %v10834_v42, %v10834_v42  ;;  %7418 = vmatpush.xpose.msk.msra.mxu3 %vm3586_vm2, %v4549_v38  ;;  %v10845_v53 = vperm.slane %v1603_v55, %v8664_v17  ;;  %v10849_v24 = vpop.eup %7753 }
 0x28d   : > { %v10847_v52 = vadd.f32 1e-24, %v4164_v33  ;;  %vm3841_vm4 = vweird.f32 %v10492_v12  ;;  %v4320_v6 = vmul.f32 0.5, %v4319_v15  ;;  %v10853_v32 = vadd.f32 1e-24, %v10667_v61  ;;  %7437 = vmatpush.xpose.msk.msra.mxu2 %vm3586_vm2, %v4560_v51  ;;  %v13807_v15 = vld [vmem:[#allocation24_spill] sm:$0xff]  ;;  %vm10934_vm12 = vmor %vm4293_vm3, %vm4294_vm13 }
 0x28e   : > { %v1615_v59 = vsel %vm754_vm1, %v1614_v0, %v10403_v20  ;;  %v2538_v37 = vrot.slane %v10793_v49, 4  ;;  %v3779_v33 = vsub.f32 1.5, %v3778_v2  ;;  %v4183_v7 = vsel %vm3586_vm2, %v4095_v56, 0.0  ;;  %v10866_v55 = vpop.eup %7755  ;;  %v10880_v0 = vpop.xlane.xlu1 %3612  ;;  %vm10947_vm11 = vmor %vm3841_vm4, %vm3842_vm15 }
 0x28f   : > { %v4338_v38 = vmul.f32 %v10849_v24, %v10781_v1  ;;  %v4606_v61 = vmul.f32 %v13808_v22, %v13807_v15  ;;  %4184 = vadd.xlane.f32.xlu2 %v4183_v7  ;;  %v10869_v20 = vperm.slane %v1615_v59, %v8664_v17  ;;  %7759 = vrsqrt.f32 %v10847_v52 }
 0x290   : > { %7421 = vmatpush.xpose.msk.msrb.mxu3 %vm3586_vm2, %v10736_v40  ;;  %v1628_v40 = vrot.slane %v10845_v53, 4  ;;  %v10873_v49 = vadd.f32 1e-24, %v4125_v27  ;;  %vm3782_vm5 = vweird.f32 %v10705_v8  ;;  %vm4323_vm6 = vweird.f32 %v10636_v4 }
 0x291   : > { %v4339_v2 = vmul.f32 %v10849_v24, %v4338_v38  ;;  %v4378_v51 = vmul.f32 %v10866_v55, %v10783_v63  ;;  %vm3781_vm8 = vweird.f32 %v10619_v47  ;;  %v4321_v56 = vsub.f32 1.5, %v4320_v6  ;;  %7419 = vmatmul.msk.f32.vlgmr.msra.gmra.mxu3 %vm3586_vm2, %v4606_v61  ;;  %v13818_v6 = vld [vmem:[#allocation33_spill] sm:$0xff] }
 0x292   : > { %7761 = vrsqrt.f32 %v10853_v32  ;;  %v10886_v27 = vsel %vm754_vm1, %v10869_v20, %v1628_v40  ;;  %v10890_v59 = vsel %vm754_vm1, %v10788_v16, %v2538_v37  ;;  %v10893_v7 = vpop.eup %7757  ;;  %v10909_v37 = vmul.f32 %v10705_v8, %v3779_v33  ;;  %vm11002_vm4 = vmor %vm3781_vm8, %vm3782_vm5 }
 0x293   : > { %13809 = vst [vmem:[#allocation42_spill] sm:$0xff] %v10886_v27  ;;  %v4340_v38 = vmul.f32 0.5, %v4339_v2  ;;  %v4379_v15 = vmul.f32 %v10866_v55, %v4378_v51  ;;  %v3581_v40 = vmul.f32 %v10886_v27, %v10886_v27  ;;  %v4097_v16 = vmul.f32 %v10890_v59, %v10890_v59  ;;  %v4161_v27 = vpop.xlane.xlu0 %4160 }
 0x294   : > { %13810 = vst [vmem:[#allocation28_spill] sm:$0xff] %v10890_v59  ;;  %7763 = vrsqrt.f32 %v10873_v49  ;;  %v10912_v61 = vadd.f32 1e-24, %v4137_v57  ;;  %v4276_v2 = vsel %vm10899_vm9, %v13798_v62, %v13813_v10  ;;  %vm4344_vm10 = vweird.f32 %v10849_v24 }
 0x295   : > { %v4341_v17 = vsub.f32 1.5, %v4340_v38  ;;  %v4380_v33 = vmul.f32 0.5, %v4379_v15  ;;  %v3668_v57 = vsel %vm3586_vm2, %v3581_v40, 0.0  ;;  %v10928_v41 = vpop.eup %7759  ;;  %v3786_v29 = vmul.f32 %v10893_v7, %v10809_v31 }
 0x296   : > { %3669 = vadd.xlane.f32.xlu0 %v3668_v57  ;;  %7765 = vrsqrt.f32 %v10912_v61  ;;  %v4551_v38 = vmul.f32 %v4276_v2, %v13818_v6  ;;  %v4322_v15 = vmul.f32 %v10733_v23, %v4321_v56  ;;  %vm4343_vm13 = vweird.f32 %v10781_v1  ;;  %v4143_v2 = vpop.xlane.xlu2 %4142 }
 0x297   : > { %v4342_v40 = vmul.f32 %v10849_v24, %v4341_v17  ;;  %v4438_v10 = vmul.f32 %v10928_v41, %v10847_v52  ;;  %v4189_v57 = vsel %vm3586_vm2, %v4097_v16, 0.0  ;;  %vm10960_vm14 = vmor %vm4343_vm13, %vm4344_vm10  ;;  %v4296_v17 = vsel %vm10934_vm12, %v10268_v54, %v10728_v5  ;;  %v13823_v54 = vld [vmem:[#allocation37_spill] sm:$0xff] }
 0x298   : > { %v10956_v6 = vpop.eup %7761  ;;  %4190 = vadd.xlane.f32.xlu2 %v4189_v57  ;;  %7422 = vmatpush.xpose.msk.msrb.mxu3 %vm3586_vm2, %v4551_v38  ;;  %vm4324_vm15 = vweird.f32 %v10733_v23  ;;  %v10971_v1 = vadd.f32 1e-24, %v10827_v11  ;;  %v1520_v56 = vrot.slane %v10437_v60, 4  ;;  %v4381_v59 = vsub.f32 1.5, %v4380_v33  ;;  %v10986_v11 = vpop.xlane.xlu1 %3618  ;;  %v13824_v33 = vld [vmem:[#allocation61_spill] sm:$0xff]  ;;  %v13827_v38 = vld [vmem:[#allocation40_spill] sm:$0xff] }
 0x299   : > { %v4346_v16 = vsel %vm10960_vm14, %v10849_v24, %v4342_v40  ;;  %v4439_v57 = vmul.f32 %v10928_v41, %v4438_v10  ;;  %vm4325_vm3 = vmor %vm4323_vm6, %vm4324_vm15  ;;  %v3754_v5 = vsel %vm10922_vm7, %v13802_v44, %v13823_v54  ;;  %v3844_v24 = vsel %vm10947_vm11, %v10560_v19, %v10757_v36  ;;  %v13828_v36 = vld [vmem:[#allocation60_spill] sm:$0xff] }
 0x29a   : > { %v10988_v60 = vpop.eup %7763  ;;  %v4558_v62 = vmul.f32 %v4346_v16, %v13824_v33  ;;  %7767 = vrsqrt.f32 %v10971_v1  ;;  %v3859_v4 = vsub.f32 1.5, %v10823_v35  ;;  %v3787_v51 = vmul.f32 %v10893_v7, %v3786_v29 }
 0x29b   : > { %v4553_v19 = vmul.f32 %v4296_v17, %v13827_v38  ;;  %v4440_v35 = vmul.f32 0.5, %v4439_v57  ;;  %v11017_v47 = vsel %vm754_vm1, %v10421_v45, %v1520_v56  ;;  %v4382_v29 = vmul.f32 %v10866_v55, %v4381_v59  ;;  %v13830_v56 = vld [vmem:[#allocation56_spill] sm:$0xff]  ;;  %v3649_v33 = vpop.xlane.xlu0 %3648 }
 0x29c   : > { %7425 = vmatpush.xpose.msk.msra.mxu3 %vm3586_vm2, %v10754_v39  ;;  %v4326_v39 = vsel %vm4325_vm3, %v10733_v23, %v4322_v15  ;;  %v11009_v40 = vpop.eup %7765  ;;  %v3784_v23 = vsel %vm11002_vm4, %v10705_v8, %v10909_v37  ;;  %v13829_v15 = vld [vmem:[#allocation36_spill] sm:$0xff]  ;;  %7433 = vmatpush.xpose.msk.msra.mxu1 %vm3586_vm2, %v4558_v62  ;;  %vm4384_vm5 = vweird.f32 %v10866_v55  ;;  %v4308_v12 = vmul.f32 %v10988_v60, %v10873_v49 }
 0x29d   : > { %v4556_v30 = vmul.f32 %v4326_v39, %v13828_v36  ;;  %v4038_v10 = vmul.f32 %v3754_v5, %v13829_v15  ;;  %v4348_v17 = vmul.f32 %v11009_v40, %v10912_v61  ;;  %vm3772_vm6 = vweird.f32 %v10532_v46  ;;  %v13831_v39 = vld [vmem:[#allocation58_spill] sm:$0xff] }
 0x29e   : > { %v3573_v45 = vmul.f32 %v11017_v47, %v11017_v47  ;;  %v11034_v59 = vadd.f32 1e-24, %v10880_v0  ;;  %v11036_v37 = vadd.f32 1e-24, %v4143_v2  ;;  %v11039_v16 = vmul.f32 %v3844_v24, %v13830_v56  ;;  %v3628_v38 = vpop.xlane.xlu2 %3627 }
 0x29f   : > { %7429 = vmatpush.xpose.msk.msrb.mxu0 %vm3586_vm2, %v4556_v30  ;;  %v4607_v8 = vmul.f32 %v13808_v22, %v4038_v10  ;;  %v11041_v57 = vmul.f32 0.5, %v3787_v51  ;;  %v4349_v54 = vmul.f32 %v11009_v40, %v4348_v17  ;;  %v11044_v5 = vadd.f32 1e-24, %v4161_v27 }
 0x2a0   : > { %7426 = vmatpush.xpose.msk.msra.mxu3 %vm3586_vm2, %v4553_v19  ;;  %v11046_v62 = vpop.eup %7767  ;;  %vm3771_vm8 = vweird.f32 %v10462_v21  ;;  %vm4383_vm9 = vweird.f32 %v10783_v63  ;;  %v4441_v0 = vsub.f32 1.5, %v4440_v35  ;;  %v3644_v2 = vsel %vm3586_vm2, %v3573_v45, 0.0  ;;  %v11073_v30 = vpop.xlane.xlu1 %4166 }
 0x2a1   : > { %7420 = vmatmul.msk.f32.gmra.mxu3 %vm3586_vm2, %v4607_v8  ;;  %7769 = vrsqrt.f32 %v11034_v59  ;;  %v11054_v24 = vmul.f32 %v10673_v18, %v3859_v4  ;;  %v11057_v27 = vmul.f32 %v3784_v23, %v13831_v39  ;;  %vm11061_vm7 = vmor %vm4383_vm9, %vm4384_vm5  ;;  %v4350_v63 = vmul.f32 0.5, %v4349_v54  ;;  %3645 = vadd.xlane.f32.xlu2 %v3644_v2  ;;  %v11094_v8 = vpop.f32.mrf.mxu2 }
 0x2a2   : > { %v4458_v51 = vmul.f32 %v11046_v62, %v10971_v1  ;;  %v4386_v4 = vsel %vm11061_vm7, %v10866_v55, %v4382_v29  ;;  %v4309_v19 = vmul.f32 %v10988_v60, %v4308_v12  ;;  %7771 = vrsqrt.f32 %v11036_v37  ;;  %v13834_v29 = vld [vmem:[#allocation62_spill] sm:$0xff]  ;;  %vm11130_vm4 = vmor %vm3771_vm8, %vm3772_vm6 }
 0x2a3   : > { %v1632_v36 = vrot.slane %v10501_v14, 4  ;;  %v3789_v23 = vsub.f32 1.5, %v11041_v57  ;;  %v11078_v35 = vmul.f32 %v10956_v6, %v10853_v32  ;;  %v4351_v15 = vsub.f32 1.5, %v4350_v63 }
 0x2a4   : > { %7773 = vrsqrt.f32 %v11044_v5  ;;  %v4442_v10 = vmul.f32 %v10928_v41, %v4441_v0  ;;  %vm4444_vm10 = vweird.f32 %v10928_v41  ;;  %v11087_v14 = vadd.f32 1e-24, %v3628_v38 }
 0x2a5   : > { %v11085_v55 = vsel %vm754_vm1, %v10487_v9, %v1632_v36  ;;  %v4562_v12 = vmul.f32 %v4386_v4, %v13834_v29  ;;  %vm4443_vm12 = vweird.f32 %v10847_v52  ;;  %v4459_v17 = vmul.f32 %v11046_v62, %v4458_v51  ;;  %v13835_v9 = vld [vmem:[#allocation46_spill] sm:$0xff]  ;;  %v11113_v51 = vpop.xlane.xlu0 %3654  ;;  %v13843_v52 = vld [vmem:[#allocation55_spill] sm:$0xff] }
 0x2a6   : > { %v3585_v45 = vmul.f32 %v11085_v55, %v11085_v55  ;;  %v4310_v54 = vmul.f32 0.5, %v4309_v19  ;;  %vm4313_vm11 = vweird.f32 %v10873_v49  ;;  %v4608_v0 = vmul.f32 %v10556_v26, %v13835_v9  ;;  %vm11104_vm13 = vmor %vm4443_vm12, %vm4444_vm10 }
 0x2a7   : > { %v11096_v56 = vpop.eup %7769  ;;  %v11101_v2 = vadd.f32 1e-24, %v3649_v33  ;;  %v1572_v39 = vrot.slane %v10742_v50, 4  ;;  %v4352_v44 = vmul.f32 %v11009_v40, %v4351_v15  ;;  %vm4353_vm14 = vweird.f32 %v10912_v61 }
 0x2a8   : > { %vm4354_vm15 = vweird.f32 %v11009_v40  ;;  %v3796_v63 = vmul.f32 %v11096_v56, %v11034_v59  ;;  %v11115_v38 = vpop.eup %7771  ;;  %v4446_v50 = vsel %vm11104_vm13, %v10928_v41, %v4442_v10  ;;  %vm4314_vm3 = vweird.f32 %v10988_v60 }
 0x2a9   : > { %v3680_v33 = vsel %vm3586_vm2, %v3585_v45, 0.0  ;;  %7423 = vmatmul.msk.f32.vlgmr.msrb.gmra.mxu3 %vm3586_vm2, %v4608_v0  ;;  %7775 = vrsqrt.f32 %v11087_v14  ;;  %v4460_v36 = vmul.f32 0.5, %v4459_v17  ;;  %v4368_v15 = vmul.f32 %v11115_v38, %v11036_v37  ;;  %vm11146_vm5 = vmor %vm4353_vm14, %vm4354_vm15 }
 0x2aa   : > { %v11124_v4 = vpop.eup %7773  ;;  %v3797_v41 = vmul.f32 %v11096_v56, %v3796_v63  ;;  %3681 = vadd.xlane.f32.xlu2 %v3680_v33  ;;  %7441 = vmatpush.xpose.msk.msrb.mxu3 %vm3586_vm2, %v4562_v12  ;;  %v11140_v10 = vsel %vm754_vm1, %v1572_v39, %v10702_v48  ;;  %v4311_v29 = vsub.f32 1.5, %v4310_v54  ;;  %vm3801_vm6 = vweird.f32 %v11034_v59  ;;  %v13842_v54 = vld [vmem:[#allocation64_spill] sm:$0xff]  ;;  %vm11180_vm7 = vmor %vm4313_vm11, %vm4314_vm3 }
 0x2ab   : > { %v4428_v17 = vmul.f32 %v11124_v4, %v11044_v5  ;;  %7777 = vrsqrt.f32 %v11101_v2  ;;  %v4356_v48 = vsel %vm11146_vm5, %v11009_v40, %v4352_v44  ;;  %vm4463_vm8 = vweird.f32 %v10971_v1  ;;  %v11168_v40 = vpop.xlane.xlu1 %3615  ;;  %v13854_v1 = vld [vmem:[#allocation69_spill] sm:$0xff] }
 0x2ac   : > { %v3798_v12 = vmul.f32 0.5, %v3797_v41  ;;  %v4369_v61 = vmul.f32 %v11115_v38, %v4368_v15  ;;  %v3774_v45 = vsel %vm11130_vm4, %v10532_v46, %v10739_v13  ;;  %v4568_v9 = vmul.f32 %v4446_v50, %v13842_v54  ;;  %v13844_v50 = vld [vmem:[#allocation67_spill] sm:$0xff] }
 0x2ad   : > { %v4429_v0 = vmul.f32 %v11124_v4, %v4428_v17  ;;  %v3578_v39 = vmul.f32 %v11140_v10, %v11140_v10  ;;  %v4040_v63 = vmul.f32 %v3774_v45, %v13843_v52  ;;  %v4461_v44 = vsub.f32 1.5, %v4460_v36  ;;  %v11193_v45 = vpop.xlane.xlu0 %3621 }
 0x2ae   : > { %v3799_v33 = vsub.f32 1.5, %v3798_v12  ;;  %vm3802_vm9 = vweird.f32 %v11096_v56  ;;  %v4370_v41 = vmul.f32 0.5, %v4369_v61  ;;  %v4312_v13 = vmul.f32 %v10988_v60, %v4311_v29  ;;  %v11191_v29 = vld [vmem:[%s13493_s6] ss:$0 sm:$0xff] }
 0x2af   : > { %v11171_v15 = vpop.eup %7775  ;;  %v4430_v19 = vmul.f32 0.5, %v4429_v0  ;;  %v4609_v46 = vmul.f32 %v10556_v26, %v4040_v63  ;;  %v4559_v21 = vmul.f32 %v4356_v48, %v13844_v50  ;;  %vm4374_vm10 = vweird.f32 %v11115_v38  ;;  %v652_v48 = vpop.f32.mrf.mxu2  ;;  %vm11214_vm14 = vmor %vm3801_vm6, %vm3802_vm9 }
 0x2b0   : > { %v3800_v36 = vmul.f32 %v11096_v56, %v3799_v33  ;;  %v4371_v12 = vsub.f32 1.5, %v4370_v41  ;;  %v3846_v61 = vmul.f32 %v11171_v15, %v11087_v14  ;;  %vm3792_vm12 = vweird.f32 %v10893_v7 }
 0x2b1   : > { %v11195_v49 = vpop.eup %7777  ;;  %v4431_v54 = vsub.f32 1.5, %v4430_v19  ;;  %v3659_v0 = vsel %vm3586_vm2, %v3578_v39, 0.0  ;;  %7424 = vmatmul.msk.f32.gmra.mxu3 %vm3586_vm2, %v4609_v46  ;;  %v4316_v52 = vsel %vm11180_vm7, %v10988_v60, %v4312_v13  ;;  %7438 = vmatpush.xpose.msk.msra.mxu2 %vm3586_vm2, %v4559_v21  ;;  %v11205_v63 = vadd.f32 1e-24, %v11073_v30  ;;  %v11242_v46 = vpop.permute.xlu2 %4601 }
 0x2b2   : > { %vm3862_vm11 = vweird.f32 %v10673_v18  ;;  %v4462_v33 = vmul.f32 %v11046_v62, %v4461_v44  ;;  %vm4464_vm13 = vweird.f32 %v11046_v62  ;;  %v4372_v60 = vmul.f32 %v11115_v38, %v4371_v12  ;;  %3660 = vadd.xlane.f32.xlu2 %v3659_v0 }
 0x2b3   : > { %v3847_v41 = vmul.f32 %v11171_v15, %v3846_v61  ;;  %vm3791_vm15 = vweird.f32 %v10809_v31  ;;  %v3804_v30 = vsel %vm11214_vm14, %v11096_v56, %v3800_v36  ;;  %vm4373_vm3 = vweird.f32 %v11036_v37  ;;  %v13851_v37 = vld [vmem:[#allocation66_spill] sm:$0xff]  ;;  %vm11248_vm7 = vmor %vm4463_vm8, %vm4464_vm13  ;;  %v3652_v17 = vpop.xlane.xlu1 %3651 }
 0x2b4   : > { %vm4433_vm4 = vweird.f32 %v11044_v5  ;;  %v3916_v59 = vmul.f32 %v11195_v49, %v11101_v2  ;;  %vm3861_vm5 = vweird.f32 %v10606_v3  ;;  %vm11232_vm6 = vmor %vm4373_vm3, %vm4374_vm10  ;;  %vm4434_vm9 = vweird.f32 %v11124_v4 }
 0x2b5   : > { %7453 = vmatpush.xpose.msk.msrb.mxu2 %vm3586_vm2, %v4568_v9  ;;  %v3848_v9 = vmul.f32 0.5, %v3847_v41  ;;  %v11239_v56 = vadd.f32 %v11191_v29, %v11094_v8  ;;  %v4555_v19 = vmul.f32 %v4316_v52, %v13851_v37  ;;  %v4376_v50 = vsel %vm11232_vm6, %v11115_v38, %v4372_v60  ;;  %vm11281_vm8 = vmor %vm4433_vm4, %vm4434_vm9  ;;  %v4152_v41 = vpop.xlane.xlu0 %4151 }
 0x2b6   : > { %v4432_v21 = vmul.f32 %v11124_v4, %v4431_v54  ;;  %v3917_v8 = vmul.f32 %v11195_v49, %v3916_v59  ;;  %7779 = vrsqrt.f32 %v11205_v63  ;;  %v4466_v36 = vsel %vm11248_vm7, %v11046_v62, %v4462_v33  ;;  %vm11325_vm13 = vmor %vm3791_vm15, %vm3792_vm12 }
 0x2b7   : > { %v4043_v12 = vmul.f32 %v3804_v30, %v13854_v1  ;;  %v3849_v61 = vsub.f32 1.5, %v3848_v9  ;;  %7430 = vmatpush.xpose.msk.msrb.mxu0 %vm3586_vm2, %v4555_v19  ;;  %v4616_v0 = vmul.f32 %v10556_v26, %v11039_v16  ;;  %v11266_v38 = vadd.f32 %v11191_v29, %v652_v48  ;;  %v13861_v19 = vld [vmem:[#allocation26_spill] sm:$0xff]  ;;  %vm11337_vm14 = vmor %vm3861_vm5, %vm3862_vm11 }
 0x2b8   : > { %v11269_v54 = vadd.f32 1e-24, %v11113_v51  ;;  %v1626_v52 = vrot.slane %v10869_v20, 4  ;;  %v4610_v39 = vmul.f32 %v11242_v46, %v11057_v27  ;;  %v3790_v62 = vmul.f32 %v10893_v7, %v3789_v23  ;;  %v13857_v51 = vld [vmem:[#allocation68_spill] sm:$0xff]  ;;  %v11290_v27 = vpop.f32.mrf.mxu2  ;;  %v13858_v23 = vld [vmem:[#allocation65_spill] sm:$0xff] }
 0x2b9   : > { %v3918_v48 = vmul.f32 0.5, %v3917_v8  ;;  %7439 = vmatmul.msk.f32.vlgmr.msra.gmra.mxu2 %vm3586_vm2, %v4616_v0  ;;  %v4561_v20 = vmul.f32 %v4376_v50, %v13857_v51  ;;  %v11288_v33 = vadd.f32 1e-24, %v11168_v40  ;;  %v3867_v57 = vmul.f32 %v10956_v6, %v11078_v35  ;;  %v13870_v50 = vld [vmem:[#allocation57_spill] sm:$0xff] }
 0x2ba   : > { %v4570_v60 = vmul.f32 %v4466_v36, %v13858_v23  ;;  %v4436_v5 = vsel %vm11281_vm8, %v11124_v4, %v4432_v21  ;;  %7781 = vrsqrt.f32 %v11269_v54  ;;  %7427 = vmatmul.msk.f32.vlgmr.msra.gmra.mxu3 %vm3586_vm2, %v4610_v39  ;;  %v11301_v30 = vadd.f32 1e-24, %v10986_v11 }
 0x2bb   : > { %v11305_v40 = vsel %vm754_vm1, %v1626_v52, %v10845_v53  ;;  %7442 = vmatpush.xpose.msk.msrb.mxu3 %vm3586_vm2, %v4561_v20  ;;  %7783 = vrsqrt.f32 %v11288_v33  ;;  %v4612_v35 = vmul.f32 %v13786_v43, %v4043_v12  ;;  %v3850_v4 = vmul.f32 %v11171_v15, %v3849_v61  ;;  %v3658_v8 = vpop.xlane.xlu1 %3657  ;;  %v13867_v20 = vld [vmem:[#allocation71_spill] sm:$0xff] }
 0x2bc   : > { %v11310_v59 = vpop.eup %7779  ;;  %vm3852_vm10 = vweird.f32 %v11171_v15  ;;  %v3579_v11 = vmul.f32 %v11305_v40, %v11305_v40  ;;  %v11319_v53 = vpack.i.bf16 %v11239_v56, %v11266_v38  ;;  %v3919_v9 = vsub.f32 1.5, %v3918_v48 }
 0x2bd   : > { %v4448_v37 = vmul.f32 %v11310_v59, %v11205_v63  ;;  %7431 = vmatmul.msk.f32.vlgmr.msrb.gmra.mxu0 %vm3586_vm2, %v4612_v35  ;;  %v4567_v13 = vmul.f32 %v4436_v5, %v13861_v19  ;;  %vm3851_vm12 = vweird.f32 %v11087_v14  ;;  %v3794_v21 = vsel %vm11325_vm13, %v10893_v7, %v3790_v62 }
 0x2be   : > { %v3662_v31 = vsel %vm3586_vm2, %v3579_v11, 0.0  ;;  %7652 = vrot.lane.b32.xlu1 %v11319_v53, %s8259_s1  ;;  %v3864_v3 = vsel %vm11337_vm14, %v10673_v18, %v11054_v24  ;;  %v3868_v36 = vmul.f32 0.5, %v3867_v57  ;;  %vm11354_vm11 = vmor %vm3851_vm12, %vm3852_vm10  ;;  %7662 = vrot.lane.b32.xlu0 %v11319_v53, %s8257_s12  ;;  %v11361_v7 = vadd.f32 1e-24, %v3652_v17  ;;  %v13866_v18 = vld [vmem:[#allocation59_spill] sm:$0xff] }
 0x2bf   : > { %7457 = vmatpush.xpose.msk.msra.mxu3 %vm3586_vm2, %v4570_v60  ;;  %v4449_v1 = vmul.f32 %v11310_v59, %v4448_v37  ;;  %3663 = vadd.xlane.f32.xlu2 %v3662_v31  ;;  %7785 = vrsqrt.f32 %v11301_v30  ;;  %v4042_v24 = vmul.f32 %v3794_v21, %v13866_v18  ;;  %v3854_v61 = vsel %vm11354_vm11, %v11171_v15, %v3850_v4 }
 0x2c0   : > { %v11363_v12 = vpop.eup %7781  ;;  %7454 = vmatpush.xpose.msk.msrb.mxu2 %vm3586_vm2, %v4567_v13  ;;  %v11371_v0 = vadd.f32 1e-24, %v4152_v41  ;;  %v3920_v39 = vmul.f32 %v11195_v49, %v3919_v9  ;;  %vm3922_vm15 = vweird.f32 %v11195_v49  ;;  %vm3921_vm3 = vweird.f32 %v11101_v2  ;;  %v11387_v23 = vpop.f32.mrf.mxu2 }
 0x2c1   : > { %v11373_v52 = vpop.eup %7783  ;;  %v4450_v17 = vmul.f32 0.5, %v4449_v1  ;;  %v3936_v62 = vmul.f32 %v11363_v12, %v11269_v54  ;;  %v4611_v48 = vmul.f32 %v11242_v46, %v4042_v24  ;;  %7787 = vrsqrt.f32 %v11361_v7  ;;  %vm11389_vm5 = vmor %vm3921_vm3, %vm3922_vm15  ;;  %v4188_v41 = vpop.xlane.xlu0 %4187  ;;  %v13872_v1 = vld [vmem:[#allocation27_spill] sm:$0xff] }
 0x2c2   : > { %v3806_v16 = vmul.f32 %v11373_v52, %v11288_v33  ;;  %vm4454_vm4 = vweird.f32 %v11310_v59  ;;  %v4048_v57 = vmul.f32 %v3854_v61, %v13867_v20  ;;  %v3869_v60 = vsub.f32 1.5, %v3868_v36 }
 0x2c3   : > { %v4451_v15 = vsub.f32 1.5, %v4450_v17  ;;  %v3937_v51 = vmul.f32 %v11363_v12, %v3936_v62  ;;  %vm4453_vm6 = vweird.f32 %v11205_v63  ;;  %7428 = vmatmul.msk.f32.gmra.mxu3 %vm3586_vm2, %v4611_v48  ;;  %7789 = vrsqrt.f32 %v11371_v0  ;;  %v4149_v13 = vpop.xlane.xlu1 %4148 }
 0x2c4   : > { %v3807_v2 = vmul.f32 %v11373_v52, %v3806_v16  ;;  %v3924_v35 = vsel %vm11389_vm5, %v11195_v49, %v3920_v39  ;;  %v4617_v11 = vmul.f32 %v10556_v26, %v4048_v57  ;;  %v11402_v44 = vadd.f32 1e-24, %v3658_v8  ;;  %vm4455_vm9 = vmor %vm4453_vm6, %vm4454_vm4  ;;  %v13871_v8 = vld [vmem:[#allocation31_spill] sm:$0xff] }
 0x2c5   : > { %v4452_v4 = vmul.f32 %v11310_v59, %v4451_v15  ;;  %v11404_v9 = vpop.eup %7785  ;;  %v3938_v63 = vmul.f32 0.5, %v3937_v51  ;;  %v11408_v19 = vadd.f32 1e-24, %v4188_v41  ;;  %v4049_v31 = vmul.f32 %v3864_v3, %v13870_v50 }
 0x2c6   : > { %v3808_v37 = vmul.f32 0.5, %v3807_v2  ;;  %vm3872_vm7 = vweird.f32 %v10956_v6  ;;  %7440 = vmatmul.msk.f32.gmra.mxu2 %vm3586_vm2, %v4617_v11  ;;  %v4055_v36 = vmul.f32 %v3924_v35, %v13871_v8  ;;  %7791 = vrsqrt.f32 %v11402_v44 }
 0x2c7   : > { %v4456_v49 = vsel %vm4455_vm9, %v11310_v59, %v4452_v4  ;;  %v11414_v21 = vpop.eup %7787  ;;  %v3870_v24 = vmul.f32 %v10956_v6, %v3869_v60  ;;  %vm3871_vm8 = vweird.f32 %v10853_v32  ;;  %vm3812_vm10 = vweird.f32 %v11373_v52 }
 0x2c8   : > { %v3809_v14 = vsub.f32 1.5, %v3808_v37  ;;  %v4569_v18 = vmul.f32 %v4456_v49, %v13872_v1  ;;  %v3926_v59 = vmul.f32 %v11414_v21, %v11361_v7  ;;  %v3939_v61 = vsub.f32 1.5, %v3938_v63  ;;  %vm11432_vm13 = vmor %vm3871_vm8, %vm3872_vm7  ;;  %v11442_v15 = vpop.f32.mrf.mxu2 }
 0x2c9   : > { %v11424_v3 = vpop.eup %7789  ;;  %v4618_v17 = vmul.f32 %v11242_v46, %v4049_v31  ;;  %7793 = vrsqrt.f32 %v11408_v19  ;;  %v3816_v62 = vmul.f32 %v11404_v9, %v11301_v30  ;;  %vm3811_vm14 = vweird.f32 %v11288_v33  ;;  %v3637_v57 = vpop.xlane.xlu0 %3636  ;;  %v13878_v31 = vld [vmem:[#allocation23_spill] sm:$0xff] }
 0x2ca   : > { %v3810_v39 = vmul.f32 %v11373_v52, %v3809_v14  ;;  %7458 = vmatpush.xpose.msk.msra.mxu3 %vm3586_vm2, %v4569_v18  ;;  %v3927_v16 = vmul.f32 %v11414_v21, %v3926_v59  ;;  %v4398_v48 = vmul.f32 %v11424_v3, %v11371_v0  ;;  %v4624_v51 = vmul.f32 %v10556_v26, %v4055_v36  ;;  %vm11449_vm15 = vmor %vm3811_vm14, %vm3812_vm10 }
 0x2cb   : > { %vm3941_vm12 = vweird.f32 %v11269_v54  ;;  %vm3942_vm11 = vweird.f32 %v11363_v12  ;;  %7443 = vmatmul.msk.f32.vlgmr.msrb.gmra.mxu3 %vm3586_vm2, %v4618_v17  ;;  %v11454_v33 = vadd.f32 1e-24, %v4149_v13  ;;  %v3874_v2 = vsel %vm11432_vm13, %v10956_v6, %v3870_v24  ;;  %v11469_v11 = vpop.xlane.xlu1 %4154  ;;  %v13877_v13 = vld [vmem:[#allocation63_spill] sm:$0xff] }
 0x2cc   : > { %v3928_v60 = vmul.f32 0.5, %v3927_v16  ;;  %v4399_v5 = vmul.f32 %v11424_v3, %v4398_v48  ;;  %v3814_v41 = vsel %vm11449_vm15, %v11373_v52, %v3810_v39  ;;  %v11463_v35 = vpop.eup %7791  ;;  %v3940_v4 = vmul.f32 %v11363_v12, %v3939_v61  ;;  %vm11487_vm9 = vmor %vm3941_vm12, %vm3942_vm11 }
 0x2cd   : > { %vm3931_vm3 = vweird.f32 %v11361_v7  ;;  %vm4403_vm4 = vweird.f32 %v11371_v0  ;;  %7795 = vrsqrt.f32 %v11454_v33  ;;  %vm3932_vm5 = vweird.f32 %v11414_v21  ;;  %v13883_v0 = vld [vmem:[#allocation72_spill] sm:$0xff] }
 0x2ce   : > { %v3929_v63 = vsub.f32 1.5, %v3928_v60  ;;  %v4400_v6 = vmul.f32 0.5, %v4399_v5  ;;  %v3946_v37 = vmul.f32 %v11463_v35, %v11402_v44  ;;  %7455 = vmatmul.msk.f32.vlgmr.msrb.gmra.mxu2 %vm3586_vm2, %v4624_v51  ;;  %vm4404_vm6 = vweird.f32 %v11424_v3  ;;  %vm11501_vm7 = vmor %vm3931_vm3, %vm3932_vm5 }
 0x2cf   : > { %v7794_v52 = vpop.eup %7793  ;;  %v4050_v50 = vmul.f32 %v3874_v2, %v13877_v13  ;;  %v4044_v49 = vmul.f32 %v3814_v41, %v13878_v31  ;;  %v11478_v8 = vadd.f32 1e-24, %v3637_v57  ;;  %v3944_v39 = vsel %vm11487_vm9, %v11363_v12, %v3940_v4  ;;  %vm4405_vm8 = vmor %vm4403_vm4, %vm4404_vm6  ;;  %v13884_v41 = vld [vmem:[#allocation75_spill] sm:$0xff]  ;;  %v13885_v13 = vld [vmem:[#allocation48_spill] sm:$0xff] }
 0x2d0   : > { %v3930_v36 = vmul.f32 %v11414_v21, %v3929_v63  ;;  %v4401_v14 = vsub.f32 1.5, %v4400_v6  ;;  %v3947_v1 = vmul.f32 %v11463_v35, %v3946_v37  ;;  %v4518_v18 = vmul.f32 %v7794_v52, %v11408_v19  ;;  %v664_v5 = vpop.f32.mrf.mxu2 }
 0x2d1   : > { %v4619_v59 = vmul.f32 %v11242_v46, %v4050_v50  ;;  %v4613_v61 = vmul.f32 %v13786_v43, %v4044_v49  ;;  %7797 = vrsqrt.f32 %v11478_v8  ;;  %v3817_v51 = vmul.f32 %v11404_v9, %v3816_v62  ;;  %v11521_v12 = vpop.xlane.xlu0 %3642 }
 0x2d2   : > { %v4402_v17 = vmul.f32 %v11424_v3, %v4401_v14  ;;  %v3948_v32 = vmul.f32 0.5, %v3947_v1  ;;  %v4519_v16 = vmul.f32 %v7794_v52, %v4518_v18  ;;  %v11510_v20 = vadd.f32 1e-24, %v11193_v45 }
 0x2d3   : > { %v11506_v48 = vpop.eup %7795  ;;  %7444 = vmatmul.msk.f32.gmra.mxu3 %vm3586_vm2, %v4619_v59  ;;  %7432 = vmatmul.msk.f32.gmra.mxu0 %vm3586_vm2, %v4613_v61  ;;  %v3934_v7 = vsel %vm11501_vm7, %v11414_v21, %v3930_v36  ;;  %v4057_v2 = vmul.f32 %v3944_v39, %v13883_v0  ;;  %v11530_v63 = vadd.f32 %v11191_v29, %v11290_v27  ;;  %v11536_v6 = vpop.xlane.xlu1 %3672  ;;  %vm4524_vm10 = vweird.f32 %v7794_v52  ;;  %v13888_v61 = vld [vmem:[#allocation34_spill] sm:$0xff]  ;;  %v13890_v0 = vld [vmem:[#allocation35_spill] sm:$0xff] }
 0x2d4   : > { %v4406_v62 = vsel %vm4405_vm8, %v11424_v3, %v4402_v17  ;;  %v3949_v57 = vsub.f32 1.5, %v3948_v32  ;;  %v4520_v45 = vmul.f32 0.5, %v4519_v16  ;;  %v4388_v60 = vmul.f32 %v11506_v48, %v11454_v33 }
 0x2d5   : > { %v4564_v4 = vmul.f32 %v4406_v62, %v13884_v41  ;;  %v11534_v21 = vadd.f32 %v11191_v29, %v11387_v23  ;;  %v4056_v50 = vmul.f32 %v3934_v7, %v13885_v13  ;;  %vm3952_vm13 = vweird.f32 %v11463_v35 }
 0x2d6   : > { %v4521_v3 = vsub.f32 1.5, %v4520_v45  ;;  %v4389_v37 = vmul.f32 %v11506_v48, %v4388_v60  ;;  %v3950_v49 = vmul.f32 %v11463_v35, %v3949_v57  ;;  %v11547_v27 = vadd.f32 %v11191_v29, %v11442_v15 }
 0x2d7   : > { %7657 = vrot.lane.b32.xlu2 %v11319_v53, %s8258_s14  ;;  %v7798_v31 = vpop.eup %7797  ;;  %7445 = vmatpush.xpose.msk.msra.mxu0 %vm3586_vm2, %v4564_v4  ;;  %v11550_v23 = vadd.f32 %v11191_v29, %v664_v5  ;;  %vm4523_vm14 = vweird.f32 %v11408_v19  ;;  %v4626_v1 = vmul.f32 %v11242_v46, %v4057_v2  ;;  %vm3951_vm12 = vweird.f32 %v11402_v44 }
 0x2d8   : > { %v4522_v36 = vmul.f32 %v7794_v52, %v4521_v3  ;;  %v4390_v53 = vmul.f32 0.5, %v4389_v37  ;;  %v3876_v14 = vmul.f32 %v7798_v31, %v11478_v8  ;;  %vm4525_vm11 = vmor %vm4523_vm14, %vm4524_vm10  ;;  %v11559_v18 = vpack.i.bf16 %v11530_v63, %v11534_v21  ;;  %v13891_v37 = vld [vmem:[#allocation49_spill] sm:$0xff] }
 0x2d9   : > { %v4625_v15 = vmul.f32 %v10556_v26, %v4056_v50  ;;  %vm11562_vm15 = vmor %vm3951_vm12, %vm3952_vm13  ;;  %vm4394_vm3 = vweird.f32 %v11506_v48  ;;  %v11570_v44 = vadd.f32 1e-24, %v11469_v11  ;;  %v11576_v17 = vpop.xlane.xlu0 %3678  ;;  %v11580_v32 = vpack.i.bf16 %v11547_v27, %v11550_v23 }
 0x2da   : > { %v4526_v19 = vsel %vm4525_vm11, %v7794_v52, %v4522_v36  ;;  %v4391_v24 = vsub.f32 1.5, %v4390_v53  ;;  %v3877_v59 = vmul.f32 %v7798_v31, %v3876_v14  ;;  %v3954_v54 = vsel %vm11562_vm15, %v11463_v35, %v3950_v49  ;;  %v4131_v52 = vpop.xlane.xlu2 %4130  ;;  %v13889_v35 = vld [vmem:[#allocation74_spill] sm:$0xff] }
 0x2db   : > { %v4576_v39 = vmul.f32 %v4526_v19, %v13888_v61  ;;  %7459 = vmatmul.msk.f32.vlgmr.msra.gmra.mxu3 %vm3586_vm2, %v4626_v1  ;;  %7456 = vmatmul.msk.f32.gmra.mxu2 %vm3586_vm2, %v4625_v15  ;;  %vm4393_vm4 = vweird.f32 %v11454_v33  ;;  %v3818_v11 = vmul.f32 0.5, %v3817_v51  ;;  %7799 = vrsqrt.f32 %v11510_v20  ;;  %v3640_v57 = vpop.xlane.xlu1 %3639 }
 0x2dc   : > { %v4392_v16 = vmul.f32 %v11506_v48, %v4391_v24  ;;  %v3878_v7 = vmul.f32 0.5, %v3877_v59  ;;  %vm4395_vm5 = vmor %vm4393_vm4, %vm4394_vm3  ;;  %vm3882_vm6 = vweird.f32 %v7798_v31  ;;  %v4058_v62 = vmul.f32 %v3954_v54, %v13889_v35  ;;  %7682 = vrot.lane.b32.xlu1 %v11580_v32, %s8259_s1  ;;  %7692 = vrot.lane.b32.xlu0 %v11580_v32, %s8257_s12 }
 0x2dd   : > { %7469 = vmatpush.xpose.msk.msra.mxu2 %vm3586_vm2, %v4576_v39  ;;  %v11594_v33 = vadd.f32 1e-24, %v3640_v57  ;;  %v11596_v51 = vadd.f32 1e-24, %v4131_v52  ;;  %7801 = vrsqrt.f32 %v11570_v44  ;;  %vm3881_vm9 = vweird.f32 %v11478_v8 }
 0x2de   : > { %v4396_v45 = vsel %vm4395_vm5, %v11506_v48, %v4392_v16  ;;  %v3879_v60 = vsub.f32 1.5, %v3878_v7  ;;  %v4627_v5 = vmul.f32 %v11242_v46, %v4058_v62  ;;  %vm3883_vm7 = vmor %vm3881_vm9, %vm3882_vm6  ;;  %v3819_v48 = vsub.f32 1.5, %v3818_v11 }
 0x2df   : > { %7667 = vrot.lane.b32.xlu2 %v11559_v18, %s8259_s1  ;;  %v4563_v2 = vmul.f32 %v4396_v45, %v13890_v0  ;;  %7803 = vrsqrt.f32 %v11594_v33  ;;  %v11610_v50 = vadd.f32 1e-24, %v11521_v12  ;;  %vm3822_vm8 = vweird.f32 %v11404_v9  ;;  %v13892_v45 = vld [vmem:[#allocation70_spill] sm:$0xff] }
 0x2e0   : > { %v3880_v41 = vmul.f32 %v7798_v31, %v3879_v60  ;;  %7805 = vrsqrt.f32 %v11596_v51  ;;  %vm3821_vm10 = vweird.f32 %v11301_v30  ;;  %vm4333_vm12 = vweird.f32 %v11596_v51 }
 0x2e1   : > { %7446 = vmatpush.xpose.msk.msra.mxu0 %vm3586_vm2, %v4563_v2  ;;  %v11606_v3 = vpop.eup %7799  ;;  %v11613_v8 = vpop.xlane.xlu0 %3675  ;;  %7807 = vrsqrt.f32 %v11610_v50  ;;  %vm3823_vm13 = vmor %vm3821_vm10, %vm3822_vm8  ;;  %vm3891_vm3 = vweird.f32 %v11594_v33 }
 0x2e2   : > { %v3884_v4 = vsel %vm3883_vm7, %v7798_v31, %v3880_v41  ;;  %v4158_v49 = vpop.xlane.xlu2 %4157  ;;  %v3820_v31 = vmul.f32 %v11404_v9, %v3819_v48  ;;  %v3826_v12 = vmul.f32 %v11606_v3, %v11510_v20 }
 0x2e3   : > { %v4051_v13 = vmul.f32 %v3884_v4, %v13891_v37  ;;  %7460 = vmatmul.msk.f32.gmra.mxu3 %vm3586_vm2, %v4627_v5  ;;  %v11615_v36 = vpop.eup %7801  ;;  %v4176_v14 = vpop.xlane.xlu1 %4175  ;;  %v11630_v29 = vadd.f32 1e-24, %v4158_v49  ;;  %v11650_v5 = vadd.f32 1e-24, %v11536_v6 }
 0x2e4   : > { %v11628_v15 = vadd.f32 1e-24, %v4176_v14  ;;  %v4408_v24 = vmul.f32 %v11615_v36, %v11570_v44  ;;  %v3824_v54 = vsel %vm3823_vm13, %v11404_v9, %v3820_v31  ;;  %v3827_v52 = vmul.f32 %v11606_v3, %v3826_v12 }
 0x2e5   : > { %v4620_v53 = vmul.f32 %v13786_v43, %v4051_v13  ;;  %v11622_v1 = vpop.eup %7803  ;;  %v4045_v60 = vmul.f32 %v3824_v54, %v13892_v45  ;;  %vm4414_vm4 = vweird.f32 %v11615_v36  ;;  %vm4423_vm10 = vweird.f32 %v11630_v29 }
 0x2e6   : > { %v7806_v19 = vpop.eup %7805  ;;  %v3886_v59 = vmul.f32 %v11622_v1, %v11594_v33  ;;  %7809 = vrsqrt.f32 %v11628_v15  ;;  %v4409_v11 = vmul.f32 %v11615_v36, %v4408_v24  ;;  %v11656_v2 = vmul.f32 0.5, %v3827_v52 }
 0x2e7   : > { %7672 = vrot.lane.b32.xlu2 %v11559_v18, %s8258_s14  ;;  %7447 = vmatmul.msk.f32.vlgmr.msra.gmra.mxu0 %vm3586_vm2, %v4620_v53  ;;  %v4328_v61 = vmul.f32 %v7806_v19, %v11596_v51  ;;  %7811 = vrsqrt.f32 %v11630_v29  ;;  %v11644_v62 = vpop.eup %7807  ;;  %vm4334_vm14 = vweird.f32 %v7806_v19  ;;  %vm3892_vm11 = vweird.f32 %v11622_v1 }
 0x2e8   : > { %v3887_v39 = vmul.f32 %v11622_v1, %v3886_v59  ;;  %v4410_v48 = vmul.f32 0.5, %v4409_v11  ;;  %v3896_v4 = vmul.f32 %v11644_v62, %v11610_v50  ;;  %v4614_v14 = vmul.f32 %v13808_v22, %v4045_v60  ;;  %vm11672_vm15 = vmor %vm4333_vm12, %vm4334_vm14  ;;  %v13897_v11 = vld [vmem:[#allocation78_spill] sm:$0xff] }
 0x2e9   : > { %v4329_v16 = vmul.f32 %v7806_v19, %v4328_v61  ;;  %v4182_v7 = vpop.xlane.xlu0 %4181  ;;  %v3829_v24 = vsub.f32 1.5, %v11656_v2  ;;  %v11686_v61 = vadd.f32 1e-24, %v11576_v17  ;;  %vm11688_vm5 = vmor %vm3891_vm3, %vm3892_vm11  ;;  %vm4483_vm9 = vweird.f32 %v11628_v15 }
 0x2ea   : > { %v3888_v35 = vmul.f32 0.5, %v3887_v39  ;;  %v11646_v57 = vadd.f32 1e-24, %v4182_v7  ;;  %v4411_v33 = vsub.f32 1.5, %v4410_v48  ;;  %v3897_v7 = vmul.f32 %v11644_v62, %v3896_v4  ;;  %v13898_v48 = vld [vmem:[#allocation79_spill] sm:$0xff] }
 0x2eb   : > { %v4330_v30 = vmul.f32 0.5, %v4329_v16  ;;  %vm4413_vm12 = vweird.f32 %v11570_v44  ;;  %vm3832_vm3 = vweird.f32 %v11606_v3 }
 0x2ec   : > { %v3889_v9 = vsub.f32 1.5, %v3888_v35  ;;  %v11654_v0 = vpop.eup %7809  ;;  %7813 = vrsqrt.f32 %v11646_v57  ;;  %v4194_v37 = vpop.xlane.xlu2 %4193  ;;  %vm11747_vm11 = vmor %vm4413_vm12, %vm4414_vm4 }
 0x2ed   : > { %v4331_v41 = vsub.f32 1.5, %v4330_v30  ;;  %v4478_v6 = vmul.f32 %v11654_v0, %v11628_v15  ;;  %v11668_v53 = vadd.f32 1e-24, %v4194_v37  ;;  %7815 = vrsqrt.f32 %v11650_v5 }
 0x2ee   : > { %v3890_v13 = vmul.f32 %v11622_v1, %v3889_v9  ;;  %vm4484_vm6 = vweird.f32 %v11654_v0  ;;  %v11718_v15 = vadd.f32 1e-24, %v11613_v8  ;;  %v4412_v8 = vmul.f32 %v11615_v36, %v4411_v33  ;;  %v13900_v33 = vld [vmem:[#allocation81_spill] sm:$0xff] }
 0x2ef   : > { %7677 = vrot.lane.b32.xlu2 %v11559_v18, %s8257_s12  ;;  %v11664_v18 = vpop.eup %7811  ;;  %v4332_v49 = vmul.f32 %v7806_v19, %v4331_v41  ;;  %v4479_v51 = vmul.f32 %v11654_v0, %v4478_v6  ;;  %7817 = vrsqrt.f32 %v11668_v53  ;;  %vm4485_vm8 = vmor %vm4483_vm9, %vm4484_vm6  ;;  %vm3831_vm6 = vweird.f32 %v11510_v20 }
 0x2f0   : > { %v4418_v12 = vmul.f32 %v11664_v18, %v11630_v29  ;;  %v3894_v17 = vsel %vm11688_vm5, %v11622_v1, %v3890_v13  ;;  %vm4424_vm7 = vweird.f32 %v11664_v18  ;;  %vm3902_vm9 = vweird.f32 %v11644_v62 }
 0x2f1   : > { %v4336_v59 = vsel %vm11672_vm15, %v7806_v19, %v4332_v49  ;;  %v4480_v54 = vmul.f32 0.5, %v4479_v51  ;;  %v4173_v19 = vpop.xlane.xlu1 %4172  ;;  %v4052_v4 = vmul.f32 %v3894_v17, %v13898_v48  ;;  %vm4425_vm13 = vmor %vm4423_vm10, %vm4424_vm7  ;;  %vm4503_vm15 = vweird.f32 %v11646_v57 }
 0x2f2   : > { %v4419_v52 = vmul.f32 %v11664_v18, %v4418_v12  ;;  %v11693_v16 = vpop.eup %7813  ;;  %v4557_v35 = vmul.f32 %v4336_v59, %v13897_v11  ;;  %v11704_v2 = vadd.f32 1e-24, %v4173_v19  ;;  %vm4543_vm7 = vweird.f32 %v11668_v53 }
 0x2f3   : > { %v4481_v30 = vsub.f32 1.5, %v4480_v54  ;;  %v4498_v60 = vmul.f32 %v11693_v16, %v11646_v57  ;;  %v4179_v9 = vpop.xlane.xlu0 %4178  ;;  %v11710_v6 = vpop.eup %7815  ;;  %v4621_v31 = vmul.f32 %v13786_v43, %v4052_v4  ;;  %v3898_v54 = vmul.f32 0.5, %v3897_v7 }
 0x2f4   : > { %v4420_v45 = vmul.f32 0.5, %v4419_v52  ;;  %v11706_v41 = vadd.f32 1e-24, %v4179_v9  ;;  %7434 = vmatpush.xpose.msk.msra.mxu1 %vm3586_vm2, %v4557_v35  ;;  %7819 = vrsqrt.f32 %v11704_v2  ;;  %v13899_v52 = vld [vmem:[#allocation82_spill] sm:$0xff]  ;;  %vm4504_vm14 = vweird.f32 %v11693_v16 }
 0x2f5   : > { %v4482_v1 = vmul.f32 %v11654_v0, %v4481_v30  ;;  %v4499_v13 = vmul.f32 %v11693_v16, %v4498_v60  ;;  %v11715_v49 = vpop.eup %7817  ;;  %7448 = vmatmul.msk.f32.gmra.mxu0 %vm3586_vm2, %v4621_v31  ;;  %v3830_v30 = vmul.f32 %v11606_v3, %v3829_v24  ;;  %v3899_v60 = vsub.f32 1.5, %v3898_v54  ;;  %vm4505_vm4 = vmor %vm4503_vm15, %vm4504_vm14 }
 0x2f6   : > { %v4421_v37 = vsub.f32 1.5, %v4420_v45  ;;  %v4538_v39 = vmul.f32 %v11715_v49, %v11668_v53  ;;  %7821 = vrsqrt.f32 %v11706_v41  ;;  %v4416_v45 = vsel %vm11747_vm11, %v11615_v36, %v4412_v8 }
 0x2f7   : > { %v4486_v51 = vsel %vm4485_vm8, %v11654_v0, %v4482_v1  ;;  %v4500_v59 = vmul.f32 0.5, %v4499_v13  ;;  %7435 = vmatmul.msk.f32.vlgmr.msra.gmra.mxu1 %vm3586_vm2, %v4614_v14  ;;  %v3996_v14 = vmul.f32 %v11710_v6, %v11650_v5  ;;  %7823 = vrsqrt.f32 %v11686_v61  ;;  %vm11774_vm8 = vmor %vm3831_vm6, %vm3832_vm3 }
 0x2f8   : > { %v4422_v12 = vmul.f32 %v11664_v18, %v4421_v37  ;;  %v4572_v19 = vmul.f32 %v4486_v51, %v13899_v52  ;;  %v4539_v11 = vmul.f32 %v11715_v49, %v4538_v39  ;;  %7825 = vrsqrt.f32 %v11718_v15  ;;  %v13905_v51 = vld [vmem:[#allocation41_spill] sm:$0xff] }
 0x2f9   : > { %v4501_v0 = vsub.f32 1.5, %v4500_v59  ;;  %vm4544_vm5 = vweird.f32 %v11715_v49  ;;  %v3997_v36 = vmul.f32 %v11710_v6, %v3996_v14  ;;  %v3900_v31 = vmul.f32 %v11644_v62, %v3899_v60 }
 0x2fa   : > { %v4426_v29 = vsel %vm4425_vm13, %v11664_v18, %v4422_v12  ;;  %7461 = vmatpush.xpose.msk.msrb.mxu0 %vm3586_vm2, %v4572_v19  ;;  %v4540_v44 = vmul.f32 0.5, %v4539_v11  ;;  %v11754_v17 = vpop.eup %7819  ;;  %vm4545_vm10 = vmor %vm4543_vm7, %vm4544_vm5  ;;  %v3834_v53 = vsel %vm11774_vm8, %v11606_v3, %v3830_v30  ;;  %v4565_v12 = vmul.f32 %v4416_v45, %v13905_v51  ;;  %v13906_v19 = vld [vmem:[#allocation47_spill] sm:$0xff]  ;;  %v13909_v30 = vld [vmem:[#allocation44_spill] sm:$0xff] }
 0x2fb   : > { %v4566_v7 = vmul.f32 %v4426_v29, %v13900_v33  ;;  %v4502_v35 = vmul.f32 %v11693_v16, %v4501_v0  ;;  %v4468_v57 = vmul.f32 %v11754_v17, %v11704_v2  ;;  %v4046_v29 = vmul.f32 %v3834_v53, %v13906_v19 }
 0x2fc   : > { %v4541_v48 = vsub.f32 1.5, %v4540_v44  ;;  %v11768_v24 = vpop.eup %7821  ;;  %v11794_v52 = vpop.f32.mrf.mxu3  ;;  %vm3901_vm13 = vweird.f32 %v11610_v50  ;;  %v3998_v0 = vmul.f32 0.5, %v3997_v36  ;;  %vm4474_vm12 = vweird.f32 %v11754_v17 }
 0x2fd   : > { %7449 = vmatpush.xpose.msk.msrb.mxu1 %vm3586_vm2, %v4566_v7  ;;  %v4506_v9 = vsel %vm4505_vm4, %v11693_v16, %v4502_v35  ;;  %v4469_v1 = vmul.f32 %v11754_v17, %v4468_v57  ;;  %v4488_v13 = vmul.f32 %v11768_v24, %v11706_v41  ;;  %v11783_v20 = vpop.eup %7823  ;;  %vm11806_vm14 = vmor %vm3901_vm13, %vm3902_vm9  ;;  %v4615_v33 = vmul.f32 %v13808_v22, %v4046_v29 }
 0x2fe   : > { %v4574_v16 = vmul.f32 %v4506_v9, %v10577_v28  ;;  %v4542_v37 = vmul.f32 %v11715_v49, %v4541_v48  ;;  %v11790_v59 = vpop.eup %7825  ;;  %v4016_v7 = vmul.f32 %v11783_v20, %v11686_v61  ;;  %vm4473_vm11 = vweird.f32 %v11704_v2 }
 0x2ff   : > { %v4470_v28 = vmul.f32 0.5, %v4469_v1  ;;  %v4489_v8 = vmul.f32 %v11768_v24, %v4488_v13  ;;  %v4006_v18 = vmul.f32 %v11790_v59, %v11718_v15  ;;  %vm4494_vm15 = vweird.f32 %v11768_v24  ;;  %7436 = vmatmul.msk.f32.gmra.mxu1 %vm3586_vm2, %v4615_v33  ;;  %vm4475_vm3 = vmor %vm4473_vm11, %vm4474_vm12 }
 0x300   : > { %v4546_v39 = vsel %vm4545_vm10, %v11715_v49, %v4542_v37  ;;  %vm4493_vm4 = vweird.f32 %v11706_v41  ;;  %v3999_v57 = vsub.f32 1.5, %v3998_v0  ;;  %v4017_v48 = vmul.f32 %v11783_v20, %v4016_v7  ;;  %v11836_v37 = vld [vmem:[#allocation11 + $0x8] sm:$0xff] }
 0x301   : > { %v4578_v11 = vmul.f32 %v4546_v39, %v10650_v25  ;;  %7450 = vmatpush.xpose.msk.msrb.mxu1 %vm3586_vm2, %v4565_v12  ;;  %v4471_v14 = vsub.f32 1.5, %v4470_v28  ;;  %v4490_v50 = vmul.f32 0.5, %v4489_v8  ;;  %v3904_v25 = vsel %vm11806_vm14, %v11644_v62, %v3900_v31  ;;  %v3667_v62 = vpop.xlane.xlu1 %3666  ;;  %vm4495_vm5 = vmor %vm4493_vm4, %vm4494_vm15  ;;  %v11847_v28 = vld [vmem:[#allocation11] sm:$0xff] }
 0x302   : > { %v4185_v54 = vpop.xlane.xlu2 %4184  ;;  %v4053_v45 = vmul.f32 %v3904_v25, %v13909_v30  ;;  %v4007_v36 = vmul.f32 %v11790_v59, %v4006_v18  ;;  %vm4002_vm6 = vweird.f32 %v11710_v6  ;;  %v4000_v51 = vmul.f32 %v11710_v6, %v3999_v57 }
 0x303   : > { %v11799_v3 = vadd.f32 1e-24, %v4185_v54  ;;  %7473 = vmatpush.xpose.msk.msrb.mxu3 %vm3586_vm2, %v4578_v11  ;;  %v4472_v35 = vmul.f32 %v11754_v17, %v4471_v14  ;;  %v4491_v44 = vsub.f32 1.5, %v4490_v50  ;;  %v4018_v12 = vmul.f32 0.5, %v4017_v48 }
 0x304   : > { %v4622_v31 = vmul.f32 %v13808_v22, %v4053_v45  ;;  %vm5236_vm9 = vcmask 130048   ;;  %vm4001_vm7 = vweird.f32 %v11650_v5  ;;  %v11862_v0 = vadd.f32 %v11847_v28, %v11794_v52  ;;  %v11873_v5 = vld [vmem:[#allocation11 + $0x10] sm:$0xff] }
 0x305   : > { %7465 = vmatpush.xpose.msk.msra.mxu1 %vm3586_vm2, %v4574_v16  ;;  %7827 = vrsqrt.f32 %v11799_v3  ;;  %v4476_v60 = vsel %vm4475_vm3, %v11754_v17, %v4472_v35  ;;  %v4492_v9 = vmul.f32 %v11768_v24, %v4491_v44  ;;  %v11834_v16 = vadd.f32 1e-24, %v3667_v62  ;;  %vm11866_vm8 = vmor %vm4001_vm7, %vm4002_vm6  ;;  %v13912_v62 = vld [vmem:[#allocation76_spill] sm:$0xff] }
 0x306   : > { %v4571_v2 = vmul.f32 %v4476_v60, %v10683_v34  ;;  %v4019_v49 = vsub.f32 1.5, %v4018_v12  ;;  %v4004_v14 = vsel %vm11866_vm8, %v11710_v6, %v4000_v51  ;;  %vm4022_vm13 = vweird.f32 %v11783_v20 }
 0x307   : > { %v4496_v4 = vsel %vm4495_vm5, %v11768_v24, %v4492_v9  ;;  %7451 = vmatmul.msk.f32.vlgmr.msrb.gmra.mxu1 %vm3586_vm2, %v4622_v31  ;;  %vm4513_vm14 = vweird.f32 %v11799_v3  ;;  %v5237_v6 = vsel %vm5236_vm9, %v11862_v0, -inf  ;;  %v4063_v30 = vmul.f32 %v4004_v14, %v13912_v62 }
 0x308   : > { %7462 = vmatpush.xpose.msk.msrb.mxu0 %vm3586_vm2, %v4571_v2  ;;  %v4573_v41 = vmul.f32 %v4496_v4, %v10699_v58  ;;  %v4008_v58 = vmul.f32 0.5, %v4007_v36  ;;  %v4020_v45 = vmul.f32 %v11783_v20, %v4019_v49  ;;  %vm4012_vm11 = vweird.f32 %v11790_v59  ;;  %v13918_v49 = vld [vmem:[#allocation80_spill] sm:$0xff] }
 0x309   : > { %v3670_v53 = vpop.xlane.xlu0 %3669  ;;  %vm4021_vm15 = vweird.f32 %v11686_v61  ;;  %vm4011_vm4 = vweird.f32 %v11718_v15 }
 0x30a   : > { %7466 = vmatpush.xpose.msk.msra.mxu1 %vm3586_vm2, %v4573_v41  ;;  %v11855_v54 = vadd.f32 1e-24, %v3670_v53  ;;  %v4009_v50 = vsub.f32 1.5, %v4008_v58  ;;  %vm11903_vm3 = vmor %vm4021_vm15, %vm4022_vm13 }
 0x30b   : > { %v4191_v1 = vpop.xlane.xlu2 %4190  ;;  %v7828_v17 = vpop.eup %7827  ;;  %v4024_v61 = vsel %vm11903_vm3, %v11783_v20, %v4020_v45  ;;  %vm11915_vm5 = vmor %vm4011_vm4, %vm4012_vm11  ;;  %vm3981_vm11 = vweird.f32 %v11834_v16 }
 0x30c   : > { %v11838_v13 = vadd.f32 1e-24, %v4191_v1  ;;  %v4508_v34 = vmul.f32 %v7828_v17, %v11799_v3  ;;  %v4668_v24 = vpop.f32.mrf.mxu3  ;;  %vm4514_vm10 = vweird.f32 %v7828_v17  ;;  %v4010_v57 = vmul.f32 %v11790_v59, %v4009_v50  ;;  %v13919_v50 = vld [vmem:[#allocation28_spill] sm:$0xff] }
 0x30d   : > { %v11850_v39 = vadd.f32 %v11836_v37, %v4668_v24  ;;  %vm4515_vm12 = vmor %vm4513_vm14, %vm4514_vm10 }
 0x30e   : > { %7829 = vrsqrt.f32 %v11838_v13  ;;  %v4509_v8 = vmul.f32 %v7828_v17, %v4508_v34  ;;  %v4014_v15 = vsel %vm11915_vm5, %v11790_v59, %v4010_v57  ;;  %vm4533_vm7 = vweird.f32 %v11838_v13 }
 0x30f   : > { %7831 = vrsqrt.f32 %v11834_v16  ;;  %v5240_v19 = vsel %vm5236_vm9, %v11850_v39, -inf  ;;  %v4064_v14 = vmul.f32 %v4014_v15, %v13918_v49 }
 0x310   : > { %v4510_v29 = vmul.f32 0.5, %v4509_v8  ;;  %5241 = vmax.xlane.f32.xlu1 %v5240_v19  ;;  %7833 = vrsqrt.f32 %v11855_v54  ;;  %v13917_v8 = vld [vmem:[#allocation77_spill] sm:$0xff] }
 0x311   : > { %v4065_v19 = vmul.f32 %v4024_v61, %v13917_v8 }
 0x312   : > { %v4511_v33 = vsub.f32 1.5, %v4510_v29 }
 0x314   : > { %v7830_v25 = vpop.eup %7829  ;;  %v3646_v52 = vpop.xlane.xlu2 %3645  ;;  %v4512_v18 = vmul.f32 %v7828_v17, %v4511_v33 }
 0x315   : > { %v11877_v7 = vpop.eup %7831  ;;  %v4528_v35 = vmul.f32 %v7830_v25, %v11838_v13  ;;  %v4700_v44 = vpop.f32.mrf.mxu3  ;;  %v11885_v60 = vadd.f32 1e-24, %v3646_v52  ;;  %vm4534_vm6 = vweird.f32 %v7830_v25  ;;  %v11932_v13 = vld [vmem:[#allocation11 + $0x18] sm:$0xff] }
 0x316   : > { %v11888_v9 = vadd.f32 %v11873_v5, %v4700_v44  ;;  %v4516_v3 = vsel %vm4515_vm12, %v7828_v17, %v4512_v18  ;;  %v3976_v2 = vmul.f32 %v11877_v7, %v11834_v16  ;;  %v11899_v41 = vpop.eup %7833  ;;  %vm4535_vm8 = vmor %vm4533_vm7, %vm4534_vm6  ;;  %vm3982_vm14 = vweird.f32 %v11877_v7 }
 0x317   : > { %v4529_v48 = vmul.f32 %v7830_v25, %v4528_v35  ;;  %7835 = vrsqrt.f32 %v11885_v60  ;;  %v4575_v36 = vmul.f32 %v4516_v3, %v10834_v42  ;;  %v4632_v42 = vmul.f32 %v10556_v26, %v4063_v30  ;;  %vm11952_vm15 = vmor %vm3981_vm11, %vm3982_vm14 }
 0x318   : > { %5238 = vmax.xlane.f32.xlu2 %v5237_v6  ;;  %v5243_v4 = vsel %vm5236_vm9, %v11888_v9, -inf  ;;  %v3977_v53 = vmul.f32 %v11877_v7, %v3976_v2  ;;  %v3986_v51 = vmul.f32 %v11899_v41, %v11855_v54  ;;  %v4634_v35 = vmul.f32 %v11242_v46, %v4065_v19  ;;  %v13922_v19 = vld [vmem:[#allocation53_spill] sm:$0xff] }
 0x319   : > { %v4530_v1 = vmul.f32 0.5, %v4529_v48  ;;  %5244 = vmax.xlane.f32.xlu1 %v5243_v4  ;;  %7470 = vmatpush.xpose.msk.msra.mxu2 %vm3586_vm2, %v4575_v36  ;;  %vm3911_vm13 = vweird.f32 %v11885_v60  ;;  %vm3992_vm4 = vweird.f32 %v11899_v41  ;;  %vm3991_vm6 = vweird.f32 %v11855_v54 }
 0x31a   : > { %v3978_v59 = vmul.f32 0.5, %v3977_v53  ;;  %v3987_v52 = vmul.f32 %v11899_v41, %v3986_v51  ;;  %v11959_v51 = vpop.f32.mrf.mxu2  ;;  %v13928_v53 = vld [vmem:[#allocation21_spill] sm:$0xff] }
 0x31b   : > { %v4531_v34 = vsub.f32 1.5, %v4530_v1 }
 0x31c   : > { %7471 = vmatmul.msk.f32.vlgmr.msra.gmra.mxu2 %vm3586_vm2, %v4632_v42  ;;  %v3979_v62 = vsub.f32 1.5, %v3978_v59  ;;  %v3988_v3 = vmul.f32 0.5, %v3987_v52 }
 0x31d   : > { %v3682_v24 = vpop.xlane.xlu2 %3681  ;;  %v4532_v12 = vmul.f32 %v7830_v25, %v4531_v34  ;;  %v7836_v58 = vpop.eup %7835 }
 0x31e   : > { %v3714_v20 = vadd.f32 1e-24, %v3682_v24  ;;  %v3906_v11 = vmul.f32 %v7836_v58, %v11885_v60  ;;  %vm3912_vm10 = vweird.f32 %v7836_v58  ;;  %v3980_v1 = vmul.f32 %v11877_v7, %v3979_v62  ;;  %v11985_v62 = vld [vmem:[#allocation11 + $0x20] sm:$0xff] }
 0x31f   : > { %v4536_v29 = vsel %vm4535_vm8, %v7830_v25, %v4532_v12  ;;  %v4633_v25 = vmul.f32 %v10556_v26, %v4064_v14  ;;  %vm3913_vm12 = vmor %vm3911_vm13, %vm3912_vm10  ;;  %v3989_v42 = vsub.f32 1.5, %v3988_v3 }
 0x320   : > { %7837 = vrsqrt.f32 %v3714_v20  ;;  %v4577_v33 = vmul.f32 %v4536_v29, %v13919_v50  ;;  %v3907_v18 = vmul.f32 %v7836_v58, %v3906_v11  ;;  %v3984_v24 = vsel %vm11952_vm15, %v11877_v7, %v3980_v1  ;;  %vm11974_vm8 = vmor %vm3991_vm6, %vm3992_vm4 }
 0x321   : > { %v3990_v16 = vmul.f32 %v11899_v41, %v3989_v42  ;;  %vm4031_vm5 = vweird.f32 %v3714_v20  ;;  %v4061_v29 = vmul.f32 %v3984_v24, %v13922_v19 }
 0x322   : > { %7474 = vmatpush.xpose.msk.msrb.mxu3 %vm3586_vm2, %v4577_v33  ;;  %v3908_v6 = vmul.f32 0.5, %v3907_v18 }
 0x324   : > { %v4703_v44 = vpop.f32.mrf.mxu3  ;;  %v3909_v48 = vsub.f32 1.5, %v3908_v6  ;;  %7472 = vmatmul.msk.f32.gmra.mxu2 %vm3586_vm2, %v4633_v25 }
 0x325   : > { %v11938_v30 = vadd.f32 %v11932_v13, %v4703_v44  ;;  %v3661_v45 = vpop.xlane.xlu2 %3660  ;;  %7475 = vmatmul.msk.f32.vlgmr.msrb.gmra.mxu3 %vm3586_vm2, %v4634_v35  ;;  %v3994_v44 = vsel %vm11974_vm8, %v11899_v41, %v3990_v16  ;;  %v2788_v16 = vrot.slane %v11530_v63, 4 }
 0x326   : > { %v7838_v57 = vpop.eup %7837  ;;  %v11940_v2 = vadd.f32 1e-24, %v3661_v45  ;;  %v3910_v26 = vmul.f32 %v7836_v58, %v3909_v48 }
 0x327   : > { %v4026_v36 = vmul.f32 %v7838_v57, %v3714_v20  ;;  %v5246_v4 = vsel %vm5236_vm9, %v11938_v30, -inf  ;;  %vm4032_vm3 = vweird.f32 %v7838_v57 }
 0x328   : > { %7839 = vrsqrt.f32 %v11940_v2  ;;  %5247 = vmax.xlane.f32.xlu1 %v5246_v4  ;;  %v3914_v61 = vsel %vm3913_vm12, %v7836_v58, %v3910_v26  ;;  %vm11970_vm7 = vmor %vm4031_vm5, %vm4032_vm3  ;;  %vm3961_vm13 = vweird.f32 %v11940_v2  ;;  %vm7141_vm3 = vcmask 195584  }
 0x329   : > { %v4027_v17 = vmul.f32 %v7838_v57, %v4026_v36  ;;  %v4054_v34 = vmul.f32 %v3914_v61, %v11017_v47  ;;  %v4630_v36 = vmul.f32 %v13808_v22, %v4061_v29  ;;  %v2844_v29 = vrot.slane %v11534_v21, 4 }
 0x32b   : > { %v4028_v31 = vmul.f32 0.5, %v4027_v17  ;;  %v4623_v12 = vmul.f32 %v13808_v22, %v4054_v34  ;;  %v13927_v17 = vld [vmem:[#allocation42_spill] sm:$0xff]  ;;  %v11999_v34 = vpop.f32.mrf.mxu2 }
 0x32c   : > { %v4735_v60 = vpop.f32.mrf.mxu3  ;;  %v4062_v41 = vmul.f32 %v3994_v44, %v13927_v17 }
 0x32d   : > { %v4029_v15 = vsub.f32 1.5, %v4028_v31  ;;  %7452 = vmatmul.msk.f32.gmra.mxu1 %vm3586_vm2, %v4623_v12  ;;  %v11995_v42 = vadd.f32 %v11985_v62, %v4735_v60  ;;  %v2732_v60 = vrot.slane %v11266_v38, 4 }
 0x32e   : > { %v7840_v58 = vpop.eup %7839  ;;  %v4631_v19 = vmul.f32 %v13808_v22, %v4062_v41 }
 0x32f   : > { %v4030_v47 = vmul.f32 %v7838_v57, %v4029_v15  ;;  %v3956_v8 = vmul.f32 %v7840_v58, %v11940_v2  ;;  %vm3962_vm10 = vweird.f32 %v7840_v58  ;;  %v2676_v2 = vrot.slane %v11239_v56, 4 }
 0x330   : > { %7687 = vrot.lane.b32.xlu2 %v11580_v32, %s8258_s14  ;;  %v7653_v7 = vpop.permute.xlu1 %7652  ;;  %v7663_v59 = vpop.permute.xlu0 %7662  ;;  %vm3963_vm14 = vmor %vm3961_vm13, %vm3962_vm10 }
 0x331   : > { %v7655_v49 = vunpack.i.h.bf16 %v7653_v7  ;;  %v7654_v14 = vunpack.i.l.bf16 %v7653_v7  ;;  %v3957_v50 = vmul.f32 %v7840_v58, %v3956_v8  ;;  %v7665_v33 = vunpack.i.h.bf16 %v7663_v59 }
 0x332   : > { %v3664_v32 = vpop.xlane.xlu2 %3663  ;;  %v7664_v52 = vunpack.i.l.bf16 %v7663_v59  ;;  %v4034_v18 = vsel %vm11970_vm7, %v7838_v57, %v4030_v47 }
 0x333   : > { %v11980_v35 = vadd.f32 1e-24, %v3664_v32  ;;  %v2688_v54 = vrot.slane %v7655_v49, 4  ;;  %v2744_v6 = vrot.slane %v7654_v14, 4  ;;  %v3958_v25 = vmul.f32 0.5, %v3957_v50 }
 0x334   : > { %v2686_v45 = vrot.slane %v7665_v33, 4  ;;  %v2742_v3 = vrot.slane %v7664_v52, 4  ;;  %v4066_v48 = vmul.f32 %v4034_v18, %v11085_v55  ;;  %v4738_v4 = vpop.f32.mrf.mxu3  ;;  %v12020_v32 = vsel %vm5236_vm9, %v11995_v42, -inf }
 0x335   : > { %7841 = vrsqrt.f32 %v11980_v35  ;;  %v2689_v57 = vsel %vm754_vm1, %v7665_v33, %v2688_v54  ;;  %v3959_v26 = vsub.f32 1.5, %v3958_v25  ;;  %v2745_v61 = vsel %vm754_vm1, %v7664_v52, %v2744_v6  ;;  %7467 = vmatmul.msk.f32.vlgmr.msra.gmra.mxu1 %vm3586_vm2, %v4630_v36  ;;  %v12027_v25 = vld [vmem:[#allocation11 + $0x28] sm:$0xff] }
 0x336   : > { %v2687_v1 = vsel %vm754_vm1, %v2686_v45, %v7655_v49  ;;  %v2743_v55 = vsel %vm754_vm1, %v2742_v3, %v7654_v14  ;;  %v2697_v15 = vperm.slane %v2689_v57, %v13928_v53  ;;  %v4635_v12 = vmul.f32 %v11242_v46, %v4066_v48 }
 0x337   : > { %v3960_v31 = vmul.f32 %v7840_v58, %v3959_v26  ;;  %v2693_v24 = vperm.slane %v2687_v1, %v13928_v53  ;;  %v2749_v8 = vperm.slane %v2743_v55, %v13928_v53  ;;  %v2753_v49 = vperm.slane %v2745_v61, %v13928_v53  ;;  %v13929_v61 = vld [vmem:[#allocation22_spill] sm:$0xff] }
 0x338   : > { %7476 = vmatmul.msk.f32.gmra.mxu3 %vm3586_vm2, %v4635_v12  ;;  %v2710_v50 = vrot.slane %v2697_v15, 4  ;;  %vm3971_vm12 = vweird.f32 %v11980_v35 }
 0x339   : > { %v3964_v47 = vsel %vm3963_vm14, %v7840_v58, %v3960_v31  ;;  %v2698_v20 = vrot.slane %v2693_v24, 4  ;;  %v2754_v54 = vrot.slane %v2749_v8, 4  ;;  %v2766_v3 = vrot.slane %v2753_v49, 4 }
 0x33a   : > { %v7658_v7 = vpop.permute.xlu2 %7657  ;;  %v4059_v46 = vmul.f32 %v3964_v47, %v11140_v10  ;;  %v4805_v45 = vpop.f32.mrf.mxu0 }
 0x33b   : > { %v12012_v11 = vpop.eup %7841  ;;  %v7660_v14 = vunpack.i.h.bf16 %v7658_v7  ;;  %v7659_v59 = vunpack.i.l.bf16 %v7658_v7  ;;  %v12046_v12 = vadd.f32 %v11847_v28, %v4805_v45 }
 0x33c   : > { %v3966_v58 = vmul.f32 %v12012_v11, %v11980_v35  ;;  %v4628_v22 = vmul.f32 %v13786_v43, %v4059_v46  ;;  %vm3972_vm11 = vweird.f32 %v12012_v11 }
 0x33d   : > { %v2674_v33 = vrot.slane %v7660_v14, 4  ;;  %v2677_v52 = vsel %vm754_vm1, %v7660_v14, %v2676_v2  ;;  %v2730_v18 = vrot.slane %v7659_v59, 4  ;;  %v2733_v44 = vsel %vm754_vm1, %v7659_v59, %v2732_v60  ;;  %v4770_v26 = vpop.f32.mrf.mxu3  ;;  %7468 = vmatmul.msk.f32.gmra.mxu1 %vm3586_vm2, %v4631_v19  ;;  %v4875_v19 = vpop.f32.mrf.mxu2  ;;  %v12053_v14 = vld [vmem:[#allocation11 + $0x30] sm:$0xff]  ;;  %vm3973_vm15 = vmor %vm3971_vm12, %vm3972_vm11 }
 0x33e   : > { %v3967_v10 = vmul.f32 %v12012_v11, %v3966_v58  ;;  %v2685_v6 = vperm.slane %v2677_v52, %v13928_v53  ;;  %v2741_v57 = vperm.slane %v2733_v44, %v13928_v53  ;;  %7463 = vmatmul.msk.f32.vlgmr.msrb.gmra.mxu0 %vm3586_vm2, %v4628_v22  ;;  %v12068_v52 = vadd.f32 %v11985_v62, %v4875_v19 }
 0x33f   : > { %v2675_v48 = vsel %vm754_vm1, %v2674_v33, %v11239_v56  ;;  %v2731_v36 = vsel %vm754_vm1, %v2730_v18, %v11266_v38  ;;  %v12043_v38 = vadd.f32 %v12027_v25, %v4738_v4  ;;  %v12071_v18 = vadd.f32 %v12053_v14, %v4770_v26 }
 0x340   : > { %v3968_v1 = vmul.f32 0.5, %v3967_v10  ;;  %v2681_v17 = vperm.slane %v2675_v48, %v13928_v53  ;;  %v2712_v41 = vrot.slane %v2685_v6, 4  ;;  %v2711_v55 = vsel %vm754_vm1, %v2710_v50, %v2685_v6 }
 0x341   : > { %v12039_v31 = vperm.slane %v2711_v55, %v13929_v61  ;;  %v2737_v56 = vperm.slane %v2731_v36, %v13928_v53  ;;  %v2768_v7 = vrot.slane %v2741_v57, 4  ;;  %v2767_v28 = vsel %vm754_vm1, %v2766_v3, %v2741_v57 }
 0x342   : > { %v2700_v2 = vrot.slane %v2681_v17, 4  ;;  %v2699_v60 = vsel %vm754_vm1, %v2698_v20, %v2681_v17  ;;  %v2713_v47 = vsel %vm754_vm1, %v2697_v15, %v2712_v41  ;;  %v12051_v46 = vpop.permute.xlu2 %7667  ;;  %v3969_v59 = vsub.f32 1.5, %v3968_v1 }
 0x343   : > { %v2721_v4 = vperm.slane %v2713_v47, %v13929_v61  ;;  %v2755_v58 = vsel %vm754_vm1, %v2754_v54, %v2737_v56  ;;  %v12063_v15 = vperm.slane %v2699_v60, %v13929_v61  ;;  %v2756_v20 = vrot.slane %v2737_v56, 4 }
 0x344   : > { %v12060_v50 = vsel %vm754_vm1, %v2693_v24, %v2700_v2  ;;  %v2726_v22 = vrot.slane %v12039_v31, 4  ;;  %v2761_v33 = vperm.slane %v2755_v58, %v13929_v61  ;;  %v2769_v24 = vsel %vm754_vm1, %v2753_v49, %v2768_v7 }
 0x345   : > { %v12073_v10 = vrot.slane %v2721_v4, 4  ;;  %v2757_v54 = vsel %vm754_vm1, %v2749_v8, %v2756_v20  ;;  %v2773_v6 = vperm.slane %v2767_v28, %v13929_v61  ;;  %v3970_v44 = vmul.f32 %v12012_v11, %v3969_v59 }
 0x346   : > { %v2709_v45 = vperm.slane %v12060_v50, %v13929_v61  ;;  %v2765_v3 = vperm.slane %v2757_v54, %v13929_v61  ;;  %v2777_v48 = vperm.slane %v2769_v24, %v13929_v61  ;;  %v2722_v36 = vrot.slane %v12063_v15, 4  ;;  %v12090_v55 = vpop.f32.mrf.mxu3 }
 0x347   : > { %v2782_v57 = vrot.slane %v2773_v6, 4  ;;  %v7670_v26 = vunpack.i.h.bf16 %v12051_v46  ;;  %v7669_v8 = vunpack.i.l.bf16 %v12051_v46  ;;  %v2778_v1 = vrot.slane %v2761_v33, 4 }
 0x348   : > { %v2784_v49 = vrot.slane %v2777_v48, 4  ;;  %v5273_v17 = vsel %vm5236_vm9, %v12068_v52, -inf  ;;  %v5255_v41 = vsel %vm5236_vm9, %v12071_v18, -inf  ;;  %v12094_v56 = vsel %vm754_vm1, 0.0, %v12073_v10 }
 0x349   : > { %v2780_v2 = vrot.slane %v2765_v3, 4  ;;  %v2783_v60 = vsel %vm754_vm1, 0.0, %v2782_v57  ;;  %v2800_v47 = vrot.slane %v7670_v26, 4  ;;  %5274 = vmax.xlane.f32.xlu0 %v5273_v17  ;;  %5256 = vmax.xlane.f32.xlu1 %v5255_v41  ;;  %v4878_v19 = vpop.f32.mrf.mxu2  ;;  %v2856_v4 = vrot.slane %v7669_v8, 4 }
 0x34a   : > { %v7673_v7 = vpop.permute.xlu2 %7672  ;;  %v2785_v59 = vsel %vm754_vm1, 0.0, %v2784_v49  ;;  %v3187_v20 = vsel %vm754_vm1, %v2784_v49, %v2773_v6  ;;  %v3974_v24 = vsel %vm3973_vm15, %v12012_v11, %v3970_v44  ;;  %v12109_v3 = vadd.f32 %v12027_v25, %v4878_v19 }
 0x34b   : > { %v7675_v58 = vunpack.i.h.bf16 %v7673_v7  ;;  %v7674_v28 = vunpack.i.l.bf16 %v7673_v7  ;;  %v3192_v54 = vrot.slane %v2785_v59, 4  ;;  %v4060_v11 = vmul.f32 %v3974_v24, %v11305_v40 }
 0x34c   : > { %v5252_v44 = vsel %vm5236_vm9, %v12043_v38, -inf  ;;  %v5276_v7 = vsel %vm5236_vm9, %v12109_v3, -inf  ;;  %v2779_v40 = vsel %vm754_vm1, 0.0, %v2778_v1 }
 0x34d   : > { %v2786_v48 = vrot.slane %v7675_v58, 4  ;;  %v2789_v35 = vsel %vm754_vm1, %v7675_v58, %v2788_v16  ;;  %v2842_v57 = vrot.slane %v7674_v28, 4  ;;  %v2845_v17 = vsel %vm754_vm1, %v7674_v28, %v2844_v29 }
 0x34e   : > { %v2797_v41 = vperm.slane %v2789_v35, %v13928_v53  ;;  %v12119_v6 = vperm.slane %v2845_v17, %v13928_v53  ;;  %v2781_v29 = vsel %vm754_vm1, 0.0, %v2780_v2  ;;  %v4629_v24 = vmul.f32 %v13786_v43, %v4060_v11 }
 0x34f   : > { %v2787_v49 = vsel %vm754_vm1, %v2786_v48, %v11530_v63  ;;  %v2843_v16 = vsel %vm754_vm1, %v2842_v57, %v11534_v21  ;;  %v3176_v63 = vsel %vm754_vm1, %v2780_v2, %v2761_v33  ;;  %v3181_v48 = vrot.slane %v2781_v29, 4  ;;  %v12147_v2 = vpop.f32.mrf.mxu3 }
 0x350   : > { %v2793_v19 = vperm.slane %v2787_v49, %v13928_v53  ;;  %v2824_v59 = vrot.slane %v2797_v41, 4  ;;  %v2849_v58 = vperm.slane %v2843_v16, %v13928_v53  ;;  %v2880_v28 = vrot.slane %v12119_v6, 4  ;;  %7464 = vmatmul.msk.f32.gmra.mxu0 %vm3586_vm2, %v4629_v24 }
 0x351   : > { %5250 = vmax.xlane.f32.xlu0 %v12020_v32  ;;  %5277 = vmax.xlane.f32.xlu1 %v5276_v7  ;;  %v12139_v17 = vperm.slane %v3176_v63, %v13928_v53  ;;  %v12142_v49 = vperm.slane %v3187_v20, %v13928_v53  ;;  %v3182_v43 = vsel %vm754_vm1, %v3181_v48, %v2779_v40 }
 0x352   : > { %v2812_v21 = vrot.slane %v2793_v19, 4  ;;  %v2868_v35 = vrot.slane %v2849_v58, 4  ;;  %v7678_v57 = vpop.permute.xlu2 %7677  ;;  %v3193_v33 = vsel %vm754_vm1, %v3192_v54, %v2783_v60  ;;  %v3186_v32 = vperm.slane %v3182_v43, %v13928_v53 }
 0x353   : > { %v7680_v1 = vunpack.i.h.bf16 %v7678_v57  ;;  %v7679_v16 = vunpack.i.l.bf16 %v7678_v57  ;;  %v12151_v11 = vperm.slane %v3193_v33, %v13928_v53  ;;  %v3200_v7 = vrot.slane %v12139_v17, 4 }
 0x354   : > { %v3212_v20 = vrot.slane %v12142_v49, 4 }
 0x355   : > { %v2798_v29 = vrot.slane %v7680_v1, 4  ;;  %v2801_v24 = vsel %vm754_vm1, %v7680_v1, %v2800_v47  ;;  %v2854_v63 = vrot.slane %v7679_v16, 4  ;;  %v2857_v57 = vsel %vm754_vm1, %v7679_v16, %v2856_v4 }
 0x356   : > { %v2809_v40 = vperm.slane %v2801_v24, %v13928_v53  ;;  %v2865_v60 = vperm.slane %v2857_v57, %v13928_v53  ;;  %v3201_v54 = vsel %vm754_vm1, %v3186_v32, %v3200_v7  ;;  %v3213_v48 = vsel %vm754_vm1, %v12151_v11, %v3212_v20 }
 0x357   : > { %v2799_v43 = vsel %vm754_vm1, %v2798_v29, %v7670_v26  ;;  %v2855_v47 = vsel %vm754_vm1, %v2854_v63, %v7669_v8  ;;  %v12169_v1 = vperm.slane %v3201_v54, %v13929_v61  ;;  %v12172_v4 = vperm.slane %v3213_v48, %v13929_v61  ;;  %v12213_v50 = vpop.f32.mrf.mxu3 }
 0x358   : > { %v2805_v16 = vperm.slane %v2799_v43, %v13928_v53  ;;  %v2822_v33 = vrot.slane %v2809_v40, 4  ;;  %v2825_v7 = vsel %vm754_vm1, %v2809_v40, %v2824_v59  ;;  %v2861_v20 = vperm.slane %v2855_v47, %v13928_v53 }
 0x359   : > { %v2833_v24 = vperm.slane %v2825_v7, %v13929_v61  ;;  %v2878_v26 = vrot.slane %v2865_v60, 4  ;;  %v2881_v46 = vsel %vm754_vm1, %v2865_v60, %v2880_v28  ;;  %v3226_v8 = vrot.slane %v12172_v4, 4  ;;  %5253 = vmax.xlane.f32.xlu0 %v5252_v44 }
 0x35a   : > { %v2810_v29 = vrot.slane %v2805_v16, 4  ;;  %v2813_v63 = vsel %vm754_vm1, %v2805_v16, %v2812_v21  ;;  %v2823_v57 = vsel %vm754_vm1, %v2822_v33, %v2797_v41  ;;  %v2866_v54 = vrot.slane %v2861_v20, 4 }
 0x35b   : > { %v2821_v48 = vperm.slane %v2813_v63, %v13929_v61  ;;  %v12184_v59 = vperm.slane %v2823_v57, %v13929_v61  ;;  %v12186_v40 = vrot.slane %v2833_v24, 4  ;;  %v2869_v43 = vsel %vm754_vm1, %v2861_v20, %v2868_v35 }
 0x35c   : > { %v2811_v28 = vsel %vm754_vm1, %v2810_v29, %v2793_v19  ;;  %v2867_v60 = vsel %vm754_vm1, %v2866_v54, %v2849_v58  ;;  %v2877_v47 = vperm.slane %v2869_v43, %v13929_v61  ;;  %v2879_v41 = vsel %vm754_vm1, %v2878_v26, %v12119_v6 }
 0x35d   : > { %v2724_v44 = vrot.slane %v2709_v45, 4  ;;  %v2727_v21 = vsel %vm754_vm1, 0.0, %v2726_v22  ;;  %v3138_v16 = vrot.slane %v12094_v56, 4  ;;  %v12201_v35 = vrot.slane %v2821_v48, 4 }
 0x35e   : > { %v12205_v19 = vsel %vm754_vm1, 0.0, %v12186_v40  ;;  %v12208_v58 = vperm.slane %v2879_v41, %v13929_v61  ;;  %v2889_v6 = vperm.slane %v2881_v46, %v13929_v61  ;;  %v12211_v33 = vrot.slane %v2877_v47, 4  ;;  %v4808_v41 = vpop.f32.mrf.mxu0 }
 0x35f   : > { %v12216_v45 = vperm.slane %v2811_v28, %v13929_v61  ;;  %v2838_v22 = vrot.slane %v12184_v59, 4  ;;  %v12220_v56 = vperm.slane %v2867_v60, %v13929_v61  ;;  %v3227_v7 = vsel %vm754_vm1, %v3226_v8, %v12169_v1 }
 0x360   : > { %v12226_v20 = vsel %vm754_vm1, 0.0, %v12201_v35  ;;  %v12230_v24 = vsel %vm754_vm1, 0.0, %v12211_v33  ;;  %v2896_v26 = vrot.slane %v2889_v6, 4  ;;  %5731 = vmatpush.msrb.mxu2 %v3227_v7  ;;  %v3198_v46 = vrot.slane %v3186_v32, 4 }
 0x361   : > { %v2894_v29 = vrot.slane %v12208_v58, 4  ;;  %v3210_v57 = vrot.slane %v12151_v11, 4  ;;  %v2725_v54 = vsel %vm754_vm1, 0.0, %v2724_v44  ;;  %v3289_v8 = vrot.slane %v12230_v24, 4 }
 0x362   : > { %v3199_v48 = vsel %vm754_vm1, %v3198_v46, %v12139_v17  ;;  %v2723_v43 = vsel %vm754_vm1, 0.0, %v2722_v36  ;;  %v3122_v32 = vsel %vm754_vm1, %v2724_v44, %v12063_v15  ;;  %v12245_v28 = vsel %vm754_vm1, 0.0, %v2896_v26 }
 0x363   : > { %v3205_v60 = vperm.slane %v3199_v48, %v13929_v61  ;;  %v3211_v11 = vsel %vm754_vm1, %v3210_v57, %v12142_v49  ;;  %v3126_v47 = vperm.slane %v3122_v32, %v13928_v53  ;;  %v3127_v6 = vrot.slane %v2725_v54, 4 }
 0x364   : > { %v3217_v17 = vperm.slane %v3211_v11, %v13929_v61  ;;  %v3133_v36 = vsel %vm754_vm1, %v12073_v10, %v12039_v31  ;;  %v3139_v15 = vsel %vm754_vm1, %v3138_v16, %v2727_v21  ;;  %v3228_v48 = vrot.slane %v12169_v1, 4 }
 0x365   : > { %v3137_v44 = vperm.slane %v3133_v36, %v13928_v53  ;;  %v3143_v7 = vperm.slane %v3139_v15, %v13928_v53  ;;  %v3146_v46 = vrot.slane %v3126_v47, 4  ;;  %v3128_v57 = vsel %vm754_vm1, %v3127_v6, %v2723_v43  ;;  %v5050_v43 = vpop.f32.mrf.mxu3 }
 0x366   : > { %v3222_v49 = vrot.slane %v3217_v17, 4  ;;  %v12261_v32 = vadd.f32 %v11836_v37, %v4808_v41  ;;  %v3224_v54 = vrot.slane %v3205_v60, 4  ;;  %v3132_v11 = vperm.slane %v3128_v57, %v13928_v53 }
 0x367   : > { %v3158_v63 = vrot.slane %v3137_v44, 4  ;;  %v3229_v31 = vsel %vm754_vm1, %v12172_v4, %v3228_v48  ;;  %v3156_v10 = vrot.slane %v3143_v7, 4  ;;  %v3295_v21 = vsel %vm754_vm1, %v2896_v26, %v12208_v58 }
 0x368   : > { %v3223_v16 = vsel %vm754_vm1, %v3222_v49, %v3205_v60  ;;  %5760 = vmatpush.msra.mxu3 %v3229_v31  ;;  %v3225_v1 = vsel %vm754_vm1, %v3217_v17, %v3224_v54  ;;  %v5261_v37 = vsel %vm5236_vm9, %v12046_v12, -inf  ;;  %v3147_v41 = vsel %vm754_vm1, %v3132_v11, %v3146_v46 }
 0x369   : > { %5673 = vmatpush.msra.mxu0 %v3223_v16  ;;  %v3159_v6 = vsel %vm754_vm1, %v3143_v7, %v3158_v63  ;;  %v3144_v36 = vrot.slane %v3132_v11, 4  ;;  %v3157_v4 = vsel %vm754_vm1, %v3156_v10, %v3137_v44  ;;  %5702 = vmatpush.msrb.mxu1 %v3225_v1  ;;  %v3155_v58 = vperm.slane %v3147_v41, %v13929_v61 }
 0x36a   : > { %v3167_v26 = vperm.slane %v3159_v6, %v13929_v61  ;;  %v3163_v60 = vperm.slane %v3157_v4, %v13929_v61  ;;  %5262 = vmax.xlane.f32.xlu2 %v5261_v37  ;;  %v5264_v17 = vsel %vm5236_vm9, %v12261_v32, -inf  ;;  %v3300_v15 = vrot.slane %v12245_v28, 4 }
 0x36b   : > { %v3145_v46 = vsel %vm754_vm1, %v3144_v36, %v3126_v47  ;;  %5265 = vmax.xlane.f32.xlu1 %v5264_v17  ;;  %v12283_v63 = vadd.f32 %v12053_v14, %v5050_v43  ;;  %v2890_v44 = vrot.slane %v12220_v56, 4  ;;  %v3174_v57 = vrot.slane %v3155_v58, 4 }
 0x36c   : > { %v3172_v7 = vrot.slane %v3167_v26, 4  ;;  %v3151_v48 = vperm.slane %v3145_v46, %v13929_v61  ;;  %v3168_v49 = vrot.slane %v3163_v60, 4  ;;  %v2895_v28 = vsel %vm754_vm1, 0.0, %v2894_v29 }
 0x36d   : > { %v5303_v54 = vsel %vm5236_vm9, %v12283_v63, -inf  ;;  %v2891_v11 = vsel %vm754_vm1, 0.0, %v2890_v44  ;;  %v3284_v47 = vsel %vm754_vm1, %v12211_v33, %v12220_v56  ;;  %v3175_v16 = vsel %vm754_vm1, %v3167_v26, %v3174_v57 }
 0x36e   : > { %v3173_v31 = vsel %vm754_vm1, %v3172_v7, %v3155_v58  ;;  %v3169_v10 = vsel %vm754_vm1, %v3168_v49, %v3151_v48  ;;  %v3170_v1 = vrot.slane %v3151_v48, 4  ;;  %v3288_v37 = vperm.slane %v3284_v47, %v13928_v53  ;;  %5761 = vmatpush.msra.mxu3 %v3175_v16 }
 0x36f   : > { %5732 = vmatpush.msrb.mxu2 %v3173_v31  ;;  %5674 = vmatpush.msra.mxu0 %v3169_v10  ;;  %v3290_v43 = vsel %vm754_vm1, %v3289_v8, %v2891_v11  ;;  %v3299_v29 = vperm.slane %v3295_v21, %v13928_v53  ;;  %v2834_v41 = vrot.slane %v12216_v45, 4  ;;  %v3301_v6 = vsel %vm754_vm1, %v3300_v15, %v2895_v28 }
 0x370   : > { %v3171_v33 = vsel %vm754_vm1, %v3163_v60, %v3170_v1  ;;  %v3294_v56 = vperm.slane %v3290_v43, %v13928_v53  ;;  %v2839_v36 = vsel %vm754_vm1, 0.0, %v2838_v22  ;;  %v3305_v24 = vperm.slane %v3301_v6, %v13928_v53 }
 0x371   : > { %5703 = vmatpush.msrb.mxu1 %v3171_v33  ;;  %v3308_v4 = vrot.slane %v3288_v37, 4  ;;  %v3320_v8 = vrot.slane %v3299_v29, 4  ;;  %v2835_v21 = vsel %vm754_vm1, 0.0, %v2834_v41  ;;  %v3230_v26 = vsel %vm754_vm1, %v12201_v35, %v12216_v45 }
 0x372   : > { %v3306_v58 = vrot.slane %v3294_v56, 4  ;;  %v3235_v60 = vrot.slane %v12226_v20, 4  ;;  %v3241_v17 = vsel %vm754_vm1, %v12186_v40, %v12184_v59  ;;  %v3318_v46 = vrot.slane %v3305_v24, 4 }
 0x373   : > { %5304 = vmax.xlane.f32.xlu1 %v5303_v54  ;;  %v3309_v22 = vsel %vm754_vm1, %v3294_v56, %v3308_v4  ;;  %v3321_v15 = vsel %vm754_vm1, %v3305_v24, %v3320_v8  ;;  %v3234_v44 = vperm.slane %v3230_v26, %v13928_v53  ;;  %v3245_v49 = vperm.slane %v3241_v17, %v13928_v53 }
 0x374   : > { %v3317_v7 = vperm.slane %v3309_v22, %v13929_v61  ;;  %v3329_v48 = vperm.slane %v3321_v15, %v13929_v61  ;;  %v3307_v35 = vsel %vm754_vm1, %v3306_v58, %v3288_v37  ;;  %v3236_v45 = vsel %vm754_vm1, %v3235_v60, %v2835_v21  ;;  %v4840_v8 = vpop.f32.mrf.mxu1  ;;  %v7683_v15 = vpop.permute.xlu1 %7682 }
 0x375   : > { %v3313_v20 = vperm.slane %v3307_v35, %v13929_v61  ;;  %v3319_v59 = vsel %vm754_vm1, %v3318_v46, %v3299_v29  ;;  %v3240_v40 = vperm.slane %v3236_v45, %v13928_v53  ;;  %v13930_v11 = vrot.slane %v12205_v19, 4 }
 0x376   : > { %v3334_v57 = vrot.slane %v3329_v48, 4  ;;  %v3325_v54 = vperm.slane %v3319_v59, %v13929_v61  ;;  %v3254_v47 = vrot.slane %v3234_v44, 4  ;;  %v3266_v10 = vrot.slane %v3245_v49, 4  ;;  %v5015_v59 = vpop.f32.mrf.mxu2 }
 0x377   : > { %v3247_v28 = vsel %vm754_vm1, %v13930_v11, %v2839_v36  ;;  %v3336_v16 = vrot.slane %v3317_v7, 4  ;;  %v3252_v29 = vrot.slane %v3240_v40, 4  ;;  %v3332_v4 = vrot.slane %v3313_v20, 4 }
 0x378   : > { %v3251_v31 = vperm.slane %v3247_v28, %v13928_v53  ;;  %v3335_v1 = vsel %vm754_vm1, %v3334_v57, %v3317_v7  ;;  %v3330_v37 = vrot.slane %v3325_v54, 4  ;;  %v3255_v43 = vsel %vm754_vm1, %v3240_v40, %v3254_v47 }
 0x379   : > { %5847 = vmatpush.msra.mxu2 %v3335_v1  ;;  %v3263_v41 = vperm.slane %v3255_v43, %v13929_v61  ;;  %v3337_v19 = vsel %vm754_vm1, %v3329_v48, %v3336_v16  ;;  %v3253_v24 = vsel %vm754_vm1, %v3252_v29, %v3234_v44  ;;  %v3333_v22 = vsel %vm754_vm1, %v3325_v54, %v3332_v4  ;;  %v7981_v54 = vld [vmem:[%s13493_s6] ss:$0 sm:$0xff] }
 0x37a   : > { %v3267_v33 = vsel %vm754_vm1, %v3251_v31, %v3266_v10  ;;  %v3264_v56 = vrot.slane %v3251_v31, 4  ;;  %v3331_v6 = vsel %vm754_vm1, %v3330_v37, %v3313_v20  ;;  %5876 = vmatpush.msrb.mxu3 %v3337_v19  ;;  %v3259_v21 = vperm.slane %v3253_v24, %v13929_v61  ;;  %5818 = vmatpush.msra.mxu1 %v3333_v22  ;;  %v12372_v37 = vld [vmem:[#allocation11 + $0x38] sm:$0xff] }
 0x37b   : > { %v3275_v36 = vperm.slane %v3267_v33, %v13929_v61  ;;  %5789 = vmatpush.msrb.mxu0 %v3331_v6  ;;  %v3282_v26 = vrot.slane %v3263_v41, 4  ;;  %v12348_v44 = vadd.f32 %v11873_v5, %v4840_v8  ;;  %v7693_v5 = vpop.permute.xlu0 %7692  ;;  %v7685_v57 = vunpack.i.h.bf16 %v7683_v15 }
 0x37c   : > { %v3265_v58 = vsel %vm754_vm1, %v3264_v56, %v3245_v49  ;;  %v3278_v7 = vrot.slane %v3259_v21, 4  ;;  %v12356_v49 = vadd.f32 %v11985_v62, %v5015_v59  ;;  %v12362_v11 = vadd.f32 %v7981_v54, %v11959_v51  ;;  %v4843_v10 = vpop.f32.mrf.mxu1 }
 0x37d   : > { %v3280_v60 = vrot.slane %v3275_v36, 4  ;;  %v3271_v17 = vperm.slane %v3265_v58, %v13929_v61  ;;  %v3283_v46 = vsel %vm754_vm1, %v3275_v36, %v3282_v26  ;;  %v5267_v20 = vsel %vm5236_vm9, %v12348_v44, -inf }
 0x37e   : > { %5877 = vmatpush.msrb.mxu3 %v3283_v46  ;;  %5268 = vmax.xlane.f32.xlu0 %v5267_v20  ;;  %v12365_v28 = vadd.f32 %v7981_v54, %v11999_v34  ;;  %v7684_v47 = vunpack.i.l.bf16 %v7683_v15  ;;  %v7695_v31 = vunpack.i.h.bf16 %v7693_v5  ;;  %v12368_v1 = vadd.f32 %v11932_v13, %v4843_v10 }
 0x37f   : > { %v3281_v48 = vsel %vm754_vm1, %v3280_v60, %v3263_v41  ;;  %v3276_v35 = vrot.slane %v3271_v17, 4  ;;  %v3279_v45 = vsel %vm754_vm1, %v3271_v17, %v3278_v7  ;;  %v5297_v62 = vsel %vm5236_vm9, %v12356_v49, -inf }
 0x380   : > { %5848 = vmatpush.msra.mxu2 %v3281_v48  ;;  %5819 = vmatpush.msra.mxu1 %v3279_v45  ;;  %v7694_v43 = vunpack.i.l.bf16 %v7693_v5  ;;  %v2912_v29 = vrot.slane %v7685_v57, 4  ;;  %v5270_v51 = vsel %vm5236_vm9, %v12368_v1, -inf  ;;  %v12378_v34 = vpack.i.bf16 %v12362_v11, %v12365_v28 }
 0x381   : > { %v3277_v40 = vsel %vm754_vm1, %v3276_v35, %v3259_v21  ;;  %v2968_v41 = vrot.slane %v7684_v47, 4  ;;  %v2910_v33 = vrot.slane %v7695_v31, 4  ;;  %5271 = vmax.xlane.f32.xlu2 %v5270_v51  ;;  %v12382_v13 = vadd.f32 %v12372_v37, %v12090_v55 }
 0x382   : > { %5790 = vmatpush.msrb.mxu0 %v3277_v40  ;;  %v2966_v6 = vrot.slane %v7694_v43, 4  ;;  %v12389_v36 = vadd.f32 %v12372_v37, %v12213_v50  ;;  %v2913_v24 = vsel %vm754_vm1, %v7695_v31, %v2912_v29  ;;  %v2900_v48 = vrot.slane %v11547_v27, 4 }
 0x383   : > { %v5242_v16 = vpop.xlane.xlu1 %5241  ;;  %v2911_v8 = vsel %vm754_vm1, %v2910_v33, %v7685_v57  ;;  %v2969_v21 = vsel %vm754_vm1, %v7694_v43, %v2968_v41  ;;  %v5258_v26 = vsel %vm5236_vm9, %v12382_v13, -inf  ;;  %v2956_v45 = vrot.slane %v11550_v23, 4 }
 0x384   : > { %v2967_v60 = vsel %vm754_vm1, %v2966_v6, %v7684_v47  ;;  %v5334_v50 = vsub.f32 %v11850_v39, %v5242_v16  ;;  %v2917_v17 = vperm.slane %v2911_v8, %v13928_v53  ;;  %v2977_v22 = vperm.slane %v2969_v21, %v13928_v53 }
 0x385   : > { %v5282_v46 = vsel %vm5236_vm9, %v12389_v36, -inf  ;;  %v2973_v7 = vperm.slane %v2967_v60, %v13928_v53 }
 0x386   : > { %5298 = vmax.xlane.f32.xlu0 %v5297_v62  ;;  %v5367_v39 = vmul.f32 1.442695, %v5334_v50  ;;  %v2922_v40 = vrot.slane %v2917_v17, 4  ;;  %v2990_v57 = vrot.slane %v2977_v22, 4 }
 0x387   : > { %v2978_v10 = vrot.slane %v2973_v7, 4 }
 0x389   : > { %5283 = vmax.xlane.f32.xlu2 %v5282_v46 }
 0x38b   : > { %v5239_v19 = vpop.xlane.xlu2 %5238 }
 0x38c   : > { %7707 = vrot.lane.b32.xlu1 %v12378_v34, %s8257_s12  ;;  %v5333_v56 = vsub.f32 %v11862_v0, %v5239_v19  ;;  %v5245_v55 = vpop.xlane.xlu1 %5244  ;;  %v2921_v0 = vperm.slane %v2913_v24, %v13928_v53  ;;  %s8262_s12 = smov 24  }
 0x38d   : > { %v5335_v58 = vsub.f32 %v11888_v9, %v5245_v55  ;;  %v12406_v9 = vadd.f32 %v12053_v14, %v12147_v2 }
 0x38e   : > { %v5365_v4 = vmul.f32 1.442695, %v5333_v56  ;;  %5259 = vmax.xlane.f32.xlu0 %v5258_v26  ;;  %v2934_v5 = vrot.slane %v2921_v0, 4 }
 0x38f   : > { %v5369_v15 = vmul.f32 1.442695, %v5335_v58  ;;  %v5279_v43 = vsel %vm5236_vm9, %v12406_v9, -inf }
 0x390   : > { %7843 = vpow2.f32 %v5365_v4 }
 0x391   : > { %7845 = vpow2.f32 %v5369_v15 }
 0x392   : > { %7847 = vpow2.f32 %v5367_v39 }
 0x393   : > { %v7688_v35 = vpop.permute.xlu2 %7687 }
 0x394   : > { %v7690_v20 = vunpack.i.h.bf16 %v7688_v35  ;;  %v7689_v59 = vunpack.i.l.bf16 %v7688_v35 }
 0x396   : > { %v12411_v54 = vpop.eup %7843  ;;  %v2898_v47 = vrot.slane %v7690_v20, 4  ;;  %v2901_v14 = vsel %vm754_vm1, %v7690_v20, %v2900_v48  ;;  %v2954_v2 = vrot.slane %v7689_v59, 4  ;;  %v2957_v31 = vsel %vm754_vm1, %v7689_v59, %v2956_v45  ;;  %5280 = vmax.xlane.f32.xlu0 %v5279_v43 }
 0x397   : > { %v2909_v16 = vperm.slane %v2901_v14, %v13928_v53  ;;  %v2965_v62 = vperm.slane %v2957_v31, %v13928_v53  ;;  %7477 = vmatmul.msk.f32.vlgmr.msra.gmra.mxu0 %vm5236_vm9, %v12411_v54  ;;  %v12425_v41 = vpop.eup %7845 }
 0x398   : > { %v2899_v29 = vsel %vm754_vm1, %v2898_v47, %v11547_v27  ;;  %v2955_v51 = vsel %vm754_vm1, %v2954_v2, %v11550_v23  ;;  %7479 = vmatmul.msk.f32.vlgmr.msrb.gmra.mxu1 %vm5236_vm9, %v12425_v41  ;;  %v12443_v39 = vpop.eup %7847 }
 0x399   : > { %v2905_v33 = vperm.slane %v2899_v29, %v13928_v53  ;;  %v2936_v19 = vrot.slane %v2909_v16, 4  ;;  %v2935_v56 = vsel %vm754_vm1, %v2934_v5, %v2909_v16  ;;  %v2961_v6 = vperm.slane %v2955_v51, %v13928_v53 }
 0x39a   : > { %v2941_v24 = vperm.slane %v2935_v56, %v13929_v61  ;;  %v2991_v4 = vsel %vm754_vm1, %v2990_v57, %v2965_v62  ;;  %v2992_v8 = vrot.slane %v2965_v62, 4 }
 0x39b   : > { %v2924_v27 = vrot.slane %v2905_v33, 4  ;;  %v2923_v23 = vsel %vm754_vm1, %v2922_v40, %v2905_v33  ;;  %v2937_v21 = vsel %vm754_vm1, %v2921_v0, %v2936_v19  ;;  %v2979_v55 = vsel %vm754_vm1, %v2978_v10, %v2961_v6  ;;  %v5248_v35 = vpop.xlane.xlu1 %5247 }
 0x39c   : > { %v2929_v58 = vperm.slane %v2923_v23, %v13929_v61  ;;  %v2945_v26 = vperm.slane %v2937_v21, %v13929_v61  ;;  %v2980_v60 = vrot.slane %v2961_v6, 4  ;;  %v2985_v15 = vperm.slane %v2979_v55, %v13929_v61 }
 0x39d   : > { %v2925_v50 = vsel %vm754_vm1, %v2917_v17, %v2924_v27  ;;  %v2993_v46 = vsel %vm754_vm1, %v2977_v22, %v2992_v8  ;;  %v2997_v48 = vperm.slane %v2991_v4, %v13929_v61  ;;  %v2950_v59 = vrot.slane %v2941_v24, 4 }
 0x39e   : > { %v2933_v0 = vperm.slane %v2925_v50, %v13929_v61  ;;  %v2952_v45 = vrot.slane %v2945_v26, 4  ;;  %v2946_v20 = vrot.slane %v2929_v58, 4  ;;  %v2981_v40 = vsel %vm754_vm1, %v2973_v7, %v2980_v60 }
 0x39f   : > { %v3001_v5 = vperm.slane %v2993_v46, %v13929_v61  ;;  %7478 = vmatmul.msk.f32.gmra.mxu0 %vm5236_vm9, %v12443_v39  ;;  %v2989_v22 = vperm.slane %v2981_v40, %v13929_v61  ;;  %v3006_v57 = vrot.slane %v2997_v48, 4  ;;  %v5336_v47 = vsub.f32 %v11938_v30, %v5248_v35 }
 0x3a0   : > { %v2953_v17 = vsel %vm754_vm1, 0.0, %v2952_v45  ;;  %v3002_v14 = vrot.slane %v2985_v15, 4  ;;  %v2948_v62 = vrot.slane %v2933_v0, 4  ;;  %v2951_v7 = vsel %vm754_vm1, 0.0, %v2950_v59 }
 0x3a1   : > { %v3008_v2 = vrot.slane %v3001_v5, 4  ;;  %v3004_v31 = vrot.slane %v2989_v22, 4  ;;  %v3354_v10 = vrot.slane %v2953_v17, 4  ;;  %v5371_v16 = vmul.f32 1.442695, %v5336_v47  ;;  %7702 = vrot.lane.b32.xlu2 %v12378_v34, %s8258_s14  ;;  %v4980_v47 = vpop.f32.mrf.mxu1  ;;  %s8263_s14 = smov 16  }
 0x3a2   : > { %v2947_v29 = vsel %vm754_vm1, 0.0, %v2946_v20  ;;  %v3007_v33 = vsel %vm754_vm1, 0.0, %v3006_v57  ;;  %v3003_v30 = vsel %vm754_vm1, 0.0, %v3002_v14  ;;  %v2949_v6 = vsel %vm754_vm1, 0.0, %v2948_v62  ;;  %v12494_v57 = vpop.f32.mrf.mxu2 }
 0x3a3   : > { %v3009_v43 = vsel %vm754_vm1, 0.0, %v3008_v2  ;;  %v3005_v51 = vsel %vm754_vm1, 0.0, %v3004_v31  ;;  %7849 = vpow2.f32 %v5371_v16  ;;  %v3349_v4 = vsel %vm754_vm1, %v2952_v45, %v2941_v24 }
 0x3a4   : > { %v3408_v19 = vrot.slane %v3009_v43, 4  ;;  %v3397_v56 = vrot.slane %v3005_v51, 4  ;;  %v3403_v8 = vsel %vm754_vm1, %v3008_v2, %v2997_v48  ;;  %v3343_v23 = vrot.slane %v2949_v6, 4 }
 0x3a5   : > { %v3355_v21 = vsel %vm754_vm1, %v3354_v10, %v2951_v7  ;;  %v3392_v55 = vsel %vm754_vm1, %v3004_v31, %v2985_v15  ;;  %v3338_v24 = vsel %vm754_vm1, %v2948_v62, %v2929_v58  ;;  %v12476_v35 = vperm.slane %v3403_v8, %v13928_v53 }
 0x3a6   : > { %v3409_v27 = vsel %vm754_vm1, %v3408_v19, %v3007_v33  ;;  %v3398_v26 = vsel %vm754_vm1, %v3397_v56, %v3003_v30  ;;  %v12470_v50 = vperm.slane %v3355_v21, %v13928_v53  ;;  %v3344_v48 = vsel %vm754_vm1, %v3343_v23, %v2947_v29  ;;  %v12507_v56 = vld [vmem:[#allocation11 + $0x10] sm:$0xff]  ;;  %v4945_v21 = vpop.f32.mrf.mxu0 }
 0x3a7   : > { %v12467_v60 = vperm.slane %v3409_v27, %v13928_v53  ;;  %v3402_v46 = vperm.slane %v3398_v26, %v13928_v53  ;;  %v3348_v15 = vperm.slane %v3344_v48, %v13928_v53  ;;  %v3396_v59 = vperm.slane %v3392_v55, %v13928_v53  ;;  %v12519_v55 = vld [vmem:[#allocation11 + $0x18] sm:$0xff] }
 0x3a8   : > { %v3372_v45 = vrot.slane %v12470_v50, 4  ;;  %v12485_v5 = vperm.slane %v3349_v4, %v13928_v53  ;;  %v3342_v17 = vperm.slane %v3338_v24, %v13928_v53  ;;  %v12510_v30 = vadd.f32 %v12507_v56, %v4980_v47 }
 0x3a9   : > { %v3426_v0 = vrot.slane %v12467_v60, 4  ;;  %v12481_v20 = vpop.eup %7849  ;;  %v3414_v40 = vrot.slane %v3402_v46, 4  ;;  %v3360_v22 = vrot.slane %v3348_v15, 4  ;;  %v3416_v48 = vrot.slane %v3396_v59, 4 }
 0x3aa   : > { %7480 = vmatmul.msk.f32.gmra.mxu1 %vm5236_vm9, %v12481_v20  ;;  %v3373_v31 = vsel %vm754_vm1, %v3372_v45, %v12485_v5  ;;  %7697 = vrot.lane.b32.xlu0 %v12378_v34, %s8259_s1  ;;  %v12515_v8 = vpop.f32.mrf.mxu2  ;;  %v4983_v27 = vpop.f32.mrf.mxu1  ;;  %v5291_v23 = vsel %vm5236_vm9, %v12510_v30, -inf  ;;  %s8264_s1 = smov 8  }
 0x3ab   : > { %v3427_v58 = vsel %vm754_vm1, %v3426_v0, %v12476_v35  ;;  %v3415_v14 = vsel %vm754_vm1, %v3414_v40, %v3396_v59  ;;  %v3361_v16 = vsel %vm754_vm1, %v3360_v22, %v3342_v17  ;;  %v3379_v62 = vperm.slane %v3373_v31, %v13929_v61 }
 0x3ac   : > { %v3433_v2 = vperm.slane %v3427_v58, %v13929_v61  ;;  %v3421_v10 = vperm.slane %v3415_v14, %v13929_v61  ;;  %v3367_v43 = vperm.slane %v3361_v16, %v13929_v61  ;;  %v12522_v26 = vadd.f32 %v12519_v55, %v4983_v27 }
 0x3ad   : > { %v3384_v29 = vrot.slane %v3379_v62, 4  ;;  %v3362_v40 = vrot.slane %v3342_v17, 4  ;;  %v3417_v14 = vsel %vm754_vm1, %v3402_v46, %v3416_v48  ;;  %v3374_v17 = vrot.slane %v12485_v5, 4 }
 0x3ae   : > { %v3438_v7 = vrot.slane %v3433_v2, 4  ;;  %v3440_v51 = vrot.slane %v3421_v10, 4  ;;  %v3386_v19 = vrot.slane %v3367_v43, 4  ;;  %v5294_v24 = vsel %vm5236_vm9, %v12522_v26, -inf  ;;  %v12528_v58 = vpop.f32.mrf.mxu0 }
 0x3af   : > { %v3385_v6 = vsel %vm754_vm1, %v3384_v29, %v3367_v43  ;;  %v3363_v59 = vsel %vm754_vm1, %v3348_v15, %v3362_v40  ;;  %v3425_v16 = vperm.slane %v3417_v14, %v13929_v61  ;;  %v3375_v15 = vsel %vm754_vm1, %v12470_v50, %v3374_v17  ;;  %v7985_v40 = vld [vmem:[#allocation11] sm:$0xff] }
 0x3b0   : > { %v3439_v33 = vsel %vm754_vm1, %v3438_v7, %v3421_v10  ;;  %v3441_v34 = vsel %vm754_vm1, %v3433_v2, %v3440_v51  ;;  %v3387_v4 = vsel %vm754_vm1, %v3379_v62, %v3386_v19  ;;  %v3428_v10 = vrot.slane %v12476_v35, 4 }
 0x3b1   : > { %5905 = vmatpush.msra.mxu0 %v3439_v33  ;;  %5934 = vmatpush.msrb.mxu1 %v3441_v34  ;;  %v3371_v62 = vperm.slane %v3363_v59, %v13929_v61  ;;  %v3444_v43 = vrot.slane %v3425_v16, 4  ;;  %v3383_v19 = vperm.slane %v3375_v15, %v13929_v61  ;;  %v5429_v15 = vsel %vm5236_vm9, %v12411_v54, 0.0 }
 0x3b2   : > { %v5158_v22 = vpop.f32.mrf.mxu2  ;;  %v3429_v46 = vsel %vm754_vm1, %v12467_v60, %v3428_v10  ;;  %v5053_v10 = vpop.f32.mrf.mxu3 }
 0x3b3   : > { %5906 = vmatpush.msra.mxu0 %v3385_v6  ;;  %5935 = vmatpush.msrb.mxu1 %v3387_v4  ;;  %v12533_v31 = vadd.f32 %v12027_v25, %v5158_v22  ;;  %v3437_v5 = vperm.slane %v3429_v46, %v13929_v61  ;;  %v3390_v51 = vrot.slane %v3371_v62, 4  ;;  %v7984_v6 = vld [vmem:[#allocation11 + $0x28] sm:$0xff]  ;;  %v12561_v22 = vadd.f32 %v7985_v40, %v4945_v21 }
 0x3b4   : > { %v12556_v4 = vadd.f32 %v7984_v6, %v12494_v57  ;;  %v12581_v46 = vadd.f32 %v12372_v37, %v5053_v10 }
 0x3b5   : > { %v3445_v60 = vsel %vm754_vm1, %v3437_v5, %v3444_v43  ;;  %v3442_v50 = vrot.slane %v3437_v5, 4 }
 0x3b6   : > { %5292 = vmax.xlane.f32.xlu1 %v5291_v23  ;;  %v3388_v23 = vrot.slane %v3383_v19, 4  ;;  %v5306_v5 = vsel %vm5236_vm9, %v12581_v46, -inf }
 0x3b8   : > { %v3389_v21 = vsel %vm754_vm1, %v3388_v23, %v3371_v62 }
 0x3ba   : > { %v5190_v43 = vpop.f32.mrf.mxu3 }
 0x3bb   : > { %v5085_v35 = vpop.f32.mrf.mxu0 }
 0x3bc   : > { %v12526_v0 = vpop.xlane.xlu0 %5274  ;;  %v5257_v45 = vpop.xlane.xlu1 %5256 }
 0x3bd   : > { %v5339_v47 = vsub.f32 %v12071_v18, %v5257_v45  ;;  %v5324_v18 = vsel %vm5236_vm9, %v12533_v31, -inf  ;;  %v5345_v57 = vsub.f32 %v12068_v52, %v12526_v0 }
 0x3be   : > { %5295 = vmax.xlane.f32.xlu1 %v5294_v24 }
 0x3bf   : > { %v5377_v2 = vmul.f32 1.442695, %v5339_v47  ;;  %v7986_v47 = vld [vmem:[#allocation11 + $0x8] sm:$0xff]  ;;  %v5389_v0 = vmul.f32 1.442695, %v5345_v57 }
 0x3c1   : > { %7851 = vpow2.f32 %v5377_v2  ;;  %v3443_v2 = vsel %vm754_vm1, %v3442_v50, %v3425_v16  ;;  %v5285_v16 = vsel %vm5236_vm9, %v12561_v22, -inf }
 0x3c2   : > { %v5193_v50 = vpop.f32.mrf.mxu3 }
 0x3c4   : > { %v5251_v7 = vpop.xlane.xlu0 %5250  ;;  %v5278_v17 = vpop.xlane.xlu1 %5277 }
 0x3c5   : > { %v5337_v25 = vsub.f32 %v11995_v42, %v5251_v7  ;;  %v3391_v42 = vsel %vm754_vm1, %v3383_v19, %v3390_v51  ;;  %v5346_v62 = vsub.f32 %v12109_v3, %v5278_v17  ;;  %v12591_v51 = vadd.f32 %v7985_v40, %v5085_v35 }
 0x3c6   : > { %5325 = vmax.xlane.f32.xlu1 %v5324_v18  ;;  %v7987_v18 = vld [vmem:[#allocation11 + $0x20] sm:$0xff]  ;;  %v5438_v40 = vsel %vm5236_vm9, %v12481_v20, 0.0 }
 0x3c7   : > { %v5373_v29 = vmul.f32 1.442695, %v5337_v25  ;;  %v12548_v33 = vpop.eup %7851  ;;  %v12578_v52 = vadd.f32 %v7987_v18, %v12515_v8  ;;  %v5391_v8 = vmul.f32 1.442695, %v5346_v62  ;;  %v5309_v35 = vsel %vm5236_vm9, %v12591_v51, -inf }
 0x3c8   : > { %7483 = vmatmul.msk.f32.vlgmr.msra.gmra.mxu3 %vm5236_vm9, %v12548_v33  ;;  %v5435_v18 = vsel %vm5236_vm9, %v12425_v41, 0.0 }
 0x3c9   : > { %7853 = vpow2.f32 %v5373_v29  ;;  %5992 = vmatpush.msra.mxu3 %v3445_v60  ;;  %v5321_v25 = vsel %vm5236_vm9, %v12578_v52, -inf }
 0x3cb   : > { %5993 = vmatpush.msra.mxu3 %v3391_v42 }
 0x3cc   : > { %v5254_v34 = vpop.xlane.xlu0 %5253 }
 0x3cd   : > { %v5338_v27 = vsub.f32 %v12043_v38, %v5254_v34  ;;  %v5088_v45 = vpop.f32.mrf.mxu0  ;;  %v5300_v38 = vsel %vm5236_vm9, %v12556_v4, -inf  ;;  %v12597_v34 = vadd.f32 %v7986_v47, %v12528_v58  ;;  %v12608_v58 = vadd.f32 %v12372_v37, %v5193_v50 }
 0x3ce   : > { %v12563_v14 = vadd.f32 %v7986_v47, %v5088_v45  ;;  %5301 = vmax.xlane.f32.xlu2 %v5300_v38  ;;  %v5120_v47 = vpop.f32.mrf.mxu1 }
 0x3cf   : > { %v12559_v24 = vpop.eup %7853  ;;  %v5375_v48 = vmul.f32 1.442695, %v5338_v27  ;;  %v5288_v6 = vsel %vm5236_vm9, %v12597_v34, -inf  ;;  %v5330_v37 = vsel %vm5236_vm9, %v12608_v58, -inf  ;;  %v12629_v38 = vadd.f32 %v12507_v56, %v5120_v47 }
 0x3d0   : > { %7481 = vmatmul.msk.f32.vlgmr.msrb.gmra.mxu2 %vm5236_vm9, %v12559_v24  ;;  %v5312_v59 = vsel %vm5236_vm9, %v12563_v14, -inf  ;;  %v5441_v10 = vsel %vm5236_vm9, %v12559_v24, 0.0  ;;  %v3012_v47 = vrot.slane %v12362_v11, 4 }
 0x3d1   : > { %7855 = vpow2.f32 %v5375_v48  ;;  %5963 = vmatpush.msrb.mxu2 %v3443_v2  ;;  %5313 = vmax.xlane.f32.xlu1 %v5312_v59  ;;  %v5315_v59 = vsel %vm5236_vm9, %v12629_v38, -inf }
 0x3d2   : > { %7857 = vpow2.f32 %v5389_v0 }
 0x3d3   : > { %5964 = vmatpush.msrb.mxu2 %v3389_v21  ;;  %7859 = vpow2.f32 %v5391_v8 }
 0x3d4   : > { %5286 = vmax.xlane.f32.xlu0 %v5285_v16 }
 0x3d6   : > { %5322 = vmax.xlane.f32.xlu2 %v5321_v25  ;;  %v5123_v17 = vpop.f32.mrf.mxu1 }
 0x3d7   : > { %v7856_v7 = vpop.eup %7855  ;;  %v12639_v56 = vadd.f32 %v12519_v55, %v5123_v17 }
 0x3d8   : > { %7482 = vmatmul.msk.f32.gmra.mxu2 %vm5236_vm9, %v7856_v7  ;;  %v12594_v19 = vpop.eup %7857 }
 0x3d9   : > { %5430 = vadd.xlane.f32.xlu1 %v5429_v15  ;;  %v12610_v23 = vpop.eup %7859 }
 0x3dc   : > { %5307 = vmax.xlane.f32.xlu0 %v5306_v5 }
 0x3dd   : > { %v5263_v29 = vpop.xlane.xlu2 %5262 }
 0x3de   : > { %v5341_v3 = vsub.f32 %v12046_v12, %v5263_v29  ;;  %v5266_v60 = vpop.xlane.xlu1 %5265  ;;  %v5444_v12 = vsel %vm5236_vm9, %v7856_v7, 0.0  ;;  %5310 = vmax.xlane.f32.xlu2 %v5309_v35 }
 0x3df   : > { %v5342_v54 = vsub.f32 %v12261_v32, %v5266_v60  ;;  %v7988_v32 = vld [vmem:[#allocation11 + $0x30] sm:$0xff]  ;;  %v5432_v60 = vsel %vm5236_vm9, %v12443_v39, 0.0  ;;  %v5465_v39 = vsel %vm5236_vm9, %v12594_v19, 0.0 }
 0x3e0   : > { %v5381_v42 = vmul.f32 1.442695, %v5341_v3  ;;  %7489 = vmatmul.msk.f32.vlgmr.msra.gmra.mxu2 %vm5236_vm9, %v12594_v19  ;;  %v12614_v45 = vadd.f32 %v7988_v32, %v5190_v43 }
 0x3e1   : > { %5445 = vadd.xlane.f32.xlu1 %v5444_v12  ;;  %v5383_v27 = vmul.f32 1.442695, %v5342_v54 }
 0x3e2   : > { %7861 = vpow2.f32 %v5381_v42  ;;  %v5327_v2 = vsel %vm5236_vm9, %v12614_v45, -inf }
 0x3e3   : > { %7863 = vpow2.f32 %v5383_v27 }
 0x3e4   : > { %5289 = vmax.xlane.f32.xlu0 %v5288_v6 }
 0x3e6   : > { %5331 = vmax.xlane.f32.xlu2 %v5330_v37  ;;  %v5305_v35 = vpop.xlane.xlu1 %5304 }
 0x3e8   : > { %v12612_v48 = vpop.eup %7861  ;;  %7490 = vmatmul.msk.f32.gmra.mxu2 %vm5236_vm9, %v12610_v23 }
 0x3e9   : > { %7485 = vmatmul.msk.f32.vlgmr.msrb.gmra.mxu0 %vm5236_vm9, %v12612_v48  ;;  %5439 = vadd.xlane.f32.xlu1 %v5438_v40  ;;  %v12626_v57 = vpop.eup %7863 }
 0x3ec   : > { %5328 = vmax.xlane.f32.xlu0 %v5327_v2 }
 0x3ee   : > { %5442 = vadd.xlane.f32.xlu2 %v5441_v10  ;;  %v3068_v10 = vrot.slane %v12365_v28, 4 }
 0x3f1   : > { %7486 = vmatmul.msk.f32.gmra.mxu0 %vm5236_vm9, %v12626_v57  ;;  %v5269_v20 = vpop.xlane.xlu0 %5268 }
 0x3f2   : > { %v5343_v21 = vsub.f32 %v12348_v44, %v5269_v20  ;;  %v5318_v44 = vsel %vm5236_vm9, %v12639_v56, -inf }
 0x3f4   : > { %v5385_v16 = vmul.f32 1.442695, %v5343_v21  ;;  %5316 = vmax.xlane.f32.xlu0 %v5315_v59  ;;  %v5272_v7 = vpop.xlane.xlu2 %5271 }
 0x3f5   : > { %v5344_v43 = vsub.f32 %v12368_v1, %v5272_v7 }
 0x3f6   : > { %7865 = vpow2.f32 %v5385_v16  ;;  %5436 = vadd.xlane.f32.xlu2 %v5435_v18 }
 0x3f7   : > { %v5387_v55 = vmul.f32 1.442695, %v5344_v43 }
 0x3f9   : > { %v5299_v0 = vpop.xlane.xlu0 %5298 }
 0x3fa   : > { %v5353_v24 = vsub.f32 %v12356_v49, %v5299_v0  ;;  %v5447_v49 = vsel %vm5236_vm9, %v12548_v33, 0.0 }
 0x3fc   : > { %v7866_v62 = vpop.eup %7865  ;;  %v5405_v25 = vmul.f32 1.442695, %v5353_v24  ;;  %5319 = vmax.xlane.f32.xlu0 %v5318_v44  ;;  %v5284_v8 = vpop.xlane.xlu2 %5283 }
 0x3fd   : > { %7487 = vmatmul.msk.f32.vlgmr.msra.gmra.mxu1 %vm5236_vm9, %v7866_v62  ;;  %v5348_v12 = vsub.f32 %v12389_v36, %v5284_v8  ;;  %v5453_v36 = vsel %vm5236_vm9, %v12612_v48, 0.0  ;;  %v5459_v44 = vsel %vm5236_vm9, %v7866_v62, 0.0 }
 0x3fe   : > { %7867 = vpow2.f32 %v5405_v25  ;;  %v7708_v2 = vpop.permute.xlu1 %7707 }
 0x3ff   : > { %7869 = vpow2.f32 %v5387_v55  ;;  %v5395_v32 = vmul.f32 1.442695, %v5348_v12  ;;  %v7710_v16 = vunpack.i.h.bf16 %v7708_v2  ;;  %v7709_v18 = vunpack.i.l.bf16 %v7708_v2 }
 0x401   : > { %v5260_v15 = vpop.xlane.xlu0 %5259  ;;  %v3078_v43 = vrot.slane %v7709_v18, 4 }
 0x402   : > { %v5340_v41 = vsub.f32 %v12382_v13, %v5260_v15 }
 0x404   : > { %v12651_v29 = vpop.eup %7867  ;;  %v5379_v5 = vmul.f32 1.442695, %v5340_v41  ;;  %5448 = vadd.xlane.f32.xlu0 %v5447_v49  ;;  %v7703_v54 = vpop.permute.xlu2 %7702  ;;  %v5456_v49 = vsel %vm5236_vm9, %v12626_v57, 0.0 }
 0x405   : > { %7497 = vmatmul.msk.f32.vlgmr.msrb.gmra.mxu2 %vm5236_vm9, %v12651_v29  ;;  %v12655_v1 = vpop.eup %7869  ;;  %v7705_v6 = vunpack.i.h.bf16 %v7703_v54  ;;  %v7704_v27 = vunpack.i.l.bf16 %v7703_v54 }
 0x406   : > { %7871 = vpow2.f32 %v5379_v5  ;;  %7488 = vmatmul.msk.f32.gmra.mxu1 %vm5236_vm9, %v12655_v1 }
 0x407   : > { %v3010_v37 = vrot.slane %v7705_v6, 4  ;;  %v3066_v20 = vrot.slane %v7704_v27, 4  ;;  %v3013_v59 = vsel %vm754_vm1, %v7705_v6, %v3012_v47  ;;  %v3069_v17 = vsel %vm754_vm1, %v7704_v27, %v3068_v10 }
 0x408   : > { %v3021_v24 = vperm.slane %v3013_v59, %v13928_v53  ;;  %v3077_v7 = vperm.slane %v3069_v17, %v13928_v53  ;;  %v5462_v27 = vsel %vm5236_vm9, %v12655_v1, 0.0 }
 0x409   : > { %v5281_v3 = vpop.xlane.xlu0 %5280  ;;  %v3011_v19 = vsel %vm754_vm1, %v3010_v37, %v12362_v11  ;;  %v3067_v0 = vsel %vm754_vm1, %v3066_v20, %v12365_v28  ;;  %v3022_v11 = vrot.slane %v7710_v16, 4  ;;  %v5468_v28 = vsel %vm5236_vm9, %v12610_v23, 0.0 }
 0x40a   : > { %v5347_v13 = vsub.f32 %v12406_v9, %v5281_v3  ;;  %v5355_v9 = vsub.f32 %v12283_v63, %v5305_v35  ;;  %v3017_v48 = vperm.slane %v3011_v19, %v13928_v53  ;;  %v3073_v55 = vperm.slane %v3067_v0, %v13928_v53 }
 0x40b   : > { %v3048_v3 = vrot.slane %v3021_v24, 4  ;;  %v3104_v62 = vrot.slane %v3077_v7, 4 }
 0x40c   : > { %v7872_v33 = vpop.eup %7871  ;;  %v5393_v42 = vmul.f32 1.442695, %v5347_v13  ;;  %5433 = vadd.xlane.f32.xlu0 %v5432_v60  ;;  %v5409_v21 = vmul.f32 1.442695, %v5355_v9  ;;  %v3036_v5 = vrot.slane %v3017_v48, 4  ;;  %v3092_v35 = vrot.slane %v3073_v55, 4 }
 0x40d   : > { %7484 = vmatmul.msk.f32.gmra.mxu3 %vm5236_vm9, %v7872_v33  ;;  %v5450_v50 = vsel %vm5236_vm9, %v7872_v33, 0.0  ;;  %v5489_v9 = vsel %vm5236_vm9, %v12651_v29, 0.0 }
 0x40e   : > { %7873 = vpow2.f32 %v5393_v42  ;;  %5451 = vadd.xlane.f32.xlu2 %v5450_v50 }
 0x40f   : > { %7875 = vpow2.f32 %v5395_v32 }
 0x410   : > { %7877 = vpow2.f32 %v5409_v21 }
 0x414   : > { %v7874_v40 = vpop.eup %7873  ;;  %5466 = vadd.xlane.f32.xlu0 %v5465_v39 }
 0x415   : > { %7491 = vmatmul.msk.f32.vlgmr.msrb.gmra.mxu3 %vm5236_vm9, %v7874_v40  ;;  %v5471_v63 = vsel %vm5236_vm9, %v7874_v40, 0.0  ;;  %v7876_v25 = vpop.eup %7875 }
 0x416   : > { %5454 = vadd.xlane.f32.xlu2 %v5453_v36  ;;  %5472 = vadd.xlane.f32.xlu1 %v5471_v63  ;;  %v7878_v54 = vpop.eup %7877  ;;  %v5474_v12 = vsel %vm5236_vm9, %v7876_v25, 0.0 }
 0x417   : > { %v5495_v20 = vsel %vm5236_vm9, %v7878_v54, 0.0 }
 0x41c   : > { %v7698_v15 = vpop.permute.xlu0 %7697  ;;  %5460 = vadd.xlane.f32.xlu0 %v5459_v44 }
 0x41d   : > { %v7700_v41 = vunpack.i.h.bf16 %v7698_v15  ;;  %v7699_v8 = vunpack.i.l.bf16 %v7698_v15  ;;  %7492 = vmatmul.msk.f32.gmra.mxu3 %vm5236_vm9, %v7876_v25 }
 0x41e   : > { %5469 = vadd.xlane.f32.xlu2 %v5468_v28  ;;  %5457 = vadd.xlane.f32.xlu1 %v5456_v49 }
 0x41f   : > { %v3024_v13 = vrot.slane %v7700_v41, 4  ;;  %v3023_v60 = vsel %vm754_vm1, %v3022_v11, %v7700_v41  ;;  %v3079_v33 = vsel %vm754_vm1, %v3078_v43, %v7699_v8  ;;  %v3080_v42 = vrot.slane %v7699_v8, 4 }
 0x420   : > { %v3029_v50 = vperm.slane %v3023_v60, %v13928_v53  ;;  %v3085_v23 = vperm.slane %v3079_v33, %v13928_v53 }
 0x421   : > { %v3025_v57 = vsel %vm754_vm1, %v7710_v16, %v3024_v13  ;;  %v3081_v6 = vsel %vm754_vm1, %v7709_v18, %v3080_v42 }
 0x422   : > { %v3033_v32 = vperm.slane %v3025_v57, %v13928_v53  ;;  %v3034_v37 = vrot.slane %v3029_v50, 4  ;;  %v3037_v39 = vsel %vm754_vm1, %v3029_v50, %v3036_v5  ;;  %v3089_v40 = vperm.slane %v3081_v6, %v13928_v53 }
 0x423   : > { %v3045_v47 = vperm.slane %v3037_v39, %v13929_v61  ;;  %v3090_v2 = vrot.slane %v3085_v23, 4  ;;  %v3093_v10 = vsel %vm754_vm1, %v3085_v23, %v3092_v35 }
 0x424   : > { %v3035_v36 = vsel %vm754_vm1, %v3034_v37, %v3017_v48  ;;  %v3046_v1 = vrot.slane %v3033_v32, 4  ;;  %v3049_v63 = vsel %vm754_vm1, %v3033_v32, %v3048_v3  ;;  %v3101_v29 = vperm.slane %v3093_v10, %v13929_v61  ;;  %5475 = vadd.xlane.f32.xlu0 %v5474_v12 }
 0x425   : > { %v3041_v21 = vperm.slane %v3035_v36, %v13929_v61  ;;  %v3057_v19 = vperm.slane %v3049_v63, %v13929_v61  ;;  %v3060_v59 = vrot.slane %v3045_v47, 4  ;;  %v3091_v17 = vsel %vm754_vm1, %v3090_v2, %v3073_v55  ;;  %7499 = vmatmul.msk.f32.vlgmr.msra.gmra.mxu3 %vm5236_vm9, %v7878_v54 }
 0x426   : > { %v3047_v16 = vsel %vm754_vm1, %v3046_v1, %v3021_v24  ;;  %v3097_v18 = vperm.slane %v3091_v17, %v13929_v61  ;;  %v3102_v0 = vrot.slane %v3089_v40, 4  ;;  %v3105_v48 = vsel %vm754_vm1, %v3089_v40, %v3104_v62  ;;  %5463 = vadd.xlane.f32.xlu2 %v5462_v27  ;;  %5490 = vadd.xlane.f32.xlu1 %v5489_v9 }
 0x427   : > { %v3053_v25 = vperm.slane %v3047_v16, %v13929_v61  ;;  %v3058_v11 = vrot.slane %v3041_v21, 4  ;;  %v3061_v43 = vsel %vm754_vm1, 0.0, %v3060_v59  ;;  %v3064_v15 = vrot.slane %v3057_v19, 4 }
 0x428   : > { %v3103_v41 = vsel %vm754_vm1, %v3102_v0, %v3077_v7  ;;  %v3113_v24 = vperm.slane %v3105_v48, %v13929_v61  ;;  %v3114_v8 = vrot.slane %v3097_v18, 4  ;;  %v3116_v5 = vrot.slane %v3101_v29, 4 }
 0x429   : > { %v5293_v44 = vpop.xlane.xlu1 %5292  ;;  %v3065_v28 = vsel %vm754_vm1, 0.0, %v3064_v15  ;;  %v3109_v49 = vperm.slane %v3103_v41, %v13929_v61  ;;  %v3451_v3 = vrot.slane %v3061_v43, 4  ;;  %v3059_v33 = vsel %vm754_vm1, 0.0, %v3058_v11 }
 0x42a   : > { %v5351_v55 = vsub.f32 %v12510_v30, %v5293_v44  ;;  %v3120_v13 = vrot.slane %v3113_v24, 4  ;;  %v3115_v60 = vsel %vm754_vm1, 0.0, %v3114_v8  ;;  %v3117_v42 = vsel %vm754_vm1, 0.0, %v3116_v5 }
 0x42b   : > { %v3500_v30 = vsel %vm754_vm1, %v3116_v5, %v3097_v18  ;;  %v3118_v7 = vrot.slane %v3109_v49, 4  ;;  %v3062_v54 = vrot.slane %v3053_v25, 4  ;;  %v3505_v50 = vrot.slane %v3117_v42, 4 }
 0x42c   : > { %v5401_v62 = vmul.f32 1.442695, %v5351_v55  ;;  %v3121_v35 = vsel %vm754_vm1, 0.0, %v3120_v13  ;;  %v3504_v23 = vperm.slane %v3500_v30, %v13928_v53  ;;  %v3511_v6 = vsel %vm754_vm1, %v3120_v13, %v3109_v49 }
 0x42d   : > { %v3516_v12 = vrot.slane %v3121_v35, 4  ;;  %v3119_v57 = vsel %vm754_vm1, 0.0, %v3118_v7  ;;  %v3063_v27 = vsel %vm754_vm1, 0.0, %v3062_v54  ;;  %v3506_v9 = vsel %vm754_vm1, %v3505_v50, %v3115_v60 }
 0x42e   : > { %7879 = vpow2.f32 %v5401_v62  ;;  %5496 = vadd.xlane.f32.xlu2 %v5495_v20  ;;  %v3515_v32 = vperm.slane %v3511_v6, %v13928_v53  ;;  %v3524_v37 = vrot.slane %v3504_v23, 4  ;;  %v3446_v39 = vsel %vm754_vm1, %v3060_v59, %v3041_v21 }
 0x42f   : > { %v3510_v47 = vperm.slane %v3506_v9, %v13928_v53  ;;  %v3517_v2 = vsel %vm754_vm1, %v3516_v12, %v3119_v57  ;;  %v3450_v10 = vperm.slane %v3446_v39, %v13928_v53  ;;  %v3452_v36 = vsel %vm754_vm1, %v3451_v3, %v3059_v33 }
 0x430   : > { %v3521_v20 = vperm.slane %v3517_v2, %v13928_v53  ;;  %v3536_v63 = vrot.slane %v3515_v32, 4  ;;  %v3456_v29 = vperm.slane %v3452_v36, %v13928_v53  ;;  %v3457_v21 = vsel %vm754_vm1, %v3064_v15, %v3053_v25 }
 0x431   : > { %v5296_v40 = vpop.xlane.xlu1 %5295  ;;  %v3525_v19 = vsel %vm754_vm1, %v3510_v47, %v3524_v37  ;;  %v3522_v17 = vrot.slane %v3510_v47, 4  ;;  %v3462_v59 = vrot.slane %v3065_v28, 4  ;;  %v3461_v55 = vperm.slane %v3457_v21, %v13928_v53 }
 0x432   : > { %v5352_v1 = vsub.f32 %v12522_v26, %v5296_v40  ;;  %v3533_v0 = vperm.slane %v3525_v19, %v13929_v61  ;;  %v3537_v48 = vsel %vm754_vm1, %v3521_v20, %v3536_v63  ;;  %v3534_v44 = vrot.slane %v3521_v20, 4 }
 0x433   : > { %v3545_v11 = vperm.slane %v3537_v48, %v13929_v61  ;;  %v3523_v43 = vsel %vm754_vm1, %v3522_v17, %v3504_v23  ;;  %v3463_v28 = vsel %vm754_vm1, %v3462_v59, %v3063_v27  ;;  %v3470_v49 = vrot.slane %v3450_v10, 4 }
 0x434   : > { %v7880_v16 = vpop.eup %7879  ;;  %v5403_v18 = vmul.f32 1.442695, %v5352_v1  ;;  %v3552_v25 = vrot.slane %v3533_v0, 4  ;;  %v3529_v15 = vperm.slane %v3523_v43, %v13929_v61  ;;  %v3535_v41 = vsel %vm754_vm1, %v3534_v44, %v3515_v32 }
 0x435   : > { %7495 = vmatmul.msk.f32.vlgmr.msrb.gmra.mxu1 %vm5236_vm9, %v7880_v16  ;;  %v5483_v26 = vsel %vm5236_vm9, %v7880_v16, 0.0  ;;  %v3541_v24 = vperm.slane %v3535_v41, %v13929_v61  ;;  %v3550_v8 = vrot.slane %v3545_v11, 4  ;;  %v3467_v62 = vperm.slane %v3463_v28, %v13928_v53 }
 0x436   : > { %7881 = vpow2.f32 %v5403_v18  ;;  %5484 = vadd.xlane.f32.xlu1 %v5483_v26  ;;  %v3553_v5 = vsel %vm754_vm1, %v3545_v11, %v3552_v25  ;;  %v3548_v3 = vrot.slane %v3529_v15, 4  ;;  %v3482_v13 = vrot.slane %v3461_v55, 4 }
 0x437   : > { %6108 = vmatpush.msrb.mxu3 %v3553_v5  ;;  %v3551_v60 = vsel %vm754_vm1, %v3550_v8, %v3533_v0  ;;  %v3471_v33 = vsel %vm754_vm1, %v3456_v29, %v3470_v49  ;;  %v3546_v42 = vrot.slane %v3541_v24, 4  ;;  %v3468_v30 = vrot.slane %v3456_v29, 4 }
 0x438   : > { %v3549_v7 = vsel %vm754_vm1, %v3541_v24, %v3548_v3  ;;  %6079 = vmatpush.msra.mxu2 %v3551_v60  ;;  %v3479_v54 = vperm.slane %v3471_v33, %v13929_v61  ;;  %v3483_v35 = vsel %vm754_vm1, %v3467_v62, %v3482_v13  ;;  %v3480_v57 = vrot.slane %v3467_v62, 4 }
 0x439   : > { %6050 = vmatpush.msra.mxu1 %v3549_v7  ;;  %v3491_v50 = vperm.slane %v3483_v35, %v13929_v61  ;;  %v3547_v23 = vsel %vm754_vm1, %v3546_v42, %v3529_v15  ;;  %v3469_v12 = vsel %vm754_vm1, %v3468_v30, %v3450_v10  ;;  %v5326_v59 = vpop.xlane.xlu1 %5325 }
 0x43a   : > { %v3498_v27 = vrot.slane %v3479_v54, 4  ;;  %6021 = vmatpush.msrb.mxu0 %v3547_v23  ;;  %v3475_v9 = vperm.slane %v3469_v12, %v13929_v61  ;;  %v3481_v32 = vsel %vm754_vm1, %v3480_v57, %v3461_v55 }
 0x43b   : > { %v3496_v37 = vrot.slane %v3491_v50, 4  ;;  %v3487_v40 = vperm.slane %v3481_v32, %v13929_v61 }
 0x43c   : > { %v12766_v6 = vpop.eup %7881  ;;  %v3499_v39 = vsel %vm754_vm1, %v3491_v50, %v3498_v27  ;;  %v3494_v47 = vrot.slane %v3475_v9, 4 }
 0x43d   : > { %7496 = vmatmul.msk.f32.gmra.mxu1 %vm5236_vm9, %v12766_v6  ;;  %6109 = vmatpush.msrb.mxu3 %v3499_v39  ;;  %v3497_v2 = vsel %vm754_vm1, %v3496_v37, %v3479_v54  ;;  %v3492_v36 = vrot.slane %v3487_v40, 4  ;;  %v5486_v35 = vsel %vm5236_vm9, %v12766_v6, 0.0 }
 0x43e   : > { %v3495_v10 = vsel %vm754_vm1, %v3487_v40, %v3494_v47  ;;  %6080 = vmatpush.msra.mxu2 %v3497_v2 }
 0x43f   : > { %6051 = vmatpush.msra.mxu1 %v3495_v10  ;;  %v3493_v1 = vsel %vm754_vm1, %v3492_v36, %v3475_v9 }
 0x440   : > { %6022 = vmatpush.msrb.mxu0 %v3493_v1 }
 0x441   : > { %v5302_v20 = vpop.xlane.xlu2 %5301 }
 0x442   : > { %v5354_v63 = vsub.f32 %v12556_v4, %v5302_v20  ;;  %v5362_v4 = vsub.f32 %v12533_v31, %v5326_v59 }
 0x444   : > { %v5407_v29 = vmul.f32 1.442695, %v5354_v63  ;;  %v5314_v55 = vpop.xlane.xlu1 %5313 }
 0x445   : > { %v5358_v33 = vsub.f32 %v12563_v14, %v5314_v55 }
 0x446   : > { %7883 = vpow2.f32 %v5407_v29 }
 0x447   : > { %v5287_v19 = vpop.xlane.xlu0 %5286  ;;  %v5415_v50 = vmul.f32 1.442695, %v5358_v33 }
 0x448   : > { %v5349_v17 = vsub.f32 %v12561_v22, %v5287_v19 }
 0x449   : > { %v5323_v16 = vpop.xlane.xlu2 %5322 }
 0x44a   : > { %v5397_v21 = vmul.f32 1.442695, %v5349_v17  ;;  %v5361_v18 = vsub.f32 %v12578_v52, %v5323_v16  ;;  %v5423_v52 = vmul.f32 1.442695, %v5362_v4 }
 0x44c   : > { %7885 = vpow2.f32 %v5397_v21  ;;  %v7884_v0 = vpop.eup %7883  ;;  %v5421_v44 = vmul.f32 1.442695, %v5361_v18  ;;  %v5431_v3 = vpop.xlane.xlu1 %5430 }
 0x44d   : > { %7498 = vmatmul.msk.f32.gmra.mxu2 %vm5236_vm9, %v7884_v0  ;;  %v5492_v49 = vsel %vm5236_vm9, %v7884_v0, 0.0 }
 0x44e   : > { %7887 = vpow2.f32 %v5421_v44 }
 0x44f   : > { %v5308_v48 = vpop.xlane.xlu0 %5307 }
 0x450   : > { %v5356_v26 = vsub.f32 %v12581_v46, %v5308_v48 }
 0x451   : > { %v5311_v25 = vpop.xlane.xlu2 %5310 }
 0x452   : > { %v7886_v11 = vpop.eup %7885  ;;  %v5411_v43 = vmul.f32 1.442695, %v5356_v26  ;;  %v5357_v15 = vsub.f32 %v12591_v51, %v5311_v25 }
 0x453   : > { %7493 = vmatmul.msk.f32.vlgmr.msra.gmra.mxu0 %vm5236_vm9, %v7886_v11  ;;  %v5477_v22 = vsel %vm5236_vm9, %v7886_v11, 0.0 }
 0x454   : > { %7889 = vpow2.f32 %v5411_v43  ;;  %5478 = vadd.xlane.f32.xlu0 %v5477_v22  ;;  %v7888_v24 = vpop.eup %7887  ;;  %v5413_v8 = vmul.f32 1.442695, %v5357_v15  ;;  %v5446_v12 = vpop.xlane.xlu1 %5445 }
 0x455   : > { %7891 = vpow2.f32 %v5423_v52  ;;  %7505 = vmatmul.msk.f32.vlgmr.msra.gmra.mxu2 %vm5236_vm9, %v7888_v24  ;;  %v5513_v6 = vsel %vm5236_vm9, %v7888_v24, 0.0  ;;  %v5734_v52 = vpop.f32.mrf.mxu2  ;;  %v5705_v24 = vpop.f32.mrf.mxu1 }
 0x456   : > { %7893 = vpow2.f32 %v5413_v8 }
 0x457   : > { %v5290_v41 = vpop.xlane.xlu0 %5289 }
 0x458   : > { %v5350_v46 = vsub.f32 %v12597_v34, %v5290_v41  ;;  %v5676_v41 = vpop.f32.mrf.mxu0 }
 0x459   : > { %v5332_v51 = vpop.xlane.xlu2 %5331 }
 0x45a   : > { %v7890_v31 = vpop.eup %7889  ;;  %v5399_v28 = vmul.f32 1.442695, %v5350_v46 }
 0x45b   : > { %7500 = vmatmul.msk.f32.gmra.mxu3 %vm5236_vm9, %v7890_v31  ;;  %v5498_v5 = vsel %vm5236_vm9, %v7890_v31, 0.0  ;;  %v7892_v62 = vpop.eup %7891 }
 0x45c   : > { %7895 = vpow2.f32 %v5399_v28  ;;  %5493 = vadd.xlane.f32.xlu0 %v5492_v49  ;;  %5499 = vadd.xlane.f32.xlu1 %v5498_v5  ;;  %v7894_v34 = vpop.eup %7893  ;;  %v5516_v37 = vsel %vm5236_vm9, %v7892_v62, 0.0  ;;  %v5440_v1 = vpop.xlane.xlu1 %5439 }
 0x45d   : > { %7506 = vmatmul.msk.f32.gmra.mxu2 %vm5236_vm9, %v7892_v62  ;;  %v5501_v54 = vsel %vm5236_vm9, %v7894_v34, 0.0 }
 0x45f   : > { %v5329_v13 = vpop.xlane.xlu0 %5328 }
 0x460   : > { %v5363_v60 = vsub.f32 %v12614_v45, %v5329_v13  ;;  %v5364_v45 = vsub.f32 %v12608_v58, %v5332_v51 }
 0x461   : > { %v5443_v14 = vpop.xlane.xlu2 %5442 }
 0x462   : > { %v7896_v42 = vpop.eup %7895  ;;  %v5425_v30 = vmul.f32 1.442695, %v5363_v60  ;;  %v5427_v27 = vmul.f32 1.442695, %v5364_v45 }
 0x463   : > { %7494 = vmatmul.msk.f32.gmra.mxu0 %vm5236_vm9, %v7896_v42  ;;  %v5480_v7 = vsel %vm5236_vm9, %v7896_v42, 0.0  ;;  %v5763_v42 = vpop.f32.mrf.mxu3 }
 0x464   : > { %7897 = vpow2.f32 %v5425_v30  ;;  %5481 = vadd.xlane.f32.xlu2 %v5480_v7  ;;  %5502 = vadd.xlane.f32.xlu1 %v5501_v54 }
 0x465   : > { %5487 = vadd.xlane.f32.xlu0 %v5486_v35  ;;  %7899 = vpow2.f32 %v5415_v50 }
 0x466   : > { %7901 = vrcp.f32 %v5431_v3 }
 0x467   : > { %v5317_v23 = vpop.xlane.xlu0 %5316  ;;  %7903 = vrcp.f32 %v5443_v14 }
 0x468   : > { %v5359_v57 = vsub.f32 %v12629_v38, %v5317_v23  ;;  %v5737_v23 = vpop.f32.mrf.mxu2 }
 0x469   : > { %v5437_v38 = vpop.xlane.xlu2 %5436 }
 0x46a   : > { %v7898_v9 = vpop.eup %7897  ;;  %v5417_v32 = vmul.f32 1.442695, %v5359_v57 }
 0x46b   : > { %7501 = vmatmul.msk.f32.vlgmr.msrb.gmra.mxu0 %vm5236_vm9, %v7894_v34  ;;  %7507 = vmatmul.msk.f32.vlgmr.msrb.gmra.mxu3 %vm5236_vm9, %v7898_v9  ;;  %v5519_v58 = vsel %vm5236_vm9, %v7898_v9, 0.0  ;;  %v7900_v39 = vpop.eup %7899  ;;  %v5708_v9 = vpop.f32.mrf.mxu1 }
 0x46c   : > { %7905 = vpow2.f32 %v5417_v32  ;;  %5514 = vadd.xlane.f32.xlu2 %v5513_v6  ;;  %5517 = vadd.xlane.f32.xlu1 %v5516_v37  ;;  %v7902_v47 = vpop.eup %7901 }
 0x46d   : > { %7907 = vpow2.f32 %v5427_v27  ;;  %5520 = vadd.xlane.f32.xlu0 %v5519_v58  ;;  %v7904_v10 = vpop.eup %7903  ;;  %v5557_v29 = vmul.f32 %v7902_v47, %v5431_v3 }
 0x46e   : > { %7909 = vrcp.f32 %v5437_v38  ;;  %v5561_v21 = vmul.f32 %v7904_v10, %v5443_v14 }
 0x46f   : > { %v5320_v40 = vpop.xlane.xlu0 %5319  ;;  %7911 = vrcp.f32 %v5446_v12  ;;  %v5589_v16 = vsub.f32 2.0, %v5557_v29 }
 0x470   : > { %v5360_v2 = vsub.f32 %v12639_v56, %v5320_v40  ;;  %v5504_v56 = vsel %vm5236_vm9, %v7900_v39, 0.0  ;;  %v5593_v48 = vsub.f32 2.0, %v5561_v21 }
 0x471   : > { %v5621_v11 = vmul.f32 %v7902_v47, %v5589_v16 }
 0x472   : > { %v7906_v36 = vpop.eup %7905  ;;  %v5419_v20 = vmul.f32 1.442695, %v5360_v2  ;;  %v5625_v25 = vmul.f32 %v7904_v10, %v5593_v48 }
 0x473   : > { %v7908_v63 = vpop.eup %7907  ;;  %7502 = vmatmul.msk.f32.gmra.mxu0 %vm5236_vm9, %v7900_v39  ;;  %7503 = vmatmul.msk.f32.vlgmr.msra.gmra.mxu1 %vm5236_vm9, %v7906_v36  ;;  %v5507_v19 = vsel %vm5236_vm9, %v7906_v36, 0.0  ;;  %v6117_v31 = vmul.f32 %v5676_v41, %v5621_v11 }
 0x474   : > { %v7910_v17 = vpop.eup %7909  ;;  %7913 = vpow2.f32 %v5419_v20  ;;  %7508 = vmatmul.msk.f32.gmra.mxu3 %vm5236_vm9, %v7908_v63  ;;  %5508 = vadd.xlane.f32.xlu2 %v5507_v19  ;;  %v5522_v43 = vsel %vm5236_vm9, %v7908_v63, 0.0  ;;  %v6121_v51 = vmul.f32 %v5734_v52, %v5625_v25  ;;  %v5679_v63 = vpop.f32.mrf.mxu0 }
 0x475   : > { %7915 = vrcp.f32 %v5440_v1  ;;  %5505 = vadd.xlane.f32.xlu0 %v5504_v56  ;;  %v5559_v59 = vmul.f32 %v7910_v17, %v5437_v38  ;;  %v7912_v0 = vpop.eup %7911  ;;  %v6151_v60 = vrot.slane %v6117_v31, 4 }
 0x476   : > { %v5562_v55 = vmul.f32 %v7912_v0, %v5446_v12  ;;  %v6149_v7 = vrot.slane %v6121_v51, 4 }
 0x477   : > { %v5449_v18 = vpop.xlane.xlu0 %5448  ;;  %v5591_v26 = vsub.f32 2.0, %v5559_v59  ;;  %v6152_v54 = vsel %vm754_vm1, %v6121_v51, %v6151_v60 }
 0x478   : > { %7917 = vrcp.f32 %v5449_v18  ;;  %v5594_v5 = vsub.f32 2.0, %v5562_v55  ;;  %v12817_v6 = vperm.slane %v6152_v54, %v13928_v53  ;;  %v6150_v37 = vsel %vm754_vm1, %v6149_v7, %v6117_v31 }
 0x479   : > { %v5623_v46 = vmul.f32 %v7910_v17, %v5591_v26  ;;  %v12823_v29 = vperm.slane %v6150_v37, %v13928_v53 }
 0x47a   : > { %v7914_v44 = vpop.eup %7913  ;;  %v5626_v30 = vmul.f32 %v7912_v0, %v5594_v5  ;;  %v6187_v17 = vrot.slane %v12817_v6, 4 }
 0x47b   : > { %v7916_v4 = vpop.eup %7915  ;;  %7504 = vmatmul.msk.f32.gmra.mxu1 %vm5236_vm9, %v7914_v44  ;;  %v5510_v22 = vsel %vm5236_vm9, %v7914_v44, 0.0  ;;  %v6119_v34 = vmul.f32 %v5705_v24, %v5623_v46  ;;  %v6175_v11 = vrot.slane %v12823_v29, 4 }
 0x47c   : > { %5523 = vadd.xlane.f32.xlu2 %v5522_v43  ;;  %5511 = vadd.xlane.f32.xlu1 %v5510_v22  ;;  %v5560_v8 = vmul.f32 %v7916_v4, %v5440_v1  ;;  %v6122_v32 = vmul.f32 %v5737_v23, %v5626_v30 }
 0x47d   : > { %v6163_v14 = vrot.slane %v6119_v34, 4 }
 0x47e   : > { %v7918_v15 = vpop.eup %7917  ;;  %v5592_v13 = vsub.f32 2.0, %v5560_v8  ;;  %v6205_v19 = vrot.slane %v6122_v32, 4 }
 0x47f   : > { %v5563_v28 = vmul.f32 %v7918_v15, %v5449_v18  ;;  %v5434_v49 = vpop.xlane.xlu0 %5433 }
 0x480   : > { %7919 = vrcp.f32 %v5434_v49  ;;  %v5624_v45 = vmul.f32 %v7916_v4, %v5592_v13 }
 0x481   : > { %v5595_v3 = vsub.f32 2.0, %v5563_v28  ;;  %v5452_v62 = vpop.xlane.xlu2 %5451 }
 0x482   : > { %7921 = vrcp.f32 %v5452_v62  ;;  %v6120_v10 = vmul.f32 %v5708_v9, %v5624_v45  ;;  %v5792_v45 = vpop.f32.mrf.mxu0 }
 0x483   : > { %v5627_v33 = vmul.f32 %v7918_v15, %v5595_v3 }
 0x484   : > { %v6219_v16 = vrot.slane %v6120_v10, 4 }
 0x485   : > { %v6123_v35 = vmul.f32 %v5763_v42, %v5627_v33  ;;  %v5850_v42 = vpop.f32.mrf.mxu2 }
 0x486   : > { %v7920_v50 = vpop.eup %7919 }
 0x487   : > { %v5558_v12 = vmul.f32 %v7920_v50, %v5434_v49  ;;  %v5467_v57 = vpop.xlane.xlu0 %5466  ;;  %v6164_v58 = vsel %vm754_vm1, %v6123_v35, %v6163_v14  ;;  %v6161_v38 = vrot.slane %v6123_v35, 4 }
 0x488   : > { %v7922_v27 = vpop.eup %7921  ;;  %7923 = vrcp.f32 %v5467_v57  ;;  %v6172_v36 = vperm.slane %v6164_v58, %v13928_v53 }
 0x489   : > { %v5590_v39 = vsub.f32 2.0, %v5558_v12  ;;  %v5564_v40 = vmul.f32 %v7922_v27, %v5452_v62  ;;  %v5455_v47 = vpop.xlane.xlu2 %5454  ;;  %v5473_v2 = vpop.xlane.xlu1 %5472  ;;  %v6162_v56 = vsel %vm754_vm1, %v6161_v38, %v6119_v34 }
 0x48a   : > { %7925 = vrcp.f32 %v5455_v47  ;;  %v6188_v18 = vsel %vm754_vm1, %v6172_v36, %v6187_v17  ;;  %v6168_v43 = vperm.slane %v6162_v56, %v13928_v53  ;;  %v6185_v52 = vrot.slane %v6172_v36, 4 }
 0x48b   : > { %v5622_v1 = vmul.f32 %v7920_v50, %v5590_v39  ;;  %v5596_v20 = vsub.f32 2.0, %v5564_v40  ;;  %7927 = vrcp.f32 %v5473_v2  ;;  %v6196_v46 = vperm.slane %v6188_v18, %v13929_v61  ;;  %v5821_v18 = vpop.f32.mrf.mxu1 }
 0x48c   : > { %v6173_v13 = vrot.slane %v6168_v43, 4  ;;  %v6176_v30 = vsel %vm754_vm1, %v6168_v43, %v6175_v11  ;;  %v6186_v37 = vsel %vm754_vm1, %v6185_v52, %v12817_v6 }
 0x48d   : > { %v6118_v21 = vmul.f32 %v5679_v63, %v5622_v1  ;;  %v5628_v26 = vmul.f32 %v7922_v27, %v5596_v20  ;;  %v6184_v58 = vperm.slane %v6176_v30, %v13929_v61  ;;  %v12850_v17 = vperm.slane %v6186_v37, %v13929_v61 }
 0x48e   : > { %v7924_v59 = vpop.eup %7923 }
 0x48f   : > { %v6206_v0 = vsel %vm754_vm1, %v6205_v19, %v6118_v21  ;;  %v6207_v48 = vrot.slane %v6118_v21, 4  ;;  %v5461_v44 = vpop.xlane.xlu0 %5460  ;;  %v5569_v22 = vmul.f32 %v7924_v59, %v5467_v57 }
 0x490   : > { %v7926_v4 = vpop.eup %7925  ;;  %7929 = vrcp.f32 %v5461_v44  ;;  %v5766_v55 = vpop.f32.mrf.mxu3  ;;  %v6212_v31 = vperm.slane %v6206_v0, %v13928_v53 }
 0x491   : > { %v6208_v25 = vsel %vm754_vm1, %v6122_v32, %v6207_v48  ;;  %v5565_v15 = vmul.f32 %v7926_v4, %v5455_v47  ;;  %v6124_v41 = vmul.f32 %v5766_v55, %v5628_v26  ;;  %v5470_v24 = vpop.xlane.xlu2 %5469  ;;  %v7928_v8 = vpop.eup %7927  ;;  %v5601_v49 = vsub.f32 2.0, %v5569_v22 }
 0x492   : > { %v6216_v28 = vperm.slane %v6208_v25, %v13928_v53  ;;  %7931 = vrcp.f32 %v5470_v24  ;;  %v5458_v62 = vpop.xlane.xlu1 %5457  ;;  %v5571_v54 = vmul.f32 %v7928_v8, %v5473_v2  ;;  %v6231_v57 = vrot.slane %v6212_v31, 4 }
 0x493   : > { %v5597_v5 = vsub.f32 2.0, %v5565_v15  ;;  %v6217_v51 = vrot.slane %v6124_v41, 4  ;;  %v6220_v3 = vsel %vm754_vm1, %v6124_v41, %v6219_v16  ;;  %v5633_v34 = vmul.f32 %v7924_v59, %v5601_v49 }
 0x494   : > { %v6228_v60 = vperm.slane %v6220_v3, %v13928_v53  ;;  %v6243_v33 = vrot.slane %v6216_v28, 4  ;;  %7933 = vrcp.f32 %v5458_v62  ;;  %v12844_v47 = vrot.slane %v6196_v46, 4 }
 0x495   : > { %v5629_v7 = vmul.f32 %v7926_v4, %v5597_v5  ;;  %v6218_v35 = vsel %vm754_vm1, %v6217_v51, %v6120_v10  ;;  %v6129_v14 = vmul.f32 %v5850_v42, %v5633_v34  ;;  %v5603_v1 = vsub.f32 2.0, %v5571_v54  ;;  %v5853_v51 = vpop.f32.mrf.mxu2 }
 0x496   : > { %v7930_v50 = vpop.eup %7929  ;;  %v6224_v23 = vperm.slane %v6218_v35, %v13928_v53  ;;  %v6241_v12 = vrot.slane %v6228_v60, 4  ;;  %v6244_v32 = vsel %vm754_vm1, %v6228_v60, %v6243_v33  ;;  %v6174_v59 = vsel %vm754_vm1, %v6173_v13, %v12823_v29  ;;  %v5795_v35 = vpop.f32.mrf.mxu0 }
 0x497   : > { %v6125_v27 = vmul.f32 %v5792_v45, %v5629_v7  ;;  %v5567_v9 = vmul.f32 %v7930_v50, %v5461_v44  ;;  %v6261_v38 = vrot.slane %v6129_v14, 4  ;;  %v6252_v63 = vperm.slane %v6244_v32, %v13929_v61  ;;  %v5476_v44 = vpop.xlane.xlu0 %5475 }
 0x498   : > { %v6229_v39 = vrot.slane %v6224_v23, 4  ;;  %v7932_v40 = vpop.eup %7931  ;;  %v6232_v36 = vsel %vm754_vm1, %v6224_v23, %v6231_v57  ;;  %v6242_v20 = vsel %vm754_vm1, %v6241_v12, %v6216_v28  ;;  %v6199_v16 = vrot.slane %v6184_v58, 4  ;;  %v5879_v22 = vpop.f32.mrf.mxu3 }
 0x499   : > { %v6263_v2 = vrot.slane %v6125_v27, 4  ;;  %v5599_v10 = vsub.f32 2.0, %v5567_v9  ;;  %v5570_v19 = vmul.f32 %v7932_v40, %v5470_v24  ;;  %v6262_v6 = vsel %vm754_vm1, %v6261_v38, %v6125_v27  ;;  %v5464_v46 = vpop.xlane.xlu2 %5463 }
 0x49a   : > { %v7934_v21 = vpop.eup %7933  ;;  %v6230_v0 = vsel %vm754_vm1, %v6229_v39, %v6212_v31  ;;  %v6240_v48 = vperm.slane %v6232_v36, %v13929_v61  ;;  %v12859_v26 = vsel %vm754_vm1, 0.0, %v12844_v47  ;;  %v6248_v43 = vperm.slane %v6242_v20, %v13929_v61 }
 0x49b   : > { %v5631_v56 = vmul.f32 %v7930_v50, %v5599_v10  ;;  %v6264_v4 = vsel %vm754_vm1, %v6129_v14, %v6263_v2  ;;  %v12864_v55 = vperm.slane %v6262_v6, %v13928_v53  ;;  %v6259_v29 = vrot.slane %v6252_v63, 4 }
 0x49c   : > { %v5602_v52 = vsub.f32 2.0, %v5570_v19  ;;  %v5635_v25 = vmul.f32 %v7928_v8, %v5603_v1  ;;  %v12867_v41 = vperm.slane %v6230_v0, %v13929_v61  ;;  %v5566_v24 = vmul.f32 %v7934_v21, %v5458_v62 }
 0x49d   : > { %v6127_v11 = vmul.f32 %v5821_v18, %v5631_v56  ;;  %7935 = vrcp.f32 %v5476_v44  ;;  %v6272_v31 = vperm.slane %v6264_v4, %v13928_v53  ;;  %v12870_v28 = vrot.slane %v6240_v48, 4  ;;  %v12902_v18 = vpop.xlane.xlu1 %5490 }
 0x49e   : > { %v5634_v49 = vmul.f32 %v7932_v40, %v5602_v52  ;;  %v6131_v5 = vmul.f32 %v5879_v22, %v5635_v25  ;;  %v6613_v3 = vrot.slane %v12859_v26, 4  ;;  %v6257_v13 = vrot.slane %v6248_v43, 4 }
 0x49f   : > { %v6275_v15 = vrot.slane %v6127_v11, 4  ;;  %v5598_v34 = vsub.f32 2.0, %v5566_v24  ;;  %v6180_v8 = vperm.slane %v6174_v59, %v13929_v61  ;;  %7937 = vrcp.f32 %v5464_v46 }
 0x4a0   : > { %v6130_v60 = vmul.f32 %v5853_v51, %v5634_v49  ;;  %v6273_v33 = vrot.slane %v6131_v5, 4  ;;  %v6287_v62 = vrot.slane %v12864_v55, 4  ;;  %v12877_v30 = vsel %vm754_vm1, 0.0, %v6259_v29 }
 0x4a1   : > { %v6276_v42 = vsel %vm754_vm1, %v6131_v5, %v6275_v15  ;;  %v5630_v7 = vmul.f32 %v7934_v21, %v5598_v34  ;;  %v6253_v50 = vrot.slane %v12867_v41, 4  ;;  %v12883_v45 = vsel %vm754_vm1, 0.0, %v12870_v28 }
 0x4a2   : > { %v6284_v54 = vperm.slane %v6276_v42, %v13928_v53  ;;  %v6274_v14 = vsel %vm754_vm1, %v6273_v33, %v6127_v11  ;;  %v6299_v23 = vrot.slane %v6272_v31, 4  ;;  %v6317_v57 = vrot.slane %v6130_v60, 4 }
 0x4a3   : > { %v7936_v12 = vpop.eup %7935  ;;  %v6126_v27 = vmul.f32 %v5795_v35, %v5630_v7  ;;  %v6280_v9 = vperm.slane %v6274_v14, %v13928_v53  ;;  %v6197_v32 = vrot.slane %v6180_v8, 4  ;;  %v6200_v38 = vsel %vm754_vm1, 0.0, %v6199_v16  ;;  %v5882_v7 = vpop.f32.mrf.mxu3 }
 0x4a4   : > { %v6297_v58 = vrot.slane %v6284_v54, 4  ;;  %v6300_v37 = vsel %vm754_vm1, %v6284_v54, %v6299_v23  ;;  %v6201_v39 = vrot.slane %v12850_v17, 4  ;;  %v12891_v40 = vsel %vm754_vm1, %v6259_v29, %v6248_v43 }
 0x4a5   : > { %v6319_v2 = vrot.slane %v6126_v27, 4  ;;  %v5572_v10 = vmul.f32 %v7936_v12, %v5476_v44  ;;  %v6597_v36 = vsel %vm754_vm1, %v6199_v16, %v6180_v8  ;;  %v7938_v1 = vpop.eup %7937  ;;  %v12895_v20 = vsel %vm754_vm1, 0.0, %v6257_v13  ;;  %v5824_v8 = vpop.f32.mrf.mxu1 }
 0x4a6   : > { %v6656_v63 = vrot.slane %v12883_v45, 4  ;;  %v6667_v19 = vrot.slane %v12877_v30, 4  ;;  %v6285_v6 = vrot.slane %v6280_v9, 4  ;;  %v6318_v56 = vsel %vm754_vm1, %v6317_v57, %v6126_v27 }
 0x4a7   : > { %v6288_v21 = vsel %vm754_vm1, %v6280_v9, %v6287_v62  ;;  %v6308_v59 = vperm.slane %v6300_v37, %v13929_v61  ;;  %v6602_v0 = vrot.slane %v6200_v38, 4  ;;  %v6298_v16 = vsel %vm754_vm1, %v6297_v58, %v6272_v31 }
 0x4a8   : > { %v6198_v48 = vsel %vm754_vm1, 0.0, %v6197_v32  ;;  %v6202_v44 = vsel %vm754_vm1, 0.0, %v6201_v39  ;;  %v6601_v26 = vperm.slane %v6597_v36, %v13928_v53  ;;  %v6320_v4 = vsel %vm754_vm1, %v6130_v60, %v6319_v2  ;;  %v5497_v32 = vpop.xlane.xlu2 %5496 }
 0x4a9   : > { %v5604_v11 = vsub.f32 2.0, %v5572_v10  ;;  %v5568_v43 = vmul.f32 %v7938_v1, %v5464_v46  ;;  %v6608_v22 = vsel %vm754_vm1, %v12844_v47, %v12850_v17  ;;  %v12913_v29 = vperm.slane %v6318_v56, %v13928_v53  ;;  %v5485_v2 = vpop.xlane.xlu1 %5484 }
 0x4aa   : > { %v6286_v52 = vsel %vm754_vm1, %v6285_v6, %v12864_v55  ;;  %v6296_v25 = vperm.slane %v6288_v21, %v13929_v61  ;;  %7939 = vrcp.f32 %v12902_v18  ;;  %v12920_v15 = vperm.slane %v6298_v16, %v13929_v61 }
 0x4ab   : > { %v12922_v24 = vrot.slane %v6308_v59, 4  ;;  %v5600_v46 = vsub.f32 2.0, %v5568_v43  ;;  %v6603_v31 = vsel %vm754_vm1, %v6602_v0, %v6198_v48  ;;  %v12926_v47 = vperm.slane %v6320_v4, %v13928_v53 }
 0x4ac   : > { %v6607_v17 = vperm.slane %v6603_v31, %v13928_v53  ;;  %v6612_v49 = vperm.slane %v6608_v22, %v13928_v53  ;;  %v6614_v55 = vsel %vm754_vm1, %v6613_v3, %v6202_v44  ;;  %v6621_v13 = vrot.slane %v6601_v26, 4 }
 0x4ad   : > { %v5632_v5 = vmul.f32 %v7938_v1, %v5600_v46  ;;  %v6618_v51 = vperm.slane %v6614_v55, %v13928_v53  ;;  %v5636_v34 = vmul.f32 %v7936_v12, %v5604_v11  ;;  %v6343_v60 = vrot.slane %v12913_v29, 4 }
 0x4ae   : > { %v12934_v33 = vperm.slane %v6286_v52, %v13929_v61  ;;  %v6633_v42 = vrot.slane %v6612_v49, 4  ;;  %v6619_v62 = vrot.slane %v6607_v17, 4  ;;  %v6622_v35 = vsel %vm754_vm1, %v6607_v17, %v6621_v13 }
 0x4af   : > { %v6128_v54 = vmul.f32 %v5824_v8, %v5632_v5  ;;  %v6631_v14 = vrot.slane %v6618_v51, 4  ;;  %v6132_v23 = vmul.f32 %v5882_v7, %v5636_v34  ;;  %v12939_v57 = vrot.slane %v6296_v25, 4 }
 0x4b0   : > { %v12937_v3 = vpop.eup %7939  ;;  %v6630_v12 = vperm.slane %v6622_v35, %v13929_v61  ;;  %v6634_v27 = vsel %vm754_vm1, %v6618_v51, %v6633_v42  ;;  %v6620_v9 = vsel %vm754_vm1, %v6619_v62, %v6601_v26  ;;  %v6355_v6 = vrot.slane %v12926_v47, 4 }
 0x4b1   : > { %v6331_v58 = vrot.slane %v6128_v54, 4  ;;  %v6642_v37 = vperm.slane %v6634_v27, %v13929_v61  ;;  %v12946_v38 = vperm.slane %v6620_v9, %v13929_v61  ;;  %v6632_v39 = vsel %vm754_vm1, %v6631_v14, %v6612_v49 }
 0x4b2   : > { %v6649_v10 = vrot.slane %v6630_v12, 4  ;;  %v12950_v36 = vperm.slane %v6632_v39, %v13929_v61  ;;  %v6329_v1 = vrot.slane %v6132_v23, 4  ;;  %7941 = vrcp.f32 %v5497_v32 }
 0x4b3   : > { %v6647_v56 = vrot.slane %v6642_v37, 4  ;;  %v6645_v21 = vrot.slane %v12946_v38, 4  ;;  %v6332_v59 = vsel %vm754_vm1, %v6132_v23, %v6331_v58  ;;  %7943 = vrcp.f32 %v5485_v2 }
 0x4b4   : > { %v6650_v0 = vsel %vm754_vm1, %v6642_v37, %v6649_v10  ;;  %v6330_v16 = vsel %vm754_vm1, %v6329_v1, %v6128_v54  ;;  %v6340_v48 = vperm.slane %v6332_v59, %v13928_v53  ;;  %v6254_v11 = vsel %vm754_vm1, 0.0, %v6253_v50 }
 0x4b5   : > { %v6648_v44 = vsel %vm754_vm1, %v6647_v56, %v6630_v12  ;;  %7101 = vrot.lane.b32.xlu1 %v6650_v0, %s8262_s12  ;;  %v6646_v26 = vsel %vm754_vm1, %v12950_v36, %v6645_v21  ;;  %v6336_v4 = vperm.slane %v6330_v16, %v13928_v53  ;;  %v6651_v52 = vsel %vm754_vm1, %v12870_v28, %v12867_v41 }
 0x4b6   : > { %7069 = vrot.lane.b32.xlu2 %v6648_v44, %s8263_s14  ;;  %7037 = vrot.lane.b32.xlu0 %v6646_v26, %s8264_s1  ;;  %v6353_v43 = vrot.slane %v6340_v48, 4  ;;  %v6356_v22 = vsel %vm754_vm1, %v6340_v48, %v6355_v6  ;;  %v6657_v25 = vsel %vm754_vm1, %v6656_v63, %v6254_v11  ;;  %v6313_v46 = vrot.slane %v12920_v15, 4 }
 0x4b7   : > { %v12978_v50 = vsel %vm754_vm1, 0.0, %v12922_v24  ;;  %v6341_v31 = vrot.slane %v6336_v4, 4  ;;  %v6344_v17 = vsel %vm754_vm1, %v6336_v4, %v6343_v60  ;;  %v6312_v49 = vsel %vm754_vm1, 0.0, %v12939_v57 }
 0x4b8   : > { %v12985_v55 = vmul.f32 %v12937_v3, %v12902_v18  ;;  %v6352_v41 = vperm.slane %v6344_v17, %v13929_v61  ;;  %v6354_v28 = vsel %vm754_vm1, %v6353_v43, %v12926_v47  ;;  %v7942_v45 = vpop.eup %7941  ;;  %v6364_v63 = vperm.slane %v6356_v22, %v13929_v61 }
 0x4b9   : > { %v6655_v5 = vperm.slane %v6651_v52, %v13928_v53  ;;  %v6661_v51 = vperm.slane %v6657_v25, %v13928_v53  ;;  %v6668_v13 = vsel %vm754_vm1, %v6667_v19, %v12895_v20  ;;  %v7944_v34 = vpop.eup %7943  ;;  %v6342_v18 = vsel %vm754_vm1, %v6341_v31, %v12913_v29 }
 0x4ba   : > { %v5579_v8 = vmul.f32 %v7942_v45, %v5497_v32  ;;  %v6666_v47 = vperm.slane %v12891_v40, %v13928_v53  ;;  %v6672_v60 = vperm.slane %v6668_v13, %v13928_v53  ;;  %v6309_v42 = vrot.slane %v12934_v33, 4 }
 0x4bb   : > { %v6716_v62 = vsel %vm754_vm1, %v12922_v24, %v12920_v15  ;;  %v6360_v30 = vperm.slane %v6354_v28, %v13929_v61  ;;  %v6367_v7 = vrot.slane %v6352_v41, 4  ;;  %v6314_v20 = vsel %vm754_vm1, 0.0, %v6313_v46  ;;  %v5995_v41 = vpop.f32.mrf.mxu3 }
 0x4bc   : > { %v6710_v19 = vrot.slane %v6312_v49, 4  ;;  %v6721_v29 = vrot.slane %v12978_v50, 4  ;;  %v5575_v54 = vmul.f32 %v7944_v34, %v5485_v2  ;;  %v5609_v35 = vsub.f32 2.0, %v12985_v55 }
 0x4bd   : > { %v6348_v40 = vperm.slane %v6342_v18, %v13929_v61  ;;  %v6371_v14 = vrot.slane %v6364_v63, 4  ;;  %v6675_v23 = vrot.slane %v6655_v5, 4  ;;  %v5611_v12 = vsub.f32 2.0, %v5579_v8 }
 0x4be   : > { %v6687_v27 = vrot.slane %v6666_v47, 4  ;;  %v6673_v9 = vrot.slane %v6661_v51, 4  ;;  %v6685_v32 = vrot.slane %v6672_v60, 4  ;;  %v6368_v15 = vsel %vm754_vm1, 0.0, %v6367_v7 }
 0x4bf   : > { %v6369_v24 = vrot.slane %v6360_v30, 4  ;;  %v6676_v58 = vsel %vm754_vm1, %v6661_v51, %v6675_v23  ;;  %v6705_v37 = vsel %vm754_vm1, %v12939_v57, %v12934_v33  ;;  %v5607_v39 = vsub.f32 2.0, %v5575_v54 }
 0x4c0   : > { %v6688_v2 = vsel %vm754_vm1, %v6672_v60, %v6687_v27  ;;  %v6674_v10 = vsel %vm754_vm1, %v6673_v9, %v6655_v5  ;;  %v6310_v1 = vsel %vm754_vm1, 0.0, %v6309_v42  ;;  %v6684_v6 = vperm.slane %v6676_v58, %v13929_v61  ;;  %v5937_v5 = vpop.f32.mrf.mxu1 }
 0x4c1   : > { %v6696_v56 = vperm.slane %v6688_v2, %v13929_v61  ;;  %v13022_v21 = vperm.slane %v6674_v10, %v13929_v61  ;;  %v6686_v59 = vsel %vm754_vm1, %v6685_v32, %v6666_v47  ;;  %v6365_v0 = vrot.slane %v6348_v40, 4 }
 0x4c2   : > { %v6372_v16 = vsel %vm754_vm1, 0.0, %v6371_v14  ;;  %v5643_v33 = vmul.f32 %v7942_v45, %v5611_v12  ;;  %v6709_v57 = vperm.slane %v6705_v37, %v13928_v53  ;;  %v13028_v44 = vperm.slane %v6686_v59, %v13929_v61 }
 0x4c3   : > { %v6701_v48 = vrot.slane %v6696_v56, 4  ;;  %v6699_v26 = vrot.slane %v13022_v21, 4  ;;  %v6711_v4 = vsel %vm754_vm1, %v6710_v19, %v6310_v1  ;;  %v6764_v11 = vrot.slane %v6368_v15, 4 }
 0x4c4   : > { %v5639_v43 = vmul.f32 %v7944_v34, %v5607_v39  ;;  %v6715_v22 = vperm.slane %v6711_v4, %v13928_v53  ;;  %v6720_v52 = vperm.slane %v6716_v62, %v13928_v53  ;;  %v6770_v25 = vsel %vm754_vm1, %v6371_v14, %v6360_v30 }
 0x4c5   : > { %v6775_v46 = vrot.slane %v6372_v16, 4  ;;  %v6702_v50 = vsel %vm754_vm1, %v6701_v48, %v6684_v6  ;;  %v6700_v31 = vsel %vm754_vm1, %v13028_v44, %v6699_v26  ;;  %v6370_v49 = vsel %vm754_vm1, 0.0, %v6369_v24 }
 0x4c6   : > { %7071 = vrot.lane.b32.xlu2 %v6702_v50, %s8263_s14  ;;  %7039 = vrot.lane.b32.xlu0 %v6700_v31, %s8264_s1  ;;  %v6722_v28 = vsel %vm754_vm1, %v6721_v29, %v6314_v20  ;;  %v6729_v45 = vrot.slane %v6709_v57, 4  ;;  %v6741_v63 = vrot.slane %v6720_v52, 4  ;;  %v13044_v51 = vmul.f32 %v5995_v41, %v5643_v33 }
 0x4c7   : > { %v13038_v17 = vpop.xlane.xlu0 %5478  ;;  %v6726_v13 = vperm.slane %v6722_v28, %v13928_v53  ;;  %v6727_v34 = vrot.slane %v6715_v22, 4  ;;  %v6366_v18 = vsel %vm754_vm1, 0.0, %v6365_v0  ;;  %v13048_v8 = vmul.f32 %v5937_v5, %v5639_v43 }
 0x4c8   : > { %v6730_v47 = vsel %vm754_vm1, %v6715_v22, %v6729_v45  ;;  %v6759_v60 = vsel %vm754_vm1, %v6367_v7, %v6348_v40  ;;  %v6765_v42 = vsel %vm754_vm1, %v6764_v11, %v6366_v18  ;;  %v6703_v62 = vrot.slane %v6684_v6, 4 }
 0x4c9   : > { %v6742_v30 = vsel %vm754_vm1, %v6726_v13, %v6741_v63  ;;  %v6728_v20 = vsel %vm754_vm1, %v6727_v34, %v6709_v57  ;;  %v6739_v19 = vrot.slane %v6726_v13, 4  ;;  %v6763_v14 = vperm.slane %v6759_v60, %v13928_v53 }
 0x4ca   : > { %v6750_v29 = vperm.slane %v6742_v30, %v13929_v61  ;;  %v13057_v54 = vperm.slane %v6728_v20, %v13929_v61  ;;  %v6769_v23 = vperm.slane %v6765_v42, %v13928_v53  ;;  %v6738_v12 = vperm.slane %v6730_v47, %v13929_v61 }
 0x4cb   : > { %v6740_v7 = vsel %vm754_vm1, %v6739_v19, %v6720_v52  ;;  %v6774_v40 = vperm.slane %v6770_v25, %v13928_v53  ;;  %v6776_v27 = vsel %vm754_vm1, %v6775_v46, %v6370_v49  ;;  %v6704_v58 = vsel %vm754_vm1, %v6696_v56, %v6703_v62  ;;  %v5966_v49 = vpop.f32.mrf.mxu2 }
 0x4cc   : > { %v6755_v9 = vrot.slane %v6750_v29, 4  ;;  %v13066_v32 = vperm.slane %v6740_v7, %v13929_v61  ;;  %v6753_v15 = vrot.slane %v13057_v54, 4  ;;  %v6780_v24 = vperm.slane %v6776_v27, %v13928_v53 }
 0x4cd   : > { %v6783_v37 = vrot.slane %v6763_v14, 4  ;;  %v6795_v39 = vrot.slane %v6774_v40, 4  ;;  %v6781_v2 = vrot.slane %v6769_v23, 4  ;;  %7945 = vrcp.f32 %v13038_v17 }
 0x4ce   : > { %7103 = vrot.lane.b32.xlu0 %v6704_v58, %s8262_s12  ;;  %v6756_v6 = vsel %vm754_vm1, %v6755_v9, %v6738_v12  ;;  %v6754_v59 = vsel %vm754_vm1, %v13066_v32, %v6753_v15  ;;  %v6793_v0 = vrot.slane %v6780_v24, 4  ;;  %v6385_v57 = vrot.slane %v13044_v51, 4 }
 0x4cf   : > { %v5494_v10 = vpop.xlane.xlu0 %5493  ;;  %v5500_v1 = vpop.xlane.xlu1 %5499  ;;  %7073 = vrot.lane.b32.xlu2 %v6756_v6, %s8263_s14  ;;  %7041 = vrot.lane.b32.xlu1 %v6754_v59, %s8264_s1  ;;  %v6784_v56 = vsel %vm754_vm1, %v6769_v23, %v6783_v37  ;;  %v6796_v16 = vsel %vm754_vm1, %v6780_v24, %v6795_v39  ;;  %v6782_v33 = vsel %vm754_vm1, %v6781_v2, %v6763_v14  ;;  %v6757_v11 = vrot.slane %v6738_v12, 4 }
 0x4d0   : > { %7947 = vrcp.f32 %v5494_v10  ;;  %v6804_v48 = vperm.slane %v6796_v16, %v13929_v61  ;;  %v13084_v26 = vperm.slane %v6782_v33, %v13929_v61  ;;  %v6794_v4 = vsel %vm754_vm1, %v6793_v0, %v6774_v40 }
 0x4d1   : > { %v13088_v43 = vperm.slane %v6794_v4, %v13929_v61  ;;  %7949 = vrcp.f32 %v5500_v1  ;;  %v5641_v22 = vmul.f32 %v12937_v3, %v5609_v35  ;;  %v6792_v52 = vperm.slane %v6784_v56, %v13929_v61 }
 0x4d2   : > { %v6809_v25 = vrot.slane %v6804_v48, 4  ;;  %v6807_v46 = vrot.slane %v13084_v26, 4  ;;  %v6387_v50 = vrot.slane %v13048_v8, 4  ;;  %v6386_v41 = vsel %vm754_vm1, %v6385_v57, %v13048_v8 }
 0x4d3   : > { %v7946_v31 = vpop.eup %7945  ;;  %v6758_v3 = vsel %vm754_vm1, %v6750_v29, %v6757_v11  ;;  %v6137_v13 = vmul.f32 %v5966_v49, %v5641_v22  ;;  %v6392_v60 = vperm.slane %v6386_v41, %v13928_v53  ;;  %v6811_v62 = vrot.slane %v6792_v52, 4  ;;  %v5969_v9 = vpop.f32.mrf.mxu2 }
 0x4d4   : > { %v6810_v28 = vsel %vm754_vm1, %v6809_v25, %v6792_v52  ;;  %v6808_v45 = vsel %vm754_vm1, %v13088_v43, %v6807_v46  ;;  %v5573_v35 = vmul.f32 %v7946_v31, %v13038_v17  ;;  %v6388_v8 = vsel %vm754_vm1, %v13044_v51, %v6387_v50  ;;  %v5908_v17 = vpop.f32.mrf.mxu0 }
 0x4d5   : > { %v6396_v29 = vperm.slane %v6388_v8, %v13928_v53  ;;  %v6373_v12 = vrot.slane %v6137_v13, 4  ;;  %v6397_v40 = vrot.slane %v6392_v60, 4  ;;  %v6812_v27 = vsel %vm754_vm1, %v6804_v48, %v6811_v62 }
 0x4d6   : > { %v7948_v55 = vpop.eup %7947  ;;  %7105 = vrot.lane.b32.xlu0 %v6758_v3, %s8262_s12  ;;  %v5605_v42 = vsub.f32 2.0, %v5573_v35  ;;  %v5940_v35 = vpop.f32.mrf.mxu1 }
 0x4d7   : > { %v5482_v63 = vpop.xlane.xlu2 %5481  ;;  %v5503_v5 = vpop.xlane.xlu1 %5502  ;;  %v5578_v34 = vmul.f32 %v7948_v55, %v5494_v10  ;;  %7075 = vrot.lane.b32.xlu2 %v6810_v28, %s8263_s14  ;;  %7043 = vrot.lane.b32.xlu1 %v6808_v45, %s8264_s1  ;;  %v6409_v59 = vrot.slane %v6396_v29, 4 }
 0x4d8   : > { %7951 = vrcp.f32 %v5482_v63  ;;  %v5488_v18 = vpop.xlane.xlu0 %5487  ;;  %v7950_v47 = vpop.eup %7949  ;;  %v5637_v19 = vmul.f32 %v7946_v31, %v5605_v42 }
 0x4d9   : > { %7953 = vrcp.f32 %v5488_v18  ;;  %v5610_v30 = vsub.f32 2.0, %v5578_v34  ;;  %v5580_v20 = vmul.f32 %v7950_v47, %v5500_v1 }
 0x4da   : > { %7955 = vrcp.f32 %v5503_v5  ;;  %v6133_v51 = vmul.f32 %v5908_v17, %v5637_v19 }
 0x4db   : > { %v5612_v14 = vsub.f32 2.0, %v5580_v20  ;;  %v5642_v23 = vmul.f32 %v7948_v55, %v5610_v30  ;;  %v6082_v19 = vpop.f32.mrf.mxu2 }
 0x4dc   : > { %v6374_v37 = vsel %vm754_vm1, %v6373_v12, %v6133_v51  ;;  %v6375_v39 = vrot.slane %v6133_v51, 4 }
 0x4dd   : > { %v5644_v15 = vmul.f32 %v7950_v47, %v5612_v14  ;;  %v13112_v2 = vmul.f32 %v5969_v9, %v5642_v23  ;;  %v6380_v0 = vperm.slane %v6374_v37, %v13928_v53 }
 0x4de   : > { %v7952_v7 = vpop.eup %7951  ;;  %v5998_v24 = vpop.f32.mrf.mxu3  ;;  %7107 = vrot.lane.b32.xlu0 %v6812_v27, %s8262_s12  ;;  %v6376_v57 = vsel %vm754_vm1, %v6137_v13, %v6375_v39 }
 0x4df   : > { %v7954_v58 = vpop.eup %7953  ;;  %v5574_v10 = vmul.f32 %v7952_v7, %v5482_v63  ;;  %v5515_v1 = vpop.xlane.xlu2 %5514  ;;  %v6140_v16 = vmul.f32 %v5998_v24, %v5644_v15  ;;  %v6384_v22 = vperm.slane %v6376_v57, %v13928_v53  ;;  %v6398_v52 = vsel %vm754_vm1, %v6397_v40, %v6380_v0 }
 0x4e0   : > { %v7956_v6 = vpop.eup %7955  ;;  %v5576_v56 = vmul.f32 %v7954_v58, %v5488_v18  ;;  %v5521_v33 = vpop.xlane.xlu0 %5520  ;;  %7957 = vrcp.f32 %v5515_v1  ;;  %v6399_v25 = vrot.slane %v6380_v0, 4  ;;  %v6404_v31 = vperm.slane %v6398_v52, %v13929_v61 }
 0x4e1   : > { %v5606_v48 = vsub.f32 2.0, %v5574_v10  ;;  %v5581_v4 = vmul.f32 %v7956_v6, %v5503_v5  ;;  %v5911_v11 = vpop.f32.mrf.mxu0  ;;  %v5518_v50 = vpop.xlane.xlu1 %5517  ;;  %v6429_v49 = vrot.slane %v13112_v2, 4  ;;  %7959 = vrcp.f32 %v5521_v33 }
 0x4e2   : > { %v5608_v46 = vsub.f32 2.0, %v5576_v56  ;;  %v6400_v28 = vsel %vm754_vm1, %v6392_v60, %v6399_v25  ;;  %v6410_v45 = vsel %vm754_vm1, %v6409_v59, %v6384_v22  ;;  %v6411_v55 = vrot.slane %v6384_v22, 4 }
 0x4e3   : > { %v5613_v41 = vsub.f32 2.0, %v5581_v4  ;;  %v6408_v63 = vperm.slane %v6400_v28, %v13929_v61  ;;  %v6421_v5 = vrot.slane %v6404_v31, 4  ;;  %v6441_v13 = vrot.slane %v6140_v16, 4 }
 0x4e4   : > { %v5640_v3 = vmul.f32 %v7954_v58, %v5608_v46  ;;  %7961 = vrcp.f32 %v5518_v50  ;;  %v6412_v34 = vsel %vm754_vm1, %v6396_v29, %v6411_v55  ;;  %v13126_v18 = vperm.slane %v6410_v45, %v13929_v61 }
 0x4e5   : > { %v5638_v8 = vmul.f32 %v7952_v7, %v5606_v48  ;;  %v6420_v60 = vperm.slane %v6412_v34, %v13929_v61  ;;  %v13130_v17 = vsel %vm754_vm1, 0.0, %v6421_v5  ;;  %v6423_v62 = vrot.slane %v6408_v63, 4 }
 0x4e6   : > { %v6136_v47 = vmul.f32 %v5940_v35, %v5640_v3  ;;  %v7958_v42 = vpop.eup %7957  ;;  %v5645_v30 = vmul.f32 %v7956_v6, %v5613_v41  ;;  %v6425_v9 = vrot.slane %v13126_v18, 4 }
 0x4e7   : > { %v5585_v23 = vmul.f32 %v7958_v42, %v5515_v1  ;;  %v6134_v12 = vmul.f32 %v5911_v11, %v5638_v8  ;;  %v13133_v29 = vpop.eup %7959  ;;  %v6424_v51 = vsel %vm754_vm1, 0.0, %v6423_v62  ;;  %v13136_v40 = vrot.slane %v6420_v60, 4  ;;  %v5509_v59 = vpop.xlane.xlu2 %5508 }
 0x4e8   : > { %v6443_v20 = vrot.slane %v6136_v47, 4  ;;  %v6442_v14 = vsel %vm754_vm1, %v6441_v13, %v6136_v47  ;;  %v6813_v7 = vsel %vm754_vm1, %v6423_v62, %v6404_v31  ;;  %v6818_v10 = vrot.slane %v6424_v51, 4 }
 0x4e9   : > { %v6448_v27 = vperm.slane %v6442_v14, %v13928_v53  ;;  %v13142_v15 = vperm.slane %v6813_v7, %v13928_v53  ;;  %v5617_v58 = vsub.f32 2.0, %v5585_v23  ;;  %v13147_v39 = vsel %vm754_vm1, 0.0, %v13136_v40  ;;  %v6024_v0 = vpop.f32.mrf.mxu0 }
 0x4ea   : > { %v6444_v24 = vsel %vm754_vm1, %v6140_v16, %v6443_v20  ;;  %v7962_v37 = vpop.eup %7961  ;;  %v13151_v57 = vmul.f32 %v13133_v29, %v5521_v33  ;;  %v6430_v4 = vsel %vm754_vm1, %v6429_v49, %v6134_v12  ;;  %v5506_v16 = vpop.xlane.xlu0 %5505  ;;  %v6829_v11 = vrot.slane %v13147_v39, 4 }
 0x4eb   : > { %v6452_v1 = vperm.slane %v6444_v24, %v13928_v53  ;;  %v6453_v6 = vrot.slane %v6448_v27, 4  ;;  %v5649_v56 = vmul.f32 %v7958_v42, %v5617_v58  ;;  %v5586_v48 = vmul.f32 %v7962_v37, %v5518_v50  ;;  %v6085_v42 = vpop.f32.mrf.mxu2 }
 0x4ec   : > { %v6431_v52 = vrot.slane %v6134_v12, 4  ;;  %v6436_v25 = vperm.slane %v6430_v4, %v13928_v53  ;;  %7963 = vrcp.f32 %v5509_v59  ;;  %v6141_v41 = vmul.f32 %v6024_v0, %v5645_v30 }
 0x4ed   : > { %v6465_v22 = vrot.slane %v6452_v1, 4  ;;  %v6145_v46 = vmul.f32 %v6082_v19, %v5649_v56  ;;  %v5618_v31 = vsub.f32 2.0, %v5586_v48  ;;  %7965 = vrcp.f32 %v5506_v16 }
 0x4ee   : > { %v6432_v28 = vsel %vm754_vm1, %v13112_v2, %v6431_v52  ;;  %v6454_v33 = vsel %vm754_vm1, %v6453_v6, %v6436_v25  ;;  %v6455_v45 = vrot.slane %v6436_v25, 4  ;;  %v5619_v35 = vsub.f32 2.0, %v13151_v57 }
 0x4ef   : > { %v6485_v50 = vrot.slane %v6145_v46, 4  ;;  %v6440_v49 = vperm.slane %v6432_v28, %v13928_v53  ;;  %v6460_v55 = vperm.slane %v6454_v33, %v13929_v61  ;;  %v5650_v3 = vmul.f32 %v7962_v37, %v5618_v31  ;;  %v6111_v31 = vpop.f32.mrf.mxu3 }
 0x4f0   : > { %v6456_v63 = vsel %vm754_vm1, %v6448_v27, %v6455_v45  ;;  %v6487_v5 = vrot.slane %v6141_v41, 4  ;;  %v6426_v13 = vsel %vm754_vm1, 0.0, %v6425_v9  ;;  %v6819_v51 = vsel %vm754_vm1, %v6818_v10, %v13130_v17 }
 0x4f1   : > { %v6464_v34 = vperm.slane %v6456_v63, %v13929_v61  ;;  %v6466_v2 = vsel %vm754_vm1, %v6465_v22, %v6440_v49  ;;  %v6467_v47 = vrot.slane %v6440_v49, 4  ;;  %v6477_v8 = vrot.slane %v6460_v55, 4  ;;  %v5524_v22 = vpop.xlane.xlu2 %5523  ;;  %v6027_v63 = vpop.f32.mrf.mxu0 }
 0x4f2   : > { %v13167_v60 = vperm.slane %v6466_v2, %v13929_v61  ;;  %v13169_v62 = vmul.f32 %v6085_v42, %v5650_v3  ;;  %v6486_v30 = vsel %vm754_vm1, %v6485_v50, %v6141_v41  ;;  %v6488_v20 = vsel %vm754_vm1, %v6145_v46, %v6487_v5  ;;  %v7964_v19 = vpop.eup %7963  ;;  %v5512_v41 = vpop.xlane.xlu1 %5511 }
 0x4f3   : > { %v6468_v14 = vsel %vm754_vm1, %v6452_v1, %v6467_v47  ;;  %v6479_v23 = vrot.slane %v6464_v34, 4  ;;  %v13175_v12 = vperm.slane %v6486_v30, %v13928_v53  ;;  %v7966_v7 = vpop.eup %7965  ;;  %v13181_v9 = vsel %vm754_vm1, 0.0, %v6477_v8  ;;  %v6053_v42 = vpop.f32.mrf.mxu1 }
 0x4f4   : > { %v6476_v27 = vperm.slane %v6468_v14, %v13929_v61  ;;  %v6481_v24 = vrot.slane %v13167_v60, 4  ;;  %v5583_v58 = vmul.f32 %v7964_v19, %v5509_v59  ;;  %v5582_v1 = vmul.f32 %v7966_v7, %v5506_v16 }
 0x4f5   : > { %v13185_v37 = vsel %vm754_vm1, 0.0, %v6479_v23  ;;  %v6867_v39 = vsel %vm754_vm1, %v6479_v23, %v6460_v55  ;;  %v13189_v6 = vperm.slane %v6488_v20, %v13928_v53  ;;  %v6541_v56 = vrot.slane %v13169_v62, 4 }
 0x4f6   : > { %v13191_v0 = vrot.slane %v6476_v27, 4  ;;  %v13194_v17 = vperm.slane %v6867_v39, %v13928_v53  ;;  %v6872_v10 = vrot.slane %v13185_v37, 4  ;;  %v5615_v57 = vsub.f32 2.0, %v5583_v58 }
 0x4f7   : > { %v5614_v59 = vsub.f32 2.0, %v5582_v1  ;;  %v6511_v48 = vrot.slane %v13175_v12, 4  ;;  %v6823_v4 = vperm.slane %v6819_v51, %v13928_v53  ;;  %v6523_v16 = vrot.slane %v13189_v6, 4 }
 0x4f8   : > { %v6824_v52 = vsel %vm754_vm1, %v13136_v40, %v13126_v18  ;;  %v6830_v25 = vsel %vm754_vm1, %v6829_v11, %v6426_v13  ;;  %v6837_v46 = vrot.slane %v13142_v15, 4  ;;  %v13208_v28 = vsel %vm754_vm1, 0.0, %v13191_v0 }
 0x4f9   : > { %v6828_v33 = vperm.slane %v6824_v52, %v13928_v53  ;;  %v6834_v45 = vperm.slane %v6830_v25, %v13928_v53  ;;  %v5651_v50 = vmul.f32 %v13133_v29, %v5619_v35  ;;  %7967 = vrcp.f32 %v5524_v22 }
 0x4fa   : > { %v6838_v49 = vsel %vm754_vm1, %v6823_v4, %v6837_v46  ;;  %v6835_v18 = vrot.slane %v6823_v4, 4  ;;  %v5646_v40 = vmul.f32 %v7966_v7, %v5614_v59  ;;  %7969 = vrcp.f32 %v5512_v41 }
 0x4fb   : > { %v6846_v11 = vperm.slane %v6838_v49, %v13929_v61  ;;  %v6849_v55 = vrot.slane %v6828_v33, 4  ;;  %v6147_v3 = vmul.f32 %v6111_v31, %v5651_v50  ;;  %v6847_v13 = vrot.slane %v6834_v45, 4 }
 0x4fc   : > { %v6836_v5 = vsel %vm754_vm1, %v6835_v18, %v13142_v15  ;;  %v6142_v34 = vmul.f32 %v6027_v63, %v5646_v40  ;;  %v5647_v2 = vmul.f32 %v7964_v19, %v5615_v57  ;;  %v6883_v47 = vrot.slane %v13208_v28, 4 }
 0x4fd   : > { %v6850_v29 = vsel %vm754_vm1, %v6834_v45, %v6849_v55  ;;  %v6865_v35 = vrot.slane %v6846_v11, 4  ;;  %v13220_v8 = vperm.slane %v6836_v5, %v13929_v61  ;;  %v6848_v20 = vsel %vm754_vm1, %v6847_v13, %v6828_v33  ;;  %v7153_v33 = vld [vmem:[#allocation10 + $0x18] sm:$0xff] }
 0x4fe   : > { %v6858_v30 = vperm.slane %v6850_v29, %v13929_v61  ;;  %v6542_v14 = vsel %vm754_vm1, %v6541_v56, %v6142_v34  ;;  %v6543_v23 = vrot.slane %v6142_v34, 4  ;;  %v13226_v15 = vperm.slane %v6848_v20, %v13929_v61  ;;  %7194 = vmatpush.msra.mxu0 %v7153_v33 }
 0x4ff   : > { %v6861_v19 = vrot.slane %v13220_v8, 4  ;;  %v13230_v51 = vperm.slane %v6542_v14, %v13928_v53  ;;  %v6143_v7 = vmul.f32 %v6053_v42, %v5647_v2  ;;  %v7968_v27 = vpop.eup %7967  ;;  %v6497_v39 = vrot.slane %v6147_v3, 4 }
 0x500   : > { %v6866_v58 = vsel %vm754_vm1, %v6858_v30, %v6865_v35  ;;  %v6863_v1 = vrot.slane %v6858_v30, 4  ;;  %v6544_v57 = vsel %vm754_vm1, %v13169_v62, %v6543_v23  ;;  %v7970_v59 = vpop.eup %7969  ;;  %v5588_v56 = vmul.f32 %v7968_v27, %v5524_v22  ;;  %v6056_v35 = vpop.f32.mrf.mxu1 }
 0x501   : > { %7109 = vrot.lane.b32.xlu0 %v6866_v58, %s8262_s12  ;;  %v6862_v4 = vsel %vm754_vm1, %v13226_v15, %v6861_v19  ;;  %v13239_v52 = vperm.slane %v6544_v57, %v13928_v53  ;;  %v6482_v25 = vsel %vm754_vm1, 0.0, %v6481_v24  ;;  %v5584_v46 = vmul.f32 %v7970_v59, %v5512_v41  ;;  %v7151_v57 = vld [vmem:[#allocation10 + $0x8] sm:$0xff] }
 0x502   : > { %v6864_v31 = vsel %vm754_vm1, %v6863_v1, %v6846_v11  ;;  %7045 = vrot.lane.b32.xlu1 %v6862_v4, %s8264_s1  ;;  %v6498_v28 = vsel %vm754_vm1, %v6497_v39, %v6143_v7  ;;  %v6499_v62 = vrot.slane %v6143_v7, 4  ;;  %v5620_v45 = vsub.f32 2.0, %v5588_v56 }
 0x503   : > { %7077 = vrot.lane.b32.xlu2 %v6864_v31, %s8263_s14  ;;  %v6567_v22 = vrot.slane %v13230_v51, 4  ;;  %v6504_v50 = vperm.slane %v6498_v28, %v13928_v53  ;;  %v6873_v24 = vsel %vm754_vm1, %v6872_v10, %v13181_v9  ;;  %v5616_v41 = vsub.f32 2.0, %v5584_v46  ;;  %v6114_v9 = vpop.f32.mrf.mxu3  ;;  %v7150_v46 = vld [vmem:[#allocation10] sm:$0xff] }
 0x504   : > { %v6579_v49 = vrot.slane %v13239_v52, 4  ;;  %v6500_v18 = vsel %vm754_vm1, %v6147_v3, %v6499_v62  ;;  %v13255_v40 = vperm.slane %v6873_v24, %v13928_v53  ;;  %v5652_v5 = vmul.f32 %v7968_v27, %v5620_v45  ;;  %v7152_v27 = vld [vmem:[#allocation10 + $0x10] sm:$0xff] }
 0x505   : > { %v6508_v11 = vperm.slane %v6500_v18, %v13928_v53  ;;  %v6509_v55 = vrot.slane %v6504_v50, 4  ;;  %v6512_v63 = vsel %vm754_vm1, %v6504_v50, %v6511_v48  ;;  %v5648_v10 = vmul.f32 %v7970_v59, %v5616_v41  ;;  %7195 = vmatpush.msra.mxu0 %v7152_v27 }
 0x506   : > { %v6520_v37 = vperm.slane %v6512_v63, %v13929_v61  ;;  %v6878_v13 = vsel %vm754_vm1, %v13191_v0, %v13167_v60  ;;  %v6884_v3 = vsel %vm754_vm1, %v6883_v47, %v6482_v25  ;;  %v6148_v48 = vmul.f32 %v6114_v9, %v5652_v5 }
 0x507   : > { %v6510_v34 = vsel %vm754_vm1, %v6509_v55, %v13175_v12  ;;  %v6521_v2 = vrot.slane %v6508_v11, 4  ;;  %v6524_v29 = vsel %vm754_vm1, %v6508_v11, %v6523_v16  ;;  %v6144_v14 = vmul.f32 %v6056_v35, %v5648_v10  ;;  %7196 = vmatpush.msra.mxu0 %v7151_v57 }
 0x508   : > { %v6516_v42 = vperm.slane %v6510_v34, %v13929_v61  ;;  %v6532_v30 = vperm.slane %v6524_v29, %v13929_v61  ;;  %v6535_v20 = vrot.slane %v6520_v37, 4  ;;  %v6553_v0 = vrot.slane %v6148_v48, 4 }
 0x509   : > { %v6522_v60 = vsel %vm754_vm1, %v6521_v2, %v13189_v6  ;;  %v6882_v47 = vperm.slane %v6878_v13, %v13928_v53  ;;  %v6891_v12 = vrot.slane %v13194_v17, 4  ;;  %v6888_v7 = vperm.slane %v6884_v3, %v13928_v53  ;;  %7197 = vmatpush.msra.mxu0 %v7150_v46 }
 0x50a   : > { %v13278_v23 = vperm.slane %v6522_v60, %v13929_v61  ;;  %v6536_v16 = vsel %vm754_vm1, 0.0, %v6535_v20  ;;  %v6539_v19 = vrot.slane %v6532_v30, 4  ;;  %v6533_v58 = vrot.slane %v6516_v42, 4 }
 0x50b   : > { %v6921_v39 = vsel %vm754_vm1, %v6535_v20, %v6516_v42  ;;  %v6554_v1 = vsel %vm754_vm1, %v6553_v0, %v6144_v14  ;;  %v6555_v6 = vrot.slane %v6144_v14, 4  ;;  %v6926_v4 = vrot.slane %v6536_v16, 4 }
 0x50c   : > { %v6537_v59 = vrot.slane %v13278_v23, 4  ;;  %v6540_v56 = vsel %vm754_vm1, 0.0, %v6539_v19  ;;  %v6560_v25 = vperm.slane %v6554_v1, %v13928_v53  ;;  %v6892_v62 = vsel %vm754_vm1, %v13255_v40, %v6891_v12 }
 0x50d   : > { %v6937_v31 = vrot.slane %v6540_v56, 4  ;;  %v6556_v28 = vsel %vm754_vm1, %v6148_v48, %v6555_v6  ;;  %v6903_v33 = vrot.slane %v6882_v47, 4  ;;  %v6900_v41 = vperm.slane %v6892_v62, %v13929_v61 }
 0x50e   : > { %v6564_v45 = vperm.slane %v6556_v28, %v13928_v53  ;;  %v6565_v50 = vrot.slane %v6560_v25, 4  ;;  %v6568_v24 = vsel %vm754_vm1, %v6560_v25, %v6567_v22  ;;  %v6889_v55 = vrot.slane %v13255_v40, 4 }
 0x50f   : > { %v6576_v18 = vperm.slane %v6568_v24, %v13929_v61  ;;  %v6904_v11 = vsel %vm754_vm1, %v6888_v7, %v6903_v33  ;;  %v6901_v63 = vrot.slane %v6888_v7, 4  ;;  %v6919_v34 = vrot.slane %v6900_v41, 4 }
 0x510   : > { %v6566_v5 = vsel %vm754_vm1, %v6565_v50, %v13230_v51  ;;  %v6577_v37 = vrot.slane %v6564_v45, 4  ;;  %v6580_v9 = vsel %vm754_vm1, %v6564_v45, %v6579_v49  ;;  %v6912_v10 = vperm.slane %v6904_v11, %v13929_v61 }
 0x511   : > { %v6572_v22 = vperm.slane %v6566_v5, %v13929_v61  ;;  %v6588_v13 = vperm.slane %v6580_v9, %v13929_v61  ;;  %v6591_v3 = vrot.slane %v6576_v18, 4  ;;  %v6890_v29 = vsel %vm754_vm1, %v6889_v55, %v13194_v17 }
 0x512   : > { %v6578_v2 = vsel %vm754_vm1, %v6577_v37, %v13239_v52  ;;  %v6917_v40 = vrot.slane %v6912_v10, 4  ;;  %v6902_v51 = vsel %vm754_vm1, %v6901_v63, %v6882_v47  ;;  %v6534_v30 = vsel %vm754_vm1, 0.0, %v6533_v58 }
 0x513   : > { %v6584_v48 = vperm.slane %v6578_v2, %v13929_v61  ;;  %v6589_v49 = vrot.slane %v6572_v22, 4  ;;  %v6592_v35 = vsel %vm754_vm1, 0.0, %v6591_v3  ;;  %v6595_v42 = vrot.slane %v6588_v13, 4 }
 0x514   : > { %v6975_v20 = vsel %vm754_vm1, %v6591_v3, %v6572_v22  ;;  %v6920_v14 = vsel %vm754_vm1, %v6912_v10, %v6919_v34  ;;  %v6918_v52 = vsel %vm754_vm1, %v6917_v40, %v6900_v41  ;;  %v6980_v17 = vrot.slane %v6592_v35, 4 }
 0x515   : > { %v6590_v60 = vsel %vm754_vm1, 0.0, %v6589_v49  ;;  %v6593_v0 = vrot.slane %v6584_v48, 4  ;;  %7111 = vrot.lane.b32.xlu0 %v6920_v14, %s8262_s12  ;;  %7079 = vrot.lane.b32.xlu2 %v6918_v52, %s8263_s14  ;;  %v13317_v47 = vperm.slane %v6890_v29, %v13929_v61  ;;  %v6596_v12 = vsel %vm754_vm1, 0.0, %v6595_v42 }
 0x516   : > { %v13321_v16 = vperm.slane %v6902_v51, %v13929_v61  ;;  %v6538_v7 = vsel %vm754_vm1, 0.0, %v6537_v59  ;;  %v6925_v27 = vperm.slane %v6921_v39, %v13928_v53  ;;  %v6927_v1 = vsel %vm754_vm1, %v6926_v4, %v6534_v30 }
 0x517   : > { %v6915_v58 = vrot.slane %v13317_v47, 4  ;;  %v6932_v6 = vsel %vm754_vm1, %v6539_v19, %v13278_v23  ;;  %v6938_v57 = vsel %vm754_vm1, %v6937_v31, %v6538_v7  ;;  %v6931_v56 = vperm.slane %v6927_v1, %v13928_v53 }
 0x518   : > { %v6936_v25 = vperm.slane %v6932_v6, %v13928_v53  ;;  %v6942_v46 = vperm.slane %v6938_v57, %v13928_v53  ;;  %v6945_v28 = vrot.slane %v6925_v27, 4  ;;  %v6991_v62 = vrot.slane %v6596_v12, 4 }
 0x519   : > { %v6916_v39 = vsel %vm754_vm1, %v13321_v16, %v6915_v58  ;;  %v6943_v33 = vrot.slane %v6931_v56, 4  ;;  %v6594_v31 = vsel %vm754_vm1, 0.0, %v6593_v0  ;;  %v6979_v45 = vperm.slane %v6975_v20, %v13928_v53 }
 0x51a   : > { %7047 = vrot.lane.b32.xlu1 %v6916_v39, %s8264_s1  ;;  %v6946_v59 = vsel %vm754_vm1, %v6931_v56, %v6945_v28  ;;  %v6957_v4 = vrot.slane %v6936_v25, 4  ;;  %v6955_v23 = vrot.slane %v6942_v46, 4  ;;  %v6981_v50 = vsel %vm754_vm1, %v6980_v17, %v6590_v60 }
 0x51b   : > { %v6954_v19 = vperm.slane %v6946_v59, %v13929_v61  ;;  %v6944_v41 = vsel %vm754_vm1, %v6943_v33, %v6925_v27  ;;  %v6985_v11 = vperm.slane %v6981_v50, %v13928_v53  ;;  %v6986_v9 = vsel %vm754_vm1, %v6595_v42, %v6584_v48 }
 0x51c   : > { %v6958_v24 = vsel %vm754_vm1, %v6942_v46, %v6957_v4  ;;  %v6956_v18 = vsel %vm754_vm1, %v6955_v23, %v6936_v25  ;;  %v13347_v5 = vperm.slane %v6944_v41, %v13929_v61  ;;  %v6992_v10 = vsel %vm754_vm1, %v6991_v62, %v6594_v31  ;;  %v7070_v25 = vpop.permute.xlu2 %7069 }
 0x51d   : > { %v6966_v55 = vperm.slane %v6958_v24, %v13929_v61  ;;  %v6973_v63 = vrot.slane %v6954_v19, 4  ;;  %v13350_v37 = vperm.slane %v6956_v18, %v13929_v61  ;;  %v6999_v22 = vrot.slane %v6979_v45, 4 }
 0x51e   : > { %v6997_v13 = vrot.slane %v6985_v11, 4  ;;  %v6969_v2 = vrot.slane %v13347_v5, 4  ;;  %v6990_v40 = vperm.slane %v6986_v9, %v13928_v53  ;;  %v6996_v29 = vperm.slane %v6992_v10, %v13928_v53 }
 0x51f   : > { %v6974_v3 = vsel %vm754_vm1, %v6966_v55, %v6973_v63  ;;  %v6971_v34 = vrot.slane %v6966_v55, 4  ;;  %v7000_v51 = vsel %vm754_vm1, %v6985_v11, %v6999_v22  ;;  %v6643_v12 = vrot.slane %v12950_v36, 4 }
 0x520   : > { %7113 = vrot.lane.b32.xlu0 %v6974_v3, %s8262_s12  ;;  %v6998_v49 = vsel %vm754_vm1, %v6997_v13, %v6979_v45  ;;  %v6970_v35 = vsel %vm754_vm1, %v13350_v37, %v6969_v2  ;;  %v7008_v42 = vperm.slane %v7000_v51, %v13929_v61  ;;  %v7011_v30 = vrot.slane %v6990_v40, 4 }
 0x521   : > { %v6972_v48 = vsel %vm754_vm1, %v6971_v34, %v6954_v19  ;;  %v13368_v20 = vperm.slane %v6998_v49, %v13929_v61  ;;  %v7009_v53 = vrot.slane %v6996_v29, 4  ;;  %v6644_v56 = vsel %vm754_vm1, %v6643_v12, %v12946_v38 }
 0x522   : > { %7081 = vrot.lane.b32.xlu2 %v6972_v48, %s8263_s14  ;;  %7049 = vrot.lane.b32.xlu1 %v6970_v35, %s8264_s1  ;;  %v7012_v14 = vsel %vm754_vm1, %v6996_v29, %v7011_v30  ;;  %v7027_v52 = vrot.slane %v7008_v42, 4  ;;  %v6697_v62 = vrot.slane %v13028_v44, 4  ;;  %v6751_v19 = vrot.slane %v13066_v32, 4 }
 0x523   : > { %v7020_v60 = vperm.slane %v7012_v14, %v13929_v61  ;;  %v7010_v0 = vsel %vm754_vm1, %v7009_v53, %v6990_v40  ;;  %v7023_v17 = vrot.slane %v13368_v20, 4  ;;  %v6805_v18 = vrot.slane %v13088_v43, 4 }
 0x524   : > { %v13376_v7 = vperm.slane %v7010_v0, %v13929_v61  ;;  %v6698_v38 = vsel %vm754_vm1, %v6697_v62, %v13022_v21  ;;  %v7072_v4 = vpop.permute.xlu2 %7071  ;;  %v6752_v44 = vsel %vm754_vm1, %v6751_v19, %v13057_v54  ;;  %v6859_v43 = vrot.slane %v13226_v15, 4 }
 0x525   : > { %v7028_v27 = vsel %vm754_vm1, %v7020_v60, %v7027_v52  ;;  %v7025_v58 = vrot.slane %v7020_v60, 4  ;;  %v6806_v55 = vsel %vm754_vm1, %v6805_v18, %v13084_v26  ;;  %v6913_v51 = vrot.slane %v13321_v16, 4 }
 0x526   : > { %v7024_v1 = vsel %vm754_vm1, %v13376_v7, %v7023_v17  ;;  %v6860_v3 = vsel %vm754_vm1, %v6859_v43, %v13220_v8  ;;  %v6967_v53 = vrot.slane %v13350_v37, 4  ;;  %v7021_v12 = vrot.slane %v13376_v7, 4 }
 0x527   : > { %v7026_v6 = vsel %vm754_vm1, %v7025_v58, %v7008_v42  ;;  %v7102_v61 = vpop.permute.xlu1 %7101  ;;  %v6914_v15 = vsel %vm754_vm1, %v6913_v51, %v13317_v47 }
 0x528   : > { %7115 = vrot.lane.b32.xlu0 %v7028_v27, %s8262_s12  ;;  %v7038_v57 = vpop.permute.xlu0 %7037  ;;  %v6968_v16 = vsel %vm754_vm1, %v6967_v53, %v13347_v5  ;;  %v7022_v37 = vsel %vm754_vm1, %v7021_v12, %v13368_v20 }
 0x529   : > { %v7125_v36 = vsel %vm3586_vm2, %v6644_v56, %v7038_v57  ;;  %v7714_v56 = vld [vmem:[%s13495_s8] ss:$0 sm:$0xff] }
 0x52a   : > { %7083 = vrot.lane.b32.xlu2 %v7026_v6, %s8263_s14  ;;  %7051 = vrot.lane.b32.xlu1 %v7024_v1, %s8264_s1  ;;  %v7133_v46 = vsel %vm5236_vm9, %v7125_v36, %v7070_v25 }
 0x52b   : > { %v7142_v28 = vsel %vm7141_vm3, %v7133_v46, %v7102_v61 }
 0x52c   : > { %7509 = vmatmul.msk.f32.vlgmr.msra.gmra.mxu0 %vm509_vm0, %v7142_v28  ;;  %v7074_v24 = vpop.permute.xlu2 %7073 }
 0x534   : > { %v7076_v9 = vpop.permute.xlu2 %7075 }
 0x538   : > { %v7040_v39 = vpop.permute.xlu0 %7039 }
 0x539   : > { %v7126_v59 = vsel %vm3586_vm2, %v6698_v38, %v7040_v39 }
 0x53a   : > { %v7134_v23 = vsel %vm5236_vm9, %v7126_v59, %v7072_v4 }
 0x540   : > { %v7104_v33 = vpop.permute.xlu0 %7103 }
 0x541   : > { %v7143_v31 = vsel %vm7141_vm3, %v7134_v23, %v7104_v33  ;;  %v7042_v45 = vpop.permute.xlu1 %7041 }
 0x542   : > { %7510 = vmatmul.msk.f32.gmra.mxu0 %vm509_vm0, %v7143_v31  ;;  %v7127_v50 = vsel %vm3586_vm2, %v6752_v44, %v7042_v45 }
 0x543   : > { %v7135_v41 = vsel %vm5236_vm9, %v7127_v50, %v7074_v24 }
 0x548   : > { %v7106_v21 = vpop.permute.xlu0 %7105 }
 0x549   : > { %v7144_v11 = vsel %vm7141_vm3, %v7135_v41, %v7106_v21  ;;  %v7044_v32 = vpop.permute.xlu1 %7043 }
 0x54a   : > { %7511 = vmatmul.msk.f32.gmra.mxu0 %vm509_vm0, %v7144_v11  ;;  %v7128_v63 = vsel %vm3586_vm2, %v6806_v55, %v7044_v32 }
 0x54b   : > { %v7136_v10 = vsel %vm5236_vm9, %v7128_v63, %v7076_v9 }
 0x550   : > { %v7108_v54 = vpop.permute.xlu0 %7107 }
 0x551   : > { %v7145_v22 = vsel %vm7141_vm3, %v7136_v10, %v7108_v54 }
 0x552   : > { %7512 = vmatmul.msk.f32.gmra.mxu0 %vm509_vm0, %v7145_v22 }
 0x55d   : > { %v7078_v34 = vpop.permute.xlu2 %7077 }
 0x56f   : > { %v7080_v49 = vpop.permute.xlu2 %7079 }
 0x573   : > { %v7110_v26 = vpop.permute.xlu0 %7109 }
 0x574   : > { %v7046_v13 = vpop.permute.xlu1 %7045 }
 0x575   : > { %v7129_v2 = vsel %vm3586_vm2, %v6860_v3, %v7046_v13 }
 0x576   : > { %v7137_v40 = vsel %vm5236_vm9, %v7129_v2, %v7078_v34 }
 0x577   : > { %v7146_v29 = vsel %vm7141_vm3, %v7137_v40, %v7110_v26 }
 0x578   : > { %7513 = vmatmul.msk.f32.gmra.mxu0 %vm509_vm0, %v7146_v29 }
 0x57c   : > { %v7082_v14 = vpop.permute.xlu2 %7081 }
 0x584   : > { %v7084_v58 = vpop.permute.xlu2 %7083 }
 0x587   : > { %v7112_v8 = vpop.permute.xlu0 %7111 }
 0x58c   : > { %v7048_v48 = vpop.permute.xlu1 %7047 }
 0x58d   : > { %v7130_v35 = vsel %vm3586_vm2, %v6914_v15, %v7048_v48 }
 0x58e   : > { %v7138_v42 = vsel %vm5236_vm9, %v7130_v35, %v7080_v49 }
 0x58f   : > { %v7147_v30 = vsel %vm7141_vm3, %v7138_v42, %v7112_v8 }
 0x590   : > { %7514 = vmatmul.msk.f32.gmra.mxu0 %vm509_vm0, %v7147_v30 }
 0x592   : > { %v7114_v0 = vpop.permute.xlu0 %7113 }
 0x594   : > { %v7050_v52 = vpop.permute.xlu1 %7049 }
 0x595   : > { %v7131_v60 = vsel %vm3586_vm2, %v6968_v16, %v7050_v52 }
 0x596   : > { %v7139_v47 = vsel %vm5236_vm9, %v7131_v60, %v7082_v14 }
 0x597   : > { %v7148_v17 = vsel %vm7141_vm3, %v7139_v47, %v7114_v0 }
 0x598   : > { %7515 = vmatmul.msk.f32.gmra.mxu0 %vm509_vm0, %v7148_v17 }
 0x59a   : > { %v7116_v5 = vpop.permute.xlu0 %7115 }
 0x59c   : > { %v7052_v27 = vpop.permute.xlu1 %7051 }
 0x59d   : > { %v7132_v1 = vsel %vm3586_vm2, %v7022_v37, %v7052_v27 }
 0x59e   : > { %v7140_v6 = vsel %vm5236_vm9, %v7132_v1, %v7084_v58 }
 0x59f   : > { %v7149_v57 = vsel %vm7141_vm3, %v7140_v6, %v7116_v5 }
 0x5a0   : > { %7516 = vmatmul.msk.f32.gmra.mxu0 %vm509_vm0, %v7149_v57 }
 0x5a9   : > { %v7199_v25 = vpop.f32.mrf.mxu0 }
 0x5aa   : > { %v7200_v7 = vadd.f32 %v7714_v56, %v7199_v25 }
 0x5ac   : > { %7223 = vst.msk [vmem:[%s490_s21] sm:$0xff] %vm509_vm0, %v7200_v7 }
 0x5bf   : > { %v7202_v20 = vpop.f32.mrf.mxu0 }
 0x5c0   : > { %v7203_v36 = vadd.f32 %v7714_v56, %v7202_v20 }
 0x5c2   : > { %7224 = vst.msk [vmem:[%s490_s21 + $0x8] sm:$0xff] %vm509_vm0, %v7203_v36 }
 0x5c7   : > { %v7205_v61 = vpop.f32.mrf.mxu0 }
 0x5c8   : > { %v7206_v46 = vadd.f32 %v7714_v56, %v7205_v61 }
 0x5ca   : > { %7225 = vst.msk [vmem:[%s490_s21 + $0x10] sm:$0xff] %vm509_vm0, %v7206_v46 }
 0x5cf   : > { %v7208_v28 = vpop.f32.mrf.mxu0 }
 0x5d0   : > { %v7209_v62 = vadd.f32 %v7714_v56, %v7208_v28 }
 0x5d2   : > { %7226 = vst.msk [vmem:[%s490_s21 + $0x18] sm:$0xff] %vm509_vm0, %v7209_v62 }
 0x5f5   : > { %v7211_v39 = vpop.f32.mrf.mxu0 }
 0x5f6   : > { %v7212_v38 = vadd.f32 %v7714_v56, %v7211_v39 }
 0x5f8   : > { %7227 = vst.msk [vmem:[%s490_s21 + $0x20] sm:$0xff] %vm509_vm0, %v7212_v38 }
 0x60d   : > { %v7214_v59 = vpop.f32.mrf.mxu0 }
 0x60e   : > { %v7215_v4 = vadd.f32 %v7714_v56, %v7214_v59 }
 0x610   : > { %7228 = vst.msk [vmem:[%s490_s21 + $0x28] sm:$0xff] %vm509_vm0, %v7215_v4 }
 0x615   : > { %v7217_v33 = vpop.f32.mrf.mxu0 }
 0x616   : > { %v7218_v23 = vadd.f32 %v7714_v56, %v7217_v33 }
 0x618   : > { %7229 = vst.msk [vmem:[%s490_s21 + $0x30] sm:$0xff] %vm509_vm0, %v7218_v23 }
 0x61d   : > { %v7220_v19 = vpop.f32.mrf.mxu0 }
 0x61e   : > { %v7221_v31 = vadd.f32 %v7714_v56, %v7220_v19 }
 0x620   : > { %7230 = vst.msk [vmem:[%s490_s21 + $0x38] sm:$0xff] %vm509_vm0, %v7221_v31 }
 0x621   : > { %8196 = shalt.err (!%p8193_p9)
}
 0x622   : > { %s8265_s29 = smov 128  }
 0x623   : > { %7561 = dma.vmem_to_hbm [thread:$0]  (%p8427_p13), %s7246_s22, 1024, %s7248_s3, %s7232_s25, %s8265_s29, %s8265_s29, %s8264_s1  }
 0x624 PF: > { %s7262_s21 = sand.u32 1, %s8235_s17   ;;  %p13931_p10 = scmp.ge.s32.totalorder %s8247_s20, 2 }
 0x625   : > { %s7263_s30 = scalar_lea.sflag [#allocation4], %s7262_s21 }
 0x626   : > { %p7584_p11 = pnand %p13931_p10, %p8432_p4 }
 0x628   : > { %p7585_p0 = pneg %p7584_p11 }
 0x62a   : > { %8230 = dma.done.wait (%p7585_p0), %s7263_s30, 1024  }
 0x62b   : > { %8232 = vsyncadd (%p7585_p0), %s7263_s30, 4294966272  ;;  %p27_p2 = scmp.ge.s32.totalorder %s8407_s16, 4   ;;  %s13932_s17 = smov %s8239_s18 }
 0x62c   : > { %s13933_s18 = smov %s8243_s19  ;;  %s13934_s19 = smov %s8419_s13 }
 0x62d   : > { %s13935_s20 = smov %s8407_s16  ;;  %29 = sbr.rel (!%p27_p2) target bundleno = 14 (0xe), region = 129 }
 0x632   :  { %7269 = vsyncpa [#allocation3], 1 }
 0x633   :  { %7271 = vsyncpa [#allocation3 + $0x1], 1 }
 0x634   :  { %7272 = vsyncpa [#allocation6], 1 }
 0x635   :  { %7273 = vsyncpa [#allocation9], 1 }
 0x636   :  { %7274 = vsyncpa [#allocation12], 1 }
 0x637   :  { %7275 = vsyncpa [#allocation4], 1 }
 0x638   :  { %7277 = vsyncpa [#allocation4 + $0x1], 1 }

</bundles_post_ra>
